<compile_context>
chip_gen: v7x
topology: tpu7x:2x2x1
jax: 0.10.0
libtpu: 0.0.40
codegen_flags: <defaults>
</compile_context>

<pallas_src>
import numpy as np
import jax
import jax.numpy as jnp
from jax import lax
from jax.experimental import pallas as pl
from jax.experimental.pallas import tpu as pltpu


def _vmem_limit_bytes():
    cap = 64 * 1024 * 1024
    try:
        info = pltpu.get_tpu_info()
        cap = int(getattr(info, "vmem_capacity_bytes", cap))
    except Exception:
        pass
    return min(int(cap * 3 // 4), 64 * 1024 * 1024)


def _shift_matrices(h, w, k):
    """0/1 shift matrices S[kh, kw] (HW, HW): S[q_in, p_out] = 1 when in-plane tap
    (kh, kw) of a k x k cross-correlation maps input position q_in to output p_out."""
    r = k // 2
    hw = h * w
    s = np.zeros((k, k, hw, hw), np.float32)
    for kh in range(k):
        for kw in range(k):
            dh, dw = kh - r, kw - r
            for h0 in range(h):
                hh = h0 + dh
                if hh < 0 or hh >= h:
                    continue
                for w0 in range(w):
                    ww = w0 + dw
                    if ww < 0 or ww >= w:
                        continue
                    s[kh, kw, hh * w + ww, h0 * w + w0] = 1.0
    return s


# ----------------------------------------------------------------------------
# The fused per-sample kernel (grid over N).
# ----------------------------------------------------------------------------
def _make_hsiam_kernel(ch, c_hid, d, hw, hwp):
    dhw = d * hwp
    f32 = jnp.float32

    def kernel(x_ref, pavg_ref, eexp_ref, wspec_ref, wfc_ref, wf1_ref, wf2_ref,
               bdw_ref, bc2_ref, bc3_ref, wbig_ref, o_ref,
               ppad, a_pad, m_pad, y1_pad, y2_pad, pgf):
        x2 = x_ref[0]                                          # (C, D*HWp) lane-dense

        # -- zero depth / lane halos of the scratches every step (no carried state,
        #    so the "parallel" grid axis stays safe on multi-TC chips) --
        zrow = jnp.zeros((2, hwp), f32)
        for buf in (a_pad, m_pad, y1_pad, y2_pad):
            buf[0:2, :] = zrow
            buf[2 + d:4 + d, :] = zrow
        zcol = jnp.zeros((ch, 2), f32)
        ppad[:, 0:2] = zcol
        ppad[:, 2 + d:4 + d] = zcol

        # -- multi-scale spectral gate: pool over H*W, 5-tap conv along D, fc --
        spool = jnp.dot(x2, pavg_ref[...], preferred_element_type=f32)   # (C, D)
        ppad[:, 2:2 + d] = spool
        ppad_v = ppad[...]                                               # (C, D+4)
        yt = jnp.zeros((3 * c_hid, d), f32)
        for k in range(5):
            yt = yt + jnp.dot(wspec_ref[k], ppad_v[:, k:k + d],
                              preferred_element_type=f32)
        yt = jnp.maximum(yt, 0.0)
        sg = jax.nn.sigmoid(jnp.dot(wfc_ref[...], yt,
                                    preferred_element_type=f32))         # (C, D)
        sg_wide = jnp.dot(sg, eexp_ref[...],
                          preferred_element_type=f32)                    # (C, D*HWp)

        # -- enhanced channel attention gate --
        gavg = jnp.mean(spool, axis=1, keepdims=True)                    # (C, 1)
        if hwp == hw:
            xm = x2
        else:
            q = lax.broadcasted_iota(jnp.int32, (1, dhw), 1) % hwp
            xm = jnp.where(q < hw, x2, -jnp.inf)
        gmax = jnp.max(xm, axis=1, keepdims=True)                        # (C, 1)
        g2 = jnp.concatenate([gavg, gmax], axis=1)                       # (C, 2)
        h2 = jnp.maximum(jnp.dot(wf1_ref[...], g2, preferred_element_type=f32), 0.0)
        s2 = jax.nn.sigmoid(jnp.dot(wf2_ref[...], h2, preferred_element_type=f32))
        cg = s2[:, 0:1] + s2[:, 1:2]                                     # (C, 1)

        # -- multi-scale spatial attention: banded MXU stencils on (D, HWp) --
        cmean = jnp.mean(x2, axis=0, keepdims=True)                      # (1, D*HWp)
        cmax = jnp.max(x2, axis=0, keepdims=True)                        # (1, D*HWp)
        for d0 in range(d):                                              # depth-pad
            a_pad[2 + d0:3 + d0, :] = cmean[:, d0 * hwp:(d0 + 1) * hwp]
            m_pad[2 + d0:3 + d0, :] = cmax[:, d0 * hwp:(d0 + 1) * hwp]
        a_v = a_pad[...]
        m_v = m_pad[...]
        y1 = jnp.zeros((d, hwp), f32)
        for ci, src in ((0, a_v), (1, m_v)):                             # dwsep 3x3x3
            for kd in range(3):
                y1 = y1 + jnp.dot(src[1 + kd:1 + kd + d, :], bdw_ref[ci * 3 + kd],
                                  preferred_element_type=f32)
        y1_pad[2:2 + d, :] = y1
        y1_v = y1_pad[...]
        y2 = jnp.zeros((d, hwp), f32)
        for kd in range(3):                                              # conv 3x3x3
            y2 = y2 + jnp.dot(y1_v[1 + kd:1 + kd + d, :], bc2_ref[kd],
                              preferred_element_type=f32)
        y2_pad[2:2 + d, :] = y2
        y2_v = y2_pad[...]
        y3 = jnp.zeros((d, hwp), f32)
        for kd in range(5):                                              # conv 5x5x5
            y3 = y3 + jnp.dot(y2_v[kd:kd + d, :], bc3_ref[kd],
                              preferred_element_type=f32)
        spat = y1 + y2 + y3                                              # (D, HWp)
        for d0 in range(d):                                              # -> (1, D*HWp)
            pgf[:, d0 * hwp:(d0 + 1) * hwp] = spat[d0:d0 + 1, :]
        pg = jax.nn.sigmoid(pgf[...])                                    # (1, D*HWp)

        # -- fused gating + 1x1x1 channel mixing: ONE wide MXU matmul --
        xs = x2 * sg_wide                                # spectral-gated x (C, D*HWp)
        xc = x2 * cg                                     # channel-gated x  (C, D*HWp)
        xstack = jnp.concatenate([xs, xc], axis=0)       # (2C, D*HWp)
        y = jnp.dot(wbig_ref[...], xstack, preferred_element_type=f32)   # (3C, D*HWp)
        o_ref[0] = y[0:ch] + pg * y[ch:2 * ch] + y[2 * ch:3 * ch]

    return kernel


# ----------------------------------------------------------------------------
# Wrapper: layout plumbing, weight folding, band-matrix construction, one call.
# ----------------------------------------------------------------------------
def hsiam_forward(x, params, a, b, c):
    f32 = jnp.float32
    x = x.astype(f32)
    n, ch, d, h, w = x.shape
    hw = h * w
    hwp = ((hw + 127) // 128) * 128           # lane-dense padding of the H*W axis
    dhw = d * hwp
    c_hid = params['spec_conv1'].shape[0]     # in_channels // 2
    c_red = params['chan_fc1'].shape[0]       # in_channels // 16

    # ---- input layout (N, C, D*HWp); pad is a no-op when hw is already 128-aligned ----
    x4 = x.reshape(n, ch, d, hw)
    if hwp != hw:
        x4 = jnp.pad(x4, ((0, 0), (0, 0), (0, 0), (0, hwp - hw)))
    x2 = x4.reshape(n, ch, dhw)

    # ---- pooling / gate-expansion constants ----
    pavg_np = np.zeros((dhw, d), np.float32)        # mean over H*W per depth plane
    eexp_np = np.zeros((d, dhw), np.float32)        # expand per-(c,d) gate over H*W
    for d0 in range(d):
        pavg_np[d0 * hwp:d0 * hwp + hw, d0] = 1.0 / hw
        eexp_np[d0, d0 * hwp:(d0 + 1) * hwp] = 1.0
    pavg = jnp.asarray(pavg_np)
    eexp = jnp.asarray(eexp_np)

    # ---- spectral 5-tap depth-conv weights, per tap, transposed: (5, 3Ch, C) ----
    wspec = jnp.zeros((5, 3 * c_hid, ch), f32)
    wspec = wspec.at[2, 0:c_hid, :].set(params['spec_conv1'][:, :, 0, 0, 0])
    for kd in range(3):
        wspec = wspec.at[kd + 1, c_hid:2 * c_hid, :].set(
            params['spec_conv3'][:, :, kd, 1, 1])
    for kd in range(5):
        wspec = wspec.at[kd, 2 * c_hid:3 * c_hid, :].set(
            params['spec_conv5'][:, :, kd, 2, 2])
    wfc = params['spec_fc'][:, :, 0, 0, 0].astype(f32)                   # (C, 3Ch)
    wf1 = params['chan_fc1'][:, :, 0, 0, 0].astype(f32)                  # (Cr, C)
    wf2 = params['chan_fc2'][:, :, 0, 0, 0].astype(f32)                  # (C, Cr)

    # ---- banded (HWp, HWp) matrices for the three spatial convs (MXU stencils) ----
    # TODO(synk): for very large H*W (band matrices of several MiB each) fall back
    #             to a roll+mask VPU stencil / multi-pass structure instead.
    s3 = jnp.asarray(_shift_matrices(h, w, 3))                           # (3,3,HW,HW)
    s5 = jnp.asarray(_shift_matrices(h, w, 5))                           # (5,5,HW,HW)
    dwc = params['spat_dw'][:, 0].astype(f32)                            # (2,3,3,3)
    pwc = params['spat_pw'][0, :, 0, 0, 0].astype(f32)                   # (2,)
    eff = pwc[:, None, None, None] * dwc                                 # pw folded in
    band_dw = jnp.einsum('cdhw,hwpq->cdpq', eff, s3).reshape(6, hw, hw)
    band_c2 = jnp.einsum('dhw,hwpq->dpq', params['spat_conv2'][0, 0].astype(f32), s3)
    band_c3 = jnp.einsum('dhw,hwpq->dpq', params['spat_conv3'][0, 0].astype(f32), s5)
    if hwp != hw:
        padb = ((0, 0), (0, hwp - hw), (0, hwp - hw))
        band_dw = jnp.pad(band_dw, padb)
        band_c2 = jnp.pad(band_c2, padb)
        band_c3 = jnp.pad(band_c3, padb)

    # ---- final 1x1x1 mixing weights stacked into one (3C, 2C) matmul weight ----
    zcc = jnp.zeros((ch, ch), f32)
    wbig = jnp.concatenate([
        jnp.concatenate([a * params['fc_spectral'][:, :, 0, 0, 0], zcc], axis=1),
        jnp.concatenate([b * params['fc_spatial'][:, :, 0, 0, 0], zcc], axis=1),
        jnp.concatenate([zcc, c * params['fc_channel'][:, :, 0, 0, 0]], axis=1),
    ], axis=0).astype(f32)                                               # (3C, 2C)

    # TODO(synk): whole-sample fusion assumes one (C, D, H*W) sample (plus the band
    #             matrices) fits in VMEM; fall back to a multi-pass structure if not.
    cidx2 = lambda i: (0, 0)
    cidx3 = lambda i: (0, 0, 0)
    out2 = pl.pallas_call(
        _make_hsiam_kernel(ch, c_hid, d, hw, hwp),
        out_shape=jax.ShapeDtypeStruct((n, ch, dhw), f32),
        grid=(n,),
        in_specs=[
            pl.BlockSpec((1, ch, dhw), lambda i: (i, 0, 0)),      # x (read once)
            pl.BlockSpec((dhw, d), cidx2),                        # pooling matrix
            pl.BlockSpec((d, dhw), cidx2),                        # gate expander
            pl.BlockSpec((5, 3 * c_hid, ch), cidx3),              # spectral taps
            pl.BlockSpec((ch, 3 * c_hid), cidx2),                 # spectral fc
            pl.BlockSpec((c_red, ch), cidx2),                     # channel fc1
            pl.BlockSpec((ch, c_red), cidx2),                     # channel fc2
            pl.BlockSpec((6, hwp, hwp), cidx3),                   # dwsep band mats
            pl.BlockSpec((3, hwp, hwp), cidx3),                   # conv2 band mats
            pl.BlockSpec((5, hwp, hwp), cidx3),                   # conv3 band mats
            pl.BlockSpec((3 * ch, 2 * ch), cidx2),                # stacked 1x1x1 w
        ],
        out_specs=pl.BlockSpec((1, ch, dhw), lambda i: (i, 0, 0)),
        scratch_shapes=[
            pltpu.VMEM((ch, d + 4), f32),        # ppad   (spectral depth halo)
            pltpu.VMEM((d + 4, hwp), f32),       # a_pad  (channel-mean, depth halo)
            pltpu.VMEM((d + 4, hwp), f32),       # m_pad  (channel-max,  depth halo)
            pltpu.VMEM((d + 4, hwp), f32),       # y1_pad
            pltpu.VMEM((d + 4, hwp), f32),       # y2_pad
            pltpu.VMEM((1, dhw), f32),           # flattened spatial-gate logits
        ],
        compiler_params=pltpu.CompilerParams(
            dimension_semantics=("parallel",),
            vmem_limit_bytes=_vmem_limit_bytes()),
    )(x2, pavg, eexp, wspec, wfc, wf1, wf2, band_dw, band_c2, band_c3, wbig)

    out = out2.reshape(n, ch, d, hwp)
    if hwp != hw:
        out = out[:, :, :, :hw]
    return out.reshape(n, ch, d, h, w)


# ----------------------------------------------------------------------------
# Deterministic parameter initialization (shapes exactly as in the nn.Module).
# ----------------------------------------------------------------------------
def init_params(key, c, red_spec=2, red_chan=16, scale=0.1):
    c_hid = c // red_spec
    c_red = c // red_chan
    keys = jax.random.split(key, 13)

    def wgt(k, shape):
        return (scale * jax.random.normal(k, shape)).astype(jnp.float32)

    return {
        'spec_conv1': wgt(keys[0], (c_hid, c, 1, 1, 1)),
        'spec_conv3': wgt(keys[1], (c_hid, c, 3, 3, 3)),
        'spec_conv5': wgt(keys[2], (c_hid, c, 5, 5, 5)),
        'spec_fc':    wgt(keys[3], (c, 3 * c_hid, 1, 1, 1)),
        'spat_dw':    wgt(keys[4], (2, 1, 3, 3, 3)),
        'spat_pw':    wgt(keys[5], (1, 2, 1, 1, 1)),
        'spat_conv2': wgt(keys[6], (1, 1, 3, 3, 3)),
        'spat_conv3': wgt(keys[7], (1, 1, 5, 5, 5)),
        'chan_fc1':   wgt(keys[8], (c_red, c, 1, 1, 1)),
        'chan_fc2':   wgt(keys[9], (c, c_red, 1, 1, 1)),
        'fc_spectral': wgt(keys[10], (c, c, 1, 1, 1)),
        'fc_spatial':  wgt(keys[11], (c, c, 1, 1, 1)),
        'fc_channel':  wgt(keys[12], (c, c, 1, 1, 1)),
    }


# ----------------------------------------------------------------------------
# Pure-JAX reference (mirrors the PyTorch graph with lax 3-D convolutions).
# ----------------------------------------------------------------------------
def _conv3d(x, w, pad, groups=1):
    return lax.conv_general_dilated(
        x, w, window_strides=(1, 1, 1), padding=[(pad, pad)] * 3,
        dimension_numbers=('NCDHW', 'OIDHW', 'NCDHW'),
        feature_group_count=groups, precision=lax.Precision.HIGHEST)


def reference_forward(x, params, a, b, c):
    avg = jnp.mean(x, axis=(3, 4), keepdims=True)
    y1 = _conv3d(avg, params['spec_conv1'], 0)
    y3 = _conv3d(avg, params['spec_conv3'], 1)
    y5 = _conv3d(avg, params['spec_conv5'], 2)
    y = jax.nn.relu(jnp.concatenate([y1, y3, y5], axis=1))
    spec_att = jax.nn.sigmoid(_conv3d(y, params['spec_fc'], 0)) * x

    am = jnp.mean(x, axis=1, keepdims=True)
    mx = jnp.max(x, axis=1, keepdims=True)
    cat = jnp.concatenate([am, mx], axis=1)
    dws = _conv3d(cat, params['spat_dw'], 1, groups=2)
    s1 = _conv3d(dws, params['spat_pw'], 0)
    s2 = _conv3d(s1, params['spat_conv2'], 1)
    s3 = _conv3d(s2, params['spat_conv3'], 2)
    spat_att = jax.nn.sigmoid(s1 + s2 + s3) * spec_att

    gavg = jnp.mean(x, axis=(2, 3, 4), keepdims=True)
    gmax = jnp.max(x, axis=(2, 3, 4), keepdims=True)

    def fc(v):
        return jax.nn.sigmoid(
            _conv3d(jax.nn.relu(_conv3d(v, params['chan_fc1'], 0)),
                    params['chan_fc2'], 0))

    chan_att = (fc(gavg) + fc(gmax)) * x

    return (a * _conv3d(spec_att, params['fc_spectral'], 0)
            + b * _conv3d(spat_att, params['fc_spatial'], 0)
            + c * _conv3d(chan_att, params['fc_channel'], 0))


if __name__ == "__main__":
    def _check(n, c_ch, d, h, w, key):
        a, b, c = 0.5, 0.3, 0.2
        kx, kp = jax.random.split(key)
        x = jax.random.normal(kx, (n, c_ch, d, h, w), dtype=jnp.float32)
        params = init_params(kp, c_ch)
        fwd = jax.jit(lambda xx, pp: hsiam_forward(xx, pp, a, b, c))
        out = jax.block_until_ready(fwd(x, params))
        ref = jax.block_until_ready(reference_forward(x, params, a, b, c))
        err = float(jnp.max(jnp.abs(out - ref)))
        assert out.shape == x.shape
        assert err < 5e-3, f"max abs error vs reference: {err} at {(n, c_ch, d, h, w)}"

    key = jax.random.PRNGKey(0)
    k1, k2 = jax.random.split(key)
    _check(2, 32, 8, 16, 16, k1)      # lane-dense main path (H*W % 128 == 0)
    _check(1, 32, 7, 10, 10, k2)      # padded path (H*W = 100 -> 128) + odd depth
    print("KERNEL_OK")
</pallas_src>

<mosaic_0001>
module attributes {stable_mosaic.version = 11 : i64} {
  func.func @kernel(%arg0: i32, %arg1: memref<1x32x2048xf32, #tpu.memory_space<vmem>>, %arg2: memref<2048x8xf32, #tpu.memory_space<vmem>>, %arg3: memref<8x2048xf32, #tpu.memory_space<vmem>>, %arg4: memref<5x48x32xf32, #tpu.memory_space<vmem>>, %arg5: memref<32x48xf32, #tpu.memory_space<vmem>>, %arg6: memref<2x32xf32, #tpu.memory_space<vmem>>, %arg7: memref<32x2xf32, #tpu.memory_space<vmem>>, %arg8: memref<6x256x256xf32, #tpu.memory_space<vmem>>, %arg9: memref<3x256x256xf32, #tpu.memory_space<vmem>>, %arg10: memref<5x256x256xf32, #tpu.memory_space<vmem>>, %arg11: memref<96x64xf32, #tpu.memory_space<vmem>>, %arg12: memref<1x32x2048xf32, #tpu.memory_space<vmem>>, %arg13: memref<32x12xf32, #tpu.memory_space<vmem>>, %arg14: memref<12x256xf32, #tpu.memory_space<vmem>>, %arg15: memref<12x256xf32, #tpu.memory_space<vmem>>, %arg16: memref<12x256xf32, #tpu.memory_space<vmem>>, %arg17: memref<12x256xf32, #tpu.memory_space<vmem>>, %arg18: memref<1x2048xf32, #tpu.memory_space<vmem>>) attributes {dimension_semantics = [#tpu.dimension_semantics<parallel>], iteration_bounds = array<i64: 2>, scalar_prefetch = 0 : i64, scratch_operands = 6 : i64, tpu.core_type = #tpu.core_type<tc>, window_params = [{transform_indices = @transform_0, window_bounds = array<i64: 1, 32, 2048>}, {pipeline_mode = #tpu.pipeline_mode<synchronous>, transform_indices = @transform_1, window_bounds = array<i64: 2048, 8>}, {pipeline_mode = #tpu.pipeline_mode<synchronous>, transform_indices = @transform_2, window_bounds = array<i64: 8, 2048>}, {pipeline_mode = #tpu.pipeline_mode<synchronous>, transform_indices = @transform_3, window_bounds = array<i64: 5, 48, 32>}, {pipeline_mode = #tpu.pipeline_mode<synchronous>, transform_indices = @transform_4, window_bounds = array<i64: 32, 48>}, {pipeline_mode = #tpu.pipeline_mode<synchronous>, transform_indices = @transform_5, window_bounds = array<i64: 2, 32>}, {pipeline_mode = #tpu.pipeline_mode<synchronous>, transform_indices = @transform_6, window_bounds = array<i64: 32, 2>}, {pipeline_mode = #tpu.pipeline_mode<synchronous>, transform_indices = @transform_7, window_bounds = array<i64: 6, 256, 256>}, {pipeline_mode = #tpu.pipeline_mode<synchronous>, transform_indices = @transform_8, window_bounds = array<i64: 3, 256, 256>}, {pipeline_mode = #tpu.pipeline_mode<synchronous>, transform_indices = @transform_9, window_bounds = array<i64: 5, 256, 256>}, {pipeline_mode = #tpu.pipeline_mode<synchronous>, transform_indices = @transform_10, window_bounds = array<i64: 96, 64>}, {transform_indices = @transform_11, window_bounds = array<i64: 1, 32, 2048>}]} {
    %c0 = arith.constant 0 : index
    %c0_0 = arith.constant 0 : index
    %c0_1 = arith.constant 0 : index
    %0 = vector.load %arg1[%c0, %c0_0, %c0_1] : memref<1x32x2048xf32, #tpu.memory_space<vmem>>, vector<1x32x2048xf32>
    %1 = vector.shape_cast %0 : vector<1x32x2048xf32> to vector<32x2048xf32>
    %cst = arith.constant 0.000000e+00 : f32
    %2 = vector.broadcast %cst : f32 to vector<2x256xf32>
    %c0_2 = arith.constant 0 : index
    %c0_3 = arith.constant 0 : index
    %3 = vector.load %arg14[%c0_2, %c0_3] : memref<12x256xf32, #tpu.memory_space<vmem>>, vector<2x256xf32>
    tpu.vector_store %arg14[%c0_2, %c0_3], %2 {strides = array<i32>} : memref<12x256xf32, #tpu.memory_space<vmem>>, vector<2x256xf32>,
    %c10 = arith.constant 10 : index
    %c0_4 = arith.constant 0 : index
    %4 = vector.load %arg14[%c10, %c0_4] : memref<12x256xf32, #tpu.memory_space<vmem>>, vector<2x256xf32>
    tpu.vector_store %arg14[%c10, %c0_4], %2 {strides = array<i32>} : memref<12x256xf32, #tpu.memory_space<vmem>>, vector<2x256xf32>,
    %c0_5 = arith.constant 0 : index
    %c0_6 = arith.constant 0 : index
    %5 = vector.load %arg15[%c0_5, %c0_6] : memref<12x256xf32, #tpu.memory_space<vmem>>, vector<2x256xf32>
    tpu.vector_store %arg15[%c0_5, %c0_6], %2 {strides = array<i32>} : memref<12x256xf32, #tpu.memory_space<vmem>>, vector<2x256xf32>,
    %c10_7 = arith.constant 10 : index
    %c0_8 = arith.constant 0 : index
    %6 = vector.load %arg15[%c10_7, %c0_8] : memref<12x256xf32, #tpu.memory_space<vmem>>, vector<2x256xf32>
    tpu.vector_store %arg15[%c10_7, %c0_8], %2 {strides = array<i32>} : memref<12x256xf32, #tpu.memory_space<vmem>>, vector<2x256xf32>,
    %c0_9 = arith.constant 0 : index
    %c0_10 = arith.constant 0 : index
    %7 = vector.load %arg16[%c0_9, %c0_10] : memref<12x256xf32, #tpu.memory_space<vmem>>, vector<2x256xf32>
    tpu.vector_store %arg16[%c0_9, %c0_10], %2 {strides = array<i32>} : memref<12x256xf32, #tpu.memory_space<vmem>>, vector<2x256xf32>,
    %c10_11 = arith.constant 10 : index
    %c0_12 = arith.constant 0 : index
    %8 = vector.load %arg16[%c10_11, %c0_12] : memref<12x256xf32, #tpu.memory_space<vmem>>, vector<2x256xf32>
    tpu.vector_store %arg16[%c10_11, %c0_12], %2 {strides = array<i32>} : memref<12x256xf32, #tpu.memory_space<vmem>>, vector<2x256xf32>,
    %c0_13 = arith.constant 0 : index
    %c0_14 = arith.constant 0 : index
    %9 = vector.load %arg17[%c0_13, %c0_14] : memref<12x256xf32, #tpu.memory_space<vmem>>, vector<2x256xf32>
    tpu.vector_store %arg17[%c0_13, %c0_14], %2 {strides = array<i32>} : memref<12x256xf32, #tpu.memory_space<vmem>>, vector<2x256xf32>,
    %c10_15 = arith.constant 10 : index
    %c0_16 = arith.constant 0 : index
    %10 = vector.load %arg17[%c10_15, %c0_16] : memref<12x256xf32, #tpu.memory_space<vmem>>, vector<2x256xf32>
    tpu.vector_store %arg17[%c10_15, %c0_16], %2 {strides = array<i32>} : memref<12x256xf32, #tpu.memory_space<vmem>>, vector<2x256xf32>,
    %cst_17 = arith.constant 0.000000e+00 : f32
    %11 = vector.broadcast %cst_17 : f32 to vector<32x2xf32>
    %c0_18 = arith.constant 0 : index
    %c0_19 = arith.constant 0 : index
    %12 = vector.load %arg13[%c0_18, %c0_19] : memref<32x12xf32, #tpu.memory_space<vmem>>, vector<32x2xf32>
    tpu.vector_store %arg13[%c0_18, %c0_19], %11 {strides = array<i32>} : memref<32x12xf32, #tpu.memory_space<vmem>>, vector<32x2xf32>,
    %c0_20 = arith.constant 0 : index
    %c10_21 = arith.constant 10 : index
    %13 = vector.load %arg13[%c0_20, %c10_21] : memref<32x12xf32, #tpu.memory_space<vmem>>, vector<32x2xf32>
    tpu.vector_store %arg13[%c0_20, %c10_21], %11 {strides = array<i32>} : memref<32x12xf32, #tpu.memory_space<vmem>>, vector<32x2xf32>,
    %c0_22 = arith.constant 0 : index
    %c0_23 = arith.constant 0 : index
    %14 = vector.load %arg2[%c0_22, %c0_23] : memref<2048x8xf32, #tpu.memory_space<vmem>>, vector<2048x8xf32>
    %cst_24 = arith.constant dense<0.000000e+00> : vector<32x8xf32>
    %15 = tpu.matmul %1, %14, %cst_24 {dimension_numbers = #tpu.dot_dimension_numbers<[1], [0], [0], [1], [0, 0, 1, 1], [], []>} : vector<32x2048xf32>, vector<2048x8xf32>, vector<32x8xf32> -> vector<32x8xf32>
    %c0_25 = arith.constant 0 : index
    %c2 = arith.constant 2 : index
    %16 = vector.load %arg13[%c0_25, %c2] : memref<32x12xf32, #tpu.memory_space<vmem>>, vector<32x8xf32>
    tpu.vector_store %arg13[%c0_25, %c2], %15 {strides = array<i32>} : memref<32x12xf32, #tpu.memory_space<vmem>>, vector<32x8xf32>,
    %c0_26 = arith.constant 0 : index
    %c0_27 = arith.constant 0 : index
    %17 = vector.load %arg13[%c0_26, %c0_27] : memref<32x12xf32, #tpu.memory_space<vmem>>, vector<32x12xf32>
    %cst_28 = arith.constant 0.000000e+00 : f32
    %18 = vector.broadcast %cst_28 : f32 to vector<48x8xf32>
    %c0_29 = arith.constant 0 : index
    %c0_30 = arith.constant 0 : index
    %c0_31 = arith.constant 0 : index
    %19 = vector.load %arg4[%c0_29, %c0_30, %c0_31] : memref<5x48x32xf32, #tpu.memory_space<vmem>>, vector<1x48x32xf32>
    %20 = vector.shape_cast %19 : vector<1x48x32xf32> to vector<48x32xf32>
    %21 = vector.extract_strided_slice %17 {offsets = [0, 0], sizes = [32, 8], strides = [1, 1]} : vector<32x12xf32> to vector<32x8xf32>
    %cst_32 = arith.constant dense<0.000000e+00> : vector<48x8xf32>
    %22 = tpu.matmul %20, %21, %cst_32 {dimension_numbers = #tpu.dot_dimension_numbers<[1], [0], [0], [1], [0, 0, 1, 1], [], []>} : vector<48x32xf32>, vector<32x8xf32>, vector<48x8xf32> -> vector<48x8xf32>
    %23 = arith.addf %18, %22 : vector<48x8xf32>
    %c1 = arith.constant 1 : index
    %c0_33 = arith.constant 0 : index
    %c0_34 = arith.constant 0 : index
    %24 = vector.load %arg4[%c1, %c0_33, %c0_34] : memref<5x48x32xf32, #tpu.memory_space<vmem>>, vector<1x48x32xf32>
    %25 = vector.shape_cast %24 : vector<1x48x32xf32> to vector<48x32xf32>
    %26 = vector.extract_strided_slice %17 {offsets = [0, 1], sizes = [32, 8], strides = [1, 1]} : vector<32x12xf32> to vector<32x8xf32>
    %cst_35 = arith.constant dense<0.000000e+00> : vector<48x8xf32>
    %27 = tpu.matmul %25, %26, %cst_35 {dimension_numbers = #tpu.dot_dimension_numbers<[1], [0], [0], [1], [0, 0, 1, 1], [], []>} : vector<48x32xf32>, vector<32x8xf32>, vector<48x8xf32> -> vector<48x8xf32>
    %28 = arith.addf %23, %27 : vector<48x8xf32>
    %c2_36 = arith.constant 2 : index
    %c0_37 = arith.constant 0 : index
    %c0_38 = arith.constant 0 : index
    %29 = vector.load %arg4[%c2_36, %c0_37, %c0_38] : memref<5x48x32xf32, #tpu.memory_space<vmem>>, vector<1x48x32xf32>
    %30 = vector.shape_cast %29 : vector<1x48x32xf32> to vector<48x32xf32>
    %31 = vector.extract_strided_slice %17 {offsets = [0, 2], sizes = [32, 8], strides = [1, 1]} : vector<32x12xf32> to vector<32x8xf32>
    %cst_39 = arith.constant dense<0.000000e+00> : vector<48x8xf32>
    %32 = tpu.matmul %30, %31, %cst_39 {dimension_numbers = #tpu.dot_dimension_numbers<[1], [0], [0], [1], [0, 0, 1, 1], [], []>} : vector<48x32xf32>, vector<32x8xf32>, vector<48x8xf32> -> vector<48x8xf32>
    %33 = arith.addf %28, %32 : vector<48x8xf32>
    %c3 = arith.constant 3 : index
    %c0_40 = arith.constant 0 : index
    %c0_41 = arith.constant 0 : index
    %34 = vector.load %arg4[%c3, %c0_40, %c0_41] : memref<5x48x32xf32, #tpu.memory_space<vmem>>, vector<1x48x32xf32>
    %35 = vector.shape_cast %34 : vector<1x48x32xf32> to vector<48x32xf32>
    %36 = vector.extract_strided_slice %17 {offsets = [0, 3], sizes = [32, 8], strides = [1, 1]} : vector<32x12xf32> to vector<32x8xf32>
    %cst_42 = arith.constant dense<0.000000e+00> : vector<48x8xf32>
    %37 = tpu.matmul %35, %36, %cst_42 {dimension_numbers = #tpu.dot_dimension_numbers<[1], [0], [0], [1], [0, 0, 1, 1], [], []>} : vector<48x32xf32>, vector<32x8xf32>, vector<48x8xf32> -> vector<48x8xf32>
    %38 = arith.addf %33, %37 : vector<48x8xf32>
    %c4 = arith.constant 4 : index
    %c0_43 = arith.constant 0 : index
    %c0_44 = arith.constant 0 : index
    %39 = vector.load %arg4[%c4, %c0_43, %c0_44] : memref<5x48x32xf32, #tpu.memory_space<vmem>>, vector<1x48x32xf32>
    %40 = vector.shape_cast %39 : vector<1x48x32xf32> to vector<48x32xf32>
    %41 = vector.extract_strided_slice %17 {offsets = [0, 4], sizes = [32, 8], strides = [1, 1]} : vector<32x12xf32> to vector<32x8xf32>
    %cst_45 = arith.constant dense<0.000000e+00> : vector<48x8xf32>
    %42 = tpu.matmul %40, %41, %cst_45 {dimension_numbers = #tpu.dot_dimension_numbers<[1], [0], [0], [1], [0, 0, 1, 1], [], []>} : vector<48x32xf32>, vector<32x8xf32>, vector<48x8xf32> -> vector<48x8xf32>
    %43 = arith.addf %38, %42 : vector<48x8xf32>
    %cst_46 = arith.constant 0.000000e+00 : f32
    %44 = vector.broadcast %cst_46 : f32 to vector<48x8xf32>
    %45 = arith.maximumf %43, %44 : vector<48x8xf32>
    %c0_47 = arith.constant 0 : index
    %c0_48 = arith.constant 0 : index
    %46 = vector.load %arg5[%c0_47, %c0_48] : memref<32x48xf32, #tpu.memory_space<vmem>>, vector<32x48xf32>
    %cst_49 = arith.constant dense<0.000000e+00> : vector<32x8xf32>
    %47 = tpu.matmul %46, %45, %cst_49 {dimension_numbers = #tpu.dot_dimension_numbers<[1], [0], [0], [1], [0, 0, 1, 1], [], []>} : vector<32x48xf32>, vector<48x8xf32>, vector<32x8xf32> -> vector<32x8xf32>
    %48 = arith.negf %47 : vector<32x8xf32>
    %49 = math.exp %48 : vector<32x8xf32>
    %cst_50 = arith.constant 1.000000e+00 : f32
    %50 = vector.broadcast %cst_50 : f32 to vector<32x8xf32>
    %51 = arith.addf %50, %49 : vector<32x8xf32>
    %52 = arith.divf %50, %51 : vector<32x8xf32>
    %c0_51 = arith.constant 0 : index
    %c0_52 = arith.constant 0 : index
    %53 = vector.load %arg3[%c0_51, %c0_52] : memref<8x2048xf32, #tpu.memory_space<vmem>>, vector<8x2048xf32>
    %cst_53 = arith.constant dense<0.000000e+00> : vector<32x2048xf32>
    %54 = tpu.matmul %52, %53, %cst_53 {dimension_numbers = #tpu.dot_dimension_numbers<[1], [0], [0], [1], [0, 0, 1, 1], [], []>} : vector<32x8xf32>, vector<8x2048xf32>, vector<32x2048xf32> -> vector<32x2048xf32>
    %cst_54 = arith.constant dense<0.000000e+00> : vector<32xf32>
    %55 = vector.multi_reduction <add>, %15, %cst_54 [1] : vector<32x8xf32> to vector<32xf32>
    %56 = vector.shape_cast %55 : vector<32xf32> to vector<32x1xf32>
    %cst_55 = arith.constant 8.000000e+00 : f32
    %57 = vector.broadcast %cst_55 : f32 to vector<32x1xf32>
    %58 = arith.divf %56, %57 : vector<32x1xf32>
    %cst_56 = arith.constant dense<0xFF800000> : vector<32xf32>
    %59 = vector.multi_reduction <maximumf>, %1, %cst_56 [1] : vector<32x2048xf32> to vector<32xf32>
    %60 = vector.shape_cast %59 : vector<32xf32> to vector<32x1xf32>
    %61 = tpu.concatenate %58, %60 in 1 : vector<32x1xf32>, vector<32x1xf32> -> vector<32x2xf32>
    %c0_57 = arith.constant 0 : index
    %c0_58 = arith.constant 0 : index
    %62 = vector.load %arg6[%c0_57, %c0_58] : memref<2x32xf32, #tpu.memory_space<vmem>>, vector<2x32xf32>
    %cst_59 = arith.constant dense<0.000000e+00> : vector<2x2xf32>
    %63 = tpu.matmul %62, %61, %cst_59 {dimension_numbers = #tpu.dot_dimension_numbers<[1], [0], [0], [1], [0, 0, 1, 1], [], []>} : vector<2x32xf32>, vector<32x2xf32>, vector<2x2xf32> -> vector<2x2xf32>
    %cst_60 = arith.constant 0.000000e+00 : f32
    %64 = vector.broadcast %cst_60 : f32 to vector<2x2xf32>
    %65 = arith.maximumf %63, %64 : vector<2x2xf32>
    %c0_61 = arith.constant 0 : index
    %c0_62 = arith.constant 0 : index
    %66 = vector.load %arg7[%c0_61, %c0_62] : memref<32x2xf32, #tpu.memory_space<vmem>>, vector<32x2xf32>
    %cst_63 = arith.constant dense<0.000000e+00> : vector<32x2xf32>
    %67 = tpu.matmul %66, %65, %cst_63 {dimension_numbers = #tpu.dot_dimension_numbers<[1], [0], [0], [1], [0, 0, 1, 1], [], []>} : vector<32x2xf32>, vector<2x2xf32>, vector<32x2xf32> -> vector<32x2xf32>
    %68 = arith.negf %67 : vector<32x2xf32>
    %69 = math.exp %68 : vector<32x2xf32>
    %cst_64 = arith.constant 1.000000e+00 : f32
    %70 = vector.broadcast %cst_64 : f32 to vector<32x2xf32>
    %71 = arith.addf %70, %69 : vector<32x2xf32>
    %72 = arith.divf %70, %71 : vector<32x2xf32>
    %73 = vector.extract_strided_slice %72 {offsets = [0, 0], sizes = [32, 1], strides = [1, 1]} : vector<32x2xf32> to vector<32x1xf32>
    %74 = vector.extract_strided_slice %72 {offsets = [0, 1], sizes = [32, 1], strides = [1, 1]} : vector<32x2xf32> to vector<32x1xf32>
    %75 = arith.addf %73, %74 : vector<32x1xf32>
    %cst_65 = arith.constant dense<0.000000e+00> : vector<2048xf32>
    %76 = vector.multi_reduction <add>, %1, %cst_65 [0] : vector<32x2048xf32> to vector<2048xf32>
    %77 = vector.shape_cast %76 : vector<2048xf32> to vector<1x2048xf32>
    %cst_66 = arith.constant 3.200000e+01 : f32
    %78 = vector.broadcast %cst_66 : f32 to vector<1x2048xf32>
    %79 = arith.divf %77, %78 : vector<1x2048xf32>
    %cst_67 = arith.constant dense<0xFF800000> : vector<2048xf32>
    %80 = vector.multi_reduction <maximumf>, %1, %cst_67 [0] : vector<32x2048xf32> to vector<2048xf32>
    %81 = vector.shape_cast %80 : vector<2048xf32> to vector<1x2048xf32>
    %82 = vector.extract_strided_slice %79 {offsets = [0, 0], sizes = [1, 256], strides = [1, 1]} : vector<1x2048xf32> to vector<1x256xf32>
    %c2_68 = arith.constant 2 : index
    %c0_69 = arith.constant 0 : index
    %83 = vector.load %arg14[%c2_68, %c0_69] : memref<12x256xf32, #tpu.memory_space<vmem>>, vector<1x256xf32>
    tpu.vector_store %arg14[%c2_68, %c0_69], %82 {strides = array<i32>} : memref<12x256xf32, #tpu.memory_space<vmem>>, vector<1x256xf32>,
    %84 = vector.extract_strided_slice %81 {offsets = [0, 0], sizes = [1, 256], strides = [1, 1]} : vector<1x2048xf32> to vector<1x256xf32>
    %c2_70 = arith.constant 2 : index
    %c0_71 = arith.constant 0 : index
    %85 = vector.load %arg15[%c2_70, %c0_71] : memref<12x256xf32, #tpu.memory_space<vmem>>, vector<1x256xf32>
    tpu.vector_store %arg15[%c2_70, %c0_71], %84 {strides = array<i32>} : memref<12x256xf32, #tpu.memory_space<vmem>>, vector<1x256xf32>,
    %86 = vector.extract_strided_slice %79 {offsets = [0, 256], sizes = [1, 256], strides = [1, 1]} : vector<1x2048xf32> to vector<1x256xf32>
    %c3_72 = arith.constant 3 : index
    %c0_73 = arith.constant 0 : index
    %87 = vector.load %arg14[%c3_72, %c0_73] : memref<12x256xf32, #tpu.memory_space<vmem>>, vector<1x256xf32>
    tpu.vector_store %arg14[%c3_72, %c0_73], %86 {strides = array<i32>} : memref<12x256xf32, #tpu.memory_space<vmem>>, vector<1x256xf32>,
    %88 = vector.extract_strided_slice %81 {offsets = [0, 256], sizes = [1, 256], strides = [1, 1]} : vector<1x2048xf32> to vector<1x256xf32>
    %c3_74 = arith.constant 3 : index
    %c0_75 = arith.constant 0 : index
    %89 = vector.load %arg15[%c3_74, %c0_75] : memref<12x256xf32, #tpu.memory_space<vmem>>, vector<1x256xf32>
    tpu.vector_store %arg15[%c3_74, %c0_75], %88 {strides = array<i32>} : memref<12x256xf32, #tpu.memory_space<vmem>>, vector<1x256xf32>,
    %90 = vector.extract_strided_slice %79 {offsets = [0, 512], sizes = [1, 256], strides = [1, 1]} : vector<1x2048xf32> to vector<1x256xf32>
    %c4_76 = arith.constant 4 : index
    %c0_77 = arith.constant 0 : index
    %91 = vector.load %arg14[%c4_76, %c0_77] : memref<12x256xf32, #tpu.memory_space<vmem>>, vector<1x256xf32>
    tpu.vector_store %arg14[%c4_76, %c0_77], %90 {strides = array<i32>} : memref<12x256xf32, #tpu.memory_space<vmem>>, vector<1x256xf32>,
    %92 = vector.extract_strided_slice %81 {offsets = [0, 512], sizes = [1, 256], strides = [1, 1]} : vector<1x2048xf32> to vector<1x256xf32>
    %c4_78 = arith.constant 4 : index
    %c0_79 = arith.constant 0 : index
    %93 = vector.load %arg15[%c4_78, %c0_79] : memref<12x256xf32, #tpu.memory_space<vmem>>, vector<1x256xf32>
    tpu.vector_store %arg15[%c4_78, %c0_79], %92 {strides = array<i32>} : memref<12x256xf32, #tpu.memory_space<vmem>>, vector<1x256xf32>,
    %94 = vector.extract_strided_slice %79 {offsets = [0, 768], sizes = [1, 256], strides = [1, 1]} : vector<1x2048xf32> to vector<1x256xf32>
    %c5 = arith.constant 5 : index
    %c0_80 = arith.constant 0 : index
    %95 = vector.load %arg14[%c5, %c0_80] : memref<12x256xf32, #tpu.memory_space<vmem>>, vector<1x256xf32>
    tpu.vector_store %arg14[%c5, %c0_80], %94 {strides = array<i32>} : memref<12x256xf32, #tpu.memory_space<vmem>>, vector<1x256xf32>,
    %96 = vector.extract_strided_slice %81 {offsets = [0, 768], sizes = [1, 256], strides = [1, 1]} : vector<1x2048xf32> to vector<1x256xf32>
    %c5_81 = arith.constant 5 : index
    %c0_82 = arith.constant 0 : index
    %97 = vector.load %arg15[%c5_81, %c0_82] : memref<12x256xf32, #tpu.memory_space<vmem>>, vector<1x256xf32>
    tpu.vector_store %arg15[%c5_81, %c0_82], %96 {strides = array<i32>} : memref<12x256xf32, #tpu.memory_space<vmem>>, vector<1x256xf32>,
    %98 = vector.extract_strided_slice %79 {offsets = [0, 1024], sizes = [1, 256], strides = [1, 1]} : vector<1x2048xf32> to vector<1x256xf32>
    %c6 = arith.constant 6 : index
    %c0_83 = arith.constant 0 : index
    %99 = vector.load %arg14[%c6, %c0_83] : memref<12x256xf32, #tpu.memory_space<vmem>>, vector<1x256xf32>
    tpu.vector_store %arg14[%c6, %c0_83], %98 {strides = array<i32>} : memref<12x256xf32, #tpu.memory_space<vmem>>, vector<1x256xf32>,
    %100 = vector.extract_strided_slice %81 {offsets = [0, 1024], sizes = [1, 256], strides = [1, 1]} : vector<1x2048xf32> to vector<1x256xf32>
    %c6_84 = arith.constant 6 : index
    %c0_85 = arith.constant 0 : index
    %101 = vector.load %arg15[%c6_84, %c0_85] : memref<12x256xf32, #tpu.memory_space<vmem>>, vector<1x256xf32>
    tpu.vector_store %arg15[%c6_84, %c0_85], %100 {strides = array<i32>} : memref<12x256xf32, #tpu.memory_space<vmem>>, vector<1x256xf32>,
    %102 = vector.extract_strided_slice %79 {offsets = [0, 1280], sizes = [1, 256], strides = [1, 1]} : vector<1x2048xf32> to vector<1x256xf32>
    %c7 = arith.constant 7 : index
    %c0_86 = arith.constant 0 : index
    %103 = vector.load %arg14[%c7, %c0_86] : memref<12x256xf32, #tpu.memory_space<vmem>>, vector<1x256xf32>
    tpu.vector_store %arg14[%c7, %c0_86], %102 {strides = array<i32>} : memref<12x256xf32, #tpu.memory_space<vmem>>, vector<1x256xf32>,
    %104 = vector.extract_strided_slice %81 {offsets = [0, 1280], sizes = [1, 256], strides = [1, 1]} : vector<1x2048xf32> to vector<1x256xf32>
    %c7_87 = arith.constant 7 : index
    %c0_88 = arith.constant 0 : index
    %105 = vector.load %arg15[%c7_87, %c0_88] : memref<12x256xf32, #tpu.memory_space<vmem>>, vector<1x256xf32>
    tpu.vector_store %arg15[%c7_87, %c0_88], %104 {strides = array<i32>} : memref<12x256xf32, #tpu.memory_space<vmem>>, vector<1x256xf32>,
    %106 = vector.extract_strided_slice %79 {offsets = [0, 1536], sizes = [1, 256], strides = [1, 1]} : vector<1x2048xf32> to vector<1x256xf32>
    %c8 = arith.constant 8 : index
    %c0_89 = arith.constant 0 : index
    %107 = vector.load %arg14[%c8, %c0_89] : memref<12x256xf32, #tpu.memory_space<vmem>>, vector<1x256xf32>
    tpu.vector_store %arg14[%c8, %c0_89], %106 {strides = array<i32>} : memref<12x256xf32, #tpu.memory_space<vmem>>, vector<1x256xf32>,
    %108 = vector.extract_strided_slice %81 {offsets = [0, 1536], sizes = [1, 256], strides = [1, 1]} : vector<1x2048xf32> to vector<1x256xf32>
    %c8_90 = arith.constant 8 : index
    %c0_91 = arith.constant 0 : index
    %109 = vector.load %arg15[%c8_90, %c0_91] : memref<12x256xf32, #tpu.memory_space<vmem>>, vector<1x256xf32>
    tpu.vector_store %arg15[%c8_90, %c0_91], %108 {strides = array<i32>} : memref<12x256xf32, #tpu.memory_space<vmem>>, vector<1x256xf32>,
    %110 = vector.extract_strided_slice %79 {offsets = [0, 1792], sizes = [1, 256], strides = [1, 1]} : vector<1x2048xf32> to vector<1x256xf32>
    %c9 = arith.constant 9 : index
    %c0_92 = arith.constant 0 : index
    %111 = vector.load %arg14[%c9, %c0_92] : memref<12x256xf32, #tpu.memory_space<vmem>>, vector<1x256xf32>
    tpu.vector_store %arg14[%c9, %c0_92], %110 {strides = array<i32>} : memref<12x256xf32, #tpu.memory_space<vmem>>, vector<1x256xf32>,
    %112 = vector.extract_strided_slice %81 {offsets = [0, 1792], sizes = [1, 256], strides = [1, 1]} : vector<1x2048xf32> to vector<1x256xf32>
    %c9_93 = arith.constant 9 : index
    %c0_94 = arith.constant 0 : index
    %113 = vector.load %arg15[%c9_93, %c0_94] : memref<12x256xf32, #tpu.memory_space<vmem>>, vector<1x256xf32>
    tpu.vector_store %arg15[%c9_93, %c0_94], %112 {strides = array<i32>} : memref<12x256xf32, #tpu.memory_space<vmem>>, vector<1x256xf32>,
    %c0_95 = arith.constant 0 : index
    %c0_96 = arith.constant 0 : index
    %114 = vector.load %arg14[%c0_95, %c0_96] : memref<12x256xf32, #tpu.memory_space<vmem>>, vector<12x256xf32>
    %c0_97 = arith.constant 0 : index
    %c0_98 = arith.constant 0 : index
    %115 = vector.load %arg15[%c0_97, %c0_98] : memref<12x256xf32, #tpu.memory_space<vmem>>, vector<12x256xf32>
    %cst_99 = arith.constant 0.000000e+00 : f32
    %116 = vector.broadcast %cst_99 : f32 to vector<8x256xf32>
    %117 = vector.extract_strided_slice %114 {offsets = [1, 0], sizes = [8, 256], strides = [1, 1]} : vector<12x256xf32> to vector<8x256xf32>
    %c0_100 = arith.constant 0 : index
    %c0_101 = arith.constant 0 : index
    %c0_102 = arith.constant 0 : index
    %118 = vector.load %arg8[%c0_100, %c0_101, %c0_102] : memref<6x256x256xf32, #tpu.memory_space<vmem>>, vector<1x256x256xf32>
    %119 = vector.shape_cast %118 : vector<1x256x256xf32> to vector<256x256xf32>
    %cst_103 = arith.constant dense<0.000000e+00> : vector<8x256xf32>
    %120 = tpu.matmul %117, %119, %cst_103 {dimension_numbers = #tpu.dot_dimension_numbers<[1], [0], [0], [1], [0, 0, 1, 1], [], []>} : vector<8x256xf32>, vector<256x256xf32>, vector<8x256xf32> -> vector<8x256xf32>
    %121 = arith.addf %116, %120 : vector<8x256xf32>
    %122 = vector.extract_strided_slice %114 {offsets = [2, 0], sizes = [8, 256], strides = [1, 1]} : vector<12x256xf32> to vector<8x256xf32>
    %c1_104 = arith.constant 1 : index
    %c0_105 = arith.constant 0 : index
    %c0_106 = arith.constant 0 : index
    %123 = vector.load %arg8[%c1_104, %c0_105, %c0_106] : memref<6x256x256xf32, #tpu.memory_space<vmem>>, vector<1x256x256xf32>
    %124 = vector.shape_cast %123 : vector<1x256x256xf32> to vector<256x256xf32>
    %cst_107 = arith.constant dense<0.000000e+00> : vector<8x256xf32>
    %125 = tpu.matmul %122, %124, %cst_107 {dimension_numbers = #tpu.dot_dimension_numbers<[1], [0], [0], [1], [0, 0, 1, 1], [], []>} : vector<8x256xf32>, vector<256x256xf32>, vector<8x256xf32> -> vector<8x256xf32>
    %126 = arith.addf %121, %125 : vector<8x256xf32>
    %127 = vector.extract_strided_slice %114 {offsets = [3, 0], sizes = [8, 256], strides = [1, 1]} : vector<12x256xf32> to vector<8x256xf32>
    %c2_108 = arith.constant 2 : index
    %c0_109 = arith.constant 0 : index
    %c0_110 = arith.constant 0 : index
    %128 = vector.load %arg8[%c2_108, %c0_109, %c0_110] : memref<6x256x256xf32, #tpu.memory_space<vmem>>, vector<1x256x256xf32>
    %129 = vector.shape_cast %128 : vector<1x256x256xf32> to vector<256x256xf32>
    %cst_111 = arith.constant dense<0.000000e+00> : vector<8x256xf32>
    %130 = tpu.matmul %127, %129, %cst_111 {dimension_numbers = #tpu.dot_dimension_numbers<[1], [0], [0], [1], [0, 0, 1, 1], [], []>} : vector<8x256xf32>, vector<256x256xf32>, vector<8x256xf32> -> vector<8x256xf32>
    %131 = arith.addf %126, %130 : vector<8x256xf32>
    %132 = vector.extract_strided_slice %115 {offsets = [1, 0], sizes = [8, 256], strides = [1, 1]} : vector<12x256xf32> to vector<8x256xf32>
    %c3_112 = arith.constant 3 : index
    %c0_113 = arith.constant 0 : index
    %c0_114 = arith.constant 0 : index
    %133 = vector.load %arg8[%c3_112, %c0_113, %c0_114] : memref<6x256x256xf32, #tpu.memory_space<vmem>>, vector<1x256x256xf32>
    %134 = vector.shape_cast %133 : vector<1x256x256xf32> to vector<256x256xf32>
    %cst_115 = arith.constant dense<0.000000e+00> : vector<8x256xf32>
    %135 = tpu.matmul %132, %134, %cst_115 {dimension_numbers = #tpu.dot_dimension_numbers<[1], [0], [0], [1], [0, 0, 1, 1], [], []>} : vector<8x256xf32>, vector<256x256xf32>, vector<8x256xf32> -> vector<8x256xf32>
    %136 = arith.addf %131, %135 : vector<8x256xf32>
    %137 = vector.extract_strided_slice %115 {offsets = [2, 0], sizes = [8, 256], strides = [1, 1]} : vector<12x256xf32> to vector<8x256xf32>
    %c4_116 = arith.constant 4 : index
    %c0_117 = arith.constant 0 : index
    %c0_118 = arith.constant 0 : index
    %138 = vector.load %arg8[%c4_116, %c0_117, %c0_118] : memref<6x256x256xf32, #tpu.memory_space<vmem>>, vector<1x256x256xf32>
    %139 = vector.shape_cast %138 : vector<1x256x256xf32> to vector<256x256xf32>
    %cst_119 = arith.constant dense<0.000000e+00> : vector<8x256xf32>
    %140 = tpu.matmul %137, %139, %cst_119 {dimension_numbers = #tpu.dot_dimension_numbers<[1], [0], [0], [1], [0, 0, 1, 1], [], []>} : vector<8x256xf32>, vector<256x256xf32>, vector<8x256xf32> -> vector<8x256xf32>
    %141 = arith.addf %136, %140 : vector<8x256xf32>
    %142 = vector.extract_strided_slice %115 {offsets = [3, 0], sizes = [8, 256], strides = [1, 1]} : vector<12x256xf32> to vector<8x256xf32>
    %c5_120 = arith.constant 5 : index
    %c0_121 = arith.constant 0 : index
    %c0_122 = arith.constant 0 : index
    %143 = vector.load %arg8[%c5_120, %c0_121, %c0_122] : memref<6x256x256xf32, #tpu.memory_space<vmem>>, vector<1x256x256xf32>
    %144 = vector.shape_cast %143 : vector<1x256x256xf32> to vector<256x256xf32>
    %cst_123 = arith.constant dense<0.000000e+00> : vector<8x256xf32>
    %145 = tpu.matmul %142, %144, %cst_123 {dimension_numbers = #tpu.dot_dimension_numbers<[1], [0], [0], [1], [0, 0, 1, 1], [], []>} : vector<8x256xf32>, vector<256x256xf32>, vector<8x256xf32> -> vector<8x256xf32>
    %146 = arith.addf %141, %145 : vector<8x256xf32>
    %c2_124 = arith.constant 2 : index
    %c0_125 = arith.constant 0 : index
    %147 = vector.load %arg16[%c2_124, %c0_125] : memref<12x256xf32, #tpu.memory_space<vmem>>, vector<8x256xf32>
    tpu.vector_store %arg16[%c2_124, %c0_125], %146 {strides = array<i32>} : memref<12x256xf32, #tpu.memory_space<vmem>>, vector<8x256xf32>,
    %c0_126 = arith.constant 0 : index
    %c0_127 = arith.constant 0 : index
    %148 = vector.load %arg16[%c0_126, %c0_127] : memref<12x256xf32, #tpu.memory_space<vmem>>, vector<12x256xf32>
    %cst_128 = arith.constant 0.000000e+00 : f32
    %149 = vector.broadcast %cst_128 : f32 to vector<8x256xf32>
    %150 = vector.extract_strided_slice %148 {offsets = [1, 0], sizes = [8, 256], strides = [1, 1]} : vector<12x256xf32> to vector<8x256xf32>
    %c0_129 = arith.constant 0 : index
    %c0_130 = arith.constant 0 : index
    %c0_131 = arith.constant 0 : index
    %151 = vector.load %arg9[%c0_129, %c0_130, %c0_131] : memref<3x256x256xf32, #tpu.memory_space<vmem>>, vector<1x256x256xf32>
    %152 = vector.shape_cast %151 : vector<1x256x256xf32> to vector<256x256xf32>
    %cst_132 = arith.constant dense<0.000000e+00> : vector<8x256xf32>
    %153 = tpu.matmul %150, %152, %cst_132 {dimension_numbers = #tpu.dot_dimension_numbers<[1], [0], [0], [1], [0, 0, 1, 1], [], []>} : vector<8x256xf32>, vector<256x256xf32>, vector<8x256xf32> -> vector<8x256xf32>
    %154 = arith.addf %149, %153 : vector<8x256xf32>
    %155 = vector.extract_strided_slice %148 {offsets = [2, 0], sizes = [8, 256], strides = [1, 1]} : vector<12x256xf32> to vector<8x256xf32>
    %c1_133 = arith.constant 1 : index
    %c0_134 = arith.constant 0 : index
    %c0_135 = arith.constant 0 : index
    %156 = vector.load %arg9[%c1_133, %c0_134, %c0_135] : memref<3x256x256xf32, #tpu.memory_space<vmem>>, vector<1x256x256xf32>
    %157 = vector.shape_cast %156 : vector<1x256x256xf32> to vector<256x256xf32>
    %cst_136 = arith.constant dense<0.000000e+00> : vector<8x256xf32>
    %158 = tpu.matmul %155, %157, %cst_136 {dimension_numbers = #tpu.dot_dimension_numbers<[1], [0], [0], [1], [0, 0, 1, 1], [], []>} : vector<8x256xf32>, vector<256x256xf32>, vector<8x256xf32> -> vector<8x256xf32>
    %159 = arith.addf %154, %158 : vector<8x256xf32>
    %160 = vector.extract_strided_slice %148 {offsets = [3, 0], sizes = [8, 256], strides = [1, 1]} : vector<12x256xf32> to vector<8x256xf32>
    %c2_137 = arith.constant 2 : index
    %c0_138 = arith.constant 0 : index
    %c0_139 = arith.constant 0 : index
    %161 = vector.load %arg9[%c2_137, %c0_138, %c0_139] : memref<3x256x256xf32, #tpu.memory_space<vmem>>, vector<1x256x256xf32>
    %162 = vector.shape_cast %161 : vector<1x256x256xf32> to vector<256x256xf32>
    %cst_140 = arith.constant dense<0.000000e+00> : vector<8x256xf32>
    %163 = tpu.matmul %160, %162, %cst_140 {dimension_numbers = #tpu.dot_dimension_numbers<[1], [0], [0], [1], [0, 0, 1, 1], [], []>} : vector<8x256xf32>, vector<256x256xf32>, vector<8x256xf32> -> vector<8x256xf32>
    %164 = arith.addf %159, %163 : vector<8x256xf32>
    %c2_141 = arith.constant 2 : index
    %c0_142 = arith.constant 0 : index
    %165 = vector.load %arg17[%c2_141, %c0_142] : memref<12x256xf32, #tpu.memory_space<vmem>>, vector<8x256xf32>
    tpu.vector_store %arg17[%c2_141, %c0_142], %164 {strides = array<i32>} : memref<12x256xf32, #tpu.memory_space<vmem>>, vector<8x256xf32>,
    %c0_143 = arith.constant 0 : index
    %c0_144 = arith.constant 0 : index
    %166 = vector.load %arg17[%c0_143, %c0_144] : memref<12x256xf32, #tpu.memory_space<vmem>>, vector<12x256xf32>
    %cst_145 = arith.constant 0.000000e+00 : f32
    %167 = vector.broadcast %cst_145 : f32 to vector<8x256xf32>
    %168 = vector.extract_strided_slice %166 {offsets = [0, 0], sizes = [8, 256], strides = [1, 1]} : vector<12x256xf32> to vector<8x256xf32>
    %c0_146 = arith.constant 0 : index
    %c0_147 = arith.constant 0 : index
    %c0_148 = arith.constant 0 : index
    %169 = vector.load %arg10[%c0_146, %c0_147, %c0_148] : memref<5x256x256xf32, #tpu.memory_space<vmem>>, vector<1x256x256xf32>
    %170 = vector.shape_cast %169 : vector<1x256x256xf32> to vector<256x256xf32>
    %cst_149 = arith.constant dense<0.000000e+00> : vector<8x256xf32>
    %171 = tpu.matmul %168, %170, %cst_149 {dimension_numbers = #tpu.dot_dimension_numbers<[1], [0], [0], [1], [0, 0, 1, 1], [], []>} : vector<8x256xf32>, vector<256x256xf32>, vector<8x256xf32> -> vector<8x256xf32>
    %172 = arith.addf %167, %171 : vector<8x256xf32>
    %173 = vector.extract_strided_slice %166 {offsets = [1, 0], sizes = [8, 256], strides = [1, 1]} : vector<12x256xf32> to vector<8x256xf32>
    %c1_150 = arith.constant 1 : index
    %c0_151 = arith.constant 0 : index
    %c0_152 = arith.constant 0 : index
    %174 = vector.load %arg10[%c1_150, %c0_151, %c0_152] : memref<5x256x256xf32, #tpu.memory_space<vmem>>, vector<1x256x256xf32>
    %175 = vector.shape_cast %174 : vector<1x256x256xf32> to vector<256x256xf32>
    %cst_153 = arith.constant dense<0.000000e+00> : vector<8x256xf32>
    %176 = tpu.matmul %173, %175, %cst_153 {dimension_numbers = #tpu.dot_dimension_numbers<[1], [0], [0], [1], [0, 0, 1, 1], [], []>} : vector<8x256xf32>, vector<256x256xf32>, vector<8x256xf32> -> vector<8x256xf32>
    %177 = arith.addf %172, %176 : vector<8x256xf32>
    %178 = vector.extract_strided_slice %166 {offsets = [2, 0], sizes = [8, 256], strides = [1, 1]} : vector<12x256xf32> to vector<8x256xf32>
    %c2_154 = arith.constant 2 : index
    %c0_155 = arith.constant 0 : index
    %c0_156 = arith.constant 0 : index
    %179 = vector.load %arg10[%c2_154, %c0_155, %c0_156] : memref<5x256x256xf32, #tpu.memory_space<vmem>>, vector<1x256x256xf32>
    %180 = vector.shape_cast %179 : vector<1x256x256xf32> to vector<256x256xf32>
    %cst_157 = arith.constant dense<0.000000e+00> : vector<8x256xf32>
    %181 = tpu.matmul %178, %180, %cst_157 {dimension_numbers = #tpu.dot_dimension_numbers<[1], [0], [0], [1], [0, 0, 1, 1], [], []>} : vector<8x256xf32>, vector<256x256xf32>, vector<8x256xf32> -> vector<8x256xf32>
    %182 = arith.addf %177, %181 : vector<8x256xf32>
    %183 = vector.extract_strided_slice %166 {offsets = [3, 0], sizes = [8, 256], strides = [1, 1]} : vector<12x256xf32> to vector<8x256xf32>
    %c3_158 = arith.constant 3 : index
    %c0_159 = arith.constant 0 : index
    %c0_160 = arith.constant 0 : index
    %184 = vector.load %arg10[%c3_158, %c0_159, %c0_160] : memref<5x256x256xf32, #tpu.memory_space<vmem>>, vector<1x256x256xf32>
    %185 = vector.shape_cast %184 : vector<1x256x256xf32> to vector<256x256xf32>
    %cst_161 = arith.constant dense<0.000000e+00> : vector<8x256xf32>
    %186 = tpu.matmul %183, %185, %cst_161 {dimension_numbers = #tpu.dot_dimension_numbers<[1], [0], [0], [1], [0, 0, 1, 1], [], []>} : vector<8x256xf32>, vector<256x256xf32>, vector<8x256xf32> -> vector<8x256xf32>
    %187 = arith.addf %182, %186 : vector<8x256xf32>
    %188 = vector.extract_strided_slice %166 {offsets = [4, 0], sizes = [8, 256], strides = [1, 1]} : vector<12x256xf32> to vector<8x256xf32>
    %c4_162 = arith.constant 4 : index
    %c0_163 = arith.constant 0 : index
    %c0_164 = arith.constant 0 : index
    %189 = vector.load %arg10[%c4_162, %c0_163, %c0_164] : memref<5x256x256xf32, #tpu.memory_space<vmem>>, vector<1x256x256xf32>
    %190 = vector.shape_cast %189 : vector<1x256x256xf32> to vector<256x256xf32>
    %cst_165 = arith.constant dense<0.000000e+00> : vector<8x256xf32>
    %191 = tpu.matmul %188, %190, %cst_165 {dimension_numbers = #tpu.dot_dimension_numbers<[1], [0], [0], [1], [0, 0, 1, 1], [], []>} : vector<8x256xf32>, vector<256x256xf32>, vector<8x256xf32> -> vector<8x256xf32>
    %192 = arith.addf %187, %191 : vector<8x256xf32>
    %193 = arith.addf %146, %164 : vector<8x256xf32>
    %194 = arith.addf %193, %192 : vector<8x256xf32>
    %195 = vector.extract_strided_slice %194 {offsets = [0, 0], sizes = [1, 256], strides = [1, 1]} : vector<8x256xf32> to vector<1x256xf32>
    %c0_166 = arith.constant 0 : index
    %c0_167 = arith.constant 0 : index
    %196 = vector.load %arg18[%c0_166, %c0_167] : memref<1x2048xf32, #tpu.memory_space<vmem>>, vector<1x256xf32>
    tpu.vector_store %arg18[%c0_166, %c0_167], %195 {strides = array<i32>} : memref<1x2048xf32, #tpu.memory_space<vmem>>, vector<1x256xf32>,
    %197 = vector.extract_strided_slice %194 {offsets = [1, 0], sizes = [1, 256], strides = [1, 1]} : vector<8x256xf32> to vector<1x256xf32>
    %c0_168 = arith.constant 0 : index
    %c256 = arith.constant 256 : index
    %198 = vector.load %arg18[%c0_168, %c256] : memref<1x2048xf32, #tpu.memory_space<vmem>>, vector<1x256xf32>
    tpu.vector_store %arg18[%c0_168, %c256], %197 {strides = array<i32>} : memref<1x2048xf32, #tpu.memory_space<vmem>>, vector<1x256xf32>,
    %199 = vector.extract_strided_slice %194 {offsets = [2, 0], sizes = [1, 256], strides = [1, 1]} : vector<8x256xf32> to vector<1x256xf32>
    %c0_169 = arith.constant 0 : index
    %c512 = arith.constant 512 : index
    %200 = vector.load %arg18[%c0_169, %c512] : memref<1x2048xf32, #tpu.memory_space<vmem>>, vector<1x256xf32>
    tpu.vector_store %arg18[%c0_169, %c512], %199 {strides = array<i32>} : memref<1x2048xf32, #tpu.memory_space<vmem>>, vector<1x256xf32>,
    %201 = vector.extract_strided_slice %194 {offsets = [3, 0], sizes = [1, 256], strides = [1, 1]} : vector<8x256xf32> to vector<1x256xf32>
    %c0_170 = arith.constant 0 : index
    %c768 = arith.constant 768 : index
    %202 = vector.load %arg18[%c0_170, %c768] : memref<1x2048xf32, #tpu.memory_space<vmem>>, vector<1x256xf32>
    tpu.vector_store %arg18[%c0_170, %c768], %201 {strides = array<i32>} : memref<1x2048xf32, #tpu.memory_space<vmem>>, vector<1x256xf32>,
    %203 = vector.extract_strided_slice %194 {offsets = [4, 0], sizes = [1, 256], strides = [1, 1]} : vector<8x256xf32> to vector<1x256xf32>
    %c0_171 = arith.constant 0 : index
    %c1024 = arith.constant 1024 : index
    %204 = vector.load %arg18[%c0_171, %c1024] : memref<1x2048xf32, #tpu.memory_space<vmem>>, vector<1x256xf32>
    tpu.vector_store %arg18[%c0_171, %c1024], %203 {strides = array<i32>} : memref<1x2048xf32, #tpu.memory_space<vmem>>, vector<1x256xf32>,
    %205 = vector.extract_strided_slice %194 {offsets = [5, 0], sizes = [1, 256], strides = [1, 1]} : vector<8x256xf32> to vector<1x256xf32>
    %c0_172 = arith.constant 0 : index
    %c1280 = arith.constant 1280 : index
    %206 = vector.load %arg18[%c0_172, %c1280] : memref<1x2048xf32, #tpu.memory_space<vmem>>, vector<1x256xf32>
    tpu.vector_store %arg18[%c0_172, %c1280], %205 {strides = array<i32>} : memref<1x2048xf32, #tpu.memory_space<vmem>>, vector<1x256xf32>,
    %207 = vector.extract_strided_slice %194 {offsets = [6, 0], sizes = [1, 256], strides = [1, 1]} : vector<8x256xf32> to vector<1x256xf32>
    %c0_173 = arith.constant 0 : index
    %c1536 = arith.constant 1536 : index
    %208 = vector.load %arg18[%c0_173, %c1536] : memref<1x2048xf32, #tpu.memory_space<vmem>>, vector<1x256xf32>
    tpu.vector_store %arg18[%c0_173, %c1536], %207 {strides = array<i32>} : memref<1x2048xf32, #tpu.memory_space<vmem>>, vector<1x256xf32>,
    %209 = vector.extract_strided_slice %194 {offsets = [7, 0], sizes = [1, 256], strides = [1, 1]} : vector<8x256xf32> to vector<1x256xf32>
    %c0_174 = arith.constant 0 : index
    %c1792 = arith.constant 1792 : index
    %210 = vector.load %arg18[%c0_174, %c1792] : memref<1x2048xf32, #tpu.memory_space<vmem>>, vector<1x256xf32>
    tpu.vector_store %arg18[%c0_174, %c1792], %209 {strides = array<i32>} : memref<1x2048xf32, #tpu.memory_space<vmem>>, vector<1x256xf32>,
    %c0_175 = arith.constant 0 : index
    %c0_176 = arith.constant 0 : index
    %211 = vector.load %arg18[%c0_175, %c0_176] : memref<1x2048xf32, #tpu.memory_space<vmem>>, vector<1x2048xf32>
    %212 = arith.negf %211 : vector<1x2048xf32>
    %213 = math.exp %212 : vector<1x2048xf32>
    %cst_177 = arith.constant 1.000000e+00 : f32
    %214 = vector.broadcast %cst_177 : f32 to vector<1x2048xf32>
    %215 = arith.addf %214, %213 : vector<1x2048xf32>
    %216 = arith.divf %214, %215 : vector<1x2048xf32>
    %217 = arith.mulf %1, %54 : vector<32x2048xf32>
    %218 = vector.broadcast %75 : vector<32x1xf32> to vector<32x2048xf32>
    %219 = arith.mulf %1, %218 : vector<32x2048xf32>
    %220 = tpu.concatenate %217, %219 in 0 : vector<32x2048xf32>, vector<32x2048xf32> -> vector<64x2048xf32>
    %c0_178 = arith.constant 0 : index
    %c0_179 = arith.constant 0 : index
    %221 = vector.load %arg11[%c0_178, %c0_179] : memref<96x64xf32, #tpu.memory_space<vmem>>, vector<96x64xf32>
    %cst_180 = arith.constant dense<0.000000e+00> : vector<96x2048xf32>
    %222 = tpu.matmul %221, %220, %cst_180 {dimension_numbers = #tpu.dot_dimension_numbers<[1], [0], [0], [1], [0, 0, 1, 1], [], []>} : vector<96x64xf32>, vector<64x2048xf32>, vector<96x2048xf32> -> vector<96x2048xf32>
    %223 = vector.extract_strided_slice %222 {offsets = [0, 0], sizes = [32, 2048], strides = [1, 1]} : vector<96x2048xf32> to vector<32x2048xf32>
    %224 = vector.extract_strided_slice %222 {offsets = [32, 0], sizes = [32, 2048], strides = [1, 1]} : vector<96x2048xf32> to vector<32x2048xf32>
    %225 = vector.broadcast %216 : vector<1x2048xf32> to vector<32x2048xf32>
    %226 = arith.mulf %225, %224 : vector<32x2048xf32>
    %227 = arith.addf %223, %226 : vector<32x2048xf32>
    %228 = vector.extract_strided_slice %222 {offsets = [64, 0], sizes = [32, 2048], strides = [1, 1]} : vector<96x2048xf32> to vector<32x2048xf32>
    %229 = arith.addf %227, %228 : vector<32x2048xf32>
    %c0_181 = arith.constant 0 : index
    %c0_182 = arith.constant 0 : index
    %c0_183 = arith.constant 0 : index
    %230 = vector.load %arg12[%c0_181, %c0_182, %c0_183] : memref<1x32x2048xf32, #tpu.memory_space<vmem>>, vector<1x32x2048xf32>
    %231 = vector.shape_cast %230 : vector<1x32x2048xf32> to vector<32x2048xf32>
    %232 = vector.shape_cast %229 : vector<32x2048xf32> to vector<1x32x2048xf32>
    tpu.vector_store %arg12[%c0_181, %c0_182, %c0_183], %232 {strides = array<i32>} : memref<1x32x2048xf32, #tpu.memory_space<vmem>>, vector<1x32x2048xf32>,
    return
  }
  func.func @transform_0(%arg0: i32) -> (i32, i32, i32) {
    %c0_i32 = arith.constant 0 : i32
    %c0_i32_0 = arith.constant 0 : i32
    %c0_i32_1 = arith.constant 0 : i32
    return %arg0, %c0_i32, %c0_i32_0 : i32, i32, i32
  }
  func.func @transform_1(%arg0: i32) -> (i32, i32) {
    %c0_i32 = arith.constant 0 : i32
    %c0_i32_0 = arith.constant 0 : i32
    %c0_i32_1 = arith.constant 0 : i32
    return %c0_i32, %c0_i32_0 : i32, i32
  }
  func.func @transform_2(%arg0: i32) -> (i32, i32) {
    %c0_i32 = arith.constant 0 : i32
    %c0_i32_0 = arith.constant 0 : i32
    %c0_i32_1 = arith.constant 0 : i32
    return %c0_i32, %c0_i32_0 : i32, i32
  }
  func.func @transform_3(%arg0: i32) -> (i32, i32, i32) {
    %c0_i32 = arith.constant 0 : i32
    %c0_i32_0 = arith.constant 0 : i32
    %c0_i32_1 = arith.constant 0 : i32
    %c0_i32_2 = arith.constant 0 : i32
    return %c0_i32, %c0_i32_0, %c0_i32_1 : i32, i32, i32
  }
  func.func @transform_4(%arg0: i32) -> (i32, i32) {
    %c0_i32 = arith.constant 0 : i32
    %c0_i32_0 = arith.constant 0 : i32
    %c0_i32_1 = arith.constant 0 : i32
    return %c0_i32, %c0_i32_0 : i32, i32
  }
  func.func @transform_5(%arg0: i32) -> (i32, i32) {
    %c0_i32 = arith.constant 0 : i32
    %c0_i32_0 = arith.constant 0 : i32
    %c0_i32_1 = arith.constant 0 : i32
    return %c0_i32, %c0_i32_0 : i32, i32
  }
  func.func @transform_6(%arg0: i32) -> (i32, i32) {
    %c0_i32 = arith.constant 0 : i32
    %c0_i32_0 = arith.constant 0 : i32
    %c0_i32_1 = arith.constant 0 : i32
    return %c0_i32, %c0_i32_0 : i32, i32
  }
  func.func @transform_7(%arg0: i32) -> (i32, i32, i32) {
    %c0_i32 = arith.constant 0 : i32
    %c0_i32_0 = arith.constant 0 : i32
    %c0_i32_1 = arith.constant 0 : i32
    %c0_i32_2 = arith.constant 0 : i32
    return %c0_i32, %c0_i32_0, %c0_i32_1 : i32, i32, i32
  }
  func.func @transform_8(%arg0: i32) -> (i32, i32, i32) {
    %c0_i32 = arith.constant 0 : i32
    %c0_i32_0 = arith.constant 0 : i32
    %c0_i32_1 = arith.constant 0 : i32
    %c0_i32_2 = arith.constant 0 : i32
    return %c0_i32, %c0_i32_0, %c0_i32_1 : i32, i32, i32
  }
  func.func @transform_9(%arg0: i32) -> (i32, i32, i32) {
    %c0_i32 = arith.constant 0 : i32
    %c0_i32_0 = arith.constant 0 : i32
    %c0_i32_1 = arith.constant 0 : i32
    %c0_i32_2 = arith.constant 0 : i32
    return %c0_i32, %c0_i32_0, %c0_i32_1 : i32, i32, i32
  }
  func.func @transform_10(%arg0: i32) -> (i32, i32) {
    %c0_i32 = arith.constant 0 : i32
    %c0_i32_0 = arith.constant 0 : i32
    %c0_i32_1 = arith.constant 0 : i32
    return %c0_i32, %c0_i32_0 : i32, i32
  }
  func.func @transform_11(%arg0: i32) -> (i32, i32, i32) {
    %c0_i32 = arith.constant 0 : i32
    %c0_i32_0 = arith.constant 0 : i32
    %c0_i32_1 = arith.constant 0 : i32
    return %arg0, %c0_i32, %c0_i32_0 : i32, i32, i32
  }
}

</mosaic_0001>

<bundles_post_ra>
// kernel: _lambda_.1
= control target key start
LH: loop header
LB: loop body
LE: loop exit
PB: predicated region body
PF: predicated region fallthrough
CT: control target
= control target key end

     0   :  { %s11138_s17 = smov 0   ;;  %s17198_s0 = inlined_call_operand.vmem [shape: f32[2,32,2048], index: 0, kind: input, shape index: {}]   ;;  %s17199_s1 = inlined_call_operand.vmem [shape: f32[2048,8], index: 1, kind: input, shape index: {}]   ;;  %s17200_s2 = inlined_call_operand.vmem [shape: f32[8,2048], index: 2, kind: input, shape index: {}]   ;;  %s17201_s3 = inlined_call_operand.vmem [shape: f32[5,48,32], index: 3, kind: input, shape index: {}]   ;;  %s17202_s4 = inlined_call_operand.vmem [shape: f32[32,48], index: 4, kind: input, shape index: {}]   ;;  %s17203_s5 = inlined_call_operand.vmem [shape: f32[2,32], index: 5, kind: input, shape index: {}]   ;;  %s17204_s6 = inlined_call_operand.vmem [shape: f32[32,2], index: 6, kind: input, shape index: {}]   ;;  %s17205_s7 = inlined_call_operand.vmem [shape: f32[6,256,256], index: 7, kind: input, shape index: {}]   ;;  %s17206_s8 = inlined_call_operand.vmem [shape: f32[3,256,256], index: 8, kind: input, shape index: {}]   ;;  %s17207_s9 = inlined_call_operand.vmem [shape: f32[5,256,256], index: 9, kind: input, shape index: {}]   ;;  %s17208_s10 = inlined_call_operand.vmem [shape: f32[96,64], index: 10, kind: input, shape index: {}]   ;;  %s17209_s11 = inlined_call_operand.vmem [shape: f32[2,32,2048], index: 11, kind: output, shape index: {}]  }
   0x1 LB: > { %s7789_s18 = sadd.s32 4294967295, %s11066_s17   ;;  %p7793_p0 = scmp.ge.s32.totalorder %s11066_s17, 1  ;;  %s11066_s17 = sphi %s11138_s17, %s21_s17  }
   0x2   : > { %p337_p1 = scmp.lt.s32.totalorder %s11066_s17, 3 }
   0x4   : > { %p338_p2 = pnand %p7793_p0, %p337_p1 }
   0x6   : > { %341 = sbr.rel (%p338_p2) target bundleno = 2803 (0xaf3), region = 64 }
   0xd   : > { %v493_v0 = vld [vmem:[%s17199_s1 + $0x80] sm:$0xff]  ;;  %v494_v1 = vld [vmem:[%s17199_s1 + $0x88] sm:$0xff]  ;;  %v495_v11 = vld [vmem:[%s17199_s1 + $0x90] sm:$0xff]  ;;  %p11220_p3 = scmp.lt.s32.totalorder %s7789_s18, 1  ;;  %vm467_vm1 = vcmask 15360   ;;  %vm472_vm2 = vcmask 97360  }
   0xe   : > { %v525_v2 = vld [vmem:[%s17199_s1 + $0x180] sm:$0xff]  ;;  %v9252_v3 = vpack.c.bf16 %v494_v1, %v493_v0  ;;  %v526_v4 = vld [vmem:[%s17199_s1 + $0x188] sm:$0xff]  ;;  %v496_v13 = vld [vmem:[%s17199_s1 + $0x98] sm:$0xff]  ;;  %s11070_s14 = smov 2   ;;  %vm1429_vm3 = vcmask 80912   ;;  %s11071_s12 = smov 127  }
   0xf   : > { %v477_v5 = vld [vmem:[%s17199_s1] sm:$0xff]  ;;  %v478_v6 = vld [vmem:[%s17199_s1 + $0x8] sm:$0xff]  ;;  %v9284_v7 = vpack.c.bf16 %v526_v4, %v525_v2  ;;  %v527_v14 = vld [vmem:[%s17199_s1 + $0x190] sm:$0xff]  ;;  %v9256_v16 = vpack.c.bf16 %v496_v13, %v495_v11  ;;  %s17426_s18 = smov (!%p11220_p3, %s7789_s18), 1  ;;  %vm1467_vm4 = vcmask 261120   ;;  %s11072_s16 = smov 126  }
  0x10   : > { %v9254_v8 = vpack.c.bf16 %v478_v6, %v477_v5  ;;  %v509_v9 = vld [vmem:[%s17199_s1 + $0x100] sm:$0xff]  ;;  %v510_v10 = vld [vmem:[%s17199_s1 + $0x108] sm:$0xff]  ;;  %9253 = vmatprep.subr.bf16.mxu0 %v9252_v3  ;;  %v528_v15 = vld [vmem:[%s17199_s1 + $0x198] sm:$0xff]  ;;  %s8706_s24 = sshll.u32 %s17426_s18, 9  ;;  %s11073_s19 = smov 125   ;;  %vm2256_vm5 = vcmask 64512  }
  0x11   : > { %v9286_v12 = vpack.c.bf16 %v510_v10, %v509_v9  ;;  %9285 = vmatprep.subr.bf16.mxu1 %v9284_v7  ;;  %v9288_v17 = vpack.c.bf16 %v528_v15, %v527_v14  ;;  %v479_v18 = vld [vmem:[%s17199_s1 + $0x10] sm:$0xff]  ;;  %v480_v19 = vld [vmem:[%s17199_s1 + $0x18] sm:$0xff]  ;;  %v497_v23 = vld [vmem:[%s17199_s1 + $0xa0] sm:$0xff]  ;;  %s11314_s22 = scalar_lea.vmem %s17198_s0, %s8706_s24  ;;  %s11074_s20 = smov 124   ;;  %vm2118_vm6 = vcmask 392192   ;;  %vm3066_vm7 = vcmask 7168  }
  0x12   : > { %9255 = vmatpush3.bf16.msra.mxu0 %v9254_v8  ;;  %v511_v20 = vld [vmem:[%s17199_s1 + $0x110] sm:$0xff]  ;;  %v9258_v21 = vpack.c.bf16 %v480_v19, %v479_v18  ;;  %v512_v22 = vld [vmem:[%s17199_s1 + $0x118] sm:$0xff]  ;;  %v498_v24 = vld [vmem:[%s17199_s1 + $0xa8] sm:$0xff]  ;;  %vm11076_vm8 = vmmov 0   ;;  %vm4081_vm9 = vcmask 1045504   ;;  %vm4161_vm10 = vcmask 1046528   ;;  %s16976_s27 = scalar_lea.vmem %s17209_s11, %s8706_s24 }
  0x13   : > { %9287 = vmatpush3.bf16.msra.mxu1 %v9286_v12  ;;  %9257 = vmatprep.subr.bf16.mxu0 %v9256_v16  ;;  %v9290_v25 = vpack.c.bf16 %v512_v22, %v511_v20  ;;  %v9260_v26 = vpack.c.bf16 %v498_v24, %v497_v23  ;;  %v529_v27 = vld [vmem:[%s17199_s1 + $0x1a0] sm:$0xff]  ;;  %v530_v28 = vld [vmem:[%s17199_s1 + $0x1a8] sm:$0xff]  ;;  %v499_v35 = vld [vmem:[%s17199_s1 + $0xb0] sm:$0xff]  ;;  %vm4306_vm11 = vcmask 1044480   ;;  %vm3162_vm12 = vcmask 1041408  }
  0x14   : > { %9289 = vmatprep.subr.bf16.mxu1 %v9288_v17  ;;  %v481_v29 = vld [vmem:[%s17199_s1 + $0x20] sm:$0xff]  ;;  %v9292_v30 = vpack.c.bf16 %v530_v28, %v529_v27  ;;  %v482_v31 = vld [vmem:[%s17199_s1 + $0x28] sm:$0xff]  ;;  %v500_v36 = vld [vmem:[%s17199_s1 + $0xb8] sm:$0xff]  ;;  %vm6263_vm13 = vcmask 523264   ;;  %vm5935_vm14 = vcmask 1043456  }
  0x15   : > { %v513_v32 = vld [vmem:[%s17199_s1 + $0x120] sm:$0xff]  ;;  %v514_v33 = vld [vmem:[%s17199_s1 + $0x128] sm:$0xff]  ;;  %v9262_v34 = vpack.c.bf16 %v482_v31, %v481_v29  ;;  %v531_v37 = vld [vmem:[%s17199_s1 + $0x1b0] sm:$0xff]  ;;  %v9264_v39 = vpack.c.bf16 %v500_v36, %v499_v35  ;;  %v17210_v36 = vlaneseq }
  0x16   : > { %9259 = vmatpush3.bf16.msra.mxu0 %v9258_v21  ;;  %v9294_v38 = vpack.c.bf16 %v514_v33, %v513_v32  ;;  %v532_v40 = vld [vmem:[%s17199_s1 + $0x1b8] sm:$0xff]  ;;  %v483_v41 = vld [vmem:[%s17199_s1 + $0x30] sm:$0xff]  ;;  %v501_v46 = vld [vmem:[%s17199_s1 + $0xc0] sm:$0xff] }
  0x17   : > { %9291 = vmatpush3.bf16.msra.mxu1 %v9290_v25  ;;  %9261 = vmatprep.subr.bf16.mxu0 %v9260_v26  ;;  %v484_v42 = vld [vmem:[%s17199_s1 + $0x38] sm:$0xff]  ;;  %v9296_v43 = vpack.c.bf16 %v532_v40, %v531_v37  ;;  %v515_v44 = vld [vmem:[%s17199_s1 + $0x130] sm:$0xff]  ;;  %v502_v47 = vld [vmem:[%s17199_s1 + $0xc8] sm:$0xff] }
  0x18   : > { %9293 = vmatprep.subr.bf16.mxu1 %v9292_v30  ;;  %v516_v45 = vld [vmem:[%s17199_s1 + $0x138] sm:$0xff]  ;;  %v533_v48 = vld [vmem:[%s17199_s1 + $0x1c0] sm:$0xff]  ;;  %v534_v49 = vld [vmem:[%s17199_s1 + $0x1c8] sm:$0xff]  ;;  %v9266_v50 = vpack.c.bf16 %v484_v42, %v483_v41  ;;  %v9268_v52 = vpack.c.bf16 %v502_v47, %v501_v46 }
  0x19   : > { %v9298_v51 = vpack.c.bf16 %v516_v45, %v515_v44  ;;  %v485_v53 = vld [vmem:[%s17199_s1 + $0x40] sm:$0xff]  ;;  %v486_v54 = vld [vmem:[%s17199_s1 + $0x48] sm:$0xff]  ;;  %v9300_v56 = vpack.c.bf16 %v534_v49, %v533_v48  ;;  %v503_v58 = vld [vmem:[%s17199_s1 + $0xd0] sm:$0xff] }
  0x1a   : > { %9263 = vmatpush3.bf16.msra.mxu0 %v9262_v34  ;;  %v517_v55 = vld [vmem:[%s17199_s1 + $0x140] sm:$0xff]  ;;  %v518_v57 = vld [vmem:[%s17199_s1 + $0x148] sm:$0xff]  ;;  %v504_v59 = vld [vmem:[%s17199_s1 + $0xd8] sm:$0xff]  ;;  %v9270_v62 = vpack.c.bf16 %v486_v54, %v485_v53  ;;  %v11068_v34 = vmov 1966171168  }
  0x1b   : > { %9295 = vmatpush3.bf16.msra.mxu1 %v9294_v38  ;;  %9265 = vmatprep.subr.bf16.mxu0 %v9264_v39  ;;  %v535_v60 = vld [vmem:[%s17199_s1 + $0x1d0] sm:$0xff]  ;;  %v536_v61 = vld [vmem:[%s17199_s1 + $0x1d8] sm:$0xff]  ;;  %v9302_v63 = vpack.c.bf16 %v518_v57, %v517_v55  ;;  %v9272_v0 = vpack.c.bf16 %v504_v59, %v503_v58  ;;  %v505_v6 = vld [vmem:[%s17199_s1 + $0xe0] sm:$0xff]  ;;  %v3604_v35 = vunpack.c.l.s4 %v11068_v34 }
  0x1c   : > { %9297 = vmatprep.subr.bf16.mxu1 %v9296_v43  ;;  %v487_v1 = vld [vmem:[%s17199_s1 + $0x50] sm:$0xff]  ;;  %v488_v2 = vld [vmem:[%s17199_s1 + $0x58] sm:$0xff]  ;;  %v9304_v4 = vpack.c.bf16 %v536_v61, %v535_v60  ;;  %v506_v7 = vld [vmem:[%s17199_s1 + $0xe8] sm:$0xff] }
  0x1d   : > { %v519_v3 = vld [vmem:[%s17199_s1 + $0x150] sm:$0xff]  ;;  %v520_v5 = vld [vmem:[%s17199_s1 + $0x158] sm:$0xff]  ;;  %v537_v8 = vld [vmem:[%s17199_s1 + $0x1e0] sm:$0xff]  ;;  %v9274_v10 = vpack.c.bf16 %v488_v2, %v487_v1  ;;  %v9276_v14 = vpack.c.bf16 %v506_v7, %v505_v6 }
  0x1e   : > { %9267 = vmatpush3.bf16.msra.mxu0 %v9266_v50  ;;  %v538_v9 = vld [vmem:[%s17199_s1 + $0x1e8] sm:$0xff]  ;;  %v489_v11 = vld [vmem:[%s17199_s1 + $0x60] sm:$0xff]  ;;  %v9306_v13 = vpack.c.bf16 %v520_v5, %v519_v3  ;;  %v11335_v17 = vld [vmem:[%s11314_s22 + $0x18] sm:$0xff] }
  0x1f   : > { %9299 = vmatpush3.bf16.msra.mxu1 %v9298_v51  ;;  %9269 = vmatprep.subr.bf16.mxu0 %v9268_v52  ;;  %v490_v12 = vld [vmem:[%s17199_s1 + $0x68] sm:$0xff]  ;;  %v521_v15 = vld [vmem:[%s17199_s1 + $0x160] sm:$0xff]  ;;  %v9308_v18 = vpack.c.bf16 %v538_v9, %v537_v8  ;;  %v507_v20 = vld [vmem:[%s17199_s1 + $0xf0] sm:$0xff] }
  0x20   : > { %9301 = vmatprep.subr.bf16.mxu1 %v9300_v56  ;;  %v11332_v16 = vld [vmem:[%s11314_s22 + $0x8] sm:$0xff]  ;;  %v508_v21 = vld [vmem:[%s17199_s1 + $0xf8] sm:$0xff]  ;;  %v539_v22 = vld [vmem:[%s17199_s1 + $0x1f0] sm:$0xff]  ;;  %882 = vmatprep.mubr.f32.mxu1 %v11335_v17  ;;  %v9278_v24 = vpack.c.bf16 %v490_v12, %v489_v11 }
  0x21   : > { %v522_v19 = vld [vmem:[%s17199_s1 + $0x168] sm:$0xff]  ;;  %797 = vmatprep.mubr.f32.mxu0 %v11332_v16  ;;  %v540_v23 = vld [vmem:[%s17199_s1 + $0x1f8] sm:$0xff]  ;;  %v9280_v26 = vpack.c.bf16 %v508_v21, %v507_v20  ;;  %v491_v27 = vld [vmem:[%s17199_s1 + $0x70] sm:$0xff] }
  0x22   : > { %9271 = vmatpush3.bf16.msra.mxu0 %v9270_v62  ;;  %v9310_v25 = vpack.c.bf16 %v522_v19, %v521_v15  ;;  %v492_v28 = vld [vmem:[%s17199_s1 + $0x78] sm:$0xff]  ;;  %v523_v29 = vld [vmem:[%s17199_s1 + $0x170] sm:$0xff]  ;;  %v9312_v30 = vpack.c.bf16 %v540_v23, %v539_v22  ;;  %v557_v32 = vld [vmem:[%s17199_s1 + $0x280] sm:$0xff]  ;;  %v3605_v62 = vunpack.c.0.s8 %v3604_v35 }
  0x23   : > { %9303 = vmatpush3.bf16.msra.mxu1 %v9302_v63  ;;  %9273 = vmatprep.subr.bf16.mxu0 %v9272_v0  ;;  %v524_v31 = vld [vmem:[%s17199_s1 + $0x178] sm:$0xff]  ;;  %v558_v33 = vld [vmem:[%s17199_s1 + $0x288] sm:$0xff]  ;;  %v11375_v37 = vld [vmem:[%s17199_s1 + $0x200] sm:$0xff]  ;;  %v9282_v41 = vpack.c.bf16 %v492_v28, %v491_v27  ;;  %v11470_v63 = vshrl.u32 %v17210_v36, 7 }
  0x24   : > { %9305 = vmatprep.subr.bf16.mxu1 %v9304_v4  ;;  %v11380_v38 = vld [vmem:[%s17199_s1 + $0x208] sm:$0xff]  ;;  %v589_v39 = vld [vmem:[%s17199_s1 + $0x380] sm:$0xff]  ;;  %v11401_v44 = vld [vmem:[%s17199_s1 + $0x290] sm:$0xff]  ;;  %v9314_v46 = vpack.c.bf16 %v524_v31, %v523_v29  ;;  %v9316_v47 = vpack.c.bf16 %v558_v33, %v557_v32 }
  0x25   : > { %v590_v40 = vld [vmem:[%s17199_s1 + $0x388] sm:$0xff]  ;;  %v11391_v42 = vld [vmem:[%s17199_s1 + $0x300] sm:$0xff]  ;;  %v11406_v45 = vld [vmem:[%s17199_s1 + $0x298] sm:$0xff]  ;;  %17238 = vst [vmem:[#allocation8_spill] sm:$0xff] %v11470_v63  ;;  %v9318_v5 = vpack.c.bf16 %v11380_v38, %v11375_v37  ;;  %v11550_v21 = vsub.s32 %v3605_v62, %v11470_v63 }
  0x26   : > { %9275 = vmatpush3.bf16.msra.mxu0 %v9274_v10  ;;  %v11396_v43 = vld [vmem:[%s17199_s1 + $0x308] sm:$0xff]  ;;  %v11411_v48 = vld [vmem:[%s17199_s1 + $0x210] sm:$0xff]  ;;  %v11416_v49 = vld [vmem:[%s17199_s1 + $0x218] sm:$0xff]  ;;  %v9348_v53 = vpack.c.bf16 %v590_v40, %v589_v39  ;;  %v9320_v10 = vpack.c.bf16 %v11406_v45, %v11401_v44 }
  0x27   : > { %9307 = vmatpush3.bf16.msra.mxu1 %v9306_v13  ;;  %9277 = vmatprep.subr.bf16.mxu0 %v9276_v14  ;;  %v11421_v50 = vld [vmem:[%s17199_s1 + $0x390] sm:$0xff]  ;;  %v592_v51 = vld [vmem:[%s17199_s1 + $0x398] sm:$0xff]  ;;  %v11427_v52 = vld [vmem:[%s11314_s22] sm:$0xff]  ;;  %v9350_v9 = vpack.c.bf16 %v11396_v43, %v11391_v42  ;;  %v9322_v14 = vpack.c.bf16 %v11416_v49, %v11411_v48  ;;  %17239 = vst [vmem:[#allocation9_spill] sm:$0xff] %v11550_v21 }
  0x28   : > { %9309 = vmatprep.subr.bf16.mxu1 %v9308_v18  ;;  %v11432_v54 = vld [vmem:[%s17199_s1 + $0x310] sm:$0xff]  ;;  %v11437_v55 = vld [vmem:[%s17199_s1 + $0x318] sm:$0xff]  ;;  %v11442_v56 = vld [vmem:[%s17199_s1 + $0x2a0] sm:$0xff]  ;;  %v9352_v15 = vpack.c.bf16 %v592_v51, %v11421_v50 }
  0x29   : > { %v11447_v57 = vld [vmem:[%s17199_s1 + $0x2a8] sm:$0xff]  ;;  %v11452_v58 = vld [vmem:[%s17199_s1 + $0x220] sm:$0xff]  ;;  %v11473_v0 = vld [vmem:[%s11314_s22 + $0x10] sm:$0xff]  ;;  %v9354_v22 = vpack.c.bf16 %v11437_v55, %v11432_v54 }
  0x2a   : > { %9279 = vmatpush3.bf16.msra.mxu0 %v9278_v24  ;;  %v11457_v59 = vld [vmem:[%s17199_s1 + $0x228] sm:$0xff]  ;;  %v11462_v60 = vld [vmem:[%s17199_s1 + $0x3a0] sm:$0xff]  ;;  %v11488_v3 = vld [vmem:[%s17199_s1 + $0x2b0] sm:$0xff]  ;;  %v9324_v23 = vpack.c.bf16 %v11447_v57, %v11442_v56 }
  0x2b   : > { %9311 = vmatpush3.bf16.msra.mxu1 %v9310_v25  ;;  %9281 = vmatprep.subr.bf16.mxu0 %v9280_v26  ;;  %v11467_v61 = vld [vmem:[%s17199_s1 + $0x3a8] sm:$0xff]  ;;  %v11478_v1 = vld [vmem:[%s17199_s1 + $0x320] sm:$0xff]  ;;  %v11493_v4 = vld [vmem:[%s17199_s1 + $0x2b8] sm:$0xff]  ;;  %v9326_v24 = vpack.c.bf16 %v11457_v59, %v11452_v58 }
  0x2c   : > { %9313 = vmatprep.subr.bf16.mxu1 %v9312_v30  ;;  %v11483_v2 = vld [vmem:[%s17199_s1 + $0x328] sm:$0xff]  ;;  %v11500_v6 = vld [vmem:[%s17199_s1 + $0x230] sm:$0xff]  ;;  %v11505_v7 = vld [vmem:[%s17199_s1 + $0x238] sm:$0xff]  ;;  %v9356_v25 = vpack.c.bf16 %v11467_v61, %v11462_v60  ;;  %v9328_v30 = vpack.c.bf16 %v11493_v4, %v11488_v3 }
  0x2d   : > { %v11510_v8 = vld [vmem:[%s17199_s1 + $0x3b0] sm:$0xff]  ;;  %v11519_v11 = vld [vmem:[%s17199_s1 + $0x3b8] sm:$0xff]  ;;  %v11537_v18 = vld [vmem:[%s17199_s1 + $0x2c0] sm:$0xff]  ;;  %v9358_v29 = vpack.c.bf16 %v11483_v2, %v11478_v1  ;;  %v9330_v31 = vpack.c.bf16 %v11505_v7, %v11500_v6 }
  0x2e   : > { %9283 = vmatpush3.bf16.msra.mxu0 %v9282_v41  ;;  %v11524_v12 = vld [vmem:[%s17199_s1 + $0x330] sm:$0xff]  ;;  %v11529_v13 = vld [vmem:[%s17199_s1 + $0x338] sm:$0xff]  ;;  %v11542_v19 = vld [vmem:[%s17199_s1 + $0x2c8] sm:$0xff]  ;;  %v9360_v35 = vpack.c.bf16 %v11519_v11, %v11510_v8 }
  0x2f   : > { %9315 = vmatpush3.bf16.msra.mxu1 %v9314_v46  ;;  %9317 = vmatprep.subr.bf16.mxu0 %v9316_v47  ;;  %v11547_v20 = vld [vmem:[%s17199_s1 + $0x240] sm:$0xff]  ;;  %v11564_v26 = vld [vmem:[%s17199_s1 + $0x248] sm:$0xff]  ;;  %v406_v33 = vld [vmem:[%s11314_s22 + $0x98] sm:$0xff]  ;;  %v9362_v37 = vpack.c.bf16 %v11529_v13, %v11524_v12  ;;  %v9332_v38 = vpack.c.bf16 %v11542_v19, %v11537_v18 }
  0x30   : > { %9349 = vmatprep.subr.bf16.mxu1 %v9348_v53  ;;  %v11569_v27 = vld [vmem:[%s17199_s1 + $0x3c0] sm:$0xff]  ;;  %v11574_v28 = vld [vmem:[%s17199_s1 + $0x3c8] sm:$0xff]  ;;  %v405_v41 = vld [vmem:[%s11314_s22 + $0x90] sm:$0xff]  ;;  %v9334_v42 = vpack.c.bf16 %v11564_v26, %v11547_v20  ;;  %v3322_v48 = vadd.f32 %v406_v33, %v11335_v17  ;;  %v3483_v49 = vmax.f32 %v11335_v17, %v406_v33 }
  0x31   : > { %798 = vmatmul.mubr.f32.vlgmr.msra.gmra.mrb[0].mxu0 %v11427_v52  ;;  %v404_v32 = vld [vmem:[%s11314_s22 + $0x88] sm:$0xff]  ;;  %v403_v34 = vld [vmem:[%s11314_s22 + $0x80] sm:$0xff]  ;;  %v11610_v45 = vld [vmem:[%s17199_s1 + $0x2d0] sm:$0xff]  ;;  %v3313_v61 = vadd.f32 %v405_v41, %v11473_v0  ;;  %v3474_v62 = vmax.f32 %v11473_v0, %v405_v41 }
  0x32   : > { %883 = vmatmul.mubr.f32.vlgmr.msra.gmra.mrb[0].mxu1 %v11473_v0  ;;  %9319 = vmatpush3.bf16.msra.mxu0 %v9318_v5  ;;  %v11595_v39 = vld [vmem:[%s17199_s1 + $0x340] sm:$0xff]  ;;  %v11600_v40 = vld [vmem:[%s17199_s1 + $0x348] sm:$0xff]  ;;  %v3304_v43 = vadd.f32 %v404_v32, %v11332_v16  ;;  %v3465_v44 = vmax.f32 %v11332_v16, %v404_v32  ;;  %v11615_v46 = vld [vmem:[%s17199_s1 + $0x2d8] sm:$0xff]  ;;  %v9364_v16 = vpack.c.bf16 %v11574_v28, %v11569_v27 }
  0x33   : > { %9351 = vmatpush3.bf16.msra.mxu1 %v9350_v9  ;;  %9321 = vmatprep.subr.bf16.mxu0 %v9320_v10  ;;  %v11620_v47 = vld [vmem:[%s17199_s1 + $0x250] sm:$0xff]  ;;  %v11629_v50 = vld [vmem:[%s17199_s1 + $0x258] sm:$0xff]  ;;  %v9366_v17 = vpack.c.bf16 %v11600_v40, %v11595_v39  ;;  %v3295_v54 = vadd.f32 %v403_v34, %v11427_v52  ;;  %v3456_v55 = vmax.f32 %v11427_v52, %v403_v34  ;;  %v420_v56 = vld [vmem:[%s11314_s22 + $0x108] sm:$0xff] }
  0x34   : > { %9353 = vmatprep.subr.bf16.mxu1 %v9352_v15  ;;  %802 = vmatprep.mubr.f32.mxu0 %v404_v32  ;;  %v11634_v51 = vld [vmem:[%s17199_s1 + $0x3d0] sm:$0xff]  ;;  %v11639_v53 = vld [vmem:[%s17199_s1 + $0x3d8] sm:$0xff]  ;;  %v419_v60 = vld [vmem:[%s11314_s22 + $0x100] sm:$0xff]  ;;  %v9336_v5 = vpack.c.bf16 %v11615_v46, %v11610_v45  ;;  %v3305_v0 = vadd.f32 %v3304_v43, %v420_v56  ;;  %v3466_v15 = vmax.f32 %v3465_v44, %v420_v56 }
  0x35   : > { %887 = vmatprep.mubr.f32.mxu1 %v406_v33  ;;  %803 = vmatmul.mubr.f32.gmra.mrb[2].mxu0 %v403_v34  ;;  %v422_v57 = vld [vmem:[%s11314_s22 + $0x118] sm:$0xff]  ;;  %v11655_v9 = vld [vmem:[%s17199_s1 + $0x350] sm:$0xff]  ;;  %v11690_v43 = vld [vmem:[%s17199_s1 + $0x3e0] sm:$0xff]  ;;  %v17240_v20 = vpack.c.bf16 %v11639_v53, %v11634_v51  ;;  %v17241_v45 = vpack.c.bf16 %v11629_v50, %v11620_v47 }
  0x36   : > { %9323 = vmatpush3.bf16.msra.mxu0 %v9322_v14  ;;  %888 = vmatmul.mubr.f32.gmra.mrb[2].mxu1 %v405_v41  ;;  %v11660_v52 = vld [vmem:[%s17199_s1 + $0x358] sm:$0xff]  ;;  %v421_v10 = vld [vmem:[%s11314_s22 + $0x110] sm:$0xff]  ;;  %v3323_v33 = vadd.f32 %v3322_v48, %v422_v57  ;;  %v3484_v34 = vmax.f32 %v3483_v49, %v422_v57  ;;  %v11685_v41 = vld [vmem:[%s17199_s1 + $0x268] sm:$0xff]  ;;  %v3296_v49 = vadd.f32 %v3295_v54, %v419_v60 }
  0x37   : > { %9355 = vmatpush3.bf16.msra.mxu1 %v9354_v22  ;;  %9325 = vmatprep.subr.bf16.mxu0 %v9324_v23  ;;  %v11668_v22 = vld [vmem:[%s17199_s1 + $0x2e0] sm:$0xff]  ;;  %v11673_v23 = vld [vmem:[%s17199_s1 + $0x2e8] sm:$0xff]  ;;  %v9370_v48 = vpack.c.bf16 %v11660_v52, %v11655_v9  ;;  %v438_v36 = vld [vmem:[%s11314_s22 + $0x198] sm:$0xff]  ;;  %v3314_v32 = vadd.f32 %v3313_v61, %v421_v10  ;;  %v3475_v58 = vmax.f32 %v3474_v62, %v421_v10 }
  0x38   : > { %9357 = vmatprep.subr.bf16.mxu1 %v9356_v25  ;;  %807 = vmatprep.mubr.f32.mxu0 %v420_v56  ;;  %v11678_v25 = vld [vmem:[%s17199_s1 + $0x260] sm:$0xff]  ;;  %v11695_v44 = vld [vmem:[%s17199_s1 + $0x3e8] sm:$0xff]  ;;  %v3457_v56 = vmax.f32 %v3456_v55, %v419_v60  ;;  %v9340_v59 = vpack.c.bf16 %v11673_v23, %v11668_v22  ;;  %v3324_v11 = vadd.f32 %v3323_v33, %v438_v36  ;;  %v11746_v62 = vld [vmem:[%s11314_s22 + $0x38] sm:$0xff] }
  0x39   : > { %892 = vmatprep.mubr.f32.mxu1 %v422_v57  ;;  %808 = vmatmul.mubr.f32.gmra.mrb[4].mxu0 %v419_v60  ;;  %v436_v57 = vld [vmem:[%s11314_s22 + $0x188] sm:$0xff]  ;;  %v435_v14 = vld [vmem:[%s11314_s22 + $0x180] sm:$0xff]  ;;  %v9342_v54 = vpack.c.bf16 %v11685_v41, %v11678_v25  ;;  %v9372_v8 = vpack.c.bf16 %v11695_v44, %v11690_v43  ;;  %v571_v47 = vld [vmem:[%s17199_s1 + $0x2f0] sm:$0xff] }
  0x3a   : > { %9327 = vmatpush3.bf16.msra.mxu0 %v9326_v24  ;;  %893 = vmatmul.mubr.f32.gmra.mrb[4].mxu1 %v421_v10  ;;  %v437_v24 = vld [vmem:[%s11314_s22 + $0x190] sm:$0xff]  ;;  %v11722_v1 = vld [vmem:[%s17199_s1 + $0x360] sm:$0xff]  ;;  %v11727_v2 = vld [vmem:[%s17199_s1 + $0x368] sm:$0xff]  ;;  %v3306_v3 = vadd.f32 %v3305_v0, %v436_v57  ;;  %v3467_v4 = vmax.f32 %v3466_v15, %v436_v57  ;;  %v3297_v55 = vadd.f32 %v3296_v49, %v435_v14  ;;  %v3325_v6 = vrot.slane %v3324_v11, 4 }
  0x3b   : > { %9359 = vmatpush3.bf16.msra.mxu1 %v9358_v29  ;;  %9329 = vmatprep.subr.bf16.mxu0 %v9328_v30  ;;  %v3485_v29 = vmax.f32 %v3484_v34, %v438_v36  ;;  %v3458_v60 = vmax.f32 %v3457_v56, %v435_v14  ;;  %v11735_v61 = vld [vmem:[%s11314_s22 + $0x28] sm:$0xff]  ;;  %v572_v50 = vld [vmem:[%s17199_s1 + $0x2f8] sm:$0xff]  ;;  %v555_v22 = vld [vmem:[%s17199_s1 + $0x270] sm:$0xff] }
  0x3c   : > { %9361 = vmatprep.subr.bf16.mxu1 %v9360_v35  ;;  %812 = vmatprep.mubr.f32.mxu0 %v436_v57  ;;  %v3307_v30 = vrot.slane %v3306_v3, 4  ;;  %v3468_v35 = vrot.slane %v3467_v4, 4  ;;  %v3298_v12 = vrot.slane %v3297_v55, 4  ;;  %v3326_v18 = vadd.f32 %v3325_v6, %v3324_v11  ;;  %v556_v23 = vld [vmem:[%s17199_s1 + $0x278] sm:$0xff] }
  0x3d   : > { %897 = vmatprep.mubr.f32.mxu1 %v438_v36  ;;  %813 = vmatmul.mubr.f32.gmra.mrb[6].mxu0 %v435_v14  ;;  %v9374_v36 = vpack.c.bf16 %v11727_v2, %v11722_v1  ;;  %v3486_v7 = vrot.slane %v3485_v29, 4  ;;  %v3459_v13 = vrot.slane %v3458_v60, 4  ;;  %v9346_v41 = vpack.c.bf16 %v556_v23, %v555_v22  ;;  %v653_v1 = vld [vmem:[%s17199_s1 + $0x580] sm:$0xff]  ;;  %v654_v2 = vld [vmem:[%s17199_s1 + $0x588] sm:$0xff]  ;;  %v11877_v22 = vld [vmem:[%s11314_s22 + $0xb0] sm:$0xff] }
  0x3e   : > { %9331 = vmatpush3.bf16.msra.mxu0 %v9330_v31  ;;  %898 = vmatmul.mubr.f32.gmra.mrb[6].mxu1 %v437_v24  ;;  %v3315_v31 = vadd.f32 %v3314_v32, %v437_v24  ;;  %v3308_v10 = vadd.f32 %v3307_v30, %v3306_v3  ;;  %v3469_v14 = vmax.f32 %v3467_v4, %v3468_v35  ;;  %v604_v30 = vld [vmem:[%s17199_s1 + $0x3f8] sm:$0xff]  ;;  %v587_v35 = vld [vmem:[%s17199_s1 + $0x370] sm:$0xff] }
  0x3f   : > { %9363 = vmatpush3.bf16.msra.mxu1 %v9362_v37  ;;  %9333 = vmatprep.subr.bf16.mxu0 %v9332_v38  ;;  %v3487_v19 = vmax.f32 %v3485_v29, %v3486_v7  ;;  %v3476_v38 = vmax.f32 %v3475_v58, %v437_v24  ;;  %v3299_v27 = vadd.f32 %v3298_v12, %v3297_v55  ;;  %v588_v55 = vld [vmem:[%s17199_s1 + $0x378] sm:$0xff]  ;;  %v639_v23 = vld [vmem:[%s17199_s1 + $0x510] sm:$0xff] }
  0x40   : > { %9365 = vmatprep.subr.bf16.mxu1 %v9364_v16  ;;  %967 = vmatprep.mubr.f32.mxu0 %v11735_v61  ;;  %v3316_v37 = vrot.slane %v3315_v31, 4  ;;  %v3309_v0 = vrot.slane %v3308_v10, 2  ;;  %v3470_v15 = vrot.slane %v3469_v14, 2  ;;  %v3460_v28 = vmax.f32 %v3458_v60, %v3459_v13  ;;  %v10961_v63 = vld [vmem:[%s11314_s22 + $0xb8] sm:$0xff] }
  0x41   : > { %1052 = vmatprep.mubr.f32.mxu1 %v11746_v62  ;;  %v3327_v16 = vrot.slane %v3326_v18, 2  ;;  %v3488_v32 = vrot.slane %v3487_v19, 2  ;;  %v3477_v34 = vrot.slane %v3476_v38, 4  ;;  %v3300_v43 = vrot.slane %v3299_v27, 2 }
  0x42   : > { %9335 = vmatpush3.bf16.msra.mxu0 %v9334_v42  ;;  %v3317_v33 = vadd.f32 %v3316_v37, %v3315_v31  ;;  %v3310_v26 = vadd.f32 %v3309_v0, %v3308_v10  ;;  %v3471_v42 = vmax.f32 %v3469_v14, %v3470_v15  ;;  %v3461_v44 = vrot.slane %v3460_v28, 2  ;;  %v621_v10 = vld [vmem:[%s17199_s1 + $0x480] sm:$0xff]  ;;  %v622_v14 = vld [vmem:[%s17199_s1 + $0x488] sm:$0xff] }
  0x43   : > { %9367 = vmatpush3.bf16.msra.mxu1 %v9366_v17  ;;  %9337 = vmatprep.subr.bf16.mxu0 %v9336_v5  ;;  %v3328_v49 = vadd.f32 %v3327_v16, %v3326_v18  ;;  %v3489_v56 = vmax.f32 %v3487_v19, %v3488_v32  ;;  %v3478_v40 = vmax.f32 %v3476_v38, %v3477_v34  ;;  %v606_v18 = vld [vmem:[%s17199_s1 + $0x408] sm:$0xff]  ;;  %v11830_v34 = vld [vmem:[%s11314_s22 + $0x20] sm:$0xff] }
  0x44   : > { %9369 = vmatprep.subr.bf16.mxu1 %v17240_v20  ;;  %v3318_v39 = vrot.slane %v3317_v33, 2  ;;  %v3311_v46 = vrot.slane %v3310_v26, 1  ;;  %v3472_v17 = vrot.slane %v3471_v42, 1  ;;  %v3301_v5 = vadd.f32 %v3300_v43, %v3299_v27  ;;  %v638_v16 = vld [vmem:[%s17199_s1 + $0x508] sm:$0xff] }
  0x45   : > { %v3462_v57 = vmax.f32 %v3460_v28, %v3461_v44  ;;  %v3329_v51 = vrot.slane %v3328_v49, 1  ;;  %v3490_v53 = vrot.slane %v3489_v56, 1  ;;  %v3479_v24 = vrot.slane %v3478_v40, 2  ;;  %v637_v28 = vld [vmem:[%s17199_s1 + $0x500] sm:$0xff]  ;;  %v11833_v44 = vld [vmem:[%s11314_s22 + $0x30] sm:$0xff] }
  0x46   : > { %9339 = vmatpush3.bf16.msra.mxu0 %v17241_v45  ;;  %v3319_v58 = vadd.f32 %v3318_v39, %v3317_v33  ;;  %v3312_v3 = vadd.f32 %v3311_v46, %v3310_v26  ;;  %v3473_v9 = vmax.f32 %v3471_v42, %v3472_v17  ;;  %v3302_v52 = vrot.slane %v3301_v5, 1  ;;  %v11839_v45 = vld [vmem:[%s11314_s22 + $0xa0] sm:$0xff]  ;;  %v623_v46 = vld [vmem:[%s17199_s1 + $0x490] sm:$0xff] }
  0x47   : > { %9371 = vmatpush3.bf16.msra.mxu1 %v9370_v48  ;;  %9341 = vmatprep.subr.bf16.mxu0 %v9340_v59  ;;  %v3463_v48 = vrot.slane %v3462_v57, 1  ;;  %v603_v59 = vld [vmem:[%s17199_s1 + $0x3f0] sm:$0xff]  ;;  %v3330_v4 = vadd.f32 %v3329_v51, %v3328_v49  ;;  %v3491_v11 = vmax.f32 %v3489_v56, %v3490_v53  ;;  %v9344_v31 = vpack.c.bf16 %v572_v50, %v571_v47  ;;  %v624_v53 = vld [vmem:[%s17199_s1 + $0x498] sm:$0xff] }
  0x48   : > { %9373 = vmatprep.subr.bf16.mxu1 %v9372_v8  ;;  %v3320_v29 = vrot.slane %v3319_v58, 1  ;;  %v3480_v8 = vmax.f32 %v3478_v40, %v3479_v24  ;;  %v3441_v60 = vmul.f32 0.03125, %v3312_v3  ;;  %v3303_v6 = vadd.f32 %v3302_v52, %v3301_v5  ;;  %v408_v40 = vld [vmem:[%s11314_s22 + $0xa8] sm:$0xff]  ;;  %v607_v24 = vld [vmem:[%s17199_s1 + $0x410] sm:$0xff]  ;;  %v608_v50 = vld [vmem:[%s17199_s1 + $0x418] sm:$0xff] }
  0x49   : > { %v3464_v7 = vmax.f32 %v3462_v57, %v3463_v48  ;;  %v3443_v12 = vmul.f32 0.03125, %v3330_v4  ;;  %v9376_v38 = vpack.c.bf16 %v604_v30, %v603_v59  ;;  %v9378_v0 = vpack.c.bf16 %v588_v55, %v587_v35  ;;  %v655_v3 = vld [vmem:[%s17199_s1 + $0x590] sm:$0xff]  ;;  %v640_v59 = vld [vmem:[%s17199_s1 + $0x518] sm:$0xff] }
  0x4a   : > { %9343 = vmatpush3.bf16.msra.mxu0 %v9342_v54  ;;  %v3321_v13 = vadd.f32 %v3320_v29, %v3319_v58  ;;  %v3481_v25 = vrot.slane %v3480_v8, 1  ;;  %v605_v54 = vld [vmem:[%s17199_s1 + $0x400] sm:$0xff]  ;;  %v3440_v19 = vmul.f32 0.03125, %v3303_v6  ;;  %v9380_v27 = vpack.c.bf16 %v622_v14, %v621_v10  ;;  %v11856_v58 = vld [vmem:[%s11314_s22 + $0xb8] sm:$0xff] }
  0x4b   : > { %9375 = vmatpush3.bf16.msra.mxu1 %v9374_v36  ;;  %v3627_v37 = vcombine.low %v3464_v7, %v3473_v9  ;;  %9345 = vmatprep.subr.bf16.mxu0 %v9344_v31  ;;  %v9382_v20 = vpack.c.bf16 %v606_v18, %v605_v54  ;;  %v9412_v43 = vpack.c.bf16 %v654_v2, %v653_v1  ;;  %v17242_v17 = vlaneseq  ;;  %v656_v9 = vld [vmem:[%s17199_s1 + $0x598] sm:$0xff]  ;;  %v625_v6 = vld [vmem:[%s17199_s1 + $0x4a0] sm:$0xff]  ;;  %v626_v7 = vld [vmem:[%s17199_s1 + $0x4a8] sm:$0xff] }
  0x4c   : > { %v3442_v36 = vmul.f32 0.03125, %v3321_v13  ;;  %v3482_v15 = vmax.f32 %v3480_v8, %v3481_v25  ;;  %v3602_v32 = vcombine.low %v3440_v19, %v3441_v60  ;;  %9377 = vmatprep.subr.bf16.mxu1 %v9376_v38  ;;  %v9414_v39 = vpack.c.bf16 %v638_v16, %v637_v28  ;;  %v424_v8 = vld [vmem:[%s11314_s22 + $0x128] sm:$0xff]  ;;  %v423_v60 = vld [vmem:[%s11314_s22 + $0x120] sm:$0xff]  ;;  %v426_v10 = vld [vmem:[%s11314_s22 + $0x138] sm:$0xff] }
  0x4d   : > { %v3634_v33 = vrot.slane %v3627_v37, %v11550_v21  ;;  %vm11845_vm0 = vcmp.lt.s32.totalorder %v17242_v17, 256  ;;  %v17243_v5 = vmov 0  ;;  %v3340_v4 = vadd.f32 %v408_v40, %v11735_v61  ;;  %v609_v14 = vld [vmem:[%s17199_s1 + $0x420] sm:$0xff]  ;;  %v11924_v54 = vld [vmem:[%s11314_s22 + $0x130] sm:$0xff]  ;;  %v440_v1 = vld [vmem:[%s11314_s22 + $0x1a8] sm:$0xff] }
  0x4e   : > { %9347 = vmatpush3.bf16.msra.mxu0 %v9346_v41  ;;  %v3648_v26 = vcombine.low %v3442_v36, %v3443_v12  ;;  %v3669_v42 = vcombine.low %v3482_v15, %v3491_v11  ;;  %v3609_v49 = vrot.slane %v3602_v32, %v11550_v21  ;;  %v17244_v5 = vsel %vm11845_vm0, 4294967295, %v17243_v5  ;;  %v610_v12 = vld [vmem:[%s17199_s1 + $0x428] sm:$0xff]  ;;  %v657_v25 = vld [vmem:[%s17199_s1 + $0x5a0] sm:$0xff]  ;;  %v627_v16 = vld [vmem:[%s17199_s1 + $0x4b0] sm:$0xff] }
  0x4f   : > { %9379 = vmatpush3.bf16.msra.mxu1 %v9378_v0  ;;  %9381 = vmatprep.subr.bf16.mxu0 %v9380_v27  ;;  %v3641_v56 = vrot.slane %v3634_v33, %v11550_v21  ;;  %17245 = vst [vmem:[#allocation10_spill] sm:$0xff] %v17244_v5  ;;  %v3501_v11 = vmax.f32 %v11735_v61, %v408_v40  ;;  %v658_v41 = vld [vmem:[%s17199_s1 + $0x5a8] sm:$0xff]  ;;  %v641_v38 = vld [vmem:[%s17199_s1 + $0x520] sm:$0xff]  ;;  %v612_v17 = vld [vmem:[%s17199_s1 + $0x438] sm:$0xff] }
  0x50   : > { %v3655_v57 = vrot.slane %v3648_v26, %v11550_v21  ;;  %v3676_v51 = vrot.slane %v3669_v42, %v11550_v21  ;;  %9413 = vmatprep.subr.bf16.mxu1 %v9412_v43  ;;  %v3616_v47 = vrot.slane %v3609_v49, %v11550_v21  ;;  %v9384_v29 = vpack.c.bf16 %v624_v53, %v623_v46  ;;  %v642_v0 = vld [vmem:[%s17199_s1 + $0x528] sm:$0xff]  ;;  %v439_v28 = vld [vmem:[%s11314_s22 + $0x1a0] sm:$0xff]  ;;  %v442_v26 = vld [vmem:[%s11314_s22 + $0x1b8] sm:$0xff] }
  0x51   : > { %968 = vmatmul.mubr.f32.vlgmr.msra.gmra.mrb[8].mxu0 %v11830_v34  ;;  %3644 = vst.msk [vmem:[#allocation4 + $0x2] ss:$8 sm:$0x3] %vm11845_vm0, %v3641_v56  ;;  %v3331_v30 = vadd.f32 %v11839_v45, %v11830_v34  ;;  %v3492_v35 = vmax.f32 %v11830_v34, %v11839_v45  ;;  %v9386_v61 = vpack.c.bf16 %v608_v50, %v607_v24  ;;  %v11947_v42 = vld [vmem:[%s11314_s22 + $0x48] sm:$0xff]  ;;  %v611_v46 = vld [vmem:[%s17199_s1 + $0x430] sm:$0xff]  ;;  %v11966_v50 = vld [vmem:[%s11314_s22 + $0x58] sm:$0xff] }
  0x52   : > { %9383 = vmatpush3.bf16.msra.mxu0 %v9382_v20  ;;  %1053 = vmatmul.mubr.f32.vlgmr.msra.gmra.mrb[8].mxu1 %v11833_v44  ;;  %v3662_v52 = vrot.slane %v3655_v57, %v11550_v21  ;;  %v3683_v48 = vrot.slane %v3676_v51, %v11550_v21  ;;  %3623 = vst.msk [vmem:[#allocation3 + $0x2] ss:$8 sm:$0x3] %vm11845_vm0, %v3616_v47  ;;  %v628_v20 = vld [vmem:[%s17199_s1 + $0x4b8] sm:$0xff]  ;;  %v659_v24 = vld [vmem:[%s17199_s1 + $0x5b0] sm:$0xff] }
  0x53   : > { %9415 = vmatpush3.bf16.msra.mxu1 %v9414_v39  ;;  %972 = vmatprep.mubr.f32.mxu0 %v408_v40  ;;  %v9416_v55 = vpack.c.bf16 %v656_v9, %v655_v3  ;;  %v9418_v31 = vpack.c.bf16 %v640_v59, %v639_v23  ;;  %v3358_v13 = vadd.f32 %v11856_v58, %v11746_v62  ;;  %v441_v39 = vld [vmem:[%s11314_s22 + $0x1b0] sm:$0xff]  ;;  %v660_v47 = vld [vmem:[%s17199_s1 + $0x5b8] sm:$0xff] }
  0x54   : > { %1057 = vmatprep.mubr.f32.mxu1 %v11856_v58  ;;  %3665 = vst.msk [vmem:[#allocation3 + $0x3] ss:$8 sm:$0x3] %vm11845_vm0, %v3662_v52  ;;  %3686 = vst.msk [vmem:[#allocation4 + $0x3] ss:$8 sm:$0x3] %vm11845_vm0, %v3683_v48  ;;  %9385 = vmatprep.subr.bf16.mxu0 %v9384_v29  ;;  %v3519_v18 = vmax.f32 %v11746_v62, %v11856_v58  ;;  %v3341_v19 = vadd.f32 %v3340_v4, %v424_v8 }
  0x55   : > { %973 = vmatmul.mubr.f32.gmra.mrb[10].mxu0 %v11839_v45  ;;  %9417 = vmatprep.subr.bf16.mxu1 %v9416_v55  ;;  %v3502_v37 = vmax.f32 %v3501_v11, %v424_v8  ;;  %v3332_v2 = vadd.f32 %v3331_v30, %v423_v60  ;;  %v3493_v36 = vmax.f32 %v3492_v35, %v423_v60 }
  0x56   : > { %1058 = vmatmul.mubr.f32.gmra.mrb[10].mxu1 %v11877_v22  ;;  %9387 = vmatpush3.bf16.msra.mxu0 %v9386_v61  ;;  %v9388_v62 = vpack.c.bf16 %v626_v7, %v625_v6  ;;  %v9390_v15 = vpack.c.bf16 %v610_v12, %v609_v14  ;;  %v9420_v27 = vpack.c.bf16 %v658_v41, %v657_v25 }
  0x57   : > { %9419 = vmatpush3.bf16.msra.mxu1 %v9418_v31  ;;  %977 = vmatprep.mubr.f32.mxu0 %v424_v8  ;;  %v3349_v32 = vadd.f32 %v11877_v22, %v11833_v44  ;;  %v3359_v33 = vadd.f32 %v3358_v13, %v426_v10  ;;  %v9422_v34 = vpack.c.bf16 %v642_v0, %v641_v38 }
  0x58   : > { %1062 = vmatprep.mubr.f32.mxu1 %v426_v10  ;;  %9389 = vmatprep.subr.bf16.mxu0 %v9388_v62  ;;  %v3520_v43 = vmax.f32 %v3519_v18, %v426_v10  ;;  %v3342_v49 = vadd.f32 %v3341_v19, %v440_v1  ;;  %v3503_v56 = vmax.f32 %v3502_v37, %v440_v1  ;;  %v643_v62 = vld [vmem:[%s17199_s1 + $0x530] sm:$0xff] }
  0x59   : > { %978 = vmatmul.mubr.f32.gmra.mrb[12].mxu0 %v423_v60  ;;  %9421 = vmatprep.subr.bf16.mxu1 %v9420_v27  ;;  %v3333_v40 = vadd.f32 %v3332_v2, %v439_v28  ;;  %v3494_v45 = vmax.f32 %v3493_v36, %v439_v28  ;;  %v3510_v57 = vmax.f32 %v11833_v44, %v11877_v22 }
  0x5a   : > { %1063 = vmatmul.mubr.f32.gmra.mrb[12].mxu1 %v11924_v54  ;;  %982 = vmatprep.mubr.f32.mxu0 %v440_v1  ;;  %v3343_v51 = vrot.slane %v3342_v49, 4  ;;  %v3504_v53 = vrot.slane %v3503_v56, 4  ;;  %v9392_v58 = vpack.c.bf16 %v628_v20, %v627_v16  ;;  %v3350_v3 = vadd.f32 %v3349_v32, %v11924_v54 }
  0x5b   : > { %9391 = vmatpush3.bf16.msra.mxu0 %v9390_v15  ;;  %9423 = vmatpush3.bf16.msra.mxu1 %v9422_v34  ;;  %v3334_v9 = vrot.slane %v3333_v40, 4  ;;  %v3495_v44 = vrot.slane %v3494_v45, 4  ;;  %v3360_v52 = vadd.f32 %v3359_v33, %v442_v26  ;;  %v3521_v23 = vmax.f32 %v3520_v43, %v442_v26  ;;  %v644_v15 = vld [vmem:[%s17199_s1 + $0x538] sm:$0xff]  ;;  %v629_v33 = vld [vmem:[%s17199_s1 + $0x4c0] sm:$0xff] }
  0x5c   : > { %1067 = vmatprep.mubr.f32.mxu1 %v442_v26  ;;  %v3344_v48 = vadd.f32 %v3343_v51, %v3342_v49  ;;  %v3505_v22 = vmax.f32 %v3503_v56, %v3504_v53  ;;  %9393 = vmatprep.subr.bf16.mxu0 %v9392_v58  ;;  %v9394_v59 = vpack.c.bf16 %v612_v17, %v611_v46  ;;  %v630_v49 = vld [vmem:[%s17199_s1 + $0x4c8] sm:$0xff]  ;;  %v613_v56 = vld [vmem:[%s17199_s1 + $0x440] sm:$0xff] }
  0x5d   : > { %983 = vmatmul.mubr.f32.gmra.mrb[14].mxu0 %v439_v28  ;;  %v3335_v4 = vadd.f32 %v3334_v9, %v3333_v40  ;;  %v3496_v11 = vmax.f32 %v3494_v45, %v3495_v44  ;;  %v3361_v29 = vrot.slane %v3360_v52, 4  ;;  %v9424_v8 = vpack.c.bf16 %v660_v47, %v659_v24  ;;  %v661_v17 = vld [vmem:[%s17199_s1 + $0x5c0] sm:$0xff]  ;;  %v631_v9 = vld [vmem:[%s17199_s1 + $0x4d0] sm:$0xff]  ;;  %v632_v44 = vld [vmem:[%s17199_s1 + $0x4d8] sm:$0xff] }
  0x5e   : > { %1137 = vmatprep.mubr.f32.mxu0 %v11947_v42  ;;  %1068 = vmatmul.mubr.f32.gmra.mrb[14].mxu1 %v441_v39  ;;  %v3511_v30 = vmax.f32 %v3510_v57, %v11924_v54  ;;  %v3345_v35 = vrot.slane %v3344_v48, 2  ;;  %v3506_v61 = vrot.slane %v3505_v22, 2  ;;  %v3522_v55 = vrot.slane %v3521_v23, 4  ;;  %v662_v57 = vld [vmem:[%s17199_s1 + $0x5c8] sm:$0xff]  ;;  %v645_v51 = vld [vmem:[%s17199_s1 + $0x540] sm:$0xff] }
  0x5f   : > { %1222 = vmatprep.mubr.f32.mxu1 %v11966_v50  ;;  %9395 = vmatpush3.bf16.msra.mxu0 %v9394_v59  ;;  %v3336_v60 = vrot.slane %v3335_v4, 2  ;;  %v3497_v6 = vrot.slane %v3496_v11, 2  ;;  %v3362_v7 = vadd.f32 %v3361_v29, %v3360_v52  ;;  %v3351_v31 = vadd.f32 %v3350_v3, %v441_v39  ;;  %v646_v3 = vld [vmem:[%s17199_s1 + $0x548] sm:$0xff]  ;;  %v615_v59 = vld [vmem:[%s17199_s1 + $0x450] sm:$0xff] }
  0x60   : > { %9425 = vmatprep.subr.bf16.mxu1 %v9424_v8  ;;  %v3346_v10 = vadd.f32 %v3345_v35, %v3344_v48  ;;  %v3507_v14 = vmax.f32 %v3505_v22, %v3506_v61  ;;  %v3523_v12 = vmax.f32 %v3521_v23, %v3522_v55  ;;  %v3512_v54 = vmax.f32 %v3511_v30, %v441_v39  ;;  %v614_v39 = vld [vmem:[%s17199_s1 + $0x448] sm:$0xff]  ;;  %v664_v61 = vld [vmem:[%s17199_s1 + $0x5d8] sm:$0xff]  ;;  %v633_v55 = vld [vmem:[%s17199_s1 + $0x4e0] sm:$0xff] }
  0x61   : > { %v3337_v13 = vadd.f32 %v3336_v60, %v3335_v4  ;;  %v3498_v25 = vmax.f32 %v3496_v11, %v3497_v6  ;;  %v3363_v41 = vrot.slane %v3362_v7, 2  ;;  %v3352_v18 = vrot.slane %v3351_v31, 4  ;;  %v616_v4 = vld [vmem:[%s17199_s1 + $0x458] sm:$0xff]  ;;  %v663_v11 = vld [vmem:[%s17199_s1 + $0x5d0] sm:$0xff]  ;;  %v634_v60 = vld [vmem:[%s17199_s1 + $0x4e8] sm:$0xff] }
  0x62   : > { %v3347_v19 = vrot.slane %v3346_v10, 1  ;;  %v3508_v37 = vrot.slane %v3507_v14, 1  ;;  %v3524_v38 = vrot.slane %v3523_v12, 2  ;;  %v3513_v32 = vrot.slane %v3512_v54, 4 }
  0x63   : > { %v3338_v0 = vrot.slane %v3337_v13, 1  ;;  %v3499_v1 = vrot.slane %v3498_v25, 1  ;;  %v3364_v2 = vadd.f32 %v3363_v41, %v3362_v7  ;;  %v3353_v36 = vadd.f32 %v3352_v18, %v3351_v31 }
  0x64   : > { %v3348_v27 = vadd.f32 %v3347_v19, %v3346_v10  ;;  %v3509_v28 = vmax.f32 %v3507_v14, %v3508_v37  ;;  %v3525_v16 = vmax.f32 %v3523_v12, %v3524_v38  ;;  %v3514_v45 = vmax.f32 %v3512_v54, %v3513_v32  ;;  %v647_v14 = vld [vmem:[%s17199_s1 + $0x550] sm:$0xff]  ;;  %v648_v12 = vld [vmem:[%s17199_s1 + $0x558] sm:$0xff]  ;;  %v665_v19 = vld [vmem:[%s17199_s1 + $0x5e0] sm:$0xff] }
  0x65   : > { %v3339_v34 = vadd.f32 %v3338_v0, %v3337_v13  ;;  %v3500_v20 = vmax.f32 %v3498_v25, %v3499_v1  ;;  %v3365_v26 = vrot.slane %v3364_v2, 1  ;;  %v3354_v43 = vrot.slane %v3353_v36, 2  ;;  %v666_v37 = vld [vmem:[%s17199_s1 + $0x5e8] sm:$0xff]  ;;  %v636_v32 = vld [vmem:[%s17199_s1 + $0x4f8] sm:$0xff] }
  0x66   : > { %v3445_v40 = vmul.f32 0.03125, %v3348_v27  ;;  %v9426_v46 = vpack.c.bf16 %v644_v15, %v643_v62  ;;  %v3526_v52 = vrot.slane %v3525_v16, 1  ;;  %v3515_v48 = vrot.slane %v3514_v45, 2 }
  0x67   : > { %v3444_v53 = vmul.f32 0.03125, %v3339_v34  ;;  %v3711_v58 = vcombine.low %v3500_v20, %v3509_v28  ;;  %v3366_v24 = vadd.f32 %v3365_v26, %v3364_v2  ;;  %v3355_v47 = vadd.f32 %v3354_v43, %v3353_v36  ;;  %v617_v2 = vld [vmem:[%s17199_s1 + $0x460] sm:$0xff]  ;;  %v618_v36 = vld [vmem:[%s17199_s1 + $0x468] sm:$0xff]  ;;  %v12064_v26 = vld [vmem:[%s17199_s1 + $0x470] sm:$0xff] }
  0x68   : > { %9427 = vmatpush3.bf16.msra.mxu1 %v9426_v46  ;;  %v9396_v22 = vpack.c.bf16 %v630_v49, %v629_v33  ;;  %v9398_v23 = vpack.c.bf16 %v614_v39, %v613_v56  ;;  %v3516_v6 = vmax.f32 %v3514_v45, %v3515_v48  ;;  %v9428_v7 = vpack.c.bf16 %v662_v57, %v661_v17  ;;  %v649_v28 = vld [vmem:[%s17199_s1 + $0x560] sm:$0xff]  ;;  %v650_v20 = vld [vmem:[%s17199_s1 + $0x568] sm:$0xff]  ;;  %v12069_v43 = vld [vmem:[%s17199_s1 + $0x478] sm:$0xff] }
  0x69   : > { %v3690_v29 = vcombine.low %v3444_v53, %v3445_v40  ;;  %v3718_v8 = vrot.slane %v3711_v58, %v11550_v21  ;;  %v3447_v30 = vmul.f32 0.03125, %v3366_v24  ;;  %v3356_v35 = vrot.slane %v3355_v47, 1  ;;  %v667_v39 = vld [vmem:[%s17199_s1 + $0x5f0] sm:$0xff]  ;;  %v668_v40 = vld [vmem:[%s17199_s1 + $0x5f8] sm:$0xff]  ;;  %v12082_v45 = vld [vmem:[%s17199_s1 + $0x680] sm:$0xff] }
  0x6a   : > { %9397 = vmatprep.subr.bf16.mxu0 %v9396_v22  ;;  %v9430_v31 = vpack.c.bf16 %v646_v3, %v645_v51  ;;  %v9400_v10 = vpack.c.bf16 %v632_v44, %v631_v9  ;;  %v9402_v18 = vpack.c.bf16 %v616_v4, %v615_v59  ;;  %v3527_v38 = vmax.f32 %v3525_v16, %v3526_v52  ;;  %v635_v16 = vld [vmem:[%s17199_s1 + $0x4f0] sm:$0xff]  ;;  %v12092_v51 = vld [vmem:[%s17199_s1 + $0x578] sm:$0xff]  ;;  %v12095_v53 = vld [vmem:[%s11314_s22 + $0x40] sm:$0xff] }
  0x6b   : > { %v3697_v13 = vrot.slane %v3690_v29, %v11550_v21  ;;  %v3725_v25 = vrot.slane %v3718_v8, %v11550_v21  ;;  %v3357_v41 = vadd.f32 %v3356_v35, %v3355_v47  ;;  %9399 = vmatpush3.bf16.msra.mxu0 %v9398_v23  ;;  %v3517_v54 = vrot.slane %v3516_v6, 1  ;;  %9429 = vmatprep.subr.bf16.mxu1 %v9428_v7  ;;  %v12087_v57 = vld [vmem:[%s17199_s1 + $0x570] sm:$0xff]  ;;  %v686_v58 = vld [vmem:[%s17199_s1 + $0x688] sm:$0xff]  ;;  %v12103_v24 = vld [vmem:[%s17199_s1 + $0x600] sm:$0xff] }
  0x6c   : > { %9401 = vmatprep.subr.bf16.mxu0 %v9400_v10  ;;  %v9432_v0 = vpack.c.bf16 %v664_v61, %v663_v11  ;;  %v9404_v1 = vpack.c.bf16 %v634_v60, %v633_v55  ;;  %9431 = vmatpush3.bf16.msra.mxu1 %v9430_v31  ;;  %v9434_v27 = vpack.c.bf16 %v648_v12, %v647_v14  ;;  %v12108_v47 = vld [vmem:[%s17199_s1 + $0x608] sm:$0xff]  ;;  %v12114_v44 = vld [vmem:[%s17199_s1 + $0x780] sm:$0xff]  ;;  %v12150_v35 = vld [vmem:[%s17199_s1 + $0x698] sm:$0xff] }
  0x6d   : > { %v3704_v62 = vrot.slane %v3697_v13, %v11550_v21  ;;  %3728 = vst.msk [vmem:[#allocation4 + $0x4] ss:$8 sm:$0x3] %vm11845_vm0, %v3725_v25  ;;  %v3446_v15 = vmul.f32 0.03125, %v3357_v41  ;;  %v3518_v33 = vmax.f32 %v3516_v6, %v3517_v54  ;;  %v9436_v34 = vpack.c.bf16 %v666_v37, %v665_v19  ;;  %v12119_v52 = vld [vmem:[%s17199_s1 + $0x788] sm:$0xff]  ;;  %v12124_v48 = vld [vmem:[%s17199_s1 + $0x700] sm:$0xff] }
  0x6e   : > { %9433 = vmatprep.subr.bf16.mxu1 %v9432_v0  ;;  %v9406_v56 = vpack.c.bf16 %v618_v36, %v617_v2  ;;  %v9408_v17 = vpack.c.bf16 %v636_v32, %v635_v16  ;;  %v9438_v9 = vpack.c.bf16 %v650_v20, %v649_v28  ;;  %v12129_v22 = vld [vmem:[%s17199_s1 + $0x708] sm:$0xff]  ;;  %v12135_v59 = vld [vmem:[%s11314_s22 + $0xc0] sm:$0xff]  ;;  %v9440_v11 = vpack.c.bf16 %v668_v40, %v667_v39  ;;  %v12153_v61 = vld [vmem:[%s11314_s22 + $0xd8] sm:$0xff] }
  0x6f   : > { %3707 = vst.msk [vmem:[#allocation3 + $0x4] ss:$8 sm:$0x3] %vm11845_vm0, %v3704_v62  ;;  %v3732_v49 = vcombine.low %v3446_v15, %v3447_v30  ;;  %9403 = vmatpush3.bf16.msra.mxu0 %v9402_v18  ;;  %v3753_v46 = vcombine.low %v3518_v33, %v3527_v38  ;;  %v12132_v23 = vld [vmem:[%s11314_s22 + $0xc8] sm:$0xff]  ;;  %v12145_v30 = vld [vmem:[%s17199_s1 + $0x690] sm:$0xff]  ;;  %v3367_v60 = vadd.f32 %v12135_v59, %v12095_v53  ;;  %v12170_v31 = vld [vmem:[%s17199_s1 + $0x618] sm:$0xff] }
  0x70   : > { %9405 = vmatprep.subr.bf16.mxu0 %v9404_v1  ;;  %9435 = vmatpush3.bf16.msra.mxu1 %v9434_v27  ;;  %v3376_v29 = vadd.f32 %v12132_v23, %v11947_v42  ;;  %v3537_v8 = vmax.f32 %v11947_v42, %v12132_v23  ;;  %v9410_v42 = vpack.c.bf16 %v12069_v43, %v12064_v26  ;;  %v12165_v7 = vld [vmem:[%s17199_s1 + $0x610] sm:$0xff]  ;;  %v12180_v14 = vld [vmem:[%s17199_s1 + $0x798] sm:$0xff]  ;;  %v12209_v1 = vld [vmem:[%s11314_s22 + $0x148] sm:$0xff] }
  0x71   : > { %v3739_v3 = vrot.slane %v3732_v49, %v11550_v21  ;;  %v3760_v4 = vrot.slane %v3753_v46, %v11550_v21  ;;  %9437 = vmatprep.subr.bf16.mxu1 %v9436_v34  ;;  %v3528_v6 = vmax.f32 %v12095_v53, %v12135_v59  ;;  %v12175_v10 = vld [vmem:[%s17199_s1 + $0x790] sm:$0xff]  ;;  %v9444_v13 = vpack.c.bf16 %v686_v58, %v12082_v45  ;;  %v12196_v19 = vld [vmem:[%s17199_s1 + $0x718] sm:$0xff]  ;;  %v12212_v2 = vld [vmem:[%s11314_s22 + $0x140] sm:$0xff] }
  0x72   : > { %v397_v25 = vld [vmem:[%s11314_s22 + $0x50] sm:$0xff]  ;;  %v9442_v37 = vpack.c.bf16 %v12092_v51, %v12087_v57  ;;  %v9446_v38 = vpack.c.bf16 %v12108_v47, %v12103_v24  ;;  %v3394_v54 = vadd.f32 %v12153_v61, %v11966_v50  ;;  %v3555_v0 = vmax.f32 %v11966_v50, %v12153_v61  ;;  %v12217_v36 = vld [vmem:[%s17199_s1 + $0x6a0] sm:$0xff]  ;;  %v12230_v28 = vld [vmem:[%s17199_s1 + $0x6a8] sm:$0xff] }
  0x73   : > { %v3746_v55 = vrot.slane %v3739_v3, %v11550_v21  ;;  %9407 = vmatpush3.bf16.msra.mxu0 %v9406_v56  ;;  %v3767_v12 = vrot.slane %v3760_v4, %v11550_v21  ;;  %v12186_v41 = vld [vmem:[%s11314_s22 + $0xd0] sm:$0xff]  ;;  %v9476_v62 = vpack.c.bf16 %v12119_v52, %v12114_v44  ;;  %v9478_v15 = vpack.c.bf16 %v12129_v22, %v12124_v48  ;;  %v12235_v16 = vld [vmem:[%s17199_s1 + $0x620] sm:$0xff]  ;;  %v12240_v32 = vld [vmem:[%s17199_s1 + $0x628] sm:$0xff] }
  0x74   : > { %9409 = vmatprep.subr.bf16.mxu0 %v9408_v17  ;;  %v12191_v18 = vld [vmem:[%s17199_s1 + $0x710] sm:$0xff]  ;;  %9439 = vmatpush3.bf16.msra.mxu1 %v9438_v9  ;;  %v3377_v50 = vadd.f32 %v3376_v29, %v12209_v1  ;;  %v3538_v27 = vmax.f32 %v3537_v8, %v12209_v1  ;;  %v9448_v33 = vpack.c.bf16 %v12150_v35, %v12145_v30  ;;  %v12250_v43 = vld [vmem:[%s17199_s1 + $0x7a0] sm:$0xff]  ;;  %v12255_v49 = vld [vmem:[%s17199_s1 + $0x7a8] sm:$0xff] }
  0x75   : > { %3749 = vst.msk [vmem:[#allocation3 + $0x5] ss:$8 sm:$0x3] %vm11845_vm0, %v3746_v55  ;;  %3770 = vst.msk [vmem:[#allocation4 + $0x5] ss:$8 sm:$0x3] %vm11845_vm0, %v3767_v12  ;;  %9441 = vmatprep.subr.bf16.mxu1 %v9440_v11  ;;  %v3385_v34 = vadd.f32 %v12186_v41, %v397_v25  ;;  %v3368_v20 = vadd.f32 %v3367_v60, %v12212_v2  ;;  %v3529_v26 = vmax.f32 %v3528_v6, %v12212_v2 }
  0x76   : > { %v9450_v56 = vpack.c.bf16 %v12170_v31, %v12165_v7  ;;  %v9480_v39 = vpack.c.bf16 %v12180_v14, %v12175_v10  ;;  %v3546_v40 = vmax.f32 %v397_v25, %v12186_v41  ;;  %v9482_v45 = vpack.c.bf16 %v12196_v19, %v12191_v18  ;;  %v430_v46 = vld [vmem:[%s11314_s22 + $0x158] sm:$0xff]  ;;  %v12272_v24 = vld [vmem:[%s17199_s1 + $0x720] sm:$0xff]  ;;  %v12277_v47 = vld [vmem:[%s17199_s1 + $0x728] sm:$0xff] }
  0x77   : > { %9411 = vmatpush3.bf16.msra.mxu0 %v9410_v42  ;;  %v9452_v17 = vpack.c.bf16 %v12230_v28, %v12217_v36  ;;  %v3395_v57 = vadd.f32 %v3394_v54, %v430_v46  ;;  %v3556_v51 = vmax.f32 %v3555_v0, %v430_v46  ;;  %v9454_v58 = vpack.c.bf16 %v12240_v32, %v12235_v16  ;;  %v444_v3 = vld [vmem:[%s11314_s22 + $0x1c8] sm:$0xff]  ;;  %v429_v44 = vld [vmem:[%s11314_s22 + $0x150] sm:$0xff]  ;;  %v12285_v22 = vld [vmem:[%s11314_s22 + $0x1c0] sm:$0xff] }
  0x78   : > { %9445 = vmatprep.subr.bf16.mxu0 %v9444_v13  ;;  %9443 = vmatpush3.bf16.msra.mxu1 %v9442_v37  ;;  %v9484_v9 = vpack.c.bf16 %v12255_v49, %v12250_v43  ;;  %v3378_v52 = vadd.f32 %v3377_v50, %v444_v3  ;;  %v3539_v48 = vmax.f32 %v3538_v27, %v444_v3  ;;  %v692_v8 = vld [vmem:[%s17199_s1 + $0x6b8] sm:$0xff]  ;;  %v12304_v60 = vld [vmem:[%s17199_s1 + $0x630] sm:$0xff] }
  0x79   : > { %9477 = vmatprep.subr.bf16.mxu1 %v9476_v62  ;;  %v3386_v4 = vadd.f32 %v3385_v34, %v429_v44  ;;  %v3369_v11 = vadd.f32 %v3368_v20, %v12285_v22  ;;  %v3530_v29 = vmax.f32 %v3529_v26, %v12285_v22  ;;  %v3547_v30 = vmax.f32 %v3546_v40, %v429_v44  ;;  %v12299_v42 = vld [vmem:[%s11314_s22 + $0x1d8] sm:$0xff]  ;;  %v723_v12 = vld [vmem:[%s17199_s1 + $0x7b0] sm:$0xff] }
  0x7a   : > { %1138 = vmatmul.mubr.f32.vlgmr.msra.gmra.mrb[16].mxu0 %v12095_v53  ;;  %v691_v53 = vld [vmem:[%s17199_s1 + $0x6b0] sm:$0xff]  ;;  %v9486_v35 = vpack.c.bf16 %v12277_v47, %v12272_v24  ;;  %v3540_v55 = vrot.slane %v3539_v48, 4  ;;  %v3396_v31 = vadd.f32 %v3395_v57, %v12299_v42  ;;  %v3557_v10 = vmax.f32 %v3556_v51, %v12299_v42  ;;  %v12312_v14 = vld [vmem:[%s17199_s1 + $0x638] sm:$0xff] }
  0x7b   : > { %9447 = vmatpush3.bf16.msra.mxu0 %v9446_v38  ;;  %1142 = vmatprep.mubr.f32.mxu0 %v12132_v23  ;;  %v3379_v23 = vrot.slane %v3378_v52, 4  ;;  %v3370_v6 = vrot.slane %v3369_v11, 4  ;;  %v3531_v7 = vrot.slane %v3530_v29, 4  ;;  %v724_v13 = vld [vmem:[%s17199_s1 + $0x7b8] sm:$0xff]  ;;  %v9456_v18 = vpack.c.bf16 %v692_v8, %v691_v53  ;;  %v12326_v28 = vld [vmem:[%s11314_s22 + $0x1d0] sm:$0xff]  ;;  %v678_v53 = vld [vmem:[%s17199_s1 + $0x648] sm:$0xff] }
  0x7c   : > { %1223 = vmatmul.mubr.f32.vlgmr.msra.gmra.mrb[16].mxu1 %v397_v25  ;;  %9449 = vmatprep.subr.bf16.mxu0 %v9448_v33  ;;  %v3541_v25 = vmax.f32 %v3539_v48, %v3540_v55  ;;  %v3397_v38 = vrot.slane %v3396_v31, 4  ;;  %v3558_v54 = vrot.slane %v3557_v10, 4  ;;  %v9488_v62 = vpack.c.bf16 %v724_v13, %v723_v12  ;;  %v707_v57 = vld [vmem:[%s17199_s1 + $0x730] sm:$0xff]  ;;  %v708_v51 = vld [vmem:[%s17199_s1 + $0x738] sm:$0xff]  ;;  %v725_v8 = vld [vmem:[%s17199_s1 + $0x7c0] sm:$0xff] }
  0x7d   : > { %9479 = vmatpush3.bf16.msra.mxu1 %v9478_v15  ;;  %1227 = vmatprep.mubr.f32.mxu1 %v12153_v61  ;;  %v3380_v61 = vadd.f32 %v3379_v23, %v3378_v52  ;;  %v3371_v19 = vadd.f32 %v3370_v6, %v3369_v11  ;;  %v3532_v37 = vmax.f32 %v3530_v29, %v3531_v7  ;;  %v12352_v52 = vld [vmem:[%s11314_s22 + $0x78] sm:$0xff]  ;;  %v709_v6 = vld [vmem:[%s17199_s1 + $0x740] sm:$0xff]  ;;  %v710_v7 = vld [vmem:[%s17199_s1 + $0x748] sm:$0xff] }
  0x7e   : > { %1143 = vmatmul.mubr.f32.gmra.mrb[18].mxu0 %v12135_v59  ;;  %9481 = vmatprep.subr.bf16.mxu1 %v9480_v39  ;;  %v3542_v36 = vrot.slane %v3541_v25, 2  ;;  %v9458_v59 = vpack.c.bf16 %v12312_v14, %v12304_v60  ;;  %v3398_v27 = vadd.f32 %v3397_v38, %v3396_v31  ;;  %v3387_v34 = vadd.f32 %v3386_v4, %v12326_v28  ;;  %v726_v60 = vld [vmem:[%s17199_s1 + $0x7c8] sm:$0xff]  ;;  %v695_v12 = vld [vmem:[%s17199_s1 + $0x6d0] sm:$0xff]  ;;  %v696_v13 = vld [vmem:[%s17199_s1 + $0x6d8] sm:$0xff] }
  0x7f   : > { %9451 = vmatpush3.bf16.msra.mxu0 %v9450_v56  ;;  %1147 = vmatprep.mubr.f32.mxu0 %v12209_v1  ;;  %v3381_v0 = vrot.slane %v3380_v61, 2  ;;  %v3372_v15 = vrot.slane %v3371_v19, 2  ;;  %v3533_v50 = vrot.slane %v3532_v37, 2  ;;  %v3559_v1 = vmax.f32 %v3557_v10, %v3558_v54  ;;  %v680_v38 = vld [vmem:[%s17199_s1 + $0x658] sm:$0xff]  ;;  %v727_v54 = vld [vmem:[%s17199_s1 + $0x7d0] sm:$0xff] }
  0x80   : > { %1228 = vmatmul.mubr.f32.gmra.mrb[18].mxu1 %v12186_v41  ;;  %9453 = vmatprep.subr.bf16.mxu0 %v9452_v17  ;;  %v3543_v33 = vmax.f32 %v3541_v25, %v3542_v36  ;;  %v3399_v43 = vrot.slane %v3398_v27, 2  ;;  %v3548_v40 = vmax.f32 %v3547_v30, %v12326_v28  ;;  %v9490_v55 = vpack.c.bf16 %v708_v51, %v707_v57  ;;  %v682_v51 = vld [vmem:[%s17199_s1 + $0x668] sm:$0xff] }
  0x81   : > { %9483 = vmatpush3.bf16.msra.mxu1 %v9482_v45  ;;  %1232 = vmatprep.mubr.f32.mxu1 %v430_v46  ;;  %v3382_v41 = vadd.f32 %v3381_v0, %v3380_v61  ;;  %v3373_v20 = vadd.f32 %v3372_v15, %v3371_v19  ;;  %v3534_v26 = vmax.f32 %v3532_v37, %v3533_v50  ;;  %v3560_v49 = vrot.slane %v3559_v1, 2  ;;  %v12335_v45 = vld [vmem:[%s11314_s22 + $0x68] sm:$0xff]  ;;  %v679_v61 = vld [vmem:[%s17199_s1 + $0x650] sm:$0xff]  ;;  %v728_v0 = vld [vmem:[%s17199_s1 + $0x7d8] sm:$0xff] }
  0x82   : > { %1148 = vmatmul.mubr.f32.gmra.mrb[20].mxu0 %v12212_v2  ;;  %9485 = vmatprep.subr.bf16.mxu1 %v9484_v9  ;;  %v3544_v39 = vrot.slane %v3543_v33, 1  ;;  %v3388_v2 = vrot.slane %v3387_v34, 4  ;;  %v3400_v16 = vadd.f32 %v3399_v43, %v3398_v27  ;;  %v693_v9 = vld [vmem:[%s17199_s1 + $0x6c0] sm:$0xff]  ;;  %v9492_v15 = vpack.c.bf16 %v726_v60, %v725_v8  ;;  %v711_v50 = vld [vmem:[%s17199_s1 + $0x750] sm:$0xff]  ;;  %v712_v27 = vld [vmem:[%s17199_s1 + $0x758] sm:$0xff] }
  0x83   : > { %9455 = vmatpush3.bf16.msra.mxu0 %v9454_v58  ;;  %1152 = vmatprep.mubr.f32.mxu0 %v444_v3  ;;  %v3383_v56 = vrot.slane %v3382_v41, 1  ;;  %v3374_v46 = vrot.slane %v3373_v20, 1  ;;  %v3535_v17 = vrot.slane %v3534_v26, 1  ;;  %v3561_v32 = vmax.f32 %v3559_v1, %v3560_v49  ;;  %v697_v1 = vld [vmem:[%s17199_s1 + $0x6e0] sm:$0xff]  ;;  %v730_v49 = vld [vmem:[%s17199_s1 + $0x7e8] sm:$0xff]  ;;  %v684_v60 = vld [vmem:[%s17199_s1 + $0x678] sm:$0xff] }
  0x84   : > { %1233 = vmatmul.mubr.f32.gmra.mrb[20].mxu1 %v429_v44  ;;  %9457 = vmatprep.subr.bf16.mxu0 %v9456_v18  ;;  %v3545_v24 = vmax.f32 %v3543_v33, %v3544_v39  ;;  %v3389_v47 = vadd.f32 %v3388_v2, %v3387_v34  ;;  %v3549_v3 = vrot.slane %v3548_v40, 4  ;;  %v694_v44 = vld [vmem:[%s17199_s1 + $0x6c8] sm:$0xff]  ;;  %v3401_v11 = vrot.slane %v3400_v16, 1  ;;  %v729_v43 = vld [vmem:[%s17199_s1 + $0x7e0] sm:$0xff] }
  0x85   : > { %9487 = vmatpush3.bf16.msra.mxu1 %v9486_v35  ;;  %1237 = vmatprep.mubr.f32.mxu1 %v12299_v42  ;;  %v3384_v58 = vadd.f32 %v3383_v56, %v3382_v41  ;;  %v3375_v48 = vadd.f32 %v3374_v46, %v3373_v20  ;;  %v3536_v4 = vmax.f32 %v3534_v26, %v3535_v17  ;;  %v3562_v29 = vrot.slane %v3561_v32, 1  ;;  %v698_v26 = vld [vmem:[%s17199_s1 + $0x6e8] sm:$0xff]  ;;  %v681_v46 = vld [vmem:[%s17199_s1 + $0x660] sm:$0xff] }
  0x86   : > { %1153 = vmatmul.mubr.f32.gmra.mrb[22].mxu0 %v12285_v22  ;;  %9489 = vmatprep.subr.bf16.mxu1 %v9488_v62  ;;  %v677_v22 = vld [vmem:[%s17199_s1 + $0x640] sm:$0xff]  ;;  %v3390_v35 = vrot.slane %v3389_v47, 2  ;;  %v3550_v23 = vmax.f32 %v3548_v40, %v3549_v3  ;;  %v3402_v14 = vadd.f32 %v3401_v11, %v3400_v16  ;;  %v9460_v19 = vpack.c.bf16 %v694_v44, %v693_v9  ;;  %v699_v44 = vld [vmem:[%s17199_s1 + $0x6f0] sm:$0xff] }
  0x87   : > { %9459 = vmatpush3.bf16.msra.mxu0 %v9458_v59  ;;  %1307 = vmatprep.mubr.f32.mxu0 %v12335_v45  ;;  %v3449_v30 = vmul.f32 0.03125, %v3384_v58  ;;  %v3448_v31 = vmul.f32 0.03125, %v3375_v48  ;;  %v3795_v10 = vcombine.low %v3536_v4, %v3545_v24  ;;  %v9462_v37 = vpack.c.bf16 %v678_v53, %v677_v22  ;;  %v713_v58 = vld [vmem:[%s17199_s1 + $0x760] sm:$0xff]  ;;  %v714_v24 = vld [vmem:[%s17199_s1 + $0x768] sm:$0xff]  ;;  %v700_v48 = vld [vmem:[%s17199_s1 + $0x6f8] sm:$0xff] }
  0x88   : > { %1238 = vmatmul.mubr.f32.gmra.mrb[22].mxu1 %v12326_v28  ;;  %v3391_v25 = vadd.f32 %v3390_v35, %v3389_v47  ;;  %v3551_v18 = vrot.slane %v3550_v23, 2  ;;  %v3563_v62 = vmax.f32 %v3561_v32, %v3562_v29  ;;  %9461 = vmatprep.subr.bf16.mxu0 %v9460_v19  ;;  %v9494_v34 = vpack.c.bf16 %v710_v7, %v709_v6  ;;  %v731_v29 = vld [vmem:[%s17199_s1 + $0x7f0] sm:$0xff]  ;;  %v732_v22 = vld [vmem:[%s17199_s1 + $0x7f8] sm:$0xff]  ;;  %v12453_v7 = vld [vmem:[%s11314_s22 + $0xe8] sm:$0xff] }
  0x89   : > { %1392 = vmatprep.mubr.f32.mxu1 %v12352_v52  ;;  %9491 = vmatpush3.bf16.msra.mxu1 %v9490_v55  ;;  %v3774_v36 = vcombine.low %v3448_v31, %v3449_v30  ;;  %v3802_v59 = vrot.slane %v3795_v10, %v11550_v21  ;;  %v9464_v20 = vpack.c.bf16 %v696_v13, %v695_v12  ;;  %v3451_v2 = vmul.f32 0.03125, %v3402_v14  ;;  %v683_v30 = vld [vmem:[%s17199_s1 + $0x670] sm:$0xff]  ;;  %v716_v10 = vld [vmem:[%s17199_s1 + $0x778] sm:$0xff]  ;;  %v12459_v14 = vld [vmem:[%s11314_s22 + $0x60] sm:$0xff] }
  0x8a   : > { %v3392_v41 = vrot.slane %v3391_v25, 1  ;;  %v3552_v33 = vmax.f32 %v3550_v23, %v3551_v18  ;;  %9493 = vmatprep.subr.bf16.mxu1 %v9492_v15  ;;  %v9466_v40 = vpack.c.bf16 %v680_v38, %v679_v61  ;;  %v9496_v32 = vpack.c.bf16 %v728_v0, %v727_v54  ;;  %v715_v6 = vld [vmem:[%s17199_s1 + $0x770] sm:$0xff]  ;;  %v12466_v61 = vld [vmem:[%s11314_s22 + $0xe0] sm:$0xff]  ;;  %v12475_v38 = vld [vmem:[%s11314_s22 + $0xf8] sm:$0xff] }
  0x8b   : > { %v3781_v56 = vrot.slane %v3774_v36, %v11550_v21  ;;  %v3809_v39 = vrot.slane %v3802_v59, %v11550_v21  ;;  %9463 = vmatpush3.bf16.msra.mxu0 %v9462_v37  ;;  %v9498_v57 = vpack.c.bf16 %v712_v27, %v711_v50  ;;  %v9468_v3 = vpack.c.bf16 %v698_v26, %v697_v1  ;;  %v12484_v50 = vld [vmem:[%s11314_s22 + $0x70] sm:$0xff]  ;;  %v12490_v1 = vld [vmem:[%s11314_s22 + $0x168] sm:$0xff] }
  0x8c   : > { %v3393_v17 = vadd.f32 %v3392_v41, %v3391_v25  ;;  %v3553_v16 = vrot.slane %v3552_v33, 1  ;;  %9465 = vmatprep.subr.bf16.mxu0 %v9464_v20  ;;  %v9500_v9 = vpack.c.bf16 %v730_v49, %v729_v43  ;;  %v9470_v53 = vpack.c.bf16 %v682_v51, %v681_v46  ;;  %v12487_v27 = vld [vmem:[%s11314_s22 + $0xf0] sm:$0xff]  ;;  %v12506_v49 = vld [vmem:[%s11314_s22 + $0x178] sm:$0xff] }
  0x8d   : > { %9495 = vmatpush3.bf16.msra.mxu1 %v9494_v34  ;;  %v3788_v47 = vrot.slane %v3781_v56, %v11550_v21  ;;  %3812 = vst.msk [vmem:[#allocation4 + $0x6] ss:$8 sm:$0x3] %vm11845_vm0, %v3809_v39  ;;  %v9502_v8 = vpack.c.bf16 %v714_v24, %v713_v58  ;;  %v9472_v55 = vpack.c.bf16 %v700_v48, %v699_v44  ;;  %v12496_v34 = vld [vmem:[%s11314_s22 + $0x160] sm:$0xff]  ;;  %v12516_v46 = vld [vmem:[%s11314_s22 + $0x170] sm:$0xff] }
  0x8e   : > { %v3450_v4 = vmul.f32 0.03125, %v3393_v17  ;;  %v3554_v11 = vmax.f32 %v3552_v33, %v3553_v16  ;;  %9497 = vmatprep.subr.bf16.mxu1 %v9496_v32  ;;  %v9504_v31 = vpack.c.bf16 %v732_v22, %v731_v29  ;;  %v3412_v12 = vadd.f32 %v12453_v7, %v12335_v45  ;;  %v12521_v32 = vld [vmem:[%s11314_s22 + $0x1e0] sm:$0xff] }
  0x8f   : > { %3791 = vst.msk [vmem:[#allocation3 + $0x6] ss:$8 sm:$0x3] %vm11845_vm0, %v3788_v47  ;;  %9467 = vmatpush3.bf16.msra.mxu0 %v9466_v40  ;;  %v3573_v13 = vmax.f32 %v12335_v45, %v12453_v7  ;;  %v3403_v19 = vadd.f32 %v12466_v61, %v12459_v14  ;;  %v3564_v37 = vmax.f32 %v12459_v14, %v12466_v61 }
  0x90   : > { %v3816_v35 = vcombine.low %v3450_v4, %v3451_v2  ;;  %v3837_v23 = vcombine.low %v3554_v11, %v3563_v62  ;;  %9469 = vmatprep.subr.bf16.mxu0 %v9468_v3  ;;  %v9474_v54 = vpack.c.bf16 %v684_v60, %v683_v30  ;;  %v3430_v0 = vadd.f32 %v12475_v38, %v12352_v52  ;;  %v12511_v2 = vld [vmem:[%s11314_s22 + $0x1e8] sm:$0xff]  ;;  %v12537_v30 = vld [vmem:[%s11314_s22 + $0x1f0] sm:$0xff] }
  0x91   : > { %9499 = vmatpush3.bf16.msra.mxu1 %v9498_v57  ;;  %v3591_v36 = vmax.f32 %v12352_v52, %v12475_v38  ;;  %v9506_v15 = vpack.c.bf16 %v716_v10, %v715_v6  ;;  %v3421_v41 = vadd.f32 %v12487_v27, %v12484_v50  ;;  %v3413_v33 = vadd.f32 %v3412_v12, %v12490_v1  ;;  %v12524_v57 = vld [vmem:[%s11314_s22 + $0x1f8] sm:$0xff] }
  0x92   : > { %9501 = vmatprep.subr.bf16.mxu1 %v9500_v9  ;;  %v3823_v25 = vrot.slane %v3816_v35, %v11550_v21  ;;  %v3844_v18 = vrot.slane %v3837_v23, %v11550_v21  ;;  %v3574_v20 = vmax.f32 %v3573_v13, %v12490_v1  ;;  %v3404_v26 = vadd.f32 %v3403_v19, %v12496_v34 }
  0x93   : > { %9471 = vmatpush3.bf16.msra.mxu0 %v9470_v53  ;;  %v3565_v43 = vmax.f32 %v3564_v37, %v12496_v34  ;;  %v3431_v56 = vadd.f32 %v3430_v0, %v12506_v49  ;;  %v3592_v39 = vmax.f32 %v3591_v36, %v12506_v49  ;;  %v3582_v40 = vmax.f32 %v12484_v50, %v12487_v27 }
  0x94   : > { %v3830_v59 = vrot.slane %v3823_v25, %v11550_v21  ;;  %v3851_v62 = vrot.slane %v3844_v18, %v11550_v21  ;;  %9473 = vmatprep.subr.bf16.mxu0 %v9472_v55  ;;  %v3414_v17 = vadd.f32 %v3413_v33, %v12511_v2  ;;  %v3575_v16 = vmax.f32 %v3574_v20, %v12511_v2 }
  0x95   : > { %9503 = vmatpush3.bf16.msra.mxu1 %v9502_v8  ;;  %v3422_v51 = vadd.f32 %v3421_v41, %v12516_v46  ;;  %v3405_v58 = vadd.f32 %v3404_v26, %v12521_v32  ;;  %v3566_v24 = vmax.f32 %v3565_v43, %v12521_v32  ;;  %v3432_v47 = vadd.f32 %v3431_v56, %v12524_v57 }
  0x96   : > { %9505 = vmatprep.subr.bf16.mxu1 %v9504_v31  ;;  %3833 = vst.msk [vmem:[#allocation3 + $0x7] ss:$8 sm:$0x3] %vm11845_vm0, %v3830_v59  ;;  %3854 = vst.msk [vmem:[#allocation4 + $0x7] ss:$8 sm:$0x3] %vm11845_vm0, %v3851_v62  ;;  %v3593_v44 = vmax.f32 %v3592_v39, %v12524_v57  ;;  %v3583_v29 = vmax.f32 %v3582_v40, %v12516_v46 }
  0x97   : > { %9475 = vmatpush3.bf16.msra.mxu0 %v9474_v54  ;;  %v3415_v3 = vrot.slane %v3414_v17, 4  ;;  %v3576_v9 = vrot.slane %v3575_v16, 4  ;;  %v3406_v48 = vrot.slane %v3405_v58, 4  ;;  %v3567_v4 = vrot.slane %v3566_v24, 4 }
  0x98   : > { %v3433_v11 = vrot.slane %v3432_v47, 4  ;;  %v3594_v8 = vrot.slane %v3593_v44, 4  ;;  %v3423_v60 = vadd.f32 %v3422_v51, %v12537_v30  ;;  %v3584_v0 = vmax.f32 %v3583_v29, %v12537_v30 }
  0x99   : > { %9507 = vmatpush3.bf16.msra.mxu1 %v9506_v15  ;;  %v3416_v22 = vadd.f32 %v3415_v3, %v3414_v17  ;;  %v3577_v53 = vmax.f32 %v3575_v16, %v3576_v9  ;;  %v3407_v35 = vadd.f32 %v3406_v48, %v3405_v58  ;;  %v3568_v23 = vmax.f32 %v3566_v24, %v3567_v4 }
  0x9a   : > { %1308 = vmatmul.mubr.f32.vlgmr.msra.gmra.mrb[24].mxu0 %v12459_v14  ;;  %v3434_v55 = vadd.f32 %v3433_v11, %v3432_v47  ;;  %v3595_v10 = vmax.f32 %v3593_v44, %v3594_v8  ;;  %v3424_v18 = vrot.slane %v3423_v60, 4  ;;  %v3585_v26 = vrot.slane %v3584_v0, 4 }
  0x9b   : > { %1312 = vmatprep.mubr.f32.mxu0 %v12453_v7  ;;  %v3417_v6 = vrot.slane %v3416_v22, 2  ;;  %v3578_v31 = vrot.slane %v3577_v53, 2  ;;  %v3408_v12 = vrot.slane %v3407_v35, 2  ;;  %v3569_v13 = vrot.slane %v3568_v23, 2 }
  0x9c   : > { %1393 = vmatmul.mubr.f32.vlgmr.msra.gmra.mrb[24].mxu1 %v12484_v50  ;;  %v3435_v25 = vrot.slane %v3434_v55, 2  ;;  %v3596_v54 = vrot.slane %v3595_v10, 2  ;;  %v3425_v15 = vadd.f32 %v3424_v18, %v3423_v60  ;;  %v3586_v51 = vmax.f32 %v3584_v0, %v3585_v26 }
  0x9d   : > { %1397 = vmatprep.mubr.f32.mxu1 %v12475_v38  ;;  %v3418_v19 = vadd.f32 %v3417_v6, %v3416_v22  ;;  %v3579_v37 = vmax.f32 %v3577_v53, %v3578_v31  ;;  %v3409_v36 = vadd.f32 %v3408_v12, %v3407_v35  ;;  %v3570_v59 = vmax.f32 %v3568_v23, %v3569_v13 }
  0x9e   : > { %1313 = vmatmul.mubr.f32.gmra.mrb[26].mxu0 %v12466_v61  ;;  %v3436_v62 = vadd.f32 %v3435_v25, %v3434_v55  ;;  %v3597_v20 = vmax.f32 %v3595_v10, %v3596_v54  ;;  %v3426_v40 = vrot.slane %v3425_v15, 2  ;;  %v3587_v48 = vrot.slane %v3586_v51, 2 }
  0x9f   : > { %1317 = vmatprep.mubr.f32.mxu0 %v12490_v1  ;;  %v3419_v41 = vrot.slane %v3418_v19, 1  ;;  %v3580_v33 = vrot.slane %v3579_v37, 1  ;;  %v3410_v43 = vrot.slane %v3409_v36, 1  ;;  %v3571_v56 = vrot.slane %v3570_v59, 1 }
  0xa0   : > { %1398 = vmatmul.mubr.f32.gmra.mrb[26].mxu1 %v12487_v27  ;;  %v3437_v39 = vrot.slane %v3436_v62, 1  ;;  %v3427_v3 = vadd.f32 %v3426_v40, %v3425_v15  ;;  %v3598_v44 = vrot.slane %v3597_v20, 1  ;;  %v3588_v22 = vmax.f32 %v3586_v51, %v3587_v48 }
  0xa1   : > { %1402 = vmatprep.mubr.f32.mxu1 %v12506_v49  ;;  %v3420_v17 = vadd.f32 %v3419_v41, %v3418_v19  ;;  %v3581_v16 = vmax.f32 %v3579_v37, %v3580_v33  ;;  %v3411_v58 = vadd.f32 %v3410_v43, %v3409_v36  ;;  %v3572_v24 = vmax.f32 %v3570_v59, %v3571_v56 }
  0xa2   : > { %1318 = vmatmul.mubr.f32.gmra.mrb[28].mxu0 %v12496_v34  ;;  %v3438_v47 = vadd.f32 %v3437_v39, %v3436_v62  ;;  %v3428_v29 = vrot.slane %v3427_v3, 1  ;;  %v3599_v55 = vmax.f32 %v3597_v20, %v3598_v44  ;;  %v3589_v60 = vrot.slane %v3588_v22, 1 }
  0xa3   : > { %1322 = vmatprep.mubr.f32.mxu0 %v12511_v2  ;;  %v3453_v9 = vmul.f32 0.03125, %v3420_v17  ;;  %v3452_v4 = vmul.f32 0.03125, %v3411_v58  ;;  %v3879_v11 = vcombine.low %v3572_v24, %v3581_v16  ;;  %v17211_v26 = vmov 0.0  }
  0xa4   : > { %1403 = vmatmul.mubr.f32.gmra.mrb[28].mxu1 %v12516_v46  ;;  %v3455_v35 = vmul.f32 0.03125, %v3438_v47  ;;  %v3429_v23 = vadd.f32 %v3428_v29, %v3427_v3  ;;  %v3590_v12 = vmax.f32 %v3588_v22, %v3589_v60  ;;  %468 = vst.msk [vmem:[#allocation2] sm:$0xff] %vm467_vm1, %v17211_v26  ;;  %451 = vst [vmem:[#allocation3] sm:$0x3] %v17211_v26 }
  0xa5   : > { %1407 = vmatprep.mubr.f32.mxu1 %v12524_v57  ;;  %v3858_v53 = vcombine.low %v3452_v4, %v3453_v9  ;;  %v3886_v8 = vrot.slane %v3879_v11, %v11550_v21  ;;  %452 = vst [vmem:[#allocation3 + $0x8] sm:$0x3] %v17211_v26  ;;  %453 = vst [vmem:[#allocation3 + $0x10] sm:$0xc] %v17211_v26 }
  0xa6   : > { %1323 = vmatmul.mubr.f32.gmra.mrb[30].mxu0 %v12521_v32  ;;  %v3454_v10 = vmul.f32 0.03125, %v3429_v23  ;;  %v3921_v18 = vcombine.low %v3590_v12, %v3599_v55  ;;  %454 = vst [vmem:[#allocation3 + $0x18] sm:$0xc] %v17211_v26  ;;  %455 = vst [vmem:[#allocation4] sm:$0x3] %v17211_v26 }
  0xa7   : > { %v3865_v6 = vrot.slane %v3858_v53, %v11550_v21  ;;  %v3893_v31 = vrot.slane %v3886_v8, %v11550_v21  ;;  %456 = vst [vmem:[#allocation4 + $0x8] sm:$0x3] %v17211_v26  ;;  %457 = vst [vmem:[#allocation4 + $0x10] sm:$0xc] %v17211_v26 }
  0xa8   : > { %1408 = vmatmul.mubr.f32.gmra.mrb[30].mxu1 %v12537_v30  ;;  %v3900_v25 = vcombine.low %v3454_v10, %v3455_v35  ;;  %v3928_v37 = vrot.slane %v3921_v18, %v11550_v21  ;;  %458 = vst [vmem:[#allocation4 + $0x18] sm:$0xc] %v17211_v26  ;;  %459 = vst [vmem:[#allocation5] sm:$0x3] %v17211_v26 }
  0xa9   : > { %v3872_v13 = vrot.slane %v3865_v6, %v11550_v21  ;;  %3896 = vst.msk [vmem:[#allocation4 + $0x10] ss:$8 sm:$0x3] %vm11845_vm0, %v3893_v31  ;;  %460 = vst [vmem:[#allocation5 + $0x8] sm:$0x3] %v17211_v26 }
  0xaa   : > { %v3907_v19 = vrot.slane %v3900_v25, %v11550_v21  ;;  %v3935_v0 = vrot.slane %v3928_v37, %v11550_v21  ;;  %461 = vst [vmem:[#allocation5 + $0x10] sm:$0xc] %v17211_v26  ;;  %462 = vst [vmem:[#allocation5 + $0x18] sm:$0xc] %v17211_v26 }
  0xab   : > { %3875 = vst.msk [vmem:[#allocation3 + $0x10] ss:$8 sm:$0x3] %vm11845_vm0, %v3872_v13  ;;  %463 = vst [vmem:[#allocation6] sm:$0x3] %v17211_v26 }
  0xac   : > { %v3914_v54 = vrot.slane %v3907_v19, %v11550_v21  ;;  %3938 = vst.msk [vmem:[#allocation4 + $0x11] ss:$8 sm:$0x3] %vm11845_vm0, %v3935_v0  ;;  %464 = vst [vmem:[#allocation6 + $0x8] sm:$0x3] %v17211_v26 }
  0xad   : > { %465 = vst [vmem:[#allocation6 + $0x10] sm:$0xc] %v17211_v26  ;;  %466 = vst [vmem:[#allocation6 + $0x18] sm:$0xc] %v17211_v26 }
  0xae   : > { %3917 = vst.msk [vmem:[#allocation3 + $0x11] ss:$8 sm:$0x3] %vm11845_vm0, %v3914_v54 }
  0xaf   : > { %469 = vst.msk [vmem:[#allocation2 + $0x8] sm:$0xff] %vm467_vm1, %v17211_v26  ;;  %470 = vst.msk [vmem:[#allocation2 + $0x10] sm:$0xff] %vm467_vm1, %v17211_v26 }
  0xb0   : > { %471 = vst.msk [vmem:[#allocation2 + $0x18] sm:$0xff] %vm467_vm1, %v17211_v26 }
  0xb1   : > { %473 = vst.msk [vmem:[#allocation2] sm:$0xff] %vm472_vm2, %v17211_v26  ;;  %474 = vst.msk [vmem:[#allocation2 + $0x8] sm:$0xff] %vm472_vm2, %v17211_v26 }
  0xb2   : > { %475 = vst.msk [vmem:[#allocation2 + $0x10] sm:$0xff] %vm472_vm2, %v17211_v26  ;;  %476 = vst.msk [vmem:[#allocation2 + $0x18] sm:$0xff] %vm472_vm2, %v17211_v26 }
 0x104   : > { %v8740_v36 = vpop.f32.mrb[0].mxu0 }
 0x105   : > { %v8784_v59 = vpop.f32.mrb[0].mxu1  ;;  %v8741_v62 = vpop.f32.mrb[1].mxu0 }
 0x106   : > { %v8742_v15 = vadd.f32 %v8741_v62, %v8740_v36  ;;  %v8785_v41 = vpop.f32.mrb[1].mxu1 }
 0x107   : > { %v8786_v33 = vadd.f32 %v8785_v41, %v8784_v59 }
 0x108   : > { %v8743_v20 = vpop.f32.mrb[2].mxu0 }
 0x109   : > { %v885_v43 = vadd.f32 %v8786_v33, %v8742_v15  ;;  %v8787_v56 = vpop.f32.mrb[2].mxu1  ;;  %v8744_v39 = vpop.f32.mrb[3].mxu0 }
 0x10a   : > { %v8745_v40 = vadd.f32 %v8744_v39, %v8743_v20  ;;  %v8788_v17 = vpop.f32.mrb[3].mxu1 }
 0x10b   : > { %v8789_v16 = vadd.f32 %v8788_v17, %v8787_v56 }
 0x10c   : > { %v8746_v51 = vpop.f32.mrb[4].mxu0 }
 0x10d   : > { %v890_v58 = vadd.f32 %v8789_v16, %v8745_v40  ;;  %v8790_v24 = vpop.f32.mrb[4].mxu1  ;;  %v8747_v47 = vpop.f32.mrb[5].mxu0 }
 0x10e   : > { %v8748_v3 = vadd.f32 %v8747_v47, %v8746_v51  ;;  %v8791_v9 = vpop.f32.mrb[5].mxu1 }
 0x10f   : > { %v8792_v44 = vadd.f32 %v8791_v9, %v8790_v24 }
 0x110   : > { %v8749_v48 = vpop.f32.mrb[6].mxu0 }
 0x111   : > { %v895_v4 = vadd.f32 %v8792_v44, %v8748_v3  ;;  %v8793_v11 = vpop.f32.mrb[6].mxu1  ;;  %v8750_v29 = vpop.f32.mrb[7].mxu0 }
 0x112   : > { %v8751_v22 = vadd.f32 %v8750_v29, %v8749_v48  ;;  %v8794_v53 = vpop.f32.mrb[7].mxu1 }
 0x113   : > { %v8795_v8 = vadd.f32 %v8794_v53, %v8793_v11 }
 0x115   : > { %v900_v35 = vadd.f32 %v8795_v8, %v8751_v22 }
 0x124   : > { %v8828_v23 = vpop.f32.mrb[8].mxu0 }
 0x125   : > { %v8829_v55 = vpop.f32.mrb[9].mxu0  ;;  %v8872_v60 = vpop.f32.mrb[8].mxu1 }
 0x126   : > { %v8830_v6 = vadd.f32 %v8829_v55, %v8828_v23  ;;  %v8873_v31 = vpop.f32.mrb[9].mxu1 }
 0x127   : > { %v8874_v10 = vadd.f32 %v8873_v31, %v8872_v60 }
 0x128   : > { %v970_v12 = vadd.f32 %v8830_v6, %v885_v43  ;;  %v8831_v13 = vpop.f32.mrb[10].mxu0 }
 0x129   : > { %v8832_v25 = vpop.f32.mrb[11].mxu0  ;;  %v8875_v18 = vpop.f32.mrb[10].mxu1 }
 0x12a   : > { %v1055_v19 = vadd.f32 %v8874_v10, %v970_v12  ;;  %v8833_v37 = vadd.f32 %v8832_v25, %v8831_v13  ;;  %v8876_v54 = vpop.f32.mrb[11].mxu1 }
 0x12b   : > { %v8877_v0 = vadd.f32 %v8876_v54, %v8875_v18 }
 0x12c   : > { %v975_v36 = vadd.f32 %v8833_v37, %v890_v58  ;;  %v8834_v59 = vpop.f32.mrb[12].mxu0 }
 0x12d   : > { %v8835_v62 = vpop.f32.mrb[13].mxu0  ;;  %v8878_v15 = vpop.f32.mrb[12].mxu1 }
 0x12e   : > { %v1060_v41 = vadd.f32 %v8877_v0, %v975_v36  ;;  %v8836_v33 = vadd.f32 %v8835_v62, %v8834_v59  ;;  %v8879_v20 = vpop.f32.mrb[13].mxu1 }
 0x12f   : > { %v8880_v56 = vadd.f32 %v8879_v20, %v8878_v15 }
 0x130   : > { %v980_v39 = vadd.f32 %v8836_v33, %v895_v4  ;;  %v8837_v40 = vpop.f32.mrb[14].mxu0 }
 0x131   : > { %v8838_v17 = vpop.f32.mrb[15].mxu0  ;;  %v8881_v51 = vpop.f32.mrb[14].mxu1 }
 0x132   : > { %v1065_v16 = vadd.f32 %v8880_v56, %v980_v39  ;;  %v8839_v43 = vadd.f32 %v8838_v17, %v8837_v40  ;;  %v8882_v24 = vpop.f32.mrb[15].mxu1 }
 0x133   : > { %v8883_v3 = vadd.f32 %v8882_v24, %v8881_v51 }
 0x134   : > { %v985_v47 = vadd.f32 %v8839_v43, %v900_v35 }
 0x136   : > { %v1070_v9 = vadd.f32 %v8883_v3, %v985_v47 }
 0x14d   : > { %v8916_v44 = vpop.f32.mrb[16].mxu0 }
 0x14e   : > { %v8917_v48 = vpop.f32.mrb[17].mxu0 }
 0x14f   : > { %v8918_v58 = vadd.f32 %v8917_v48, %v8916_v44  ;;  %v8960_v11 = vpop.f32.mrb[16].mxu1 }
 0x150   : > { %v8961_v29 = vpop.f32.mrb[17].mxu1 }
 0x151   : > { %v1140_v22 = vadd.f32 %v8918_v58, %v1055_v19  ;;  %v8962_v53 = vadd.f32 %v8961_v29, %v8960_v11  ;;  %v8919_v8 = vpop.f32.mrb[18].mxu0 }
 0x152   : > { %v8920_v23 = vpop.f32.mrb[19].mxu0 }
 0x153   : > { %v1225_v55 = vadd.f32 %v8962_v53, %v1140_v22  ;;  %v8921_v4 = vadd.f32 %v8920_v23, %v8919_v8  ;;  %v8963_v60 = vpop.f32.mrb[18].mxu1 }
 0x154   : > { %v8964_v6 = vpop.f32.mrb[19].mxu1 }
 0x155   : > { %v1145_v31 = vadd.f32 %v8921_v4, %v1060_v41  ;;  %v8965_v10 = vadd.f32 %v8964_v6, %v8963_v60  ;;  %v8922_v12 = vpop.f32.mrb[20].mxu0 }
 0x156   : > { %v8923_v13 = vpop.f32.mrb[21].mxu0 }
 0x157   : > { %v1230_v35 = vadd.f32 %v8965_v10, %v1145_v31  ;;  %v8924_v25 = vadd.f32 %v8923_v13, %v8922_v12  ;;  %v8966_v18 = vpop.f32.mrb[20].mxu1 }
 0x158   : > { %v8967_v37 = vpop.f32.mrb[21].mxu1 }
 0x159   : > { %v1150_v54 = vadd.f32 %v8924_v25, %v1065_v16  ;;  %v8968_v0 = vadd.f32 %v8967_v37, %v8966_v18  ;;  %v8925_v36 = vpop.f32.mrb[22].mxu0 }
 0x15a   : > { %v8926_v59 = vpop.f32.mrb[23].mxu0 }
 0x15b   : > { %v1235_v19 = vadd.f32 %v8968_v0, %v1150_v54  ;;  %v8927_v62 = vadd.f32 %v8926_v59, %v8925_v36  ;;  %v8969_v15 = vpop.f32.mrb[22].mxu1 }
 0x15c   : > { %v8970_v33 = vpop.f32.mrb[23].mxu1 }
 0x15d   : > { %v1155_v20 = vadd.f32 %v8927_v62, %v1070_v9  ;;  %v8971_v56 = vadd.f32 %v8970_v33, %v8969_v15 }
 0x15f   : > { %v1240_v39 = vadd.f32 %v8971_v56, %v1155_v20  ;;  %v7798_v56 = vld [vmem:[%s17201_s3 + $0x30] sm:$0xff] }
 0x160   : > { %9138 = vmatprep.mubr.msk.f32.mxu0 %vm1467_vm4, %v7798_v56 }
 0x16d   : > { %v9004_v40 = vpop.f32.mrb[24].mxu0 }
 0x16e   : > { %v9005_v41 = vpop.f32.mrb[25].mxu0 }
 0x16f   : > { %v9048_v17 = vpop.f32.mrb[24].mxu1  ;;  %v9006_v43 = vadd.f32 %v9005_v41, %v9004_v40 }
 0x170   : > { %v9049_v51 = vpop.f32.mrb[25].mxu1 }
 0x171   : > { %v9050_v24 = vadd.f32 %v9049_v51, %v9048_v17  ;;  %v1310_v47 = vadd.f32 %v9006_v43, %v1225_v55  ;;  %v9007_v3 = vpop.f32.mrb[26].mxu0  ;;  %v10872_v43 = vld [vmem:[%s11314_s22 + $0x8] sm:$0xff]  ;;  %v10873_v51 = vld [vmem:[%s11314_s22] sm:$0xff] }
 0x172   : > { %v9008_v44 = vpop.f32.mrb[27].mxu0 }
 0x173   : > { %v9051_v16 = vpop.f32.mrb[26].mxu1  ;;  %v9009_v48 = vadd.f32 %v9008_v44, %v9007_v3  ;;  %v12599_v11 = vadd.f32 %v9050_v24, %v1310_v47  ;;  %v2998_v24 = vmax.f32 %v10873_v51, %v10872_v43  ;;  %v10874_v47 = vld [vmem:[%s11314_s22 + $0x48] sm:$0xff]  ;;  %v10875_v3 = vld [vmem:[%s11314_s22 + $0x40] sm:$0xff]  ;;  %v10893_v51 = vld [vmem:[%s11314_s22 + $0x190] sm:$0xff] }
 0x174   : > { %v9052_v58 = vpop.f32.mrb[27].mxu1  ;;  %v3005_v44 = vmax.f32 %v10874_v47, %v10875_v3  ;;  %v10894_v47 = vld [vmem:[%s11314_s22 + $0xa0] sm:$0xff] }
 0x175   : > { %v9053_v29 = vadd.f32 %v9052_v58, %v9051_v16  ;;  %v1315_v22 = vadd.f32 %v9009_v48, %v1230_v35  ;;  %v9010_v53 = vpop.f32.mrb[28].mxu0  ;;  %1417 = vrot.lane.b32.xlu0 %v12599_v11, %s11070_s14  ;;  %v10876_v16 = vld [vmem:[%s11314_s22 + $0x88] sm:$0xff]  ;;  %v10877_v48 = vld [vmem:[%s11314_s22 + $0x80] sm:$0xff] }
 0x176   : > { %v9011_v9 = vpop.f32.mrb[29].mxu0  ;;  %v3015_v58 = vmax.f32 %v10877_v48, %v10876_v16  ;;  %v10895_v16 = vld [vmem:[%s11314_s22 + $0x28] sm:$0xff] }
 0x177   : > { %v9054_v8 = vpop.f32.mrb[28].mxu1  ;;  %v12602_v23 = vadd.f32 %v9053_v29, %v1315_v22  ;;  %v9012_v4 = vadd.f32 %v9011_v9, %v9010_v53  ;;  %v10878_v29 = vld [vmem:[%s11314_s22 + $0xc8] sm:$0xff]  ;;  %v10879_v22 = vld [vmem:[%s11314_s22 + $0xc0] sm:$0xff]  ;;  %v10880_v9 = vld [vmem:[%s11314_s22 + $0x10] sm:$0xff] }
 0x178   : > { %v9055_v60 = vpop.f32.mrb[29].mxu1  ;;  %v3022_v53 = vmax.f32 %v10878_v29, %v10879_v22  ;;  %v10896_v22 = vld [vmem:[%s11314_s22 + $0x108] sm:$0xff] }
 0x179   : > { %v9056_v55 = vadd.f32 %v9055_v60, %v9054_v8  ;;  %v1320_v6 = vadd.f32 %v9012_v4, %v1235_v19  ;;  %v9013_v31 = vpop.f32.mrb[30].mxu0  ;;  %1419 = vrot.lane.b32.xlu0 %v12602_v23, %s11070_s14  ;;  %v2999_v8 = vmax.f32 %v2998_v24, %v10880_v9  ;;  %v10881_v4 = vld [vmem:[%s11314_s22 + $0x58] sm:$0xff]  ;;  %v10898_v9 = vld [vmem:[%s11314_s22 + $0x148] sm:$0xff] }
 0x17a   : > { %v9014_v10 = vpop.f32.mrb[31].mxu0  ;;  %v3006_v60 = vmax.f32 %v3005_v44, %v10881_v4 }
 0x17b   : > { %v9057_v12 = vpop.f32.mrb[30].mxu1  ;;  %v9015_v13 = vadd.f32 %v9014_v10, %v9013_v31  ;;  %v12605_v35 = vadd.f32 %v9056_v55, %v1320_v6  ;;  %v10882_v55 = vld [vmem:[%s11314_s22 + $0x90] sm:$0xff]  ;;  %v10883_v31 = vld [vmem:[%s11314_s22 + $0xd8] sm:$0xff] }
 0x17c   : > { %v9058_v25 = vpop.f32.mrb[31].mxu1  ;;  %v3016_v6 = vmax.f32 %v3015_v58, %v10882_v55  ;;  %v3023_v10 = vmax.f32 %v3022_v53, %v10883_v31  ;;  %v10897_v53 = vld [vmem:[%s11314_s22 + $0x100] sm:$0xff] }
 0x17d   : > { %v9059_v18 = vadd.f32 %v9058_v25, %v9057_v12  ;;  %v1325_v37 = vadd.f32 %v9015_v13, %v1240_v39  ;;  %1421 = vrot.lane.b32.xlu1 %v12605_v35, %s11070_s14  ;;  %v10884_v12 = vld [vmem:[%s11314_s22 + $0x18] sm:$0xff]  ;;  %v10885_v25 = vld [vmem:[%s11314_s22 + $0x50] sm:$0xff] }
 0x17e   : > { %v3000_v13 = vmax.f32 %v2999_v8, %v10884_v12  ;;  %v10899_v8 = vld [vmem:[%s11314_s22 + $0x140] sm:$0xff] }
 0x17f   : > { %v12608_v54 = vadd.f32 %v9059_v18, %v1325_v37  ;;  %v3007_v18 = vmax.f32 %v3006_v60, %v10885_v25  ;;  %v10886_v37 = vld [vmem:[%s11314_s22 + $0x188] sm:$0xff]  ;;  %v3039_v4 = vmax.f32 %v10898_v9, %v10899_v8  ;;  %v10916_v8 = vld [vmem:[%s11314_s22 + $0x130] sm:$0xff] }
 0x180   : > { %v10900_v60 = vld [vmem:[%s11314_s22 + $0xa8] sm:$0xff] }
 0x181   : > { %1423 = vrot.lane.b32.xlu1 %v12608_v54, %s11070_s14  ;;  %v3008_v43 = vmax.f32 %v3007_v18, %v12335_v45  ;;  %v3032_v45 = vmax.f32 %v10897_v53, %v10896_v22  ;;  %v10904_v18 = vld [vmem:[%s11314_s22 + $0x158] sm:$0xff]  ;;  %v10914_v22 = vld [vmem:[%s11314_s22 + $0x128] sm:$0xff] }
 0x183   : > { %v3009_v29 = vmax.f32 %v3008_v43, %v12459_v14 }
 0x185   : > { %v3010_v12 = vmax.f32 %v3009_v29, %v12352_v52  ;;  %v10907_v52 = vld [vmem:[%s11314_s22 + $0x38] sm:$0xff] }
 0x1e7   : > { %v1418_v0 = vpop.permute.xlu0 %1417 }
 0x1e8   : > { %1430 = vst.msk [vmem:[#allocation2] sm:$0xff] %vm1429_vm3, %v1418_v0  ;;  %v10887_v0 = vld [vmem:[%s11314_s22 + $0x180] sm:$0xff] }
 0x1eb   : > { %v1420_v36 = vpop.permute.xlu0 %1419 }
 0x1ec   : > { %1431 = vst.msk [vmem:[#allocation2 + $0x8] sm:$0xff] %vm1429_vm3, %v1420_v36  ;;  %v3049_v36 = vmax.f32 %v10887_v0, %v10886_v37  ;;  %v3040_v37 = vmax.f32 %v3039_v4, %v10904_v18  ;;  %v10905_v0 = vld [vmem:[%s11314_s22 + $0xb0] sm:$0xff] }
 0x1ee   : > { %v3050_v24 = vmax.f32 %v3049_v36, %v10893_v51 }
 0x1ef   : > { %v1422_v59 = vpop.permute.xlu1 %1421  ;;  %v1434_v62 = vld [vmem:[#allocation2] sm:$0xff] }
 0x1f0   : > { %1432 = vst.msk [vmem:[#allocation2 + $0x10] sm:$0xff] %vm1429_vm3, %v1422_v59  ;;  %v10888_v59 = vld [vmem:[%s11314_s22 + $0x98] sm:$0xff] }
 0x1f3   : > { %v1424_v19 = vpop.permute.xlu1 %1423  ;;  %v1435_v15 = vld [vmem:[#allocation2 + $0x8] sm:$0xff] }
 0x1f4   : > { %1433 = vst.msk [vmem:[#allocation2 + $0x18] sm:$0xff] %vm1429_vm3, %v1424_v19  ;;  %v10790_v33 = vpack.i.bf16 %v1435_v15, %v1434_v62  ;;  %v12611_v20 = vpack.c.bf16 %v1435_v15, %v1434_v62  ;;  %v3017_v19 = vmax.f32 %v3016_v6, %v10888_v59  ;;  %v10889_v62 = vld [vmem:[%s11314_s22 + $0xd0] sm:$0xff]  ;;  %v10906_v59 = vld [vmem:[%s11314_s22 + $0x1a0] sm:$0xff] }
 0x1f5   : > { %v3024_v15 = vmax.f32 %v3023_v10, %v10889_v62  ;;  %v10902_v10 = vld [vmem:[%s11314_s22 + $0x30] sm:$0xff]  ;;  %v3011_v62 = vmax.f32 %v3010_v12, %v12484_v50 }
 0x1f6   : > { %10791 = vrot.lane.b32.xlu0 %v10790_v33, %s11071_s12  ;;  %v3018_v3 = vmax.f32 %v3017_v19, %v10894_v47 }
 0x1f7   : > { %v1436_v39 = vld [vmem:[#allocation2 + $0x10] sm:$0xff]  ;;  %v3025_v44 = vmax.f32 %v3024_v15, %v12453_v7  ;;  %v10901_v7 = vld [vmem:[%s11314_s22 + $0x198] sm:$0xff] }
 0x1f8   : > { %v3019_v55 = vmax.f32 %v3018_v3, %v10900_v60  ;;  %v3051_v6 = vmax.f32 %v3050_v24, %v10901_v7  ;;  %v10911_v24 = vld [vmem:[%s11314_s22 + $0xb8] sm:$0xff]  ;;  %v10912_v3 = vld [vmem:[%s11314_s22 + $0x120] sm:$0xff]  ;;  %v2990_v60 = vsel %vm2256_vm5, %v12608_v54, 0.0 }
 0x1f9   : > { %v3026_v31 = vmax.f32 %v3025_v44, %v12466_v61 }
 0x1fa   : > { %10801 = vrot.lane.b32.xlu0 %v10790_v33, %s11072_s16  ;;  %v3020_v36 = vmax.f32 %v3019_v55, %v10905_v0  ;;  %v3052_v19 = vmax.f32 %v3051_v6, %v10906_v59  ;;  %v2987_v6 = vsel %vm2256_vm5, %v12605_v35, 0.0  ;;  %v7799_v35 = vld [vmem:[%s17201_s3 + $0x38] sm:$0xff]  ;;  %v7801_v0 = vld [vmem:[%s17201_s3 + $0x48] sm:$0xff] }
 0x1fb   : > { %v1437_v40 = vld [vmem:[#allocation2 + $0x18] sm:$0xff]  ;;  %v3027_v61 = vmax.f32 %v3026_v31, %v12475_v38  ;;  %v2981_v38 = vsel %vm2256_vm5, %v12599_v11, 0.0 }
 0x1fc   : > { %v10795_v41 = vpack.i.bf16 %v1437_v40, %v1436_v39  ;;  %v12618_v17 = vpack.c.bf16 %v1437_v40, %v1436_v39  ;;  %v10891_v39 = vld [vmem:[%s11314_s22 + $0x1c8] sm:$0xff]  ;;  %v10892_v40 = vld [vmem:[%s11314_s22 + $0x1c0] sm:$0xff]  ;;  %v3021_v47 = vmax.f32 %v3020_v36, %v10911_v24  ;;  %v7802_v36 = vld [vmem:[%s17201_s3 + $0x50] sm:$0xff] }
 0x1fd   : > { %v3028_v50 = vmax.f32 %v3027_v61, %v12487_v27  ;;  %v1438_v61 = vld [vmem:[%s17201_s3] sm:$0xff] }
 0x1fe   : > { %10796 = vrot.lane.b32.xlu1 %v10795_v41, %s11071_s12  ;;  %10811 = vrot.lane.b32.xlu0 %v10790_v33, %s11073_s19 }
 0x1ff   : > { %v3029_v11 = vmax.f32 %v3028_v50, %v3021_v47  ;;  %v1443_v50 = vld [vmem:[%s17201_s3 + $0x28] sm:$0xff] }
 0x202   : > { %10806 = vrot.lane.b32.xlu1 %v10795_v41, %s11072_s16  ;;  %10821 = vrot.lane.b32.xlu0 %v10790_v33, %s11074_s20  ;;  %v10890_v33 = vld [vmem:[%s11314_s22 + $0x20] sm:$0xff] }
 0x203   : > { %v3001_v56 = vmax.f32 %v3000_v13, %v10890_v33  ;;  %v10903_v13 = vld [vmem:[%s11314_s22 + $0x110] sm:$0xff]  ;;  %v10908_v33 = vld [vmem:[%s11314_s22 + $0x118] sm:$0xff] }
 0x204   : > { %v3033_v25 = vmax.f32 %v3032_v45, %v10903_v13  ;;  %v10915_v45 = vld [vmem:[%s11314_s22 + $0x1b8] sm:$0xff] }
 0x205   : > { %v3002_v48 = vmax.f32 %v3001_v56, %v10895_v16 }
 0x206   : > { %10816 = vrot.lane.b32.xlu1 %v10795_v41, %s11073_s19  ;;  %v3034_v56 = vmax.f32 %v3033_v25, %v10908_v33  ;;  %v7800_v25 = vld [vmem:[%s17201_s3 + $0x40] sm:$0xff] }
 0x208   : > { %v3035_v44 = vmax.f32 %v3034_v56, %v10912_v3  ;;  %v7817_v3 = vld [vmem:[%s17201_s3 + $0x68] sm:$0xff] }
 0x20a   : > { %10826 = vrot.lane.b32.xlu1 %v10795_v41, %s11074_s20  ;;  %v3056_v41 = vmax.f32 %v10891_v39, %v10892_v40  ;;  %v10909_v39 = vld [vmem:[%s11314_s22 + $0x150] sm:$0xff]  ;;  %v3036_v27 = vmax.f32 %v3035_v44, %v10914_v22 }
 0x20b   : > { %v3041_v40 = vmax.f32 %v3040_v37, %v10909_v39  ;;  %v7818_v44 = vld [vmem:[%s17201_s3 + $0x70] sm:$0xff] }
 0x20c   : > { %v3057_v58 = vmax.f32 %v3056_v41, %v12299_v42  ;;  %v3003_v42 = vmax.f32 %v3002_v48, %v10902_v10  ;;  %v10910_v41 = vld [vmem:[%s11314_s22 + $0x1a8] sm:$0xff]  ;;  %v10913_v48 = vld [vmem:[%s11314_s22 + $0x1b0] sm:$0xff]  ;;  %v3037_v4 = vmax.f32 %v3036_v27, %v10916_v8  ;;  %v7829_v8 = vld [vmem:[%s17201_s3 + $0x98] sm:$0xff] }
 0x20d   : > { %v3053_v43 = vmax.f32 %v3052_v19, %v10910_v41  ;;  %v3042_v16 = vmax.f32 %v3041_v40, %v12490_v1  ;;  %v1441_v40 = vld [vmem:[%s17201_s3 + $0x18] sm:$0xff]  ;;  %v1442_v41 = vld [vmem:[%s17201_s3 + $0x20] sm:$0xff] }
 0x20e   : > { %v3058_v14 = vmax.f32 %v3057_v58, %v12326_v28  ;;  %v3004_v15 = vmax.f32 %v3003_v42, %v10907_v52 }
 0x20f   : > { %v3054_v58 = vmax.f32 %v3053_v43, %v10913_v48 }
 0x210   : > { %v3059_v28 = vmax.f32 %v3058_v14, %v12511_v2  ;;  %v3012_v2 = vmax.f32 %v3011_v62, %v3004_v15  ;;  %v1440_v15 = vld [vmem:[%s17201_s3 + $0x10] sm:$0xff] }
 0x211   : > { %v3055_v9 = vmax.f32 %v3054_v58, %v10915_v45 }
 0x212   : > { %v3060_v51 = vmax.f32 %v3059_v28, %v12521_v32  ;;  %v3043_v32 = vmax.f32 %v3042_v16, %v12496_v34  ;;  %v10917_v34 = vld [vmem:[%s11314_s22 + $0x138] sm:$0xff] }
 0x214   : > { %v3061_v29 = vmax.f32 %v3060_v51, %v12524_v57  ;;  %v3044_v1 = vmax.f32 %v3043_v32, %v12506_v49  ;;  %v2984_v57 = vsel %vm2256_vm5, %v12602_v23, 0.0  ;;  %v7816_v51 = vld [vmem:[%s17201_s3 + $0x60] sm:$0xff]  ;;  %v7821_v32 = vld [vmem:[%s17201_s3 + $0x88] sm:$0xff] }
 0x216   : > { %v3062_v53 = vmax.f32 %v3061_v29, %v12537_v30  ;;  %v3045_v7 = vmax.f32 %v3044_v1, %v12516_v46  ;;  %v3038_v30 = vmax.f32 %v3037_v4, %v10917_v34  ;;  %v7819_v29 = vld [vmem:[%s17201_s3 + $0x78] sm:$0xff]  ;;  %v7830_v4 = vld [vmem:[%s17201_s3 + $0xa0] sm:$0xff]  ;;  %v7841_v34 = vld [vmem:[%s17201_s3 + $0xc8] sm:$0xff] }
 0x218   : > { %v3063_v55 = vmax.f32 %v3062_v53, %v3055_v9  ;;  %v3046_v31 = vmax.f32 %v3045_v7, %v3038_v30  ;;  %v7828_v53 = vld [vmem:[%s17201_s3 + $0x90] sm:$0xff]  ;;  %v7840_v7 = vld [vmem:[%s17201_s3 + $0xc0] sm:$0xff] }
 0x219   : > { %v7842_v30 = vld [vmem:[%s17201_s3 + $0xd0] sm:$0xff] }
 0x221   : > { %2982 = vadd.xlane.f32.xlu0 %v2981_v38 }
 0x225   : > { %3013 = vmax.xlane.f32.xlu0 %v3012_v2 }
 0x229   : > { %3030 = vmax.xlane.f32.xlu0 %v3029_v11  ;;  %v7820_v11 = vld [vmem:[%s17201_s3 + $0x80] sm:$0xff] }
 0x22d   : > { %2991 = vadd.xlane.f32.xlu0 %v2990_v60  ;;  %v7831_v60 = vld [vmem:[%s17201_s3 + $0xa8] sm:$0xff] }
 0x22e   : > { %2985 = vadd.xlane.f32.xlu1 %v2984_v57  ;;  %v7832_v57 = vld [vmem:[%s17201_s3 + $0xb0] sm:$0xff] }
 0x231   : > { %3064 = vmax.xlane.f32.xlu0 %v3063_v55  ;;  %v7833_v55 = vld [vmem:[%s17201_s3 + $0xb8] sm:$0xff] }
 0x232   : > { %2988 = vadd.xlane.f32.xlu1 %v2987_v6  ;;  %v7843_v6 = vld [vmem:[%s17201_s3 + $0xd8] sm:$0xff] }
 0x236   : > { %3047 = vmax.xlane.f32.xlu1 %v3046_v31  ;;  %v7844_v31 = vld [vmem:[%s17201_s3 + $0xe0] sm:$0xff] }
 0x268   : > { %v10792_v49 = vpop.permute.xlu0 %10791 }
 0x269   : > { %v10794_v10 = vunpack.i.h.bf16 %v10792_v49  ;;  %v10793_v54 = vunpack.i.l.bf16 %v10792_v49  ;;  %v7845_v49 = vld [vmem:[%s17201_s3 + $0xe8] sm:$0xff] }
 0x26b   : > { %v9508_v42 = vpack.c.bf16 %v10794_v10, %v10793_v54  ;;  %v2114_v10 = vld [vmem:[%s17202_s4] sm:$0xff] }
 0x26c   : > { %v10802_v13 = vpop.permute.xlu0 %10801  ;;  %9227 = vmatprep.mubr.msk.f32.mxu1 %vm2118_vm6, %v2114_v10 }
 0x26d   : > { %9509 = vmatprep.subr.bf16.mxu0 %v9508_v42  ;;  %v10804_v18 = vunpack.i.h.bf16 %v10802_v13  ;;  %v10803_v37 = vunpack.i.l.bf16 %v10802_v13 }
 0x26e   : > { %9511 = vmatpush3.bf16.msra.mxu0 %v9508_v42 }
 0x26f   : > { %v9524_v59 = vpack.c.bf16 %v10804_v18, %v10803_v37 }
 0x270   : > { %v10797_v23 = vpop.permute.xlu1 %10796  ;;  %v10812_v52 = vpop.permute.xlu0 %10811 }
 0x271   : > { %v10799_v14 = vunpack.i.h.bf16 %v10797_v23  ;;  %v10798_v12 = vunpack.i.l.bf16 %v10797_v23  ;;  %v10814_v33 = vunpack.i.h.bf16 %v10812_v52  ;;  %v10813_v56 = vunpack.i.l.bf16 %v10812_v52  ;;  %v2240_v52 = vld [vmem:[%s17200_s2] sm:$0xff] }
 0x273   : > { %v9512_v46 = vpack.c.bf16 %v10799_v14, %v10798_v12  ;;  %v9532_v43 = vpack.c.bf16 %v10814_v33, %v10813_v56  ;;  %v2243_v33 = vld [vmem:[%s17200_s2 + $0x18] sm:$0xff]  ;;  %v2253_v56 = vld [vmem:[%s17200_s2 + $0x68] sm:$0xff] }
 0x274   : > { %v10807_v19 = vpop.permute.xlu1 %10806  ;;  %v10822_v47 = vpop.permute.xlu0 %10821 }
 0x275   : > { %9513 = vmatprep.subr.bf16.mxu0 %v9512_v46  ;;  %v10809_v62 = vunpack.i.h.bf16 %v10807_v19  ;;  %v10808_v28 = vunpack.i.l.bf16 %v10807_v19  ;;  %v10824_v16 = vunpack.i.h.bf16 %v10822_v47  ;;  %v10823_v48 = vunpack.i.l.bf16 %v10822_v47 }
 0x276   : > { %9515 = vmatpush3.bf16.msra.mxu0 %v9512_v46 }
 0x277   : > { %9517 = vmatprep.subr.bf16.mxu0 %v12611_v20  ;;  %v9528_v39 = vpack.c.bf16 %v10809_v62, %v10808_v28  ;;  %v9540_v22 = vpack.c.bf16 %v10824_v16, %v10823_v48  ;;  %v2117_v62 = vld [vmem:[%s17202_s4 + $0x18] sm:$0xff]  ;;  %v2241_v28 = vld [vmem:[%s17200_s2 + $0x8] sm:$0xff] }
 0x278   : > { %v10817_v38 = vpop.permute.xlu1 %10816 }
 0x279   : > { %9139 = vmatmul.mubr.msk.f32.vlgmr.msra.gmra.mrb[32].mxu0 %vm1467_vm4, %v7799_v35  ;;  %v10819_v2 = vunpack.i.h.bf16 %v10817_v38  ;;  %v10818_v24 = vunpack.i.l.bf16 %v10817_v38 }
 0x27a   : > { %9519 = vmatpush3.bf16.msra.mxu0 %v12611_v20  ;;  %9141 = vmatprep.mubr.msk.f32.mxu0 %vm1467_vm4, %v7800_v25  ;;  %v7803_v20 = vld [vmem:[%s17201_s3 + $0x58] sm:$0xff] }
 0x27b   : > { %9521 = vmatprep.subr.bf16.mxu0 %v12618_v17  ;;  %v9536_v58 = vpack.c.bf16 %v10819_v2, %v10818_v24 }
 0x27c   : > { %v10827_v27 = vpop.permute.xlu1 %10826 }
 0x27d   : > { %9142 = vmatmul.mubr.msk.f32.gmra.mrb[34].mxu0 %vm1467_vm4, %v7801_v0  ;;  %v10829_v45 = vunpack.i.h.bf16 %v10827_v27  ;;  %v10828_v9 = vunpack.i.l.bf16 %v10827_v27 }
 0x27e   : > { %9523 = vmatpush3.bf16.msra.mxu0 %v12618_v17  ;;  %9144 = vmatprep.mubr.msk.f32.mxu0 %vm1467_vm4, %v7802_v36  ;;  %v1439_v17 = vld [vmem:[%s17201_s3 + $0x8] sm:$0xff] }
 0x27f   : > { %9525 = vmatprep.subr.bf16.mxu0 %v9524_v59  ;;  %v9544_v1 = vpack.c.bf16 %v10829_v45, %v10828_v9  ;;  %v2245_v45 = vld [vmem:[%s17200_s2 + $0x28] sm:$0xff] }
 0x281   : > { %9145 = vmatmul.mubr.msk.f32.gmra.mrb[36].mxu0 %vm1467_vm4, %v7803_v20  ;;  %v2115_v20 = vld [vmem:[%s17202_s4 + $0x8] sm:$0xff] }
 0x282   : > { %9155 = vmatprep.mubr.msk.f32.mxu0 %vm1467_vm4, %v1438_v61  ;;  %v2116_v61 = vld [vmem:[%s17202_s4 + $0x10] sm:$0xff] }
 0x285   : > { %9156 = vmatmul.mubr.msk.f32.vlgmr.msra.gmra.mrb[32].mxu0 %vm1467_vm4, %v1439_v17  ;;  %v2249_v17 = vld [vmem:[%s17200_s2 + $0x48] sm:$0xff] }
 0x286   : > { %9527 = vmatpush3.bf16.msra.mxu0 %v9524_v59  ;;  %9158 = vmatprep.mubr.msk.f32.mxu0 %vm1467_vm4, %v1440_v15  ;;  %v2248_v15 = vld [vmem:[%s17200_s2 + $0x40] sm:$0xff] }
 0x287   : > { %9529 = vmatprep.subr.bf16.mxu0 %v9528_v39 }
 0x289   : > { %9159 = vmatmul.mubr.msk.f32.gmra.mrb[34].mxu0 %vm1467_vm4, %v1441_v40 }
 0x28a   : > { %9531 = vmatpush3.bf16.msra.mxu0 %v9528_v39  ;;  %9161 = vmatprep.mubr.msk.f32.mxu0 %vm1467_vm4, %v1442_v41 }
 0x28b   : > { %9533 = vmatprep.subr.bf16.mxu0 %v9532_v43 }
 0x28d   : > { %9162 = vmatmul.mubr.msk.f32.gmra.mrb[36].mxu0 %vm1467_vm4, %v1443_v50 }
 0x28e   : > { %9172 = vmatprep.mubr.msk.f32.mxu0 %vm1467_vm4, %v7816_v51 }
 0x291   : > { %9173 = vmatmul.mubr.msk.f32.vlgmr.msra.gmra.mrb[32].mxu0 %vm1467_vm4, %v7817_v3 }
 0x292   : > { %9535 = vmatpush3.bf16.msra.mxu0 %v9532_v43  ;;  %9175 = vmatprep.mubr.msk.f32.mxu0 %vm1467_vm4, %v7818_v44 }
 0x293   : > { %9537 = vmatprep.subr.bf16.mxu0 %v9536_v58 }
 0x295   : > { %9176 = vmatmul.mubr.msk.f32.gmra.mrb[34].mxu0 %vm1467_vm4, %v7819_v29 }
 0x296   : > { %9539 = vmatpush3.bf16.msra.mxu0 %v9536_v58  ;;  %9178 = vmatprep.mubr.msk.f32.mxu0 %vm1467_vm4, %v7820_v11 }
 0x297   : > { %9541 = vmatprep.subr.bf16.mxu0 %v9540_v22 }
 0x299   : > { %9179 = vmatmul.mubr.msk.f32.gmra.mrb[36].mxu0 %vm1467_vm4, %v7821_v32  ;;  %v2242_v32 = vld [vmem:[%s17200_s2 + $0x10] sm:$0xff] }
 0x29a   : > { %9189 = vmatprep.mubr.msk.f32.mxu0 %vm1467_vm4, %v7828_v53  ;;  %v2252_v53 = vld [vmem:[%s17200_s2 + $0x60] sm:$0xff] }
 0x29d   : > { %9190 = vmatmul.mubr.msk.f32.vlgmr.msra.gmra.mrb[32].mxu0 %vm1467_vm4, %v7829_v8 }
 0x29e   : > { %9543 = vmatpush3.bf16.msra.mxu0 %v9540_v22  ;;  %9192 = vmatprep.mubr.msk.f32.mxu0 %vm1467_vm4, %v7830_v4 }
 0x29f   : > { %9545 = vmatprep.subr.bf16.mxu0 %v9544_v1 }
 0x2a1   : > { %9193 = vmatmul.mubr.msk.f32.gmra.mrb[34].mxu0 %vm1467_vm4, %v7831_v60 }
 0x2a2   : > { %9547 = vmatpush3.bf16.msra.mxu0 %v9544_v1  ;;  %9195 = vmatprep.mubr.msk.f32.mxu0 %vm1467_vm4, %v7832_v57  ;;  %v11075_v1 = vmov 0.0|0.0  }
 0x2a3   : > { %2625 = vmatprep.subr.mxu0 %v2249_v17  ;;  %v7909_v17 = vld [vmem:[%s17205_s7 + $0x238] sm:$0xff] }
 0x2a5   : > { %9196 = vmatmul.mubr.msk.f32.gmra.mrb[36].mxu0 %vm1467_vm4, %v7833_v55 }
 0x2a6   : > { %9206 = vmatprep.mubr.msk.f32.mxu0 %vm1467_vm4, %v7840_v7 }
 0x2a9   : > { %9207 = vmatmul.mubr.msk.f32.vlgmr.msra.gmra.mrb[32].mxu0 %vm1467_vm4, %v7841_v34 }
 0x2aa   : > { %9209 = vmatprep.mubr.msk.f32.mxu0 %vm1467_vm4, %v7842_v30  ;;  %2626 = vmatpush1.msra.mxu0 %v2248_v15 }
 0x2ab   : > { %2803 = vmatprep.subr.mxu0 %v2253_v56  ;;  %v7906_v56 = vld [vmem:[%s17205_s7 + $0x220] sm:$0xff] }
 0x2ad   : > { %9210 = vmatmul.mubr.msk.f32.gmra.mrb[34].mxu0 %vm1467_vm4, %v7843_v6 }
 0x2ae   : > { %9212 = vmatprep.mubr.msk.f32.mxu0 %vm1467_vm4, %v7844_v31  ;;  %v2983_v48 = vpop.xlane.xlu0 %2982 }
 0x2af   : > { %v2994_v30 = vmul.f32 0.125, %v2983_v48  ;;  %v7914_v48 = vld [vmem:[%s17205_s7 + $0x260] sm:$0xff] }
 0x2b1   : > { %9213 = vmatmul.mubr.msk.f32.gmra.mrb[36].mxu0 %vm1467_vm4, %v7845_v49 }
 0x2b2   : > { %2689 = vmatprep.mubr.f32.mxu0 %v17211_v26  ;;  %v3014_v11 = vpop.xlane.xlu0 %3013 }
 0x2b3   : > { %v3067_v49 = vsel %vm3066_vm7, %v2994_v30, %v3014_v11  ;;  %v7927_v30 = vld [vmem:[%s17205_s7 + $0x2c8] sm:$0xff] }
 0x2b6   : > { %v3031_v4 = vpop.xlane.xlu0 %3030 }
 0x2ba   : > { %v2992_v7 = vpop.xlane.xlu0 %2991 }
 0x2bb   : > { %v2986_v9 = vpop.xlane.xlu1 %2985 }
 0x2bc   : > { %v2995_v55 = vmul.f32 0.125, %v2986_v9  ;;  %v7920_v9 = vld [vmem:[%s17205_s7 + $0x290] sm:$0xff] }
 0x2be   : > { %v3068_v6 = vsel %vm3066_vm7, %v2995_v55, %v3031_v4  ;;  %v7923_v4 = vld [vmem:[%s17205_s7 + $0x2a8] sm:$0xff]  ;;  %v7922_v55 = vld [vmem:[%s17205_s7 + $0x2a0] sm:$0xff] }
 0x2bf   : > { %v2989_v57 = vpop.xlane.xlu1 %2988 }
 0x2c0   : > { %v2996_v10 = vmul.f32 0.125, %v2989_v57 }
 0x2c3   : > { %v3048_v31 = vpop.xlane.xlu1 %3047 }
 0x37c   : > { %v9208_v54 = vpop.f32.mrb[32].mxu0 }
 0x37d   : > { %v2109_v42 = vmax.f32 %v9208_v54, 0.0  ;;  %v2073_v23 = vpop.f32.mrb[33].mxu0  ;;  %v9561_v54 = vpack.c.bf16 %v3068_v6, %v3067_v49  ;;  %v7926_v49 = vld [vmem:[%s17205_s7 + $0x2c0] sm:$0xff] }
 0x37e   : > { %v2108_v14 = vmax.f32 %v2073_v23, 0.0  ;;  %v2997_v23 = vmul.f32 0.125, %v2992_v7  ;;  %v7924_v7 = vld [vmem:[%s17205_s7 + $0x2b0] sm:$0xff] }
 0x37f   : > { %v9588_v6 = vpack.c.bf16 %v7924_v7, %v7922_v55  ;;  %v7965_v55 = vld [vmem:[%s17205_s7 + $0x3f8] sm:$0xff] }
 0x380   : > { %v9548_v12 = vpack.c.bf16 %v2109_v42, %v2108_v14  ;;  %v9211_v46 = vpop.f32.mrb[34].mxu0  ;;  %v3065_v42 = vpop.xlane.xlu0 %3064  ;;  %v3069_v14 = vsel %vm3066_vm7, %v2996_v10, %v3048_v31  ;;  %v7928_v10 = vld [vmem:[%s17205_s7 + $0x2d0] sm:$0xff] }
 0x381   : > { %v2111_v13 = vmax.f32 %v9211_v46, 0.0  ;;  %v2083_v35 = vpop.f32.mrb[35].mxu0  ;;  %v3070_v46 = vsel %vm3066_vm7, %v2997_v23, %v3065_v42  ;;  %v7933_v42 = vld [vmem:[%s17205_s7 + $0x2f8] sm:$0xff]  ;;  %v9592_v23 = vpack.c.bf16 %v7928_v10, %v7926_v49  ;;  %v13195_v49 = vld [vmem:[#allocation3 + $0x10] sm:$0xf]  ;;  %v3949_v10 = vld [vmem:[%s17205_s7 + $0x8] sm:$0xff] }
 0x382   : > { %v2110_v25 = vmax.f32 %v2083_v35, 0.0  ;;  %9549 = vmatprep.subr.bf16.mxu1 %v9548_v12  ;;  %v2247_v35 = vld [vmem:[%s17200_s2 + $0x38] sm:$0xff] }
 0x383   : > { %9551 = vmatpush3.bf16.msra.mxu1 %v9548_v12  ;;  %v2244_v12 = vld [vmem:[%s17200_s2 + $0x20] sm:$0xff] }
 0x384   : > { %v9552_v18 = vpack.c.bf16 %v2111_v13, %v2110_v25  ;;  %v9214_v37 = vpop.f32.mrb[36].mxu0  ;;  %v9564_v13 = vpack.c.bf16 %v3070_v46, %v3069_v14  ;;  %v3071_v25 = vld [vmem:[%s17203_s5] sm:$0x3]  ;;  %v7932_v46 = vld [vmem:[%s17205_s7 + $0x2f0] sm:$0xff] }
 0x385   : > { %v2113_v0 = vmax.f32 %v9214_v37, 0.0  ;;  %v2093_v36 = vpop.f32.mrb[37].mxu0  ;;  %v2251_v37 = vld [vmem:[%s17200_s2 + $0x58] sm:$0xff] }
 0x386   : > { %v2112_v59 = vmax.f32 %v2093_v36, 0.0  ;;  %9553 = vmatprep.subr.bf16.mxu1 %v9552_v18  ;;  %v2255_v36 = vld [vmem:[%s17200_s2 + $0x78] sm:$0xff] }
 0x387   : > { %9555 = vmatpush3.bf16.msra.mxu1 %v9552_v18  ;;  %v2246_v18 = vld [vmem:[%s17200_s2 + $0x30] sm:$0xff] }
 0x388   : > { %v9556_v19 = vpack.c.bf16 %v2113_v0, %v2112_v59  ;;  %v2250_v0 = vld [vmem:[%s17200_s2 + $0x50] sm:$0xff]  ;;  %v7903_v59 = vld [vmem:[%s17205_s7 + $0x208] sm:$0xff] }
 0x38a   : > { %9557 = vmatprep.subr.bf16.mxu1 %v9556_v19 }
 0x38b   : > { %9559 = vmatpush3.bf16.msra.mxu1 %v9556_v19  ;;  %v7905_v19 = vld [vmem:[%s17205_s7 + $0x218] sm:$0xff] }
 0x38c   : > { %2269 = vmatprep.subr.mxu1 %v2241_v28  ;;  %v7904_v28 = vld [vmem:[%s17205_s7 + $0x210] sm:$0xff] }
 0x38e   : > { %9228 = vmatmul.mubr.msk.f32.vlgmr.msra.gmra.mrb[32].mxu1 %vm2118_vm6, %v2115_v20  ;;  %v2254_v20 = vld [vmem:[%s17200_s2 + $0x70] sm:$0xff] }
 0x38f   : > { %9230 = vmatprep.mubr.msk.f32.mxu1 %vm2118_vm6, %v2116_v61  ;;  %2270 = vmatpush1.msra.mxu1 %v2240_v52  ;;  %v9566_v61 = vpack.c.bf16 %v7905_v19, %v7903_v59  ;;  %v7907_v52 = vld [vmem:[%s17205_s7 + $0x228] sm:$0xff]  ;;  %v7941_v59 = vld [vmem:[%s17205_s7 + $0x338] sm:$0xff] }
 0x390   : > { %2358 = vmatprep.subr.mxu1 %v2243_v33  ;;  %v9570_v33 = vpack.c.bf16 %v7909_v17, %v7907_v52  ;;  %v7945_v52 = vld [vmem:[%s17205_s7 + $0x358] sm:$0xff] }
 0x392   : > { %9231 = vmatmul.mubr.msk.f32.gmra.mrb[34].mxu1 %vm2118_vm6, %v2117_v62  ;;  %v7902_v62 = vld [vmem:[%s17205_s7 + $0x200] sm:$0xff] }
 0x393   : > { %2333 = vmatprep.mubr.f32.mxu1 %v17211_v26  ;;  %v9568_v15 = vpack.c.bf16 %v7904_v28, %v7902_v62  ;;  %v7940_v62 = vld [vmem:[%s17205_s7 + $0x330] sm:$0xff]  ;;  %v7943_v28 = vld [vmem:[%s17205_s7 + $0x348] sm:$0xff] }
 0x461   : > { %v9229_v39 = vpop.f32.mrb[32].mxu1 }
 0x462   : > { %v7857_v40 = vmul.f32 -1.442695, %v9229_v39  ;;  %v2197_v41 = vpop.f32.mrb[33].mxu1  ;;  %v7908_v39 = vld [vmem:[%s17205_s7 + $0x230] sm:$0xff] }
 0x463   : > { %v7856_v43 = vmul.f32 -1.442695, %v2197_v41  ;;  %v7913_v41 = vld [vmem:[%s17205_s7 + $0x258] sm:$0xff] }
 0x464   : > { %10832 = vpow2.f32 %v7857_v40  ;;  %v7911_v40 = vld [vmem:[%s17205_s7 + $0x248] sm:$0xff] }
 0x465   : > { %10834 = vpow2.f32 %v7856_v43  ;;  %v9232_v38 = vpop.f32.mrb[34].mxu1  ;;  %v9572_v43 = vpack.c.bf16 %v7908_v39, %v7906_v56  ;;  %v7944_v56 = vld [vmem:[%s17205_s7 + $0x350] sm:$0xff]  ;;  %v7947_v39 = vld [vmem:[%s17205_s7 + $0x368] sm:$0xff] }
 0x466   : > { %v2207_v50 = vpop.f32.mrb[35].mxu1  ;;  %v7859_v2 = vmul.f32 -1.442695, %v9232_v38  ;;  %v9574_v38 = vpack.c.bf16 %v7913_v41, %v7911_v40  ;;  %v7949_v40 = vld [vmem:[%s17205_s7 + $0x378] sm:$0xff] }
 0x467   : > { %v7858_v51 = vmul.f32 -1.442695, %v2207_v50  ;;  %v7910_v50 = vld [vmem:[%s17205_s7 + $0x240] sm:$0xff] }
 0x469   : > { %10836 = vpow2.f32 %v7858_v51  ;;  %v7912_v51 = vld [vmem:[%s17205_s7 + $0x250] sm:$0xff] }
 0x46a   : > { %10838 = vpow2.f32 %v7859_v2  ;;  %v7915_v2 = vld [vmem:[%s17205_s7 + $0x268] sm:$0xff] }
 0x46e   : > { %v10833_v24 = vpop.eup %10832 }
 0x46f   : > { %v10835_v47 = vpop.eup %10834  ;;  %v2229_v44 = vadd.f32 1.0, %v10833_v24  ;;  %v7917_v24 = vld [vmem:[%s17205_s7 + $0x278] sm:$0xff] }
 0x470   : > { %v2228_v3 = vadd.f32 1.0, %v10835_v47  ;;  %v13024_v47 = vld [vmem:[#allocation3 + $0x8] sm:$0xff] }
 0x472   : > { %10840 = vrcp.f32 %v2228_v3  ;;  %v13026_v3 = vld [vmem:[#allocation3 + $0x18] sm:$0xf] }
 0x473   : > { %v10837_v16 = vpop.eup %10836  ;;  %10842 = vrcp.f32 %v2229_v44  ;;  %v9576_v44 = vpack.c.bf16 %v7912_v51, %v7910_v50  ;;  %v4086_v11 = vrot.slane %v13026_v3, 2  ;;  %v7948_v50 = vld [vmem:[%s17205_s7 + $0x370] sm:$0xff]  ;;  %v7951_v51 = vld [vmem:[%s17205_s7 + $0x388] sm:$0xff] }
 0x474   : > { %v2230_v58 = vadd.f32 1.0, %v10837_v16  ;;  %v10839_v29 = vpop.eup %10838  ;;  %v9578_v16 = vpack.c.bf16 %v7917_v24, %v7915_v2  ;;  %v7953_v2 = vld [vmem:[%s17205_s7 + $0x398] sm:$0xff]  ;;  %v3146_v24 = vld [vmem:[%s17204_s6] sm:$0xff] }
 0x475   : > { %v2231_v22 = vadd.f32 1.0, %v10839_v29  ;;  %v4085_v29 = vrot.slane %v13024_v47, 2 }
 0x476   : > { %10844 = vrcp.f32 %v2230_v58  ;;  %v7916_v58 = vld [vmem:[%s17205_s7 + $0x270] sm:$0xff] }
 0x477   : > { %10846 = vrcp.f32 %v2231_v22  ;;  %v7919_v22 = vld [vmem:[%s17205_s7 + $0x288] sm:$0xff] }
 0x47c   : > { %v12849_v27 = vpop.eup %10840 }
 0x47d   : > { %7860 = vmatmul.mubr.msk.f32.vlgmr.msra.gmra.mrb[36].mxu1 %vm2256_vm5, %v12849_v27  ;;  %7876 = vmatmul.mubr.msk.f32.vlgmr.msra.gmra.mrb[38].mxu0 %vm2256_vm5, %v12849_v27  ;;  %v12866_v8 = vpop.eup %10842 }
 0x47e   : > { %2339 = vmatprep.mubr.f32.mxu1 %v17211_v26  ;;  %2695 = vmatprep.mubr.f32.mxu0 %v17211_v26 }
 0x47f   : > { %2359 = vmatpush1.msra.mxu1 %v2242_v32  ;;  %2804 = vmatpush1.msra.mxu0 %v2252_v53  ;;  %v9580_v32 = vpack.c.bf16 %v7916_v58, %v7914_v48  ;;  %v7950_v48 = vld [vmem:[%s17205_s7 + $0x380] sm:$0xff]  ;;  %v7952_v58 = vld [vmem:[%s17205_s7 + $0x390] sm:$0xff] }
 0x480   : > { %9560 = vmatprep.subr.bf16.mxu0 %v11075_v1  ;;  %2447 = vmatprep.subr.mxu1 %v2245_v45  ;;  %v12872_v60 = vpop.eup %10844  ;;  %v7918_v45 = vld [vmem:[%s17205_s7 + $0x280] sm:$0xff] }
 0x481   : > { %7861 = vmatmul.mubr.msk.f32.gmra.mrb[38].mxu1 %vm2256_vm5, %v12866_v8  ;;  %7877 = vmatmul.mubr.msk.f32.gmra.mrb[40].mxu0 %vm2256_vm5, %v12866_v8  ;;  %v12882_v34 = vpop.eup %10846 }
 0x482   : > { %2345 = vmatprep.mubr.f32.mxu1 %v17211_v26  ;;  %2701 = vmatprep.mubr.f32.mxu0 %v17211_v26 }
 0x485   : > { %7862 = vmatmul.mubr.msk.f32.gmra.mrb[40].mxu1 %vm2256_vm5, %v12872_v60  ;;  %7878 = vmatmul.mubr.msk.f32.gmra.mrb[42].mxu0 %vm2256_vm5, %v12872_v60 }
 0x486   : > { %2351 = vmatprep.mubr.f32.mxu1 %v17211_v26  ;;  %2707 = vmatprep.mubr.f32.mxu0 %v17211_v26 }
 0x489   : > { %7863 = vmatmul.mubr.msk.f32.gmra.mrb[42].mxu1 %vm2256_vm5, %v12882_v34  ;;  %7879 = vmatmul.mubr.msk.f32.gmra.mrb[44].mxu0 %vm2256_vm5, %v12882_v34 }
 0x48a   : > { %2422 = vmatprep.mubr.f32.mxu1 %v17211_v26  ;;  %2867 = vmatprep.mubr.f32.mxu0 %v17211_v26 }
 0x48d   : > { %7864 = vmatmul.mubr.msk.f32.vlgmr.msra.gmra.mrb[44].mxu1 %vm2256_vm5, %v12849_v27  ;;  %7884 = vmatmul.mubr.msk.f32.vlgmr.msra.gmra.mrb[46].mxu0 %vm2256_vm5, %v12849_v27 }
 0x48e   : > { %9562 = vmatpush3.bf16.msra.mxu0 %v9561_v54  ;;  %2428 = vmatprep.mubr.f32.mxu1 %v17211_v26  ;;  %v7931_v54 = vld [vmem:[%s17205_s7 + $0x2e8] sm:$0xff] }
 0x48f   : > { %2873 = vmatprep.mubr.f32.mxu0 %v17211_v26  ;;  %9563 = vmatprep.subr.bf16.mxu0 %v11075_v1  ;;  %v7925_v1 = vld [vmem:[%s17205_s7 + $0x2b8] sm:$0xff]  ;;  %v9594_v14 = vpack.c.bf16 %v7933_v42, %v7931_v54 }
 0x490   : > { %2448 = vmatpush1.msra.mxu1 %v2244_v12  ;;  %v9586_v57 = vpack.c.bf16 %v7925_v1, %v7923_v4  ;;  %v7930_v12 = vld [vmem:[%s17205_s7 + $0x2e0] sm:$0xff]  ;;  %v3951_v54 = vld [vmem:[%s17205_s7 + $0x18] sm:$0xff] }
 0x491   : > { %7865 = vmatmul.mubr.msk.f32.gmra.mrb[46].mxu1 %vm2256_vm5, %v12866_v8  ;;  %7885 = vmatmul.mubr.msk.f32.gmra.mrb[48].mxu0 %vm2256_vm5, %v12866_v8  ;;  %v7958_v1 = vld [vmem:[%s17205_s7 + $0x3c0] sm:$0xff] }
 0x492   : > { %9565 = vmatpush3.bf16.msra.mxu0 %v9564_v13  ;;  %2434 = vmatprep.mubr.f32.mxu1 %v17211_v26  ;;  %v7935_v13 = vld [vmem:[%s17205_s7 + $0x308] sm:$0xff] }
 0x493   : > { %2879 = vmatprep.mubr.f32.mxu0 %v17211_v26  ;;  %2536 = vmatprep.subr.mxu1 %v2247_v35  ;;  %v7937_v35 = vld [vmem:[%s17205_s7 + $0x318] sm:$0xff] }
 0x495   : > { %7866 = vmatmul.mubr.msk.f32.gmra.mrb[48].mxu1 %vm2256_vm5, %v12872_v60  ;;  %7886 = vmatmul.mubr.msk.f32.gmra.mrb[50].mxu0 %vm2256_vm5, %v12872_v60 }
 0x496   : > { %2440 = vmatprep.mubr.f32.mxu1 %v17211_v26  ;;  %2885 = vmatprep.mubr.f32.mxu0 %v17211_v26 }
 0x499   : > { %7867 = vmatmul.mubr.msk.f32.gmra.mrb[50].mxu1 %vm2256_vm5, %v12882_v34  ;;  %7887 = vmatmul.mubr.msk.f32.gmra.mrb[52].mxu0 %vm2256_vm5, %v12882_v34 }
 0x49a   : > { %2511 = vmatprep.mubr.f32.mxu1 %v17211_v26  ;;  %9241 = vmatprep.mubr.msk.f32.mxu0 %vm11076_vm8, %v17211_v26 }
 0x49d   : > { %7868 = vmatmul.mubr.msk.f32.vlgmr.msra.gmra.mrb[52].mxu1 %vm2256_vm5, %v12849_v27  ;;  %9242 = vmatmul.mubr.msk.f32.vlgmr.msra.gmra.mrb[54].mxu0 %vm1467_vm4, %v3071_v25  ;;  %v9596_v25 = vpack.c.bf16 %v7932_v46, %v7930_v12  ;;  %v9630_v12 = vpack.c.bf16 %v3951_v54, %v3949_v10  ;;  %v3948_v46 = vld [vmem:[%s17205_s7] sm:$0xff] }
 0x49e   : > { %2517 = vmatprep.mubr.f32.mxu1 %v17211_v26  ;;  %2537 = vmatpush1.msra.mxu1 %v2246_v18  ;;  %v9598_v18 = vpack.c.bf16 %v7937_v35, %v7935_v13  ;;  %v3950_v13 = vld [vmem:[%s17205_s7 + $0x10] sm:$0xff]  ;;  %v4165_v35 = vrot.slane %v13024_v47, 1 }
 0x49f   : > { %2714 = vmatprep.subr.mxu1 %v2251_v37  ;;  %v7934_v37 = vld [vmem:[%s17205_s7 + $0x300] sm:$0xff]  ;;  %9246 = vmatprep.mubr.msk.f32.mxu0 %vm467_vm1, %v3146_v24 }
 0x4a1   : > { %7869 = vmatmul.mubr.msk.f32.gmra.mrb[54].mxu1 %vm2256_vm5, %v12866_v8 }
 0x4a2   : > { %2523 = vmatprep.mubr.f32.mxu1 %v17211_v26 }
 0x4a5   : > { %7870 = vmatmul.mubr.msk.f32.gmra.mrb[56].mxu1 %vm2256_vm5, %v12872_v60 }
 0x4a6   : > { %2529 = vmatprep.mubr.f32.mxu1 %v17211_v26 }
 0x4a9   : > { %7871 = vmatmul.mubr.msk.f32.gmra.mrb[58].mxu1 %vm2256_vm5, %v12882_v34 }
 0x4aa   : > { %2600 = vmatprep.mubr.f32.mxu1 %v17211_v26 }
 0x4ad   : > { %7872 = vmatmul.mubr.msk.f32.vlgmr.msra.gmra.mrb[60].mxu1 %vm2256_vm5, %v12849_v27 }
 0x4ae   : > { %2606 = vmatprep.mubr.f32.mxu1 %v17211_v26  ;;  %2715 = vmatpush1.msra.mxu1 %v2250_v0  ;;  %v7936_v0 = vld [vmem:[%s17205_s7 + $0x310] sm:$0xff] }
 0x4af   : > { %2892 = vmatprep.subr.mxu1 %v2255_v36  ;;  %v7939_v36 = vld [vmem:[%s17205_s7 + $0x328] sm:$0xff]  ;;  %v9600_v19 = vpack.c.bf16 %v7936_v0, %v7934_v37  ;;  %v3955_v37 = vld [vmem:[%s17205_s7 + $0x38] sm:$0xff] }
 0x4b1   : > { %7873 = vmatmul.mubr.msk.f32.gmra.mrb[62].mxu1 %vm2256_vm5, %v12866_v8 }
 0x4b2   : > { %2612 = vmatprep.mubr.f32.mxu1 %v17211_v26 }
 0x4b5   : > { %7874 = vmatmul.mubr.msk.f32.gmra.mrb[64].mxu1 %vm2256_vm5, %v12872_v60 }
 0x4b6   : > { %2618 = vmatprep.mubr.f32.mxu1 %v17211_v26 }
 0x4b9   : > { %7875 = vmatmul.mubr.msk.f32.gmra.mrb[66].mxu1 %vm2256_vm5, %v12882_v34 }
 0x4ba   : > { %2778 = vmatprep.mubr.f32.mxu1 %v17211_v26 }
 0x4bd   : > { %7880 = vmatmul.mubr.msk.f32.vlgmr.msra.gmra.mrb[68].mxu1 %vm2256_vm5, %v12849_v27 }
 0x4be   : > { %2784 = vmatprep.mubr.f32.mxu1 %v17211_v26  ;;  %2893 = vmatpush1.msra.mxu1 %v2254_v20  ;;  %v9602_v20 = vpack.c.bf16 %v7941_v59, %v7939_v36  ;;  %v9632_v36 = vpack.c.bf16 %v3950_v13, %v3948_v46 }
 0x4bf   : > { %9567 = vmatprep.subr.bf16.mxu1 %v9566_v61  ;;  %v7938_v61 = vld [vmem:[%s17205_s7 + $0x320] sm:$0xff] }
 0x4c0   : > { %v9604_v17 = vpack.c.bf16 %v7940_v62, %v7938_v61  ;;  %v3957_v62 = vld [vmem:[%s17205_s7 + $0x48] sm:$0xff] }
 0x4c1   : > { %7881 = vmatmul.mubr.msk.f32.gmra.mrb[70].mxu1 %vm2256_vm5, %v12866_v8 }
 0x4c2   : > { %2790 = vmatprep.mubr.f32.mxu1 %v17211_v26 }
 0x4c5   : > { %7882 = vmatmul.mubr.msk.f32.gmra.mrb[72].mxu1 %vm2256_vm5, %v12872_v60 }
 0x4c6   : > { %2796 = vmatprep.mubr.f32.mxu1 %v17211_v26 }
 0x4c9   : > { %7883 = vmatmul.mubr.msk.f32.gmra.mrb[74].mxu1 %vm2256_vm5, %v12882_v34 }
 0x4ca   : > { %2956 = vmatprep.mubr.f32.mxu1 %v17211_v26 }
 0x4cd   : > { %7888 = vmatmul.mubr.msk.f32.vlgmr.msra.gmra.mrb[76].mxu1 %vm2256_vm5, %v12849_v27  ;;  %v7921_v27 = vld [vmem:[%s17205_s7 + $0x298] sm:$0xff] }
 0x4ce   : > { %9569 = vmatpush1.bf16.msra.mxu1 %v9568_v15  ;;  %2962 = vmatprep.mubr.f32.mxu1 %v17211_v26  ;;  %v9582_v53 = vpack.c.bf16 %v7921_v27, %v7919_v22  ;;  %v9606_v15 = vpack.c.bf16 %v7945_v52, %v7943_v28  ;;  %v9616_v22 = vpack.c.bf16 %v7952_v58, %v7950_v48  ;;  %v3959_v28 = vld [vmem:[%s17205_s7 + $0x58] sm:$0xff]  ;;  %v3969_v48 = vld [vmem:[%s17205_s7 + $0xa8] sm:$0xff] }
 0x4cf   : > { %9571 = vmatprep.subr.bf16.mxu1 %v9570_v33  ;;  %v7942_v33 = vld [vmem:[%s17205_s7 + $0x340] sm:$0xff]  ;;  %v3971_v58 = vld [vmem:[%s17205_s7 + $0xb8] sm:$0xff] }
 0x4d0   : > { %v9608_v41 = vpack.c.bf16 %v7944_v56, %v7942_v33  ;;  %v3958_v33 = vld [vmem:[%s17205_s7 + $0x50] sm:$0xff]  ;;  %v3961_v56 = vld [vmem:[%s17205_s7 + $0x68] sm:$0xff] }
 0x4d1   : > { %7889 = vmatmul.mubr.msk.f32.gmra.mrb[78].mxu1 %vm2256_vm5, %v12866_v8  ;;  %v4087_v8 = vsel %vm4081_vm9, %v4085_v29, %v4086_v11  ;;  %v7955_v29 = vld [vmem:[%s17205_s7 + $0x3a8] sm:$0xff]  ;;  %v7957_v11 = vld [vmem:[%s17205_s7 + $0x3b8] sm:$0xff] }
 0x4d2   : > { %9573 = vmatpush1.bf16.msra.mxu1 %v9572_v43  ;;  %2968 = vmatprep.mubr.f32.mxu1 %v17211_v26  ;;  %v9610_v43 = vpack.c.bf16 %v7949_v40, %v7947_v39  ;;  %v9618_v27 = vpack.c.bf16 %v7957_v11, %v7955_v29  ;;  %v3963_v39 = vld [vmem:[%s17205_s7 + $0x78] sm:$0xff]  ;;  %v9650_v11 = vpack.c.bf16 %v3971_v58, %v3969_v48 }
 0x4d3   : > { %9575 = vmatprep.subr.bf16.mxu1 %v9574_v38  ;;  %v7946_v38 = vld [vmem:[%s17205_s7 + $0x360] sm:$0xff] }
 0x4d5   : > { %7890 = vmatmul.mubr.msk.f32.gmra.mrb[80].mxu1 %vm2256_vm5, %v12872_v60  ;;  %v9584_v60 = vpack.c.bf16 %v7920_v9, %v7918_v45  ;;  %v7959_v45 = vld [vmem:[%s17205_s7 + $0x3c8] sm:$0xff]  ;;  %v7961_v9 = vld [vmem:[%s17205_s7 + $0x3d8] sm:$0xff] }
 0x4d6   : > { %9577 = vmatpush1.bf16.msra.mxu1 %v9576_v44  ;;  %2974 = vmatprep.mubr.f32.mxu1 %v17211_v26  ;;  %v9612_v44 = vpack.c.bf16 %v7948_v50, %v7946_v38  ;;  %v9622_v4 = vpack.c.bf16 %v7961_v9, %v7959_v45  ;;  %v3962_v38 = vld [vmem:[%s17205_s7 + $0x70] sm:$0xff]  ;;  %v3965_v50 = vld [vmem:[%s17205_s7 + $0x88] sm:$0xff] }
 0x4d7   : > { %9579 = vmatprep.subr.bf16.mxu1 %v9578_v16  ;;  %v9614_v16 = vpack.c.bf16 %v7953_v2, %v7951_v51  ;;  %v3967_v51 = vld [vmem:[%s17205_s7 + $0x98] sm:$0xff] }
 0x4d8   : > { %v9646_v24 = vpack.c.bf16 %v3967_v51, %v3965_v50 }
 0x4d9   : > { %7891 = vmatmul.mubr.msk.f32.gmra.mrb[82].mxu1 %vm2256_vm5, %v12882_v34  ;;  %v7929_v34 = vld [vmem:[%s17205_s7 + $0x2d8] sm:$0xff] }
 0x4da   : > { %9581 = vmatpush1.bf16.msra.mxu1 %v9580_v32  ;;  %4154 = vmatprep.mubr.f32.mxu1 %v4087_v8  ;;  %v9590_v31 = vpack.c.bf16 %v7929_v34, %v7927_v30  ;;  %v7954_v32 = vld [vmem:[%s17205_s7 + $0x3a0] sm:$0xff] }
 0x4db   : > { %9583 = vmatprep.subr.bf16.mxu1 %v9582_v53  ;;  %v7956_v53 = vld [vmem:[%s17205_s7 + $0x3b0] sm:$0xff]  ;;  %v7962_v30 = vld [vmem:[%s17205_s7 + $0x3e0] sm:$0xff] }
 0x4dc   : > { %v9620_v8 = vpack.c.bf16 %v7956_v53, %v7954_v32  ;;  %v3973_v32 = vld [vmem:[%s17205_s7 + $0xc8] sm:$0xff]  ;;  %v3975_v53 = vld [vmem:[%s17205_s7 + $0xd8] sm:$0xff] }
 0x4dd   : > { %v9654_v9 = vpack.c.bf16 %v3975_v53, %v3973_v32 }
 0x4de   : > { %9585 = vmatpush1.bf16.msra.mxu1 %v9584_v60  ;;  %v7960_v60 = vld [vmem:[%s17205_s7 + $0x3d0] sm:$0xff] }
 0x4df   : > { %9587 = vmatprep.subr.bf16.mxu1 %v9586_v57  ;;  %v7963_v57 = vld [vmem:[%s17205_s7 + $0x3e8] sm:$0xff]  ;;  %v9624_v7 = vpack.c.bf16 %v7960_v60, %v7958_v1  ;;  %v3979_v60 = vld [vmem:[%s17205_s7 + $0xf8] sm:$0xff] }
 0x4e0   : > { %v9626_v34 = vpack.c.bf16 %v7965_v55, %v7963_v57  ;;  %v3977_v1 = vld [vmem:[%s17205_s7 + $0xe8] sm:$0xff] }
 0x4e1   : > { %v9658_v55 = vpack.c.bf16 %v3979_v60, %v3977_v1 }
 0x4e2   : > { %9589 = vmatpush1.bf16.msra.mxu1 %v9588_v6  ;;  %v7964_v6 = vld [vmem:[%s17205_s7 + $0x3f0] sm:$0xff] }
 0x4e3   : > { %9591 = vmatprep.subr.bf16.mxu1 %v9590_v31  ;;  %v13193_v31 = vld [vmem:[#allocation3] sm:$0xff]  ;;  %v9628_v42 = vpack.c.bf16 %v7964_v6, %v7962_v30  ;;  %v3978_v30 = vld [vmem:[%s17205_s7 + $0xf0] sm:$0xff]  ;;  %v3983_v6 = vld [vmem:[%s17205_s7 + $0x118] sm:$0xff] }
 0x4e4   : > { %v4162_v60 = vrot.slane %v13193_v31, 1  ;;  %v4307_v21 = vrot.slane %v13193_v31, 3 }
 0x4e6   : > { %9593 = vmatpush1.bf16.msra.mxu1 %v9592_v23  ;;  %v4082_v23 = vrot.slane %v13193_v31, 2 }
 0x4e7   : > { %9595 = vmatprep.subr.bf16.mxu1 %v9594_v14  ;;  %v4083_v14 = vrot.slane %v13195_v49, 2 }
 0x4e9   : > { %v4084_v0 = vsel %vm4081_vm9, %v4082_v23, %v4083_v14  ;;  %v3982_v23 = vld [vmem:[%s17205_s7 + $0x110] sm:$0xff]  ;;  %v3985_v14 = vld [vmem:[%s17205_s7 + $0x128] sm:$0xff] }
 0x4ea   : > { %9597 = vmatpush1.bf16.msra.mxu1 %v9596_v25  ;;  %v4166_v25 = vrot.slane %v13026_v3, 1 }
 0x4eb   : > { %9599 = vmatprep.subr.bf16.mxu1 %v9598_v18  ;;  %v3953_v18 = vld [vmem:[%s17205_s7 + $0x28] sm:$0xff] }
 0x4ec   : > { %v9634_v59 = vpack.c.bf16 %v3955_v37, %v3953_v18  ;;  %v4167_v61 = vsel %vm4161_vm10, %v4165_v35, %v4166_v25  ;;  %v3984_v35 = vld [vmem:[%s17205_s7 + $0x120] sm:$0xff]  ;;  %v3986_v25 = vld [vmem:[%s17205_s7 + $0x130] sm:$0xff]  ;;  %v3989_v18 = vld [vmem:[%s17205_s7 + $0x148] sm:$0xff] }
 0x4ed   : > { %v3991_v37 = vld [vmem:[%s17205_s7 + $0x158] sm:$0xff] }
 0x4ee   : > { %9601 = vmatpush1.bf16.msra.mxu1 %v9600_v19  ;;  %v3952_v19 = vld [vmem:[%s17205_s7 + $0x20] sm:$0xff] }
 0x4ef   : > { %9603 = vmatprep.subr.bf16.mxu1 %v9602_v20  ;;  %v3954_v20 = vld [vmem:[%s17205_s7 + $0x30] sm:$0xff] }
 0x4f0   : > { %v9636_v52 = vpack.c.bf16 %v3954_v20, %v3952_v19  ;;  %v3990_v19 = vld [vmem:[%s17205_s7 + $0x150] sm:$0xff]  ;;  %v3993_v20 = vld [vmem:[%s17205_s7 + $0x168] sm:$0xff] }
 0x4f2   : > { %9605 = vmatpush1.bf16.msra.mxu1 %v9604_v17  ;;  %v9638_v17 = vpack.c.bf16 %v3959_v28, %v3957_v62 }
 0x4f3   : > { %9607 = vmatprep.subr.bf16.mxu1 %v9606_v15  ;;  %v3956_v15 = vld [vmem:[%s17205_s7 + $0x40] sm:$0xff] }
 0x4f4   : > { %v9640_v40 = vpack.c.bf16 %v3958_v33, %v3956_v15  ;;  %v3997_v15 = vld [vmem:[%s17205_s7 + $0x188] sm:$0xff]  ;;  %v3999_v33 = vld [vmem:[%s17205_s7 + $0x198] sm:$0xff] }
 0x4f6   : > { %9609 = vmatpush1.bf16.msra.mxu1 %v9608_v41  ;;  %v9642_v41 = vpack.c.bf16 %v3963_v39, %v3961_v56  ;;  %v9678_v39 = vpack.c.bf16 %v3999_v33, %v3997_v15 }
 0x4f7   : > { %9611 = vmatprep.subr.bf16.mxu1 %v9610_v43  ;;  %v3960_v43 = vld [vmem:[%s17205_s7 + $0x60] sm:$0xff] }
 0x4f8   : > { %v9644_v2 = vpack.c.bf16 %v3962_v38, %v3960_v43  ;;  %v4001_v43 = vld [vmem:[%s17205_s7 + $0x1a8] sm:$0xff]  ;;  %v4003_v38 = vld [vmem:[%s17205_s7 + $0x1b8] sm:$0xff] }
 0x4f9   : > { %v9682_v51 = vpack.c.bf16 %v4003_v38, %v4001_v43  ;;  %v10919_v38 = vld [vmem:[%s11314_s22 + $0x40] sm:$0xff] }
 0x4fa   : > { %9613 = vmatpush1.bf16.msra.mxu1 %v9612_v44  ;;  %v3964_v44 = vld [vmem:[%s17205_s7 + $0x80] sm:$0xff] }
 0x4fb   : > { %9615 = vmatprep.subr.bf16.mxu1 %v9614_v16  ;;  %v3966_v16 = vld [vmem:[%s17205_s7 + $0x90] sm:$0xff] }
 0x4fc   : > { %v9648_v29 = vpack.c.bf16 %v3966_v16, %v3964_v44  ;;  %v4005_v44 = vld [vmem:[%s17205_s7 + $0x1c8] sm:$0xff]  ;;  %v4007_v16 = vld [vmem:[%s17205_s7 + $0x1d8] sm:$0xff] }
 0x4fd   : > { %v9686_v58 = vpack.c.bf16 %v4007_v16, %v4005_v44 }
 0x4fe   : > { %9617 = vmatpush1.bf16.msra.mxu1 %v9616_v22  ;;  %v3968_v22 = vld [vmem:[%s17205_s7 + $0xa0] sm:$0xff] }
 0x4ff   : > { %9619 = vmatprep.subr.bf16.mxu1 %v9618_v27  ;;  %v3970_v27 = vld [vmem:[%s17205_s7 + $0xb0] sm:$0xff] }
 0x500   : > { %v9652_v45 = vpack.c.bf16 %v3970_v27, %v3968_v22  ;;  %v4009_v22 = vld [vmem:[%s17205_s7 + $0x1e8] sm:$0xff]  ;;  %v4011_v27 = vld [vmem:[%s17205_s7 + $0x1f8] sm:$0xff] }
 0x501   : > { %v9690_v53 = vpack.c.bf16 %v4011_v27, %v4009_v22  ;;  %v10924_v27 = vld [vmem:[%s11314_s22 + $0x88] sm:$0xff] }
 0x502   : > { %9621 = vmatpush1.bf16.msra.mxu1 %v9620_v8  ;;  %v3972_v8 = vld [vmem:[%s17205_s7 + $0xc0] sm:$0xff] }
 0x503   : > { %9623 = vmatprep.subr.bf16.mxu1 %v9622_v4  ;;  %v3974_v4 = vld [vmem:[%s17205_s7 + $0xd0] sm:$0xff] }
 0x504   : > { %v9656_v57 = vpack.c.bf16 %v3974_v4, %v3972_v8  ;;  %v7967_v8 = vld [vmem:[%s17205_s7 + $0x408] sm:$0xff]  ;;  %v7969_v4 = vld [vmem:[%s17205_s7 + $0x418] sm:$0xff] }
 0x506   : > { %9625 = vmatpush1.bf16.msra.mxu1 %v9624_v7  ;;  %v3976_v7 = vld [vmem:[%s17205_s7 + $0xe0] sm:$0xff] }
 0x507   : > { %9627 = vmatprep.subr.bf16.mxu1 %v9626_v34  ;;  %v3981_v34 = vld [vmem:[%s17205_s7 + $0x108] sm:$0xff]  ;;  %v9660_v10 = vpack.c.bf16 %v3978_v30, %v3976_v7  ;;  %v7966_v7 = vld [vmem:[%s17205_s7 + $0x400] sm:$0xff]  ;;  %v7968_v30 = vld [vmem:[%s17205_s7 + $0x410] sm:$0xff] }
 0x508   : > { %v9662_v54 = vpack.c.bf16 %v3983_v6, %v3981_v34  ;;  %v4310_v34 = vrot.slane %v13024_v47, 3  ;;  %v4311_v6 = vrot.slane %v13026_v3, 3  ;;  %v7970_v47 = vld [vmem:[%s17205_s7 + $0x420] sm:$0xff]  ;;  %v7972_v3 = vld [vmem:[%s17205_s7 + $0x430] sm:$0xff] }
 0x50a   : > { %9629 = vmatpush1.bf16.msra.mxu1 %v9628_v42  ;;  %v3980_v42 = vld [vmem:[%s17205_s7 + $0x100] sm:$0xff] }
 0x50b   : > { %9631 = vmatprep.subr.bf16.mxu1 %v9630_v12  ;;  %v3987_v12 = vld [vmem:[%s17205_s7 + $0x138] sm:$0xff]  ;;  %v9664_v46 = vpack.c.bf16 %v3982_v23, %v3980_v42  ;;  %v9696_v23 = vpack.c.bf16 %v7968_v30, %v7966_v7 }
 0x50c   : > { %v9666_v13 = vpack.c.bf16 %v3987_v12, %v3985_v14  ;;  %v4312_v12 = vsel %vm4306_vm11, %v4310_v34, %v4311_v6  ;;  %v7987_v34 = vld [vmem:[%s17205_s7 + $0x4a8] sm:$0xff]  ;;  %v7989_v6 = vld [vmem:[%s17205_s7 + $0x4b8] sm:$0xff] }
 0x50d   : > { %4155 = vmatmul.mubr.f32.vlgmr.msra.gmra.mrb[84].mxu1 %v4084_v0  ;;  %v9668_v0 = vpack.c.bf16 %v3986_v25, %v3984_v35  ;;  %v9700_v35 = vpack.c.bf16 %v7972_v3, %v7970_v47  ;;  %v9714_v47 = vpack.c.bf16 %v7989_v6, %v7987_v34 }
 0x50e   : > { %9633 = vmatpush1.bf16.msra.mxu1 %v9632_v36  ;;  %4234 = vmatprep.mubr.f32.mxu1 %v4167_v61  ;;  %v9670_v36 = vpack.c.bf16 %v3991_v37, %v3989_v18  ;;  %v3995_v61 = vld [vmem:[%s17205_s7 + $0x178] sm:$0xff]  ;;  %v7974_v18 = vld [vmem:[%s17205_s7 + $0x440] sm:$0xff]  ;;  %v7976_v37 = vld [vmem:[%s17205_s7 + $0x450] sm:$0xff] }
 0x50f   : > { %9635 = vmatprep.subr.bf16.mxu1 %v9634_v59  ;;  %v3988_v59 = vld [vmem:[%s17205_s7 + $0x140] sm:$0xff]  ;;  %v9674_v28 = vpack.c.bf16 %v3995_v61, %v3993_v20 }
 0x510   : > { %v9672_v62 = vpack.c.bf16 %v3990_v19, %v3988_v59  ;;  %v7979_v59 = vld [vmem:[%s17205_s7 + $0x468] sm:$0xff]  ;;  %v7981_v19 = vld [vmem:[%s17205_s7 + $0x478] sm:$0xff] }
 0x512   : > { %9637 = vmatpush1.bf16.msra.mxu1 %v9636_v52  ;;  %v3992_v52 = vld [vmem:[%s17205_s7 + $0x160] sm:$0xff] }
 0x513   : > { %9639 = vmatprep.subr.bf16.mxu1 %v9638_v17  ;;  %v3994_v17 = vld [vmem:[%s17205_s7 + $0x170] sm:$0xff] }
 0x514   : > { %v9676_v56 = vpack.c.bf16 %v3994_v17, %v3992_v52  ;;  %v9704_v52 = vpack.c.bf16 %v7976_v37, %v7974_v18  ;;  %v9706_v17 = vpack.c.bf16 %v7981_v19, %v7979_v59  ;;  %v10927_v37 = vld [vmem:[%s11314_s22 + $0x140] sm:$0xff] }
 0x515   : > { %v10929_v19 = vld [vmem:[%s11314_s22 + $0x1c0] sm:$0xff] }
 0x516   : > { %9641 = vmatpush1.bf16.msra.mxu1 %v9640_v40  ;;  %v3996_v40 = vld [vmem:[%s17205_s7 + $0x180] sm:$0xff] }
 0x517   : > { %9643 = vmatprep.subr.bf16.mxu1 %v9642_v41  ;;  %v3998_v41 = vld [vmem:[%s17205_s7 + $0x190] sm:$0xff] }
 0x518   : > { %v9680_v50 = vpack.c.bf16 %v3998_v41, %v3996_v40  ;;  %v7985_v40 = vld [vmem:[%s17205_s7 + $0x498] sm:$0xff]  ;;  %v10918_v41 = vld [vmem:[%s11314_s22] sm:$0xff] }
 0x51a   : > { %9645 = vmatpush1.bf16.msra.mxu1 %v9644_v2  ;;  %v4000_v2 = vld [vmem:[%s17205_s7 + $0x1a0] sm:$0xff] }
 0x51b   : > { %9647 = vmatprep.subr.bf16.mxu1 %v9646_v24  ;;  %v4002_v24 = vld [vmem:[%s17205_s7 + $0x1b0] sm:$0xff] }
 0x51c   : > { %v9684_v48 = vpack.c.bf16 %v4002_v24, %v4000_v2  ;;  %v10921_v24 = vld [vmem:[%s11314_s22 + $0xc0] sm:$0xff] }
 0x51e   : > { %9649 = vmatpush1.bf16.msra.mxu1 %v9648_v29  ;;  %v4004_v29 = vld [vmem:[%s17205_s7 + $0x1c0] sm:$0xff] }
 0x51f   : > { %9651 = vmatprep.subr.bf16.mxu1 %v9650_v11  ;;  %v4006_v11 = vld [vmem:[%s17205_s7 + $0x1d0] sm:$0xff] }
 0x520   : > { %v9688_v32 = vpack.c.bf16 %v4006_v11, %v4004_v29  ;;  %v10923_v11 = vld [vmem:[%s11314_s22 + $0x48] sm:$0xff] }
 0x522   : > { %9653 = vmatpush1.bf16.msra.mxu1 %v9652_v45  ;;  %v4008_v45 = vld [vmem:[%s17205_s7 + $0x1e0] sm:$0xff] }
 0x523   : > { %9655 = vmatprep.subr.bf16.mxu1 %v9654_v9  ;;  %v4010_v9 = vld [vmem:[%s17205_s7 + $0x1f0] sm:$0xff] }
 0x524   : > { %v9692_v1 = vpack.c.bf16 %v4010_v9, %v4008_v45 }
 0x526   : > { %9657 = vmatpush1.bf16.msra.mxu1 %v9656_v57  ;;  %v4163_v57 = vrot.slane %v13195_v49, 1 }
 0x527   : > { %9659 = vmatprep.subr.bf16.mxu1 %v9658_v55  ;;  %v9694_v55 = vpack.c.bf16 %v7969_v4, %v7967_v8 }
 0x528   : > { %v4164_v42 = vsel %vm4161_vm10, %v4162_v60, %v4163_v57  ;;  %v7984_v60 = vld [vmem:[%s17205_s7 + $0x490] sm:$0xff] }
 0x52a   : > { %9661 = vmatpush1.bf16.msra.mxu1 %v9660_v10  ;;  %v7971_v10 = vld [vmem:[%s17205_s7 + $0x428] sm:$0xff] }
 0x52b   : > { %9663 = vmatprep.subr.bf16.mxu1 %v9662_v54  ;;  %v7973_v54 = vld [vmem:[%s17205_s7 + $0x438] sm:$0xff] }
 0x52c   : > { %v9698_v14 = vpack.c.bf16 %v7973_v54, %v7971_v10 }
 0x52e   : > { %9665 = vmatpush1.bf16.msra.mxu1 %v9664_v46  ;;  %v7975_v46 = vld [vmem:[%s17205_s7 + $0x448] sm:$0xff] }
 0x52f   : > { %9667 = vmatprep.subr.bf16.mxu1 %v9666_v13  ;;  %v7977_v13 = vld [vmem:[%s17205_s7 + $0x458] sm:$0xff] }
 0x530   : > { %v9702_v25 = vpack.c.bf16 %v7977_v13, %v7975_v46  ;;  %v7991_v13 = vld [vmem:[%s17205_s7 + $0x4c8] sm:$0xff] }
 0x532   : > { %9669 = vmatpush1.bf16.msra.mxu1 %v9668_v0 }
 0x533   : > { %9671 = vmatprep.subr.bf16.mxu1 %v9670_v36 }
 0x536   : > { %9673 = vmatpush1.bf16.msra.mxu1 %v9672_v62  ;;  %v7978_v62 = vld [vmem:[%s17205_s7 + $0x460] sm:$0xff] }
 0x537   : > { %9675 = vmatprep.subr.bf16.mxu1 %v9674_v28  ;;  %v7980_v28 = vld [vmem:[%s17205_s7 + $0x470] sm:$0xff] }
 0x53a   : > { %9677 = vmatpush1.bf16.msra.mxu1 %v9676_v56  ;;  %v9708_v56 = vpack.c.bf16 %v7980_v28, %v7978_v62  ;;  %v10930_v28 = vld [vmem:[%s11314_s22 + $0x108] sm:$0xff] }
 0x53b   : > { %9679 = vmatprep.subr.bf16.mxu1 %v9678_v39  ;;  %v7983_v39 = vld [vmem:[%s17205_s7 + $0x488] sm:$0xff] }
 0x53c   : > { %v9710_v4 = vpack.c.bf16 %v7985_v40, %v7983_v39  ;;  %v10933_v39 = vld [vmem:[%s11314_s22 + $0x1c8] sm:$0xff] }
 0x53e   : > { %9681 = vmatpush1.bf16.msra.mxu1 %v9680_v50 }
 0x53f   : > { %9683 = vmatprep.subr.bf16.mxu1 %v9682_v51  ;;  %v10920_v51 = vld [vmem:[%s11314_s22 + $0x80] sm:$0xff] }
 0x542   : > { %9685 = vmatpush1.bf16.msra.mxu1 %v9684_v48 }
 0x543   : > { %9687 = vmatprep.subr.bf16.mxu1 %v9686_v58  ;;  %v10922_v58 = vld [vmem:[%s11314_s22 + $0x8] sm:$0xff] }
 0x546   : > { %9689 = vmatpush1.bf16.msra.mxu1 %v9688_v32 }
 0x547   : > { %9691 = vmatprep.subr.bf16.mxu1 %v9690_v53  ;;  %v10925_v53 = vld [vmem:[%s11314_s22 + $0xc8] sm:$0xff] }
 0x54a   : > { %9693 = vmatpush1.bf16.msra.mxu1 %v9692_v1  ;;  %v7982_v1 = vld [vmem:[%s17205_s7 + $0x480] sm:$0xff] }
 0x54b   : > { %9695 = vmatprep.subr.bf16.mxu1 %v9694_v55  ;;  %v10952_v55 = vld [vmem:[%s11314_s22 + $0x28] sm:$0xff] }
 0x54d   : > { %4235 = vmatmul.mubr.f32.vlgmr.msra.gmra.mrb[84].mxu1 %v4164_v42  ;;  %v7986_v42 = vld [vmem:[%s17205_s7 + $0x4a0] sm:$0xff] }
 0x54e   : > { %9697 = vmatpush1.bf16.msra.mxu1 %v9696_v23  ;;  %4379 = vmatprep.mubr.f32.mxu1 %v4312_v12  ;;  %v7988_v23 = vld [vmem:[%s17205_s7 + $0x4b0] sm:$0xff] }
 0x54f   : > { %9699 = vmatprep.subr.bf16.mxu1 %v9698_v14  ;;  %v9712_v14 = vpack.c.bf16 %v7984_v60, %v7982_v1  ;;  %v9716_v46 = vpack.c.bf16 %v7988_v23, %v7986_v42  ;;  %v7999_v23 = vld [vmem:[%s17205_s7 + $0x508] sm:$0xff] }
 0x550   : > { %v2335_v0 = vpop.f32.mrb[36].mxu1  ;;  %v2691_v36 = vpop.f32.mrb[38].mxu0 }
 0x551   : > { %v2337_v20 = vpop.f32.mrb[37].mxu1  ;;  %v2693_v61 = vpop.f32.mrb[39].mxu0  ;;  %v13456_v43 = vmul.f32 %v10918_v41, %v2335_v0  ;;  %v13459_v50 = vmul.f32 %v10919_v38, %v2691_v36  ;;  %v10928_v36 = vld [vmem:[%s11314_s22 + $0x180] sm:$0xff] }
 0x552   : > { %9701 = vmatpush1.bf16.msra.mxu1 %v9700_v35  ;;  %v13468_v29 = vmul.f32 %v10922_v58, %v2337_v20  ;;  %v13471_v22 = vmul.f32 %v10923_v11, %v2693_v61  ;;  %v7993_v35 = vld [vmem:[%s17205_s7 + $0x4d8] sm:$0xff] }
 0x553   : > { %9703 = vmatprep.subr.bf16.mxu1 %v9702_v25  ;;  %v10926_v25 = vld [vmem:[%s11314_s22 + $0x100] sm:$0xff]  ;;  %v10948_v58 = vld [vmem:[%s11314_s22 + $0x198] sm:$0xff] }
 0x554   : > { %v2341_v15 = vpop.f32.mrb[38].mxu1  ;;  %v2697_v33 = vpop.f32.mrb[40].mxu0 }
 0x555   : > { %v13462_v2 = vmul.f32 %v10920_v51, %v2341_v15  ;;  %v13465_v44 = vmul.f32 %v10921_v24, %v2697_v33  ;;  %v2343_v16 = vpop.f32.mrb[39].mxu1  ;;  %v2699_v48 = vpop.f32.mrb[41].mxu0  ;;  %v10932_v33 = vld [vmem:[%s11314_s22 + $0x188] sm:$0xff]  ;;  %v9718_v51 = vpack.c.bf16 %v7993_v35, %v7991_v13  ;;  %v7990_v24 = vld [vmem:[%s17205_s7 + $0x4c0] sm:$0xff]  ;;  %v10936_v13 = vld [vmem:[%s11314_s22 + $0x90] sm:$0xff] }
 0x556   : > { %v13474_v32 = vmul.f32 %v10924_v27, %v2343_v16  ;;  %v13477_v45 = vmul.f32 %v10925_v53, %v2699_v48  ;;  %9705 = vmatpush1.bf16.msra.mxu1 %v9704_v52  ;;  %v7992_v16 = vld [vmem:[%s17205_s7 + $0x4d0] sm:$0xff]  ;;  %v7995_v53 = vld [vmem:[%s17205_s7 + $0x4e8] sm:$0xff] }
 0x557   : > { %9707 = vmatprep.subr.bf16.mxu1 %v9706_v17  ;;  %v10931_v17 = vld [vmem:[%s11314_s22 + $0x148] sm:$0xff]  ;;  %v9720_v34 = vpack.c.bf16 %v7992_v16, %v7990_v24 }
 0x558   : > { %v2347_v7 = vpop.f32.mrb[40].mxu1  ;;  %v2703_v30 = vpop.f32.mrb[42].mxu0  ;;  %v10957_v16 = vld [vmem:[%s11314_s22 + $0x1a8] sm:$0xff] }
 0x559   : > { %v2349_v10 = vpop.f32.mrb[41].mxu1  ;;  %v2705_v54 = vpop.f32.mrb[43].mxu0  ;;  %v13512_v18 = vmul.f32 %v10926_v25, %v2347_v7  ;;  %v13515_v0 = vmul.f32 %v10927_v37, %v2703_v30  ;;  %v7994_v7 = vld [vmem:[%s17205_s7 + $0x4e0] sm:$0xff]  ;;  %v7996_v30 = vld [vmem:[%s17205_s7 + $0x4f0] sm:$0xff] }
 0x55a   : > { %9709 = vmatpush1.bf16.msra.mxu1 %v9708_v56  ;;  %v13524_v52 = vmul.f32 %v10930_v28, %v2349_v10  ;;  %v13527_v15 = vmul.f32 %v10931_v17, %v2705_v54  ;;  %v9724_v42 = vpack.c.bf16 %v7996_v30, %v7994_v7  ;;  %v10937_v25 = vld [vmem:[%s11314_s22 + $0xe0] sm:$0xff]  ;;  %v10939_v28 = vld [vmem:[%s11314_s22 + $0x68] sm:$0xff] }
 0x55b   : > { %9711 = vmatprep.subr.bf16.mxu1 %v9710_v4  ;;  %v7997_v4 = vld [vmem:[%s17205_s7 + $0x4f8] sm:$0xff] }
 0x55c   : > { %v2353_v3 = vpop.f32.mrb[42].mxu1  ;;  %v2709_v12 = vpop.f32.mrb[44].mxu0  ;;  %v9722_v6 = vpack.c.bf16 %v7997_v4, %v7995_v53  ;;  %v7998_v53 = vld [vmem:[%s17205_s7 + $0x500] sm:$0xff]  ;;  %v8000_v4 = vld [vmem:[%s17205_s7 + $0x510] sm:$0xff] }
 0x55d   : > { %v13518_v59 = vmul.f32 %v10928_v36, %v2353_v3  ;;  %v13521_v20 = vmul.f32 %v10929_v19, %v2709_v12  ;;  %v2355_v61 = vpop.f32.mrb[43].mxu1  ;;  %v2711_v62 = vpop.f32.mrb[45].mxu0  ;;  %v10935_v12 = vld [vmem:[%s11314_s22 + $0x60] sm:$0xff] }
 0x55e   : > { %v13530_v56 = vmul.f32 %v10932_v33, %v2355_v61  ;;  %v13533_v40 = vmul.f32 %v10933_v39, %v2711_v62  ;;  %9713 = vmatpush1.bf16.msra.mxu1 %v9712_v14  ;;  %v8001_v14 = vld [vmem:[%s17205_s7 + $0x518] sm:$0xff] }
 0x55f   : > { %9715 = vmatprep.subr.bf16.mxu1 %v9714_v47  ;;  %v10934_v47 = vld [vmem:[%s11314_s22 + $0x10] sm:$0xff]  ;;  %v10938_v61 = vld [vmem:[%s11314_s22 + $0x18] sm:$0xff] }
 0x560   : > { %v2424_v11 = vpop.f32.mrb[44].mxu1  ;;  %v2869_v27 = vpop.f32.mrb[46].mxu0  ;;  %v10940_v33 = vld [vmem:[%s11314_s22 + $0x98] sm:$0xff] }
 0x561   : > { %v2426_v1 = vpop.f32.mrb[45].mxu1  ;;  %v2871_v60 = vpop.f32.mrb[47].mxu0  ;;  %v13568_v3 = vmul.f32 %v10934_v47, %v2424_v11  ;;  %v9728_v47 = vpack.c.bf16 %v8000_v4, %v7998_v53  ;;  %v10945_v4 = vld [vmem:[%s11314_s22 + $0x1e0] sm:$0xff] }
 0x562   : > { %9717 = vmatpush1.bf16.msra.mxu1 %v9716_v46  ;;  %v13571_v46 = vmul.f32 %v10935_v12, %v2869_v27  ;;  %v13580_v62 = vmul.f32 %v10938_v61, %v2426_v1  ;;  %v13583_v17 = vmul.f32 %v10939_v28, %v2871_v60  ;;  %v9726_v27 = vpack.c.bf16 %v8001_v14, %v7999_v23  ;;  %v8002_v23 = vld [vmem:[%s17205_s7 + $0x520] sm:$0xff]  ;;  %v8004_v14 = vld [vmem:[%s17205_s7 + $0x530] sm:$0xff]  ;;  %v8009_v61 = vld [vmem:[%s17205_s7 + $0x558] sm:$0xff] }
 0x563   : > { %9719 = vmatprep.subr.bf16.mxu1 %v9718_v51  ;;  %v10941_v51 = vld [vmem:[%s11314_s22 + $0xe8] sm:$0xff]  ;;  %v10942_v28 = vld [vmem:[%s11314_s22 + $0x110] sm:$0xff] }
 0x564   : > { %v2430_v10 = vpop.f32.mrb[46].mxu1  ;;  %v2875_v54 = vpop.f32.mrb[48].mxu0  ;;  %v10947_v60 = vld [vmem:[%s11314_s22 + $0x168] sm:$0xff] }
 0x565   : > { %v13574_v35 = vmul.f32 %v10936_v13, %v2430_v10  ;;  %v13577_v37 = vmul.f32 %v10937_v25, %v2875_v54  ;;  %v2432_v36 = vpop.f32.mrb[47].mxu1  ;;  %v2877_v19 = vpop.f32.mrb[49].mxu0 }
 0x566   : > { %v13586_v39 = vmul.f32 %v10940_v33, %v2432_v36  ;;  %v13589_v24 = vmul.f32 %v10941_v51, %v2877_v19  ;;  %9721 = vmatpush1.bf16.msra.mxu1 %v9720_v34  ;;  %v8003_v34 = vld [vmem:[%s17205_s7 + $0x528] sm:$0xff]  ;;  %v9732_v36 = vpack.c.bf16 %v8004_v14, %v8002_v23  ;;  %v10943_v33 = vld [vmem:[%s11314_s22 + $0x160] sm:$0xff]  ;;  %v10946_v14 = vld [vmem:[%s11314_s22 + $0x118] sm:$0xff] }
 0x567   : > { %9723 = vmatprep.subr.bf16.mxu1 %v9722_v6  ;;  %v8005_v6 = vld [vmem:[%s17205_s7 + $0x538] sm:$0xff]  ;;  %v8007_v19 = vld [vmem:[%s17205_s7 + $0x548] sm:$0xff] }
 0x568   : > { %v2436_v7 = vpop.f32.mrb[48].mxu1  ;;  %v2881_v30 = vpop.f32.mrb[50].mxu0  ;;  %v9730_v12 = vpack.c.bf16 %v8005_v6, %v8003_v34 }
 0x569   : > { %v2438_v10 = vpop.f32.mrb[49].mxu1  ;;  %v2883_v54 = vpop.f32.mrb[51].mxu0  ;;  %v13627_v51 = vmul.f32 %v10943_v33, %v2881_v30  ;;  %v9734_v33 = vpack.c.bf16 %v8009_v61, %v8007_v19  ;;  %v8013_v19 = vld [vmem:[%s17205_s7 + $0x578] sm:$0xff] }
 0x56a   : > { %9725 = vmatpush1.bf16.msra.mxu1 %v9724_v42  ;;  %v13624_v42 = vmul.f32 %v10942_v28, %v2436_v7  ;;  %v13636_v11 = vmul.f32 %v10946_v14, %v2438_v10  ;;  %v13639_v38 = vmul.f32 %v10947_v60, %v2883_v54  ;;  %v10949_v28 = vld [vmem:[%s11314_s22 + $0x1e8] sm:$0xff]  ;;  %v8006_v60 = vld [vmem:[%s17205_s7 + $0x540] sm:$0xff] }
 0x56b   : > { %9727 = vmatprep.subr.bf16.mxu1 %v9726_v27  ;;  %17246 = vst [vmem:[#allocation11_spill] sm:$0xff] %v13627_v51  ;;  %v10944_v27 = vld [vmem:[%s11314_s22 + $0x190] sm:$0xff]  ;;  %v4308_v51 = vrot.slane %v13195_v49, 3  ;;  %v8035_v49 = vld [vmem:[%s17205_s7 + $0x628] sm:$0xff] }
 0x56c   : > { %v2442_v13 = vpop.f32.mrb[50].mxu1  ;;  %v2887_v25 = vpop.f32.mrb[52].mxu0  ;;  %17248 = vst [vmem:[#allocation13_spill] sm:$0xff] %v13639_v38 }
 0x56d   : > { %v13630_v53 = vmul.f32 %v10944_v27, %v2442_v13  ;;  %v13633_v34 = vmul.f32 %v10945_v4, %v2887_v25  ;;  %v2444_v6 = vpop.f32.mrb[51].mxu1  ;;  %v2889_v23 = vpop.f32.mrb[53].mxu0 }
 0x56e   : > { %v13642_v7 = vmul.f32 %v10948_v58, %v2444_v6  ;;  %v13645_v30 = vmul.f32 %v10949_v28, %v2889_v23  ;;  %9729 = vmatpush1.bf16.msra.mxu1 %v9728_v47  ;;  %v8008_v58 = vld [vmem:[%s17205_s7 + $0x550] sm:$0xff]  ;;  %v3147_v23 = vld [vmem:[%s17204_s6 + $0x8] sm:$0xff] }
 0x56f   : > { %17247 = vst [vmem:[#allocation12_spill] sm:$0xff] %v13633_v34  ;;  %9731 = vmatprep.subr.bf16.mxu1 %v9730_v12  ;;  %v8011_v12 = vld [vmem:[%s17205_s7 + $0x568] sm:$0xff]  ;;  %v9736_v14 = vpack.c.bf16 %v8008_v58, %v8006_v60  ;;  %v3148_v28 = vld [vmem:[%s17204_s6 + $0x10] sm:$0xff]  ;;  %v8017_v60 = vld [vmem:[%s17205_s7 + $0x598] sm:$0xff] }
 0x570   : > { %17249 = vst [vmem:[#allocation14_spill] sm:$0xff] %v13645_v30  ;;  %v2513_v47 = vpop.f32.mrb[52].mxu1  ;;  %v3141_v27 = vpop.f32.mrb[54].mxu0  ;;  %v10950_v58 = vld [vmem:[%s11314_s22 + $0x20] sm:$0xff] }
 0x571   : > { %v3145_v61 = vmax.f32 %v3141_v27, 0.0  ;;  %v2515_v4 = vpop.f32.mrb[53].mxu1  ;;  %v9243_v6 = vpop.f32.mrb[55].mxu0  ;;  %v9738_v27 = vpack.c.bf16 %v8013_v19, %v8011_v12  ;;  %v13688_v12 = vmul.f32 %v10950_v58, %v2513_v47  ;;  %v10951_v19 = vld [vmem:[%s11314_s22 + $0xa0] sm:$0xff]  ;;  %v3149_v47 = vld [vmem:[%s17204_s6 + $0x18] sm:$0xff] }
 0x572   : > { %9733 = vmatpush1.bf16.msra.mxu1 %v9732_v36  ;;  %v8010_v6 = vld [vmem:[%s17205_s7 + $0x560] sm:$0xff]  ;;  %v8012_v36 = vld [vmem:[%s17205_s7 + $0x570] sm:$0xff]  ;;  %v13695_v13 = vmul.f32 %v10952_v55, %v2515_v4 }
 0x573   : > { %9244 = vmatprep.subr.msk.mxu0 %vm3162_vm12, %v3145_v61  ;;  %9735 = vmatprep.subr.bf16.mxu1 %v9734_v33  ;;  %v8015_v33 = vld [vmem:[%s17205_s7 + $0x588] sm:$0xff]  ;;  %v9740_v58 = vpack.c.bf16 %v8012_v36, %v8010_v6  ;;  %v8014_v55 = vld [vmem:[%s17205_s7 + $0x580] sm:$0xff] }
 0x574   : > { %v2519_v25 = vpop.f32.mrb[54].mxu1  ;;  %9245 = vmatpush3.msk.msra.mxu0 %vm3162_vm12, %v3145_v61  ;;  %v10953_v61 = vld [vmem:[%s11314_s22 + $0xa8] sm:$0xff]  ;;  %v8038_v30 = vld [vmem:[%s17205_s7 + $0x640] sm:$0xff] }
 0x575   : > { %v13691_v54 = vmul.f32 %v10951_v19, %v2519_v25  ;;  %v2521_v8 = vpop.f32.mrb[55].mxu1  ;;  %9247 = vmatmul.mubr.msk.f32.vlgmr.msra.gmra.mrb[56].mxu0 %vm467_vm1, %v3147_v23  ;;  %v9742_v19 = vpack.c.bf16 %v8017_v60, %v8015_v33  ;;  %v8018_v33 = vld [vmem:[%s17205_s7 + $0x5a0] sm:$0xff]  ;;  %v8020_v60 = vld [vmem:[%s17205_s7 + $0x5b0] sm:$0xff]  ;;  %v8023_v25 = vld [vmem:[%s17205_s7 + $0x5c8] sm:$0xff] }
 0x576   : > { %v13698_v10 = vmul.f32 %v10953_v61, %v2521_v8  ;;  %9737 = vmatpush1.bf16.msra.mxu1 %v9736_v14  ;;  %9249 = vmatprep.mubr.msk.f32.mxu0 %vm467_vm1, %v3148_v28  ;;  %v8016_v8 = vld [vmem:[%s17205_s7 + $0x590] sm:$0xff]  ;;  %v8019_v14 = vld [vmem:[%s17205_s7 + $0x5a8] sm:$0xff]  ;;  %v8021_v28 = vld [vmem:[%s17205_s7 + $0x5b8] sm:$0xff]  ;;  %v9748_v41 = vpack.c.bf16 %v8020_v60, %v8018_v33 }
 0x577   : > { %9739 = vmatprep.subr.bf16.mxu1 %v9738_v27  ;;  %v9744_v6 = vpack.c.bf16 %v8016_v8, %v8014_v55  ;;  %v9746_v36 = vpack.c.bf16 %v8021_v28, %v8019_v14  ;;  %v10955_v55 = vld [vmem:[%s11314_s22 + $0x1a0] sm:$0xff]  ;;  %v10956_v28 = vld [vmem:[%s11314_s22 + $0x128] sm:$0xff] }
 0x578   : > { %v2525_v23 = vpop.f32.mrb[56].mxu1  ;;  %v8026_v60 = vld [vmem:[%s17205_s7 + $0x5e0] sm:$0xff] }
 0x579   : > { %v2527_v27 = vpop.f32.mrb[57].mxu1  ;;  %9250 = vmatmul.mubr.msk.f32.gmra.mrb[58].mxu0 %vm467_vm1, %v3149_v47  ;;  %v8025_v47 = vld [vmem:[%s17205_s7 + $0x5d8] sm:$0xff] }
 0x57a   : > { %9741 = vmatpush1.bf16.msra.mxu1 %v9740_v58  ;;  %v10954_v58 = vld [vmem:[%s11314_s22 + $0x120] sm:$0xff]  ;;  %v13740_v4 = vmul.f32 %v10956_v28, %v2527_v27  ;;  %v9750_v26 = vpack.c.bf16 %v8025_v47, %v8023_v25  ;;  %v8029_v25 = vld [vmem:[%s17205_s7 + $0x5f8] sm:$0xff]  ;;  %v8028_v47 = vld [vmem:[%s17205_s7 + $0x5f0] sm:$0xff] }
 0x57b   : > { %9743 = vmatprep.subr.bf16.mxu1 %v9742_v19  ;;  %v13734_v19 = vmul.f32 %v10954_v58, %v2525_v23  ;;  %v8022_v23 = vld [vmem:[%s17205_s7 + $0x5c0] sm:$0xff]  ;;  %v13773_v28 = vld [vmem:[#allocation4 + $0x8] sm:$0xff]  ;;  %v10959_v27 = vld [vmem:[%s11314_s22 + $0xb0] sm:$0xff] }
 0x57c   : > { %v2531_v61 = vpop.f32.mrb[58].mxu1 }
 0x57d   : > { %v13737_v8 = vmul.f32 %v10955_v55, %v2531_v61  ;;  %v2533_v14 = vpop.f32.mrb[59].mxu1  ;;  %v8024_v61 = vld [vmem:[%s17205_s7 + $0x5d0] sm:$0xff]  ;;  %v8031_v55 = vld [vmem:[%s17205_s7 + $0x608] sm:$0xff] }
 0x57e   : > { %v13743_v1 = vmul.f32 %v10957_v16, %v2533_v14  ;;  %9745 = vmatpush1.bf16.msra.mxu1 %v9744_v6  ;;  %v8027_v6 = vld [vmem:[%s17205_s7 + $0x5e8] sm:$0xff]  ;;  %v9752_v33 = vpack.c.bf16 %v8024_v61, %v8022_v23  ;;  %v13775_v23 = vld [vmem:[#allocation4 + $0x18] sm:$0xf]  ;;  %v10958_v61 = vld [vmem:[%s11314_s22 + $0x30] sm:$0xff] }
 0x57f   : > { %9747 = vmatprep.subr.bf16.mxu1 %v9746_v36  ;;  %v9754_v58 = vpack.c.bf16 %v8029_v25, %v8027_v6  ;;  %v10960_v6 = vld [vmem:[%s11314_s22 + $0x38] sm:$0xff] }
 0x580   : > { %v2602_v16 = vpop.f32.mrb[60].mxu1 }
 0x581   : > { %v2604_v36 = vpop.f32.mrb[61].mxu1  ;;  %v6109_v48 = vmul.f32 %v10958_v61, %v2602_v16  ;;  %v8030_v16 = vld [vmem:[%s17205_s7 + $0x600] sm:$0xff]  ;;  %v10963_v61 = vld [vmem:[%s11314_s22 + $0x1b0] sm:$0xff] }
 0x582   : > { %9749 = vmatpush1.bf16.msra.mxu1 %v9748_v41  ;;  %v8033_v41 = vld [vmem:[%s17205_s7 + $0x618] sm:$0xff]  ;;  %v6110_v25 = vmul.f32 %v10960_v6, %v2604_v36  ;;  %v4460_v36 = vrot.slane %v13773_v28, 1 }
 0x583   : > { %9751 = vmatprep.subr.bf16.mxu1 %v9750_v26  ;;  %v9756_v26 = vpack.c.bf16 %v8028_v47, %v8026_v60  ;;  %v9758_v38 = vpack.c.bf16 %v8033_v41, %v8031_v55  ;;  %v8034_v47 = vld [vmem:[%s17205_s7 + $0x620] sm:$0xff] }
 0x584   : > { %v2608_v14 = vpop.f32.mrb[62].mxu1 }
 0x585   : > { %v6125_v9 = vmul.f32 %v10959_v27, %v2608_v14  ;;  %v2610_v57 = vpop.f32.mrb[63].mxu1  ;;  %v8032_v27 = vld [vmem:[%s17205_s7 + $0x610] sm:$0xff] }
 0x586   : > { %v6126_v5 = vmul.f32 %v10961_v63, %v2610_v57  ;;  %9753 = vmatpush1.bf16.msra.mxu1 %v9752_v33  ;;  %v4461_v63 = vrot.slane %v13775_v23, 1  ;;  %v4309_v33 = vsel %vm4306_vm11, %v4307_v21, %v4308_v51  ;;  %v9760_v60 = vpack.c.bf16 %v8032_v27, %v8030_v16  ;;  %v8039_v21 = vld [vmem:[%s17205_s7 + $0x648] sm:$0xff]  ;;  %v10962_v51 = vld [vmem:[%s11314_s22 + $0x130] sm:$0xff]  ;;  %v10965_v27 = vld [vmem:[%s11314_s22 + $0x1b8] sm:$0xff] }
 0x587   : > { %v13783_v34 = vpack.c.bf16 %v6125_v9, %v6109_v48  ;;  %9755 = vmatprep.subr.bf16.mxu1 %v9754_v58  ;;  %v8037_v9 = vld [vmem:[%s17205_s7 + $0x638] sm:$0xff]  ;;  %v8036_v58 = vld [vmem:[%s17205_s7 + $0x630] sm:$0xff] }
 0x588   : > { %v13793_v57 = vpack.c.bf16 %v6126_v5, %v6110_v25  ;;  %v2614_v31 = vpop.f32.mrb[64].mxu1  ;;  %v9762_v5 = vpack.c.bf16 %v8037_v9, %v8035_v49  ;;  %v4462_v55 = vsel %vm4161_vm10, %v4460_v36, %v4461_v63  ;;  %v10964_v25 = vld [vmem:[%s11314_s22 + $0x138] sm:$0xff]  ;;  %v9764_v36 = vpack.c.bf16 %v8036_v58, %v8034_v47 }
 0x589   : > { %v2616_v48 = vpop.f32.mrb[65].mxu1  ;;  %v6141_v41 = vmul.f32 %v10962_v51, %v2614_v31  ;;  %v8040_v31 = vld [vmem:[%s17205_s7 + $0x650] sm:$0xff]  ;;  %v8047_v51 = vld [vmem:[%s17205_s7 + $0x688] sm:$0xff] }
 0x58a   : > { %9757 = vmatpush1.bf16.msra.mxu1 %v9756_v26  ;;  %v6142_v16 = vmul.f32 %v10964_v25, %v2616_v48  ;;  %v9768_v58 = vpack.c.bf16 %v8040_v31, %v8038_v30  ;;  %v10966_v30 = vld [vmem:[%s11314_s22 + $0x50] sm:$0xff]  ;;  %v10973_v31 = vld [vmem:[%s11314_s22 + $0x1d8] sm:$0xff] }
 0x58b   : > { %9759 = vmatprep.subr.bf16.mxu1 %v9758_v38  ;;  %v8041_v38 = vld [vmem:[%s17205_s7 + $0x658] sm:$0xff] }
 0x58c   : > { %v2620_v14 = vpop.f32.mrb[66].mxu1  ;;  %v9766_v9 = vpack.c.bf16 %v8041_v38, %v8039_v21  ;;  %v8044_v21 = vld [vmem:[%s17205_s7 + $0x670] sm:$0xff] }
 0x58d   : > { %v6157_v26 = vmul.f32 %v10963_v61, %v2620_v14  ;;  %v2622_v6 = vpop.f32.mrb[67].mxu1  ;;  %4380 = vmatmul.mubr.f32.vlgmr.msra.gmra.mrb[84].mxu1 %v4309_v33  ;;  %v8042_v14 = vld [vmem:[%s17205_s7 + $0x660] sm:$0xff] }
 0x58e   : > { %v6158_v49 = vmul.f32 %v10965_v27, %v2622_v6  ;;  %9761 = vmatpush1.bf16.msra.mxu1 %v9760_v60  ;;  %4529 = vmatprep.mubr.f32.mxu1 %v4462_v55  ;;  %v8043_v60 = vld [vmem:[%s17205_s7 + $0x668] sm:$0xff] }
 0x58f   : > { %v13819_v63 = vpack.c.bf16 %v6157_v26, %v6141_v41  ;;  %9763 = vmatprep.subr.bf16.mxu1 %v9762_v5  ;;  %v8045_v5 = vld [vmem:[%s17205_s7 + $0x678] sm:$0xff]  ;;  %v10967_v26 = vld [vmem:[%s11314_s22 + $0xd0] sm:$0xff] }
 0x590   : > { %v13827_v33 = vpack.c.bf16 %v6158_v49, %v6142_v16  ;;  %v2780_v48 = vpop.f32.mrb[68].mxu1  ;;  %v9770_v55 = vpack.c.bf16 %v8045_v5, %v8043_v60  ;;  %v8049_v41 = vld [vmem:[%s17205_s7 + $0x698] sm:$0xff]  ;;  %v8048_v5 = vld [vmem:[%s17205_s7 + $0x690] sm:$0xff] }
 0x591   : > { %v2782_v47 = vpop.f32.mrb[69].mxu1  ;;  %v13848_v61 = vmul.f32 %v10966_v30, %v2780_v48  ;;  %v10968_v16 = vld [vmem:[%s11314_s22 + $0x58] sm:$0xff]  ;;  %v9774_v60 = vpack.c.bf16 %v8049_v41, %v8047_v51  ;;  %v8046_v48 = vld [vmem:[%s17205_s7 + $0x680] sm:$0xff]  ;;  %v8052_v30 = vld [vmem:[%s17205_s7 + $0x6b0] sm:$0xff] }
 0x592   : > { %9765 = vmatpush1.bf16.msra.mxu1 %v9764_v36  ;;  %v13854_v27 = vmul.f32 %v10968_v16, %v2782_v47  ;;  %v10969_v49 = vld [vmem:[%s11314_s22 + $0xd8] sm:$0xff]  ;;  %v8050_v41 = vld [vmem:[%s17205_s7 + $0x6a0] sm:$0xff] }
 0x593   : > { %9767 = vmatprep.subr.bf16.mxu1 %v9766_v9  ;;  %17250 = vst [vmem:[#allocation15_spill] sm:$0xff] %v13848_v61  ;;  %v9772_v9 = vpack.c.bf16 %v8044_v21, %v8042_v14  ;;  %v8051_v14 = vld [vmem:[%s17205_s7 + $0x6a8] sm:$0xff]  ;;  %v8057_v16 = vld [vmem:[%s17205_s7 + $0x6d8] sm:$0xff]  ;;  %v9780_v61 = vpack.c.bf16 %v8052_v30, %v8050_v41 }
 0x594   : > { %v2786_v38 = vpop.f32.mrb[70].mxu1  ;;  %17252 = vst [vmem:[#allocation17_spill] sm:$0xff] %v13854_v27  ;;  %v8059_v41 = vld [vmem:[%s17205_s7 + $0x6e8] sm:$0xff] }
 0x595   : > { %v13851_v6 = vmul.f32 %v10967_v26, %v2786_v38  ;;  %v2788_v25 = vpop.f32.mrb[71].mxu1  ;;  %v9776_v38 = vpack.c.bf16 %v8048_v5, %v8046_v48 }
 0x596   : > { %v13857_v36 = vmul.f32 %v10969_v49, %v2788_v25  ;;  %9769 = vmatpush1.bf16.msra.mxu1 %v9768_v58  ;;  %v8055_v25 = vld [vmem:[%s17205_s7 + $0x6c8] sm:$0xff]  ;;  %v10970_v49 = vld [vmem:[%s11314_s22 + $0x150] sm:$0xff] }
 0x597   : > { %17251 = vst [vmem:[#allocation16_spill] sm:$0xff] %v13851_v6  ;;  %9771 = vmatprep.subr.bf16.mxu1 %v9770_v55  ;;  %v8053_v55 = vld [vmem:[%s17205_s7 + $0x6b8] sm:$0xff]  ;;  %v9782_v27 = vpack.c.bf16 %v8057_v16, %v8055_v25  ;;  %v8058_v16 = vld [vmem:[%s17205_s7 + $0x6e0] sm:$0xff] }
 0x598   : > { %v2792_v58 = vpop.f32.mrb[72].mxu1  ;;  %v9778_v51 = vpack.c.bf16 %v8053_v55, %v8051_v14  ;;  %v10972_v14 = vld [vmem:[%s11314_s22 + $0x158] sm:$0xff] }
 0x599   : > { %v2794_v21 = vpop.f32.mrb[73].mxu1 }
 0x59a   : > { %9773 = vmatpush1.bf16.msra.mxu1 %v9772_v9  ;;  %v13888_v9 = vmul.f32 %v10970_v49, %v2792_v58  ;;  %v13894_v55 = vmul.f32 %v10972_v14, %v2794_v21  ;;  %v8054_v58 = vld [vmem:[%s17205_s7 + $0x6c0] sm:$0xff]  ;;  %v8056_v21 = vld [vmem:[%s17205_s7 + $0x6d0] sm:$0xff] }
 0x59b   : > { %9775 = vmatprep.subr.bf16.mxu1 %v9774_v60  ;;  %v10971_v60 = vld [vmem:[%s11314_s22 + $0x1d0] sm:$0xff] }
 0x59c   : > { %v2798_v26 = vpop.f32.mrb[74].mxu1  ;;  %17253 = vst [vmem:[#allocation18_spill] sm:$0xff] %v13888_v9  ;;  %17255 = vst [vmem:[#allocation20_spill] sm:$0xff] %v13894_v55  ;;  %v8060_v49 = vld [vmem:[%s17205_s7 + $0x6f0] sm:$0xff] }
 0x59d   : > { %v13891_v48 = vmul.f32 %v10971_v60, %v2798_v26  ;;  %v2800_v5 = vpop.f32.mrb[75].mxu1  ;;  %v9784_v26 = vpack.c.bf16 %v8056_v21, %v8054_v58  ;;  %v10974_v14 = vld [vmem:[%s11314_s22 + $0x70] sm:$0xff] }
 0x59e   : > { %v13897_v47 = vmul.f32 %v10973_v31, %v2800_v5  ;;  %9777 = vmatpush1.bf16.msra.mxu1 %v9776_v38  ;;  %v8063_v5 = vld [vmem:[%s17205_s7 + $0x708] sm:$0xff]  ;;  %v10975_v58 = vld [vmem:[%s11314_s22 + $0xf0] sm:$0xff]  ;;  %v10977_v31 = vld [vmem:[%s11314_s22 + $0xf8] sm:$0xff] }
 0x59f   : > { %17254 = vst [vmem:[#allocation19_spill] sm:$0xff] %v13891_v48  ;;  %9779 = vmatprep.subr.bf16.mxu1 %v9778_v51  ;;  %v8061_v51 = vld [vmem:[%s17205_s7 + $0x6f8] sm:$0xff]  ;;  %v9788_v48 = vpack.c.bf16 %v8060_v49, %v8058_v16  ;;  %v8067_v16 = vld [vmem:[%s17205_s7 + $0x728] sm:$0xff] }
 0x5a0   : > { %17256 = vst [vmem:[#allocation21_spill] sm:$0xff] %v13897_v47  ;;  %v2958_v38 = vpop.f32.mrb[76].mxu1  ;;  %v9786_v25 = vpack.c.bf16 %v8061_v51, %v8059_v41  ;;  %v10976_v51 = vld [vmem:[%s11314_s22 + $0x78] sm:$0xff] }
 0x5a1   : > { %v2960_v30 = vpop.f32.mrb[77].mxu1 }
 0x5a2   : > { %9781 = vmatpush1.bf16.msra.mxu1 %v9780_v61  ;;  %v8065_v61 = vld [vmem:[%s17205_s7 + $0x718] sm:$0xff]  ;;  %v13934_v6 = vmul.f32 %v10976_v51, %v2960_v30  ;;  %v8064_v30 = vld [vmem:[%s17205_s7 + $0x710] sm:$0xff] }
 0x5a3   : > { %9783 = vmatprep.subr.bf16.mxu1 %v9782_v27  ;;  %v13928_v27 = vmul.f32 %v10974_v14, %v2958_v38  ;;  %v9790_v47 = vpack.c.bf16 %v8065_v61, %v8063_v5  ;;  %v8062_v38 = vld [vmem:[%s17205_s7 + $0x700] sm:$0xff]  ;;  %v8068_v14 = vld [vmem:[%s17205_s7 + $0x730] sm:$0xff] }
 0x5a4   : > { %v2964_v60 = vpop.f32.mrb[78].mxu1  ;;  %17259 = vst [vmem:[#allocation24_spill] sm:$0xff] %v13934_v6  ;;  %v8066_v61 = vld [vmem:[%s17205_s7 + $0x720] sm:$0xff]  ;;  %v10978_v51 = vld [vmem:[%s11314_s22 + $0x170] sm:$0xff]  ;;  %v4607_v6 = vrot.slane %v13775_v23, 2 }
 0x5a5   : > { %17257 = vst [vmem:[#allocation22_spill] sm:$0xff] %v13928_v27  ;;  %v13931_v21 = vmul.f32 %v10975_v58, %v2964_v60  ;;  %v2966_v41 = vpop.f32.mrb[79].mxu1  ;;  %v9792_v60 = vpack.c.bf16 %v8064_v30, %v8062_v38  ;;  %v10979_v38 = vld [vmem:[%s11314_s22 + $0x1f0] sm:$0xff] }
 0x5a6   : > { %v13937_v9 = vmul.f32 %v10977_v31, %v2966_v41  ;;  %9785 = vmatpush1.bf16.msra.mxu1 %v9784_v26  ;;  %v8071_v41 = vld [vmem:[%s17205_s7 + $0x748] sm:$0xff]  ;;  %v10981_v31 = vld [vmem:[%s11314_s22 + $0x1f8] sm:$0xff] }
 0x5a7   : > { %17258 = vst [vmem:[#allocation23_spill] sm:$0xff] %v13931_v21  ;;  %9787 = vmatprep.subr.bf16.mxu1 %v9786_v25  ;;  %v8069_v25 = vld [vmem:[%s17205_s7 + $0x738] sm:$0xff]  ;;  %v9796_v21 = vpack.c.bf16 %v8068_v14, %v8066_v61  ;;  %v8074_v14 = vld [vmem:[%s17205_s7 + $0x760] sm:$0xff] }
 0x5a8   : > { %17260 = vst [vmem:[#allocation25_spill] sm:$0xff] %v13937_v9  ;;  %v2970_v26 = vpop.f32.mrb[80].mxu1  ;;  %v9794_v5 = vpack.c.bf16 %v8069_v25, %v8067_v16  ;;  %v10980_v25 = vld [vmem:[%s11314_s22 + $0x178] sm:$0xff] }
 0x5a9   : > { %v2972_v49 = vpop.f32.mrb[81].mxu1 }
 0x5aa   : > { %9789 = vmatpush1.bf16.msra.mxu1 %v9788_v48  ;;  %v8073_v48 = vld [vmem:[%s17205_s7 + $0x758] sm:$0xff]  ;;  %v13974_v55 = vmul.f32 %v10980_v25, %v2972_v49  ;;  %v8083_v25 = vld [vmem:[%s17205_s7 + $0x7a8] sm:$0xff]  ;;  %v8100_v49 = vld [vmem:[%s17205_s7 + $0x830] sm:$0xff] }
 0x5ab   : > { %9791 = vmatprep.subr.bf16.mxu1 %v9790_v47  ;;  %v13968_v47 = vmul.f32 %v10978_v51, %v2970_v26  ;;  %v9798_v9 = vpack.c.bf16 %v8073_v48, %v8071_v41  ;;  %v8070_v26 = vld [vmem:[%s17205_s7 + $0x740] sm:$0xff]  ;;  %v8076_v41 = vld [vmem:[%s17205_s7 + $0x770] sm:$0xff]  ;;  %v8079_v48 = vld [vmem:[%s17205_s7 + $0x788] sm:$0xff] }
 0x5ac   : > { %v2976_v58 = vpop.f32.mrb[82].mxu1  ;;  %v8081_v51 = vld [vmem:[%s17205_s7 + $0x798] sm:$0xff] }
 0x5ad   : > { %17261 = vst [vmem:[#allocation26_spill] sm:$0xff] %v13968_v47  ;;  %v13971_v30 = vmul.f32 %v10979_v38, %v2976_v58  ;;  %v2978_v16 = vpop.f32.mrb[83].mxu1  ;;  %v8072_v58 = vld [vmem:[%s17205_s7 + $0x750] sm:$0xff]  ;;  %v8078_v38 = vld [vmem:[%s17205_s7 + $0x780] sm:$0xff] }
 0x5ae   : > { %v13977_v27 = vmul.f32 %v10981_v31, %v2978_v16  ;;  %9793 = vmatpush1.bf16.msra.mxu1 %v9792_v60  ;;  %v8075_v31 = vld [vmem:[%s17205_s7 + $0x768] sm:$0xff]  ;;  %v8077_v60 = vld [vmem:[%s17205_s7 + $0x778] sm:$0xff]  ;;  %v8080_v16 = vld [vmem:[%s17205_s7 + $0x790] sm:$0xff] }
 0x5af   : > { %17262 = vst [vmem:[#allocation27_spill] sm:$0xff] %v13971_v30  ;;  %9795 = vmatprep.subr.bf16.mxu1 %v9794_v5  ;;  %v9800_v5 = vpack.c.bf16 %v8072_v58, %v8070_v26  ;;  %v9802_v61 = vpack.c.bf16 %v8077_v60, %v8075_v31  ;;  %v8085_v26 = vld [vmem:[%s17205_s7 + $0x7b8] sm:$0xff]  ;;  %v9808_v58 = vpack.c.bf16 %v8080_v16, %v8078_v38  ;;  %v8082_v60 = vld [vmem:[%s17205_s7 + $0x7a0] sm:$0xff]  ;;  %v8103_v30 = vld [vmem:[%s17205_s7 + $0x848] sm:$0xff] }
 0x5b0   : > { %v9810_v31 = vpack.c.bf16 %v8085_v26, %v8083_v25  ;;  %v8093_v38 = vld [vmem:[%s17205_s7 + $0x7f8] sm:$0xff]  ;;  %v8090_v25 = vld [vmem:[%s17205_s7 + $0x7e0] sm:$0xff] }
 0x5b2   : > { %9797 = vmatpush1.bf16.msra.mxu1 %v9796_v21  ;;  %v9804_v21 = vpack.c.bf16 %v8076_v41, %v8074_v14  ;;  %v8089_v14 = vld [vmem:[%s17205_s7 + $0x7d8] sm:$0xff] }
 0x5b3   : > { %9799 = vmatprep.subr.bf16.mxu1 %v9798_v9  ;;  %v9806_v9 = vpack.c.bf16 %v8081_v51, %v8079_v48  ;;  %v8086_v51 = vld [vmem:[%s17205_s7 + $0x7c0] sm:$0xff] }
 0x5b6   : > { %9801 = vmatpush1.bf16.msra.mxu1 %v9800_v5  ;;  %v8084_v5 = vld [vmem:[%s17205_s7 + $0x7b0] sm:$0xff] }
 0x5b7   : > { %9803 = vmatprep.subr.bf16.mxu1 %v9802_v61  ;;  %v8087_v61 = vld [vmem:[%s17205_s7 + $0x7c8] sm:$0xff]  ;;  %v9812_v41 = vpack.c.bf16 %v8084_v5, %v8082_v60  ;;  %v14051_v60 = vld [vmem:[#allocation4 + $0x10] sm:$0xf] }
 0x5b8   : > { %v9814_v48 = vpack.c.bf16 %v8089_v14, %v8087_v61  ;;  %v8095_v5 = vld [vmem:[%s17205_s7 + $0x808] sm:$0xff]  ;;  %v8097_v61 = vld [vmem:[%s17205_s7 + $0x818] sm:$0xff] }
 0x5ba   : > { %9805 = vmatpush1.bf16.msra.mxu1 %v9804_v21  ;;  %v8088_v21 = vld [vmem:[%s17205_s7 + $0x7d0] sm:$0xff] }
 0x5bb   : > { %9807 = vmatprep.subr.bf16.mxu1 %v9806_v9  ;;  %v8091_v9 = vld [vmem:[%s17205_s7 + $0x7e8] sm:$0xff]  ;;  %v9816_v16 = vpack.c.bf16 %v8088_v21, %v8086_v51  ;;  %v9822_v51 = vpack.c.bf16 %v8097_v61, %v8095_v5  ;;  %v8094_v21 = vld [vmem:[%s17205_s7 + $0x800] sm:$0xff] }
 0x5bc   : > { %v9818_v26 = vpack.c.bf16 %v8093_v38, %v8091_v9  ;;  %v8096_v9 = vld [vmem:[%s17205_s7 + $0x810] sm:$0xff]  ;;  %v4606_v38 = vrot.slane %v13773_v28, 2  ;;  %v8098_v61 = vld [vmem:[%s17205_s7 + $0x820] sm:$0xff] }
 0x5be   : > { %9809 = vmatpush1.bf16.msra.mxu1 %v9808_v58  ;;  %v8092_v58 = vld [vmem:[%s17205_s7 + $0x7f0] sm:$0xff]  ;;  %v4608_v47 = vsel %vm4081_vm9, %v4606_v38, %v4607_v6 }
 0x5bf   : > { %9811 = vmatprep.subr.bf16.mxu1 %v9810_v31  ;;  %v14049_v31 = vld [vmem:[#allocation4] sm:$0xff]  ;;  %v9820_v14 = vpack.c.bf16 %v8092_v58, %v8090_v25  ;;  %v8101_v25 = vld [vmem:[%s17205_s7 + $0x838] sm:$0xff]  ;;  %v9824_v58 = vpack.c.bf16 %v8096_v9, %v8094_v21  ;;  %v8104_v6 = vld [vmem:[%s17205_s7 + $0x850] sm:$0xff] }
 0x5c0   : > { %v8107_v21 = vld [vmem:[%s17205_s7 + $0x868] sm:$0xff]  ;;  %v8109_v9 = vld [vmem:[%s17205_s7 + $0x878] sm:$0xff]  ;;  %v8108_v38 = vld [vmem:[%s17205_s7 + $0x870] sm:$0xff] }
 0x5c2   : > { %9813 = vmatpush1.bf16.msra.mxu1 %v9812_v41  ;;  %v4457_v41 = vrot.slane %v14049_v31, 1 }
 0x5c3   : > { %9815 = vmatprep.subr.bf16.mxu1 %v9814_v48  ;;  %v4458_v48 = vrot.slane %v14051_v60, 1 }
 0x5c6   : > { %9817 = vmatpush1.bf16.msra.mxu1 %v9816_v16  ;;  %v8099_v16 = vld [vmem:[%s17205_s7 + $0x828] sm:$0xff] }
 0x5c7   : > { %9819 = vmatprep.subr.bf16.mxu1 %v9818_v26  ;;  %v4459_v26 = vsel %vm4161_vm10, %v4457_v41, %v4458_v48  ;;  %v9826_v5 = vpack.c.bf16 %v8101_v25, %v8099_v16  ;;  %v9828_v41 = vpack.c.bf16 %v8100_v49, %v8098_v61  ;;  %v8106_v49 = vld [vmem:[%s17205_s7 + $0x860] sm:$0xff]  ;;  %v8111_v16 = vld [vmem:[%s17205_s7 + $0x888] sm:$0xff]  ;;  %v8113_v25 = vld [vmem:[%s17205_s7 + $0x898] sm:$0xff] }
 0x5c8   : > { %v8112_v61 = vld [vmem:[%s17205_s7 + $0x890] sm:$0xff] }
 0x5ca   : > { %9821 = vmatpush1.bf16.msra.mxu1 %v9820_v14  ;;  %v8105_v14 = vld [vmem:[%s17205_s7 + $0x858] sm:$0xff] }
 0x5cb   : > { %9823 = vmatprep.subr.bf16.mxu1 %v9822_v51  ;;  %v9830_v48 = vpack.c.bf16 %v8105_v14, %v8103_v30  ;;  %v8102_v51 = vld [vmem:[%s17205_s7 + $0x840] sm:$0xff]  ;;  %v9834_v30 = vpack.c.bf16 %v8109_v9, %v8107_v21  ;;  %v8115_v14 = vld [vmem:[%s17205_s7 + $0x8a8] sm:$0xff]  ;;  %v8116_v21 = vld [vmem:[%s17205_s7 + $0x8b0] sm:$0xff] }
 0x5cc   : > { %v8119_v9 = vld [vmem:[%s17205_s7 + $0x8c8] sm:$0xff] }
 0x5cd   : > { %4530 = vmatmul.mubr.f32.vlgmr.msra.gmra.mrb[84].mxu1 %v4459_v26  ;;  %v9836_v26 = vpack.c.bf16 %v8108_v38, %v8106_v49  ;;  %v8118_v38 = vld [vmem:[%s17205_s7 + $0x8c0] sm:$0xff] }
 0x5ce   : > { %9825 = vmatpush1.bf16.msra.mxu1 %v9824_v58  ;;  %4675 = vmatprep.mubr.f32.mxu1 %v4608_v47  ;;  %v9832_v47 = vpack.c.bf16 %v8104_v6, %v8102_v51  ;;  %v9838_v58 = vpack.c.bf16 %v8113_v25, %v8111_v16  ;;  %v8114_v6 = vld [vmem:[%s17205_s7 + $0x8a0] sm:$0xff]  ;;  %v8120_v16 = vld [vmem:[%s17205_s7 + $0x8d0] sm:$0xff]  ;;  %v8123_v25 = vld [vmem:[%s17205_s7 + $0x8e8] sm:$0xff] }
 0x5cf   : > { %9827 = vmatprep.subr.bf16.mxu1 %v9826_v5  ;;  %v8110_v5 = vld [vmem:[%s17205_s7 + $0x880] sm:$0xff] }
 0x5d2   : > { %9829 = vmatpush1.bf16.msra.mxu1 %v9828_v41  ;;  %v8117_v41 = vld [vmem:[%s17205_s7 + $0x8b8] sm:$0xff] }
 0x5d3   : > { %9831 = vmatprep.subr.bf16.mxu1 %v9830_v48  ;;  %v9840_v48 = vpack.c.bf16 %v8112_v61, %v8110_v5  ;;  %v9842_v51 = vpack.c.bf16 %v8117_v41, %v8115_v14  ;;  %v8122_v61 = vld [vmem:[%s17205_s7 + $0x8e0] sm:$0xff]  ;;  %v8124_v14 = vld [vmem:[%s17205_s7 + $0x8f0] sm:$0xff]  ;;  %v8127_v41 = vld [vmem:[%s17205_s7 + $0x908] sm:$0xff] }
 0x5d6   : > { %9833 = vmatpush1.bf16.msra.mxu1 %v9832_v47  ;;  %v8121_v47 = vld [vmem:[%s17205_s7 + $0x8d8] sm:$0xff] }
 0x5d7   : > { %9835 = vmatprep.subr.bf16.mxu1 %v9834_v30  ;;  %v9844_v30 = vpack.c.bf16 %v8116_v21, %v8114_v6  ;;  %v9846_v49 = vpack.c.bf16 %v8121_v47, %v8119_v9  ;;  %v8126_v21 = vld [vmem:[%s17205_s7 + $0x900] sm:$0xff]  ;;  %v8128_v9 = vld [vmem:[%s17205_s7 + $0x910] sm:$0xff]  ;;  %v8131_v47 = vld [vmem:[%s17205_s7 + $0x928] sm:$0xff] }
 0x5da   : > { %9837 = vmatpush1.bf16.msra.mxu1 %v9836_v26  ;;  %v8125_v26 = vld [vmem:[%s17205_s7 + $0x8f8] sm:$0xff] }
 0x5db   : > { %9839 = vmatprep.subr.bf16.mxu1 %v9838_v58  ;;  %v9848_v58 = vpack.c.bf16 %v8120_v16, %v8118_v38  ;;  %v9850_v5 = vpack.c.bf16 %v8125_v26, %v8123_v25  ;;  %v8130_v16 = vld [vmem:[%s17205_s7 + $0x920] sm:$0xff]  ;;  %v8132_v25 = vld [vmem:[%s17205_s7 + $0x930] sm:$0xff]  ;;  %v8135_v26 = vld [vmem:[%s17205_s7 + $0x948] sm:$0xff] }
 0x5de   : > { %9841 = vmatpush1.bf16.msra.mxu1 %v9840_v48  ;;  %v8129_v48 = vld [vmem:[%s17205_s7 + $0x918] sm:$0xff] }
 0x5df   : > { %9843 = vmatprep.subr.bf16.mxu1 %v9842_v51  ;;  %v9852_v51 = vpack.c.bf16 %v8124_v14, %v8122_v61  ;;  %v9854_v6 = vpack.c.bf16 %v8129_v48, %v8127_v41  ;;  %v8134_v14 = vld [vmem:[%s17205_s7 + $0x940] sm:$0xff]  ;;  %v8136_v41 = vld [vmem:[%s17205_s7 + $0x950] sm:$0xff]  ;;  %v8139_v48 = vld [vmem:[%s17205_s7 + $0x968] sm:$0xff] }
 0x5e2   : > { %9845 = vmatpush1.bf16.msra.mxu1 %v9844_v30  ;;  %v8133_v30 = vld [vmem:[%s17205_s7 + $0x938] sm:$0xff] }
 0x5e3   : > { %9847 = vmatprep.subr.bf16.mxu1 %v9846_v49  ;;  %v9856_v49 = vpack.c.bf16 %v8128_v9, %v8126_v21  ;;  %v9858_v38 = vpack.c.bf16 %v8133_v30, %v8131_v47  ;;  %v8138_v9 = vld [vmem:[%s17205_s7 + $0x960] sm:$0xff]  ;;  %v8140_v47 = vld [vmem:[%s17205_s7 + $0x970] sm:$0xff]  ;;  %v8143_v30 = vld [vmem:[%s17205_s7 + $0x988] sm:$0xff] }
 0x5e6   : > { %9849 = vmatpush1.bf16.msra.mxu1 %v9848_v58  ;;  %v8137_v58 = vld [vmem:[%s17205_s7 + $0x958] sm:$0xff] }
 0x5e7   : > { %9851 = vmatprep.subr.bf16.mxu1 %v9850_v5  ;;  %v9860_v5 = vpack.c.bf16 %v8132_v25, %v8130_v16  ;;  %v9862_v61 = vpack.c.bf16 %v8137_v58, %v8135_v26  ;;  %v8142_v25 = vld [vmem:[%s17205_s7 + $0x980] sm:$0xff]  ;;  %v8144_v26 = vld [vmem:[%s17205_s7 + $0x990] sm:$0xff]  ;;  %v8147_v58 = vld [vmem:[%s17205_s7 + $0x9a8] sm:$0xff] }
 0x5ea   : > { %9853 = vmatpush1.bf16.msra.mxu1 %v9852_v51  ;;  %v8141_v51 = vld [vmem:[%s17205_s7 + $0x978] sm:$0xff] }
 0x5eb   : > { %9855 = vmatprep.subr.bf16.mxu1 %v9854_v6  ;;  %v9864_v6 = vpack.c.bf16 %v8136_v41, %v8134_v14  ;;  %v9866_v21 = vpack.c.bf16 %v8141_v51, %v8139_v48  ;;  %v8146_v41 = vld [vmem:[%s17205_s7 + $0x9a0] sm:$0xff]  ;;  %v8148_v48 = vld [vmem:[%s17205_s7 + $0x9b0] sm:$0xff]  ;;  %v8151_v51 = vld [vmem:[%s17205_s7 + $0x9c8] sm:$0xff] }
 0x5ee   : > { %9857 = vmatpush1.bf16.msra.mxu1 %v9856_v49  ;;  %v8145_v49 = vld [vmem:[%s17205_s7 + $0x998] sm:$0xff] }
 0x5ef   : > { %9859 = vmatprep.subr.bf16.mxu1 %v9858_v38  ;;  %v9868_v38 = vpack.c.bf16 %v8140_v47, %v8138_v9  ;;  %v9870_v16 = vpack.c.bf16 %v8145_v49, %v8143_v30  ;;  %v8150_v47 = vld [vmem:[%s17205_s7 + $0x9c0] sm:$0xff]  ;;  %v8152_v30 = vld [vmem:[%s17205_s7 + $0x9d0] sm:$0xff]  ;;  %v8155_v49 = vld [vmem:[%s17205_s7 + $0x9e8] sm:$0xff] }
 0x5f2   : > { %9861 = vmatpush1.bf16.msra.mxu1 %v9860_v5  ;;  %v8149_v5 = vld [vmem:[%s17205_s7 + $0x9b8] sm:$0xff] }
 0x5f3   : > { %9863 = vmatprep.subr.bf16.mxu1 %v9862_v61  ;;  %v9872_v61 = vpack.c.bf16 %v8144_v26, %v8142_v25  ;;  %v9874_v14 = vpack.c.bf16 %v8149_v5, %v8147_v58  ;;  %v8154_v26 = vld [vmem:[%s17205_s7 + $0x9e0] sm:$0xff]  ;;  %v8156_v58 = vld [vmem:[%s17205_s7 + $0x9f0] sm:$0xff]  ;;  %v8159_v5 = vld [vmem:[%s17205_s7 + $0xa08] sm:$0xff] }
 0x5f6   : > { %9865 = vmatpush1.bf16.msra.mxu1 %v9864_v6  ;;  %v8153_v6 = vld [vmem:[%s17205_s7 + $0x9d8] sm:$0xff] }
 0x5f7   : > { %9867 = vmatprep.subr.bf16.mxu1 %v9866_v21  ;;  %v9876_v21 = vpack.c.bf16 %v8148_v48, %v8146_v41  ;;  %v9878_v9 = vpack.c.bf16 %v8153_v6, %v8151_v51  ;;  %v4603_v41 = vrot.slane %v14049_v31, 2  ;;  %v4604_v48 = vrot.slane %v14051_v60, 2  ;;  %v8158_v6 = vld [vmem:[%s17205_s7 + $0xa00] sm:$0xff] }
 0x5fa   : > { %9869 = vmatpush1.bf16.msra.mxu1 %v9868_v38  ;;  %v8157_v38 = vld [vmem:[%s17205_s7 + $0x9f8] sm:$0xff] }
 0x5fb   : > { %9871 = vmatprep.subr.bf16.mxu1 %v9870_v16  ;;  %v9880_v16 = vpack.c.bf16 %v8152_v30, %v8150_v47  ;;  %v9882_v25 = vpack.c.bf16 %v8157_v38, %v8155_v49  ;;  %v4753_v47 = vrot.slane %v13775_v23, 3  ;;  %v8163_v30 = vld [vmem:[%s17205_s7 + $0xa28] sm:$0xff]  ;;  %v8165_v49 = vld [vmem:[%s17205_s7 + $0xa38] sm:$0xff]  ;;  %v4605_v38 = vsel %vm4081_vm9, %v4603_v41, %v4604_v48  ;;  %v8164_v23 = vld [vmem:[%s17205_s7 + $0xa30] sm:$0xff] }
 0x5fc   : > { %v8166_v41 = vld [vmem:[%s17205_s7 + $0xa40] sm:$0xff]  ;;  %v8168_v48 = vld [vmem:[%s17205_s7 + $0xa50] sm:$0xff] }
 0x5fe   : > { %9873 = vmatpush1.bf16.msra.mxu1 %v9872_v61  ;;  %v8161_v61 = vld [vmem:[%s17205_s7 + $0xa18] sm:$0xff] }
 0x5ff   : > { %9875 = vmatprep.subr.bf16.mxu1 %v9874_v14  ;;  %v9884_v14 = vpack.c.bf16 %v8156_v58, %v8154_v26  ;;  %v9886_v51 = vpack.c.bf16 %v8161_v61, %v8159_v5  ;;  %v8167_v58 = vld [vmem:[%s17205_s7 + $0xa48] sm:$0xff]  ;;  %v8169_v5 = vld [vmem:[%s17205_s7 + $0xa58] sm:$0xff] }
 0x602   : > { %9877 = vmatpush1.bf16.msra.mxu1 %v9876_v21  ;;  %v8160_v21 = vld [vmem:[%s17205_s7 + $0xa10] sm:$0xff] }
 0x603   : > { %9879 = vmatprep.subr.bf16.mxu1 %v9878_v9  ;;  %v4752_v9 = vrot.slane %v13773_v28, 3  ;;  %v8162_v28 = vld [vmem:[%s17205_s7 + $0xa20] sm:$0xff] }
 0x604   : > { %v9892_v61 = vpack.c.bf16 %v8164_v23, %v8162_v28  ;;  %v8174_v28 = vld [vmem:[%s17205_s7 + $0xa80] sm:$0xff]  ;;  %v8176_v23 = vld [vmem:[%s17205_s7 + $0xa90] sm:$0xff] }
 0x605   : > { %v4754_v26 = vsel %vm4306_vm11, %v4752_v9, %v4753_v47  ;;  %v8170_v47 = vld [vmem:[%s17205_s7 + $0xa60] sm:$0xff] }
 0x606   : > { %9881 = vmatpush1.bf16.msra.mxu1 %v9880_v16  ;;  %v9888_v16 = vpack.c.bf16 %v8160_v21, %v8158_v6  ;;  %v8173_v6 = vld [vmem:[%s17205_s7 + $0xa78] sm:$0xff]  ;;  %v9896_v21 = vpack.c.bf16 %v8168_v48, %v8166_v41  ;;  %v8180_v41 = vld [vmem:[%s17205_s7 + $0xab0] sm:$0xff]  ;;  %v8183_v48 = vld [vmem:[%s17205_s7 + $0xac8] sm:$0xff] }
 0x607   : > { %9883 = vmatprep.subr.bf16.mxu1 %v9882_v25  ;;  %v9890_v25 = vpack.c.bf16 %v8165_v49, %v8163_v30  ;;  %v8172_v30 = vld [vmem:[%s17205_s7 + $0xa70] sm:$0xff]  ;;  %v8175_v49 = vld [vmem:[%s17205_s7 + $0xa88] sm:$0xff] }
 0x60a   : > { %9885 = vmatpush1.bf16.msra.mxu1 %v9884_v14  ;;  %v9894_v14 = vpack.c.bf16 %v8169_v5, %v8167_v58  ;;  %v8181_v58 = vld [vmem:[%s17205_s7 + $0xab8] sm:$0xff]  ;;  %v9904_v5 = vpack.c.bf16 %v8176_v23, %v8174_v28  ;;  %v8188_v28 = vld [vmem:[%s17205_s7 + $0xaf0] sm:$0xff]  ;;  %v8191_v23 = vld [vmem:[%s17205_s7 + $0xb08] sm:$0xff] }
 0x60b   : > { %9887 = vmatprep.subr.bf16.mxu1 %v9886_v51  ;;  %v8171_v51 = vld [vmem:[%s17205_s7 + $0xa68] sm:$0xff] }
 0x60c   : > { %v9898_v9 = vpack.c.bf16 %v8173_v6, %v8171_v51  ;;  %v8185_v51 = vld [vmem:[%s17205_s7 + $0xad8] sm:$0xff] }
 0x60d   : > { %4676 = vmatmul.mubr.f32.vlgmr.msra.gmra.mrb[84].mxu1 %v4605_v38  ;;  %v8177_v38 = vld [vmem:[%s17205_s7 + $0xa98] sm:$0xff] }
 0x60e   : > { %9889 = vmatpush1.bf16.msra.mxu1 %v9888_v16  ;;  %4821 = vmatprep.mubr.f32.mxu1 %v4754_v26  ;;  %v9900_v16 = vpack.c.bf16 %v8172_v30, %v8170_v47  ;;  %v8179_v26 = vld [vmem:[%s17205_s7 + $0xaa8] sm:$0xff]  ;;  %v8184_v47 = vld [vmem:[%s17205_s7 + $0xad0] sm:$0xff] }
 0x60f   : > { %9891 = vmatprep.subr.bf16.mxu1 %v9890_v25  ;;  %v9902_v25 = vpack.c.bf16 %v8177_v38, %v8175_v49  ;;  %v8187_v30 = vld [vmem:[%s17205_s7 + $0xae8] sm:$0xff]  ;;  %v8189_v49 = vld [vmem:[%s17205_s7 + $0xaf8] sm:$0xff] }
 0x612   : > { %9893 = vmatpush1.bf16.msra.mxu1 %v9892_v61  ;;  %v9906_v61 = vpack.c.bf16 %v8181_v58, %v8179_v26  ;;  %v8193_v26 = vld [vmem:[%s17205_s7 + $0xb18] sm:$0xff] }
 0x613   : > { %9895 = vmatprep.subr.bf16.mxu1 %v9894_v14  ;;  %v8178_v14 = vld [vmem:[%s17205_s7 + $0xaa0] sm:$0xff] }
 0x614   : > { %v9908_v6 = vpack.c.bf16 %v8180_v41, %v8178_v14  ;;  %v8192_v14 = vld [vmem:[%s17205_s7 + $0xb10] sm:$0xff]  ;;  %v8195_v41 = vld [vmem:[%s17205_s7 + $0xb28] sm:$0xff] }
 0x616   : > { %9897 = vmatpush1.bf16.msra.mxu1 %v9896_v21  ;;  %v9910_v21 = vpack.c.bf16 %v8185_v51, %v8183_v48  ;;  %v8197_v48 = vld [vmem:[%s17205_s7 + $0xb38] sm:$0xff] }
 0x617   : > { %9899 = vmatprep.subr.bf16.mxu1 %v9898_v9  ;;  %v8182_v9 = vld [vmem:[%s17205_s7 + $0xac0] sm:$0xff] }
 0x618   : > { %v9912_v38 = vpack.c.bf16 %v8184_v47, %v8182_v9  ;;  %v8196_v9 = vld [vmem:[%s17205_s7 + $0xb30] sm:$0xff]  ;;  %v8199_v47 = vld [vmem:[%s17205_s7 + $0xb48] sm:$0xff] }
 0x61a   : > { %9901 = vmatpush1.bf16.msra.mxu1 %v9900_v16  ;;  %v9914_v16 = vpack.c.bf16 %v8189_v49, %v8187_v30  ;;  %v8201_v30 = vld [vmem:[%s17205_s7 + $0xb58] sm:$0xff] }
 0x61b   : > { %9903 = vmatprep.subr.bf16.mxu1 %v9902_v25  ;;  %v8186_v25 = vld [vmem:[%s17205_s7 + $0xae0] sm:$0xff] }
 0x61c   : > { %v9916_v58 = vpack.c.bf16 %v8188_v28, %v8186_v25  ;;  %v8200_v25 = vld [vmem:[%s17205_s7 + $0xb50] sm:$0xff]  ;;  %v8203_v28 = vld [vmem:[%s17205_s7 + $0xb68] sm:$0xff] }
 0x61e   : > { %9905 = vmatpush1.bf16.msra.mxu1 %v9904_v5  ;;  %v9918_v5 = vpack.c.bf16 %v8193_v26, %v8191_v23  ;;  %v8205_v23 = vld [vmem:[%s17205_s7 + $0xb78] sm:$0xff] }
 0x61f   : > { %9907 = vmatprep.subr.bf16.mxu1 %v9906_v61  ;;  %v8190_v61 = vld [vmem:[%s17205_s7 + $0xb00] sm:$0xff] }
 0x620   : > { %v9920_v51 = vpack.c.bf16 %v8192_v14, %v8190_v61  ;;  %v8204_v61 = vld [vmem:[%s17205_s7 + $0xb70] sm:$0xff]  ;;  %v8207_v14 = vld [vmem:[%s17205_s7 + $0xb88] sm:$0xff] }
 0x622   : > { %9909 = vmatpush1.bf16.msra.mxu1 %v9908_v6  ;;  %v9922_v6 = vpack.c.bf16 %v8197_v48, %v8195_v41  ;;  %v8209_v41 = vld [vmem:[%s17205_s7 + $0xb98] sm:$0xff] }
 0x623   : > { %9911 = vmatprep.subr.bf16.mxu1 %v9910_v21  ;;  %v8194_v21 = vld [vmem:[%s17205_s7 + $0xb20] sm:$0xff] }
 0x624   : > { %v9924_v49 = vpack.c.bf16 %v8196_v9, %v8194_v21  ;;  %v8208_v21 = vld [vmem:[%s17205_s7 + $0xb90] sm:$0xff]  ;;  %v8211_v9 = vld [vmem:[%s17205_s7 + $0xba8] sm:$0xff] }
 0x626   : > { %9913 = vmatpush1.bf16.msra.mxu1 %v9912_v38  ;;  %v9926_v38 = vpack.c.bf16 %v8201_v30, %v8199_v47  ;;  %v8213_v47 = vld [vmem:[%s17205_s7 + $0xbb8] sm:$0xff] }
 0x627   : > { %9915 = vmatprep.subr.bf16.mxu1 %v9914_v16  ;;  %v8198_v16 = vld [vmem:[%s17205_s7 + $0xb40] sm:$0xff] }
 0x628   : > { %v9928_v26 = vpack.c.bf16 %v8200_v25, %v8198_v16  ;;  %v8212_v16 = vld [vmem:[%s17205_s7 + $0xbb0] sm:$0xff]  ;;  %v8215_v25 = vld [vmem:[%s17205_s7 + $0xbc8] sm:$0xff] }
 0x62a   : > { %9917 = vmatpush1.bf16.msra.mxu1 %v9916_v58  ;;  %v9930_v58 = vpack.c.bf16 %v8205_v23, %v8203_v28  ;;  %v8217_v28 = vld [vmem:[%s17205_s7 + $0xbd8] sm:$0xff] }
 0x62b   : > { %9919 = vmatprep.subr.bf16.mxu1 %v9918_v5  ;;  %v8202_v5 = vld [vmem:[%s17205_s7 + $0xb60] sm:$0xff] }
 0x62c   : > { %v9932_v48 = vpack.c.bf16 %v8204_v61, %v8202_v5  ;;  %v8216_v5 = vld [vmem:[%s17205_s7 + $0xbd0] sm:$0xff]  ;;  %v8219_v61 = vld [vmem:[%s17205_s7 + $0xbe8] sm:$0xff] }
 0x62e   : > { %9921 = vmatpush1.bf16.msra.mxu1 %v9920_v51  ;;  %v9934_v51 = vpack.c.bf16 %v8209_v41, %v8207_v14  ;;  %v8221_v14 = vld [vmem:[%s17205_s7 + $0xbf8] sm:$0xff] }
 0x62f   : > { %9923 = vmatprep.subr.bf16.mxu1 %v9922_v6  ;;  %v8206_v6 = vld [vmem:[%s17205_s7 + $0xb80] sm:$0xff] }
 0x630   : > { %v9936_v30 = vpack.c.bf16 %v8208_v21, %v8206_v6  ;;  %v8220_v6 = vld [vmem:[%s17205_s7 + $0xbf0] sm:$0xff] }
 0x632   : > { %9925 = vmatpush1.bf16.msra.mxu1 %v9924_v49  ;;  %v9938_v49 = vpack.c.bf16 %v8213_v47, %v8211_v9  ;;  %v4749_v9 = vrot.slane %v14049_v31, 3  ;;  %v4750_v47 = vrot.slane %v14051_v60, 3  ;;  %v17264_v60 = vpack.c.bf16 %v13462_v2, %v13456_v43 }
 0x633   : > { %9927 = vmatprep.subr.bf16.mxu1 %v9926_v38  ;;  %v8210_v38 = vld [vmem:[%s17205_s7 + $0xba0] sm:$0xff] }
 0x634   : > { %v9940_v23 = vpack.c.bf16 %v8212_v16, %v8210_v38 }
 0x636   : > { %9929 = vmatpush1.bf16.msra.mxu1 %v9928_v26  ;;  %v9942_v26 = vpack.c.bf16 %v8217_v28, %v8215_v25  ;;  %v4751_v25 = vsel %vm4306_vm11, %v4749_v9, %v4750_v47  ;;  %v17263_v28 = vpack.c.bf16 %v13474_v32, %v13468_v29  ;;  %v17267_v29 = vpack.c.bf16 %v13518_v59, %v13512_v18  ;;  %v8223_v18 = vld [vmem:[%s17206_s8 + $0x208] sm:$0xff]  ;;  %v8225_v59 = vld [vmem:[%s17206_s8 + $0x218] sm:$0xff]  ;;  %v8224_v47 = vld [vmem:[%s17206_s8 + $0x210] sm:$0xff] }
 0x637   : > { %9931 = vmatprep.subr.bf16.mxu1 %v9930_v58  ;;  %v8214_v58 = vld [vmem:[%s17205_s7 + $0xbc0] sm:$0xff]  ;;  %v9950_v9 = vpack.c.bf16 %v8225_v59, %v8223_v18  ;;  %v8241_v18 = vld [vmem:[%s17206_s8 + $0x298] sm:$0xff] }
 0x638   : > { %v9944_v41 = vpack.c.bf16 %v8216_v5, %v8214_v58  ;;  %v17265_v5 = vmov 0.0  }
 0x639   : > { %9951 = vmatprep.subr.bf16.mxu0 %v9950_v9  ;;  %v8238_v9 = vld [vmem:[%s17206_s8 + $0x280] sm:$0xff] }
 0x63a   : > { %9933 = vmatpush1.bf16.msra.mxu1 %v9932_v48  ;;  %v9946_v48 = vpack.c.bf16 %v8221_v14, %v8219_v61  ;;  %v17266_v61 = vpack.c.bf16 %v13530_v56, %v13524_v52  ;;  %v8222_v52 = vld [vmem:[%s17206_s8 + $0x200] sm:$0xff] }
 0x63b   : > { %9935 = vmatprep.subr.bf16.mxu1 %v9934_v51  ;;  %v8218_v51 = vld [vmem:[%s17205_s7 + $0xbe0] sm:$0xff] }
 0x63c   : > { %v9948_v21 = vpack.c.bf16 %v8220_v6, %v8218_v51 }
 0x63e   : > { %9937 = vmatpush1.bf16.msra.mxu1 %v9936_v30 }
 0x63f   : > { %9939 = vmatprep.subr.bf16.mxu1 %v9938_v49 }
 0x642   : > { %9941 = vmatpush1.bf16.msra.mxu1 %v9940_v23 }
 0x643   : > { %9943 = vmatprep.subr.bf16.mxu1 %v9942_v26 }
 0x646   : > { %9945 = vmatpush1.bf16.msra.mxu1 %v9944_v41 }
 0x647   : > { %9947 = vmatprep.subr.bf16.mxu1 %v9946_v48 }
 0x648   : > { %v9248_v30 = vpop.f32.mrb[56].mxu0 }
 0x649   : > { %v7899_v49 = vmul.f32 -1.442695, %v9248_v30  ;;  %v3232_v38 = vpop.f32.mrb[57].mxu0  ;;  %v8227_v30 = vld [vmem:[%s17206_s8 + $0x228] sm:$0xff] }
 0x64a   : > { %v7898_v16 = vmul.f32 -1.442695, %v3232_v38  ;;  %9949 = vmatpush1.bf16.msra.mxu1 %v9948_v21  ;;  %v11077_v21 = vmov 0  }
 0x64b   : > { %10848 = vpow2.f32 %v7899_v49  ;;  %10463 = vmatprep.subr.bf16.mxu1 %v17263_v28  ;;  %10831 = vset.pattern.permute.xlu0 %v11077_v21  ;;  %v8229_v49 = vld [vmem:[%s17206_s8 + $0x238] sm:$0xff]  ;;  %v8226_v28 = vld [vmem:[%s17206_s8 + $0x220] sm:$0xff] }
 0x64c   : > { %10850 = vpow2.f32 %v7898_v16  ;;  %v9251_v23 = vpop.f32.mrb[58].mxu0  ;;  %10830 = vset.pattern.permute.xlu1 %v11077_v21  ;;  %v9952_v16 = vpack.c.bf16 %v8224_v47, %v8222_v52  ;;  %v8239_v21 = vld [vmem:[%s17206_s8 + $0x288] sm:$0xff]  ;;  %v8240_v47 = vld [vmem:[%s17206_s8 + $0x290] sm:$0xff] }
 0x64d   : > { %v7901_v26 = vmul.f32 -1.442695, %v9251_v23  ;;  %4822 = vmatmul.mubr.f32.vlgmr.msra.gmra.mrb[84].mxu1 %v4751_v25  ;;  %v3242_v31 = vpop.f32.mrb[59].mxu0  ;;  %v9954_v25 = vpack.c.bf16 %v8229_v49, %v8227_v30  ;;  %v8228_v23 = vld [vmem:[%s17206_s8 + $0x230] sm:$0xff]  ;;  %v9966_v52 = vpack.c.bf16 %v8241_v18, %v8239_v21  ;;  %v8243_v30 = vld [vmem:[%s17206_s8 + $0x2a8] sm:$0xff]  ;;  %v8245_v49 = vld [vmem:[%s17206_s8 + $0x2b8] sm:$0xff] }
 0x64e   : > { %v7900_v58 = vmul.f32 -1.442695, %v3242_v31  ;;  %10465 = vmatpush1.bf16.msra.mxu1 %v17264_v60  ;;  %6364 = vmatprep.mubr.f32.mxu1 %v17265_v5  ;;  %v8233_v31 = vld [vmem:[%s17206_s8 + $0x258] sm:$0xff]  ;;  %v8255_v21 = vld [vmem:[%s17206_s8 + $0x308] sm:$0xff] }
 0x64f   : > { %10852 = vpow2.f32 %v7901_v26  ;;  %10467 = vmatprep.subr.bf16.mxu1 %v17266_v61  ;;  %v8231_v26 = vld [vmem:[%s17206_s8 + $0x248] sm:$0xff]  ;;  %9953 = vmatpush1.bf16.msra.mxu0 %v9952_v16  ;;  %v8230_v61 = vld [vmem:[%s17206_s8 + $0x240] sm:$0xff]  ;;  %v9968_v16 = vpack.c.bf16 %v8240_v47, %v8238_v9  ;;  %v8257_v18 = vld [vmem:[%s17206_s8 + $0x318] sm:$0xff] }
 0x650   : > { %10854 = vpow2.f32 %v7900_v58  ;;  %v9956_v58 = vpack.c.bf16 %v8228_v23, %v8226_v28  ;;  %9955 = vmatprep.subr.bf16.mxu0 %v9954_v25  ;;  %v9958_v60 = vpack.c.bf16 %v8233_v31, %v8231_v26  ;;  %v9970_v25 = vpack.c.bf16 %v8245_v49, %v8243_v30  ;;  %v8242_v28 = vld [vmem:[%s17206_s8 + $0x2a0] sm:$0xff]  ;;  %v8244_v23 = vld [vmem:[%s17206_s8 + $0x2b0] sm:$0xff]  ;;  %v8247_v26 = vld [vmem:[%s17206_s8 + $0x2c8] sm:$0xff] }
 0x651   : > { %v8249_v31 = vld [vmem:[%s17206_s8 + $0x2d8] sm:$0xff]  ;;  %v8254_v9 = vld [vmem:[%s17206_s8 + $0x300] sm:$0xff]  ;;  %v8256_v47 = vld [vmem:[%s17206_s8 + $0x310] sm:$0xff] }
 0x652   : > { %10469 = vmatpush1.bf16.msra.mxu1 %v17267_v29  ;;  %v8232_v29 = vld [vmem:[%s17206_s8 + $0x250] sm:$0xff]  ;;  %v8259_v30 = vld [vmem:[%s17206_s8 + $0x328] sm:$0xff]  ;;  %v8261_v49 = vld [vmem:[%s17206_s8 + $0x338] sm:$0xff] }
 0x653   : > { %9957 = vmatpush1.bf16.msra.mxu0 %v9956_v58  ;;  %v9972_v58 = vpack.c.bf16 %v8244_v23, %v8242_v28  ;;  %v8258_v28 = vld [vmem:[%s17206_s8 + $0x320] sm:$0xff]  ;;  %v8260_v23 = vld [vmem:[%s17206_s8 + $0x330] sm:$0xff] }
 0x654   : > { %9959 = vmatprep.subr.bf16.mxu0 %v9958_v60  ;;  %v9974_v60 = vpack.c.bf16 %v8249_v31, %v8247_v26  ;;  %v8263_v26 = vld [vmem:[%s17206_s8 + $0x348] sm:$0xff]  ;;  %v8265_v31 = vld [vmem:[%s17206_s8 + $0x358] sm:$0xff] }
 0x655   : > { %v10849_v32 = vpop.eup %10848 }
 0x656   : > { %v10851_v14 = vpop.eup %10850  ;;  %v3264_v41 = vadd.f32 1.0, %v10849_v32 }
 0x657   : > { %v3263_v48 = vadd.f32 1.0, %v10851_v14  ;;  %v8235_v14 = vld [vmem:[%s17206_s8 + $0x268] sm:$0xff] }
 0x658   : > { %10856 = vrcp.f32 %v3264_v41  ;;  %v8237_v41 = vld [vmem:[%s17206_s8 + $0x278] sm:$0xff] }
 0x659   : > { %v10853_v51 = vpop.eup %10852  ;;  %10858 = vrcp.f32 %v3263_v48 }
 0x65a   : > { %v10855_v43 = vpop.eup %10854  ;;  %v3266_v2 = vadd.f32 1.0, %v10853_v51  ;;  %v9960_v51 = vpack.c.bf16 %v8232_v29, %v8230_v61  ;;  %v8246_v61 = vld [vmem:[%s17206_s8 + $0x2c0] sm:$0xff]  ;;  %v8248_v29 = vld [vmem:[%s17206_s8 + $0x2d0] sm:$0xff] }
 0x65b   : > { %v3265_v6 = vadd.f32 1.0, %v10855_v43  ;;  %v9962_v43 = vpack.c.bf16 %v8237_v41, %v8235_v14  ;;  %v8251_v14 = vld [vmem:[%s17206_s8 + $0x2e8] sm:$0xff]  ;;  %v8253_v41 = vld [vmem:[%s17206_s8 + $0x2f8] sm:$0xff] }
 0x65c   : > { %9961 = vmatpush1.bf16.msra.mxu0 %v9960_v51  ;;  %v9976_v51 = vpack.c.bf16 %v8248_v29, %v8246_v61  ;;  %v8262_v61 = vld [vmem:[%s17206_s8 + $0x340] sm:$0xff]  ;;  %v8264_v29 = vld [vmem:[%s17206_s8 + $0x350] sm:$0xff] }
 0x65d   : > { %10860 = vrcp.f32 %v3265_v6  ;;  %v8236_v6 = vld [vmem:[%s17206_s8 + $0x270] sm:$0xff]  ;;  %9963 = vmatprep.subr.bf16.mxu0 %v9962_v43  ;;  %v9978_v43 = vpack.c.bf16 %v8253_v41, %v8251_v14  ;;  %v8267_v14 = vld [vmem:[%s17206_s8 + $0x368] sm:$0xff]  ;;  %v8269_v41 = vld [vmem:[%s17206_s8 + $0x378] sm:$0xff] }
 0x65e   : > { %10862 = vrcp.f32 %v3266_v2  ;;  %v8234_v2 = vld [vmem:[%s17206_s8 + $0x260] sm:$0xff] }
 0x65f   : > { %v9964_v59 = vpack.c.bf16 %v8236_v6, %v8234_v2  ;;  %v8250_v2 = vld [vmem:[%s17206_s8 + $0x2e0] sm:$0xff]  ;;  %v8252_v6 = vld [vmem:[%s17206_s8 + $0x2f0] sm:$0xff] }
 0x661   : > { %9965 = vmatpush1.bf16.msra.mxu0 %v9964_v59  ;;  %v9980_v59 = vpack.c.bf16 %v8252_v6, %v8250_v2  ;;  %v8266_v2 = vld [vmem:[%s17206_s8 + $0x360] sm:$0xff]  ;;  %v8268_v6 = vld [vmem:[%s17206_s8 + $0x370] sm:$0xff] }
 0x662   : > { %v14474_v56 = vpop.eup %10856  ;;  %9967 = vmatprep.subr.bf16.mxu0 %v9966_v52  ;;  %v9982_v52 = vpack.c.bf16 %v8257_v18, %v8255_v21  ;;  %v8271_v21 = vld [vmem:[%s17206_s8 + $0x388] sm:$0xff]  ;;  %v8273_v18 = vld [vmem:[%s17206_s8 + $0x398] sm:$0xff] }
 0x663   : > { %v14485_v38 = vpop.eup %10858  ;;  %3281 = vrot.lane.b32.xlu0 %v14474_v56, %s11071_s12 }
 0x664   : > { %3279 = vrot.lane.b32.xlu1 %v14485_v38, %s11071_s12 }
 0x665   : > { %9969 = vmatpush1.bf16.msra.mxu0 %v9968_v16  ;;  %v9984_v16 = vpack.c.bf16 %v8256_v47, %v8254_v9  ;;  %v8270_v9 = vld [vmem:[%s17206_s8 + $0x380] sm:$0xff]  ;;  %v8272_v47 = vld [vmem:[%s17206_s8 + $0x390] sm:$0xff] }
 0x666   : > { %9971 = vmatprep.subr.bf16.mxu0 %v9970_v25  ;;  %v9986_v25 = vpack.c.bf16 %v8261_v49, %v8259_v30  ;;  %v10000_v30 = vpack.c.bf16 %v8272_v47, %v8270_v9  ;;  %v8275_v49 = vld [vmem:[%s17206_s8 + $0x3a8] sm:$0xff] }
 0x667   : > { %v14509_v32 = vpop.eup %10860 }
 0x668   : > { %3283 = vrot.lane.b32.xlu1 %v14509_v32, %s11071_s12  ;;  %v14519_v48 = vpop.eup %10862 }
 0x669   : > { %9973 = vmatpush1.bf16.msra.mxu0 %v9972_v58  ;;  %v9988_v58 = vpack.c.bf16 %v8260_v23, %v8258_v28  ;;  %v8274_v28 = vld [vmem:[%s17206_s8 + $0x3a0] sm:$0xff]  ;;  %v8276_v23 = vld [vmem:[%s17206_s8 + $0x3b0] sm:$0xff] }
 0x66a   : > { %9975 = vmatprep.subr.bf16.mxu0 %v9974_v60  ;;  %v9990_v60 = vpack.c.bf16 %v8265_v31, %v8263_v26  ;;  %v10004_v26 = vpack.c.bf16 %v8276_v23, %v8274_v28  ;;  %v8279_v31 = vld [vmem:[%s17206_s8 + $0x3c8] sm:$0xff] }
 0x66c   : > { %3285 = vrot.lane.b32.xlu1 %v14519_v48, %s11071_s12 }
 0x66d   : > { %9977 = vmatpush1.bf16.msra.mxu0 %v9976_v51  ;;  %v9992_v51 = vpack.c.bf16 %v8264_v29, %v8262_v61  ;;  %v8280_v29 = vld [vmem:[%s17206_s8 + $0x3d0] sm:$0xff] }
 0x66e   : > { %9979 = vmatprep.subr.bf16.mxu0 %v9978_v43  ;;  %v9994_v43 = vpack.c.bf16 %v8269_v41, %v8267_v14  ;;  %v8283_v14 = vld [vmem:[%s17206_s8 + $0x3e8] sm:$0xff]  ;;  %v8285_v41 = vld [vmem:[%s17206_s8 + $0x3f8] sm:$0xff] }
 0x671   : > { %9981 = vmatpush1.bf16.msra.mxu0 %v9980_v59  ;;  %v9996_v59 = vpack.c.bf16 %v8268_v6, %v8266_v2  ;;  %v8282_v2 = vld [vmem:[%s17206_s8 + $0x3e0] sm:$0xff]  ;;  %v8284_v6 = vld [vmem:[%s17206_s8 + $0x3f0] sm:$0xff] }
 0x672   : > { %9983 = vmatprep.subr.bf16.mxu0 %v9982_v52  ;;  %v9998_v52 = vpack.c.bf16 %v8273_v18, %v8271_v21  ;;  %v10012_v21 = vpack.c.bf16 %v8284_v6, %v8282_v2  ;;  %v4845_v18 = vld [vmem:[%s17206_s8 + $0x8] sm:$0xff] }
 0x675   : > { %9985 = vmatpush1.bf16.msra.mxu0 %v9984_v16  ;;  %v8277_v16 = vld [vmem:[%s17206_s8 + $0x3b8] sm:$0xff] }
 0x676   : > { %9987 = vmatprep.subr.bf16.mxu0 %v9986_v25  ;;  %v10002_v25 = vpack.c.bf16 %v8277_v16, %v8275_v49 }
 0x679   : > { %9989 = vmatpush1.bf16.msra.mxu0 %v9988_v58  ;;  %v8281_v58 = vld [vmem:[%s17206_s8 + $0x3d8] sm:$0xff] }
 0x67a   : > { %9991 = vmatprep.subr.bf16.mxu0 %v9990_v60  ;;  %v8278_v60 = vld [vmem:[%s17206_s8 + $0x3c0] sm:$0xff]  ;;  %v10006_v61 = vpack.c.bf16 %v8281_v58, %v8279_v31 }
 0x67d   : > { %9993 = vmatpush1.bf16.msra.mxu0 %v9992_v51  ;;  %v10008_v51 = vpack.c.bf16 %v8280_v29, %v8278_v60  ;;  %v4851_v29 = vld [vmem:[%s17206_s8 + $0x38] sm:$0xff] }
 0x67e   : > { %9995 = vmatprep.subr.bf16.mxu0 %v9994_v43  ;;  %v10010_v43 = vpack.c.bf16 %v8285_v41, %v8283_v14 }
 0x681   : > { %9997 = vmatpush1.bf16.msra.mxu0 %v9996_v59  ;;  %v4847_v59 = vld [vmem:[%s17206_s8 + $0x18] sm:$0xff] }
 0x682   : > { %9999 = vmatprep.subr.bf16.mxu0 %v9998_v52  ;;  %v10014_v52 = vpack.c.bf16 %v4847_v59, %v4845_v18 }
 0x685   : > { %10001 = vmatpush1.bf16.msra.mxu0 %v10000_v30 }
 0x686   : > { %10003 = vmatprep.subr.bf16.mxu0 %v10002_v25 }
 0x689   : > { %10005 = vmatpush1.bf16.msra.mxu0 %v10004_v26 }
 0x68a   : > { %10007 = vmatprep.subr.bf16.mxu0 %v10006_v61 }
 0x68d   : > { %10009 = vmatpush1.bf16.msra.mxu0 %v10008_v51 }
 0x68e   : > { %10011 = vmatprep.subr.bf16.mxu0 %v10010_v43 }
 0x691   : > { %10013 = vmatpush1.bf16.msra.mxu0 %v10012_v21 }
 0x692   : > { %10015 = vmatprep.subr.bf16.mxu0 %v10014_v52 }
 0x6d5   : > { %v3282_v9 = vpop.permute.xlu0 %3281 }
 0x6d6   : > { %v3280_v47 = vpop.permute.xlu1 %3279  ;;  %v3292_v30 = vadd.f32 %v14474_v56, %v3282_v9 }
 0x6d7   : > { %v3291_v49 = vadd.f32 %v14485_v38, %v3280_v47  ;;  %v4844_v38 = vld [vmem:[%s17206_s8] sm:$0xff] }
 0x6d8   : > { %6174 = vperm.xlu1 %10830, %v3292_v30  }
 0x6d9   : > { %6169 = vperm.xlu0 %10831, %v3291_v49  }
 0x6da   : > { %v3284_v16 = vpop.permute.xlu1 %3283 }
 0x6db   : > { %v3293_v25 = vadd.f32 %v14509_v32, %v3284_v16  ;;  %v4846_v32 = vld [vmem:[%s17206_s8 + $0x10] sm:$0xff] }
 0x6dc   : > { %v10016_v52 = vpack.c.bf16 %v4846_v32, %v4844_v38 }
 0x6dd   : > { %6179 = vperm.xlu1 %10830, %v3293_v25  }
 0x6de   : > { %v3286_v28 = vpop.permute.xlu1 %3285 }
 0x6df   : > { %v3294_v23 = vadd.f32 %v14519_v48, %v3286_v28  ;;  %v4849_v48 = vld [vmem:[%s17206_s8 + $0x28] sm:$0xff]  ;;  %v4848_v28 = vld [vmem:[%s17206_s8 + $0x20] sm:$0xff] }
 0x6e0   : > { %v10018_v25 = vpack.c.bf16 %v4851_v29, %v4849_v48 }
 0x6e1   : > { %6184 = vperm.xlu0 %10831, %v3294_v23   ;;  %v4850_v23 = vld [vmem:[%s17206_s8 + $0x30] sm:$0xff] }
 0x720   : > { %v14683_v26 = vpop.f32.mrb[84].mxu1 }
 0x721   : > { %v4832_v31 = vrot.slane %v14683_v26, 6  ;;  %v14686_v58 = vpop.f32.mrb[85].mxu1 }
 0x722   : > { %v4833_v56 = vrot.slane %v14686_v58, 6 }
 0x723   : > { %4836 = vst [vmem:[#allocation5] sm:$0xfc] %v4832_v31  ;;  %4838 = vst [vmem:[#allocation5 + $0x10] sm:$0x3] %v4832_v31  ;;  %v4853_v31 = vld [vmem:[%s17206_s8 + $0x48] sm:$0xff] }
 0x724   : > { %4837 = vst [vmem:[#allocation5 + $0x8] sm:$0xfc] %v4833_v56  ;;  %4839 = vst [vmem:[#allocation5 + $0x18] sm:$0x3] %v4833_v56  ;;  %v4855_v56 = vld [vmem:[%s17206_s8 + $0x58] sm:$0xff] }
 0x72a   : > { %v4840_v60 = vld [vmem:[#allocation5] sm:$0xff]  ;;  %v4842_v61 = vld [vmem:[#allocation5 + $0x10] sm:$0xf] }
 0x72b   : > { %v4841_v14 = vld [vmem:[#allocation5 + $0x8] sm:$0xff]  ;;  %v4843_v41 = vld [vmem:[#allocation5 + $0x18] sm:$0xf]  ;;  %v4977_v51 = vrot.slane %v4840_v60, 2  ;;  %v4978_v43 = vrot.slane %v4842_v61, 2  ;;  %v5056_v2 = vrot.slane %v4840_v60, 1 }
 0x72c   : > { %v4980_v6 = vrot.slane %v4841_v14, 2  ;;  %v4981_v21 = vrot.slane %v4843_v41, 2  ;;  %v5059_v18 = vrot.slane %v4841_v14, 1  ;;  %v5060_v59 = vrot.slane %v4843_v41, 1 }
 0x72d   : > { %v5057_v9 = vrot.slane %v4842_v61, 1  ;;  %v5203_v47 = vrot.slane %v4841_v14, 3  ;;  %v5204_v30 = vrot.slane %v4843_v41, 3  ;;  %v4979_v16 = vsel %vm4081_vm9, %v4977_v51, %v4978_v43 }
 0x72e   : > { %v4982_v49 = vsel %vm4081_vm9, %v4980_v6, %v4981_v21  ;;  %v5200_v48 = vrot.slane %v4840_v60, 3  ;;  %v5201_v29 = vrot.slane %v4842_v61, 3  ;;  %v5061_v14 = vsel %vm4161_vm10, %v5059_v18, %v5060_v59  ;;  %v4854_v60 = vld [vmem:[%s17206_s8 + $0x50] sm:$0xff]  ;;  %v4857_v61 = vld [vmem:[%s17206_s8 + $0x68] sm:$0xff]  ;;  %v4859_v6 = vld [vmem:[%s17206_s8 + $0x78] sm:$0xff] }
 0x72f   : > { %5049 = vmatprep.mubr.f32.mxu0 %v4982_v49  ;;  %v14716_v38 = vsel %vm4161_vm10, %v5056_v2, %v5057_v9  ;;  %v14719_v32 = vsel %vm4306_vm11, %v5203_v47, %v5204_v30  ;;  %v10020_v41 = vpack.c.bf16 %v4850_v23, %v4848_v28  ;;  %v10022_v43 = vpack.c.bf16 %v4855_v56, %v4853_v31  ;;  %v4852_v2 = vld [vmem:[%s17206_s8 + $0x40] sm:$0xff]  ;;  %v4861_v9 = vld [vmem:[%s17206_s8 + $0x88] sm:$0xff]  ;;  %v4863_v47 = vld [vmem:[%s17206_s8 + $0x98] sm:$0xff] }
 0x730   : > { %5050 = vmatmul.mubr.f32.vlgmr.msra.gmra.mrb[60].mxu0 %v4979_v16  ;;  %v14723_v51 = vsel %vm4306_vm11, %v5200_v48, %v5201_v29  ;;  %v10024_v21 = vpack.c.bf16 %v4854_v60, %v4852_v2  ;;  %v10026_v18 = vpack.c.bf16 %v4859_v6, %v4857_v61  ;;  %v4856_v59 = vld [vmem:[%s17206_s8 + $0x60] sm:$0xff]  ;;  %v10030_v49 = vpack.c.bf16 %v4863_v47, %v4861_v9  ;;  %v4865_v28 = vld [vmem:[%s17206_s8 + $0xa8] sm:$0xff]  ;;  %v4867_v23 = vld [vmem:[%s17206_s8 + $0xb8] sm:$0xff] }
 0x731   : > { %10017 = vmatpush1.bf16.msra.mxu0 %v10016_v52  ;;  %5128 = vmatprep.mubr.f32.mxu0 %v5061_v14  ;;  %v4858_v52 = vld [vmem:[%s17206_s8 + $0x70] sm:$0xff]  ;;  %v4860_v16 = vld [vmem:[%s17206_s8 + $0x80] sm:$0xff]  ;;  %v10034_v56 = vpack.c.bf16 %v4867_v23, %v4865_v28  ;;  %v4869_v14 = vld [vmem:[%s17206_s8 + $0xc8] sm:$0xff] }
 0x732   : > { %10019 = vmatprep.subr.bf16.mxu0 %v10018_v25  ;;  %v10028_v30 = vpack.c.bf16 %v4858_v52, %v4856_v59  ;;  %v4862_v25 = vld [vmem:[%s17206_s8 + $0x90] sm:$0xff]  ;;  %v4864_v48 = vld [vmem:[%s17206_s8 + $0xa0] sm:$0xff]  ;;  %v4873_v6 = vld [vmem:[%s17206_s8 + $0xe8] sm:$0xff] }
 0x733   : > { %v10032_v31 = vpack.c.bf16 %v4862_v25, %v4860_v16  ;;  %v4866_v29 = vld [vmem:[%s17206_s8 + $0xb0] sm:$0xff]  ;;  %v4868_v60 = vld [vmem:[%s17206_s8 + $0xc0] sm:$0xff]  ;;  %v4877_v47 = vld [vmem:[%s17206_s8 + $0x108] sm:$0xff] }
 0x734   : > { %v4870_v61 = vld [vmem:[%s17206_s8 + $0xd0] sm:$0xff]  ;;  %v4872_v52 = vld [vmem:[%s17206_s8 + $0xe0] sm:$0xff]  ;;  %v4881_v23 = vld [vmem:[%s17206_s8 + $0x128] sm:$0xff] }
 0x735   : > { %10021 = vmatpush1.bf16.msra.mxu0 %v10020_v41  ;;  %v4871_v41 = vld [vmem:[%s17206_s8 + $0xd8] sm:$0xff]  ;;  %v4874_v9 = vld [vmem:[%s17206_s8 + $0xf0] sm:$0xff]  ;;  %v4876_v25 = vld [vmem:[%s17206_s8 + $0x100] sm:$0xff] }
 0x736   : > { %10023 = vmatprep.subr.bf16.mxu0 %v10022_v43  ;;  %v10036_v43 = vpack.c.bf16 %v4866_v29, %v4864_v48  ;;  %v10038_v2 = vpack.c.bf16 %v4871_v41, %v4869_v14  ;;  %v4878_v28 = vld [vmem:[%s17206_s8 + $0x110] sm:$0xff]  ;;  %v4880_v29 = vld [vmem:[%s17206_s8 + $0x120] sm:$0xff]  ;;  %v4885_v41 = vld [vmem:[%s17206_s8 + $0x148] sm:$0xff] }
 0x737   : > { %v4882_v14 = vld [vmem:[%s17206_s8 + $0x130] sm:$0xff] }
 0x739   : > { %10025 = vmatpush1.bf16.msra.mxu0 %v10024_v21  ;;  %v4875_v21 = vld [vmem:[%s17206_s8 + $0xf8] sm:$0xff] }
 0x73a   : > { %10027 = vmatprep.subr.bf16.mxu0 %v10026_v18  ;;  %v10040_v18 = vpack.c.bf16 %v4870_v61, %v4868_v60  ;;  %v10042_v59 = vpack.c.bf16 %v4875_v21, %v4873_v6  ;;  %v4884_v61 = vld [vmem:[%s17206_s8 + $0x140] sm:$0xff]  ;;  %v4886_v6 = vld [vmem:[%s17206_s8 + $0x150] sm:$0xff]  ;;  %v4889_v21 = vld [vmem:[%s17206_s8 + $0x168] sm:$0xff] }
 0x73d   : > { %10029 = vmatpush1.bf16.msra.mxu0 %v10028_v30  ;;  %v4879_v30 = vld [vmem:[%s17206_s8 + $0x118] sm:$0xff] }
 0x73e   : > { %10031 = vmatprep.subr.bf16.mxu0 %v10030_v49  ;;  %v10044_v49 = vpack.c.bf16 %v4874_v9, %v4872_v52  ;;  %v10046_v16 = vpack.c.bf16 %v4879_v30, %v4877_v47  ;;  %v4888_v9 = vld [vmem:[%s17206_s8 + $0x160] sm:$0xff]  ;;  %v4890_v47 = vld [vmem:[%s17206_s8 + $0x170] sm:$0xff] }
 0x741   : > { %10033 = vmatpush1.bf16.msra.mxu0 %v10032_v31  ;;  %v4883_v31 = vld [vmem:[%s17206_s8 + $0x138] sm:$0xff] }
 0x742   : > { %10035 = vmatprep.subr.bf16.mxu0 %v10034_v56  ;;  %v10048_v56 = vpack.c.bf16 %v4878_v28, %v4876_v25  ;;  %v10050_v48 = vpack.c.bf16 %v4883_v31, %v4881_v23  ;;  %v10982_v28 = vld [vmem:[%s11314_s22 + $0x88] sm:$0xff]  ;;  %v10983_v31 = vld [vmem:[%s11314_s22 + $0x80] sm:$0xff] }
 0x745   : > { %10037 = vmatpush1.bf16.msra.mxu0 %v10036_v43  ;;  %v4887_v43 = vld [vmem:[%s17206_s8 + $0x158] sm:$0xff] }
 0x746   : > { %10039 = vmatprep.subr.bf16.mxu0 %v10038_v2  ;;  %v10052_v2 = vpack.c.bf16 %v4882_v14, %v4880_v29  ;;  %v10054_v60 = vpack.c.bf16 %v4887_v43, %v4885_v41  ;;  %v10984_v29 = vld [vmem:[%s11314_s22 + $0x8] sm:$0xff]  ;;  %v10985_v41 = vld [vmem:[%s11314_s22] sm:$0xff] }
 0x749   : > { %10041 = vmatpush1.bf16.msra.mxu0 %v10040_v18  ;;  %v4891_v18 = vld [vmem:[%s17206_s8 + $0x178] sm:$0xff] }
 0x74a   : > { %10043 = vmatprep.subr.bf16.mxu0 %v10042_v59  ;;  %v10056_v59 = vpack.c.bf16 %v4886_v6, %v4884_v61  ;;  %v10058_v52 = vpack.c.bf16 %v4891_v18, %v4889_v21  ;;  %v4894_v61 = vld [vmem:[%s17206_s8 + $0x190] sm:$0xff]  ;;  %v4897_v21 = vld [vmem:[%s17206_s8 + $0x1a8] sm:$0xff]  ;;  %v4899_v18 = vld [vmem:[%s17206_s8 + $0x1b8] sm:$0xff] }
 0x74d   : > { %10045 = vmatpush1.bf16.msra.mxu0 %v10044_v49  ;;  %v4893_v49 = vld [vmem:[%s17206_s8 + $0x188] sm:$0xff] }
 0x74e   : > { %10047 = vmatprep.subr.bf16.mxu0 %v10046_v16  ;;  %v4895_v16 = vld [vmem:[%s17206_s8 + $0x198] sm:$0xff] }
 0x751   : > { %10049 = vmatpush1.bf16.msra.mxu0 %v10048_v56 }
 0x752   : > { %10051 = vmatprep.subr.bf16.mxu0 %v10050_v48  ;;  %v10060_v48 = vpack.c.bf16 %v4890_v47, %v4888_v9  ;;  %v10066_v47 = vpack.c.bf16 %v4899_v18, %v4897_v21  ;;  %v4900_v21 = vld [vmem:[%s17206_s8 + $0x1c0] sm:$0xff]  ;;  %v4902_v18 = vld [vmem:[%s17206_s8 + $0x1d0] sm:$0xff] }
 0x755   : > { %10053 = vmatpush1.bf16.msra.mxu0 %v10052_v2  ;;  %v10062_v2 = vpack.c.bf16 %v4895_v16, %v4893_v49  ;;  %v4896_v49 = vld [vmem:[%s17206_s8 + $0x1a0] sm:$0xff]  ;;  %v4898_v16 = vld [vmem:[%s17206_s8 + $0x1b0] sm:$0xff] }
 0x756   : > { %10055 = vmatprep.subr.bf16.mxu0 %v10054_v60  ;;  %v4892_v60 = vld [vmem:[%s17206_s8 + $0x180] sm:$0xff] }
 0x757   : > { %v14839_v30 = vpop.permute.xlu1 %6174  ;;  %v10064_v9 = vpack.c.bf16 %v4894_v61, %v4892_v60  ;;  %v10989_v60 = vld [vmem:[%s11314_s22 + $0x180] sm:$0xff] }
 0x758   : > { %v14847_v25 = vpop.permute.xlu0 %6169  ;;  %v6204_v23 = vmul.f32 %v10982_v28, %v14839_v30  ;;  %v6203_v56 = vmul.f32 %v10983_v31, %v14839_v30  ;;  %v10986_v28 = vld [vmem:[%s11314_s22 + $0x108] sm:$0xff] }
 0x759   : > { %10057 = vmatpush1.bf16.msra.mxu0 %v10056_v59  ;;  %v6188_v14 = vmul.f32 %v10984_v29, %v14847_v25  ;;  %v6187_v43 = vmul.f32 %v10985_v41, %v14847_v25  ;;  %v4901_v31 = vld [vmem:[%s17206_s8 + $0x1c8] sm:$0xff]  ;;  %v10068_v41 = vpack.c.bf16 %v4898_v16, %v4896_v49  ;;  %v10072_v49 = vpack.c.bf16 %v4902_v18, %v4900_v21  ;;  %v14908_v16 = vld [vmem:[%s17208_s10] sm:$0xff] }
 0x75a   : > { %10059 = vmatprep.subr.bf16.mxu0 %v10058_v52  ;;  %v8286_v18 = vld [vmem:[%s17206_s8 + $0x400] sm:$0xff] }
 0x75b   : > { %v10470_v6 = vpack.c.bf16 %v6204_v23, %v6188_v14  ;;  %v10472_v59 = vpack.c.bf16 %v6203_v56, %v6187_v43  ;;  %v4903_v56 = vld [vmem:[%s17206_s8 + $0x1d8] sm:$0xff]  ;;  %v10988_v43 = vld [vmem:[%s11314_s22 + $0x188] sm:$0xff] }
 0x75c   : > { %v14869_v52 = vpop.permute.xlu1 %6179 }
 0x75d   : > { %10061 = vmatpush1.bf16.msra.mxu0 %v10060_v48  ;;  %10471 = vmatprep.subr.bf16.mxu1 %v10470_v6  ;;  %v6220_v23 = vmul.f32 %v10986_v28, %v14869_v52  ;;  %v10987_v48 = vld [vmem:[%s11314_s22 + $0x100] sm:$0xff]  ;;  %v10070_v6 = vpack.c.bf16 %v4903_v56, %v4901_v31  ;;  %v4906_v56 = vld [vmem:[%s17206_s8 + $0x1f0] sm:$0xff] }
 0x75e   : > { %10063 = vmatprep.subr.bf16.mxu0 %v10062_v2  ;;  %10473 = vmatpush1.bf16.msra.mxu1 %v10472_v59  ;;  %v6219_v29 = vmul.f32 %v10987_v48, %v14869_v52  ;;  %v4904_v31 = vld [vmem:[%s17206_s8 + $0x1e0] sm:$0xff]  ;;  %v17268_v48 = vpack.c.bf16 %v13586_v39, %v13580_v62  ;;  %v17269_v39 = vpack.c.bf16 %v13574_v35, %v13568_v3  ;;  %v8291_v35 = vld [vmem:[%s17206_s8 + $0x428] sm:$0xff] }
 0x75f   : > { %v10076_v62 = vpack.c.bf16 %v4906_v56, %v4904_v31  ;;  %v10994_v56 = vld [vmem:[%s11314_s22 + $0x118] sm:$0xff] }
 0x760   : > { %v14887_v14 = vpop.permute.xlu0 %6184 }
 0x761   : > { %10065 = vmatpush1.bf16.msra.mxu0 %v10064_v9  ;;  %v6236_v2 = vmul.f32 %v10988_v43, %v14887_v14  ;;  %v6235_v61 = vmul.f32 %v10989_v60, %v14887_v14  ;;  %v4905_v9 = vld [vmem:[%s17206_s8 + $0x1e8] sm:$0xff]  ;;  %v10990_v43 = vld [vmem:[%s11314_s22 + $0x18] sm:$0xff] }
 0x762   : > { %10067 = vmatprep.subr.bf16.mxu0 %v10066_v47  ;;  %v4907_v47 = vld [vmem:[%s17206_s8 + $0x1f8] sm:$0xff] }
 0x763   : > { %v10474_v59 = vpack.c.bf16 %v6236_v2, %v6220_v23  ;;  %v10476_v28 = vpack.c.bf16 %v6235_v61, %v6219_v29  ;;  %v10074_v23 = vpack.c.bf16 %v4907_v47, %v4905_v9  ;;  %v8287_v29 = vld [vmem:[%s17206_s8 + $0x408] sm:$0xff]  ;;  %v6190_v2 = vmul.f32 %v10990_v43, %v14847_v25  ;;  %v10991_v60 = vld [vmem:[%s11314_s22 + $0x98] sm:$0xff]  ;;  %v10992_v47 = vld [vmem:[%s11314_s22 + $0x10] sm:$0xff] }
 0x764   : > { %v6206_v61 = vmul.f32 %v10991_v60, %v14839_v30  ;;  %v8293_v9 = vld [vmem:[%s17206_s8 + $0x438] sm:$0xff]  ;;  %v8292_v60 = vld [vmem:[%s17206_s8 + $0x430] sm:$0xff] }
 0x765   : > { %10069 = vmatpush1.bf16.msra.mxu0 %v10068_v41  ;;  %10475 = vmatprep.subr.bf16.mxu1 %v10474_v59  ;;  %v8289_v41 = vld [vmem:[%s17206_s8 + $0x418] sm:$0xff]  ;;  %v8288_v59 = vld [vmem:[%s17206_s8 + $0x410] sm:$0xff]  ;;  %v10082_v43 = vpack.c.bf16 %v8293_v9, %v8291_v35  ;;  %v8294_v9 = vld [vmem:[%s17206_s8 + $0x440] sm:$0xff] }
 0x766   : > { %10071 = vmatprep.subr.bf16.mxu0 %v10070_v6  ;;  %10477 = vmatpush1.bf16.msra.mxu1 %v10476_v28  ;;  %v14937_v6 = vld [vmem:[%s17208_s10 + $0x8] sm:$0xff]  ;;  %v10078_v21 = vpack.c.bf16 %v8289_v41, %v8287_v29  ;;  %v17270_v28 = vpack.c.bf16 %v13642_v7, %v13636_v11  ;;  %v10486_v3 = vpack.c.bf16 %v6206_v61, %v6190_v2  ;;  %v10995_v7 = vld [vmem:[%s11314_s22 + $0x198] sm:$0xff]  ;;  %v8290_v2 = vld [vmem:[%s17206_s8 + $0x420] sm:$0xff] }
 0x767   : > { %10479 = vmatprep.subr.bf16.mxu1 %v17268_v48  ;;  %v6222_v11 = vmul.f32 %v10994_v56, %v14869_v52  ;;  %v6238_v48 = vmul.f32 %v10995_v7, %v14887_v14  ;;  %v10080_v29 = vpack.c.bf16 %v8288_v59, %v8286_v18  ;;  %v17271_v41 = vpack.c.bf16 %v13630_v53, %v13624_v42  ;;  %v14978_v61 = vld [vmem:[%s17208_s10 + $0x10] sm:$0xff]  ;;  %v8295_v42 = vld [vmem:[%s17206_s8 + $0x448] sm:$0xff]  ;;  %v8297_v53 = vld [vmem:[%s17206_s8 + $0x458] sm:$0xff] }
 0x768   : > { %v10997_v18 = vld [vmem:[%s11314_s22 + $0x190] sm:$0xff]  ;;  %v10086_v35 = vpack.c.bf16 %v8297_v53, %v8295_v42  ;;  %v8309_v53 = vld [vmem:[%s17206_s8 + $0x4b8] sm:$0xff] }
 0x769   : > { %10073 = vmatpush1.bf16.msra.mxu0 %v10072_v49  ;;  %8608 = vmatmul.mubr.msk.f32.vlgmr.msra.gmra.mrb[86].mxu1 %vm6263_vm13, %v14908_v16  ;;  %v6189_v49 = vmul.f32 %v10992_v47, %v14847_v25  ;;  %v6237_v59 = vmul.f32 %v10997_v18, %v14887_v14  ;;  %v8296_v47 = vld [vmem:[%s17206_s8 + $0x450] sm:$0xff]  ;;  %v8306_v18 = vld [vmem:[%s17206_s8 + $0x4a0] sm:$0xff] }
 0x76a   : > { %10075 = vmatprep.subr.bf16.mxu0 %v10074_v23  ;;  %10481 = vmatpush1.bf16.msra.mxu1 %v17269_v39  ;;  %v10993_v23 = vld [vmem:[%s11314_s22 + $0x90] sm:$0xff] }
 0x76b   : > { %10483 = vmatprep.subr.bf16.mxu1 %v17270_v28  ;;  %6370 = vmatprep.mubr.f32.mxu1 %v17265_v5  ;;  %v6205_v31 = vmul.f32 %v10993_v23, %v14839_v30  ;;  %v10996_v39 = vld [vmem:[%s11314_s22 + $0x110] sm:$0xff]  ;;  %v10490_v28 = vpack.c.bf16 %v6238_v48, %v6222_v11  ;;  %v8301_v23 = vld [vmem:[%s17206_s8 + $0x478] sm:$0xff]  ;;  %v8298_v11 = vld [vmem:[%s17206_s8 + $0x460] sm:$0xff] }
 0x76c   : > { %v8300_v7 = vld [vmem:[%s17206_s8 + $0x470] sm:$0xff]  ;;  %v15024_v48 = vld [vmem:[%s17208_s10 + $0x20] sm:$0xff] }
 0x76d   : > { %10077 = vmatpush1.bf16.msra.mxu0 %v10076_v62  ;;  %8609 = vmatmul.mubr.msk.f32.gmra.mrb[88].mxu1 %vm6263_vm13, %v14937_v6  ;;  %v10488_v62 = vpack.c.bf16 %v6205_v31, %v6189_v49  ;;  %v8299_v49 = vld [vmem:[%s17206_s8 + $0x468] sm:$0xff]  ;;  %v10088_v31 = vpack.c.bf16 %v8296_v47, %v8294_v9  ;;  %v8304_v42 = vld [vmem:[%s17206_s8 + $0x490] sm:$0xff] }
 0x76e   : > { %10079 = vmatprep.subr.bf16.mxu0 %v10078_v21  ;;  %10485 = vmatpush1.bf16.msra.mxu1 %v17271_v41  ;;  %v6221_v21 = vmul.f32 %v10996_v39, %v14869_v52  ;;  %v10090_v56 = vpack.c.bf16 %v8301_v23, %v8299_v49  ;;  %v8305_v41 = vld [vmem:[%s17206_s8 + $0x498] sm:$0xff]  ;;  %v8312_v49 = vld [vmem:[%s17206_s8 + $0x4d0] sm:$0xff] }
 0x76f   : > { %6376 = vmatprep.mubr.f32.mxu1 %v17265_v5  ;;  %10487 = vmatprep.subr.bf16.mxu1 %v10486_v3  ;;  %v10084_v3 = vpack.c.bf16 %v8292_v60, %v8290_v2  ;;  %v10092_v2 = vpack.c.bf16 %v8300_v7, %v8298_v11  ;;  %v15087_v23 = vld [vmem:[%s17208_s10 + $0x38] sm:$0xff] }
 0x770   : > { %5129 = vmatmul.mubr.f32.vlgmr.msra.gmra.mrb[60].mxu0 %v14716_v38  ;;  %v15004_v38 = vld [vmem:[%s17208_s10 + $0x18] sm:$0xff] }
 0x771   : > { %10081 = vmatpush1.bf16.msra.mxu0 %v10080_v29  ;;  %5272 = vmatprep.mubr.f32.mxu0 %v14719_v32  ;;  %v10492_v32 = vpack.c.bf16 %v6237_v59, %v6221_v21  ;;  %v8303_v29 = vld [vmem:[%s17206_s8 + $0x488] sm:$0xff]  ;;  %v8308_v59 = vld [vmem:[%s17206_s8 + $0x4b0] sm:$0xff] }
 0x772   : > { %8610 = vmatmul.mubr.msk.f32.gmra.mrb[90].mxu1 %vm6263_vm13, %v14978_v61  ;;  %10083 = vmatprep.subr.bf16.mxu0 %v10082_v43  ;;  %v17272_v43 = vpack.c.bf16 %v13698_v10, %v13695_v13  ;;  %v10094_v60 = vpack.c.bf16 %v8305_v41, %v8303_v29  ;;  %v15047_v13 = vld [vmem:[%s17208_s10 + $0x28] sm:$0xff]  ;;  %v10100_v9 = vpack.c.bf16 %v8308_v59, %v8306_v18  ;;  %v8314_v29 = vld [vmem:[%s17206_s8 + $0x4e0] sm:$0xff]  ;;  %v8316_v41 = vld [vmem:[%s17206_s8 + $0x4f0] sm:$0xff] }
 0x773   : > { %10489 = vmatpush1.bf16.msra.mxu1 %v10488_v62  ;;  %6382 = vmatprep.mubr.f32.mxu1 %v17265_v5  ;;  %v8302_v62 = vld [vmem:[%s17206_s8 + $0x480] sm:$0xff]  ;;  %v8307_v10 = vld [vmem:[%s17206_s8 + $0x4a8] sm:$0xff]  ;;  %v8325_v18 = vld [vmem:[%s17206_s8 + $0x538] sm:$0xff] }
 0x774   : > { %10491 = vmatprep.subr.bf16.mxu1 %v10490_v28  ;;  %v10096_v39 = vpack.c.bf16 %v8304_v42, %v8302_v62  ;;  %v10098_v21 = vpack.c.bf16 %v8309_v53, %v8307_v10  ;;  %v15067_v28 = vld [vmem:[%s17208_s10 + $0x30] sm:$0xff]  ;;  %v10108_v62 = vpack.c.bf16 %v8316_v41, %v8314_v29  ;;  %v8318_v10 = vld [vmem:[%s17206_s8 + $0x500] sm:$0xff]  ;;  %v15167_v29 = vld [vmem:[%s17208_s10 + $0x58] sm:$0xff] }
 0x775   : > { %10085 = vmatpush1.bf16.msra.mxu0 %v10084_v3  ;;  %v8311_v3 = vld [vmem:[%s17206_s8 + $0x4c8] sm:$0xff]  ;;  %v8320_v53 = vld [vmem:[%s17206_s8 + $0x510] sm:$0xff] }
 0x776   : > { %8611 = vmatmul.mubr.msk.f32.gmra.mrb[92].mxu1 %vm6263_vm13, %v15004_v38  ;;  %10087 = vmatprep.subr.bf16.mxu0 %v10086_v35  ;;  %v8313_v35 = vld [vmem:[%s17206_s8 + $0x4d8] sm:$0xff]  ;;  %v10112_v59 = vpack.c.bf16 %v8320_v53, %v8318_v10  ;;  %v8331_v41 = vld [vmem:[%s17206_s8 + $0x568] sm:$0xff]  ;;  %v8332_v10 = vld [vmem:[%s17206_s8 + $0x570] sm:$0xff] }
 0x777   : > { %10493 = vmatpush1.bf16.msra.mxu1 %v10492_v32  ;;  %6388 = vmatprep.mubr.f32.mxu1 %v17265_v5  ;;  %v10102_v47 = vpack.c.bf16 %v8313_v35, %v8311_v3  ;;  %v8310_v32 = vld [vmem:[%s17206_s8 + $0x4c0] sm:$0xff]  ;;  %v8335_v53 = vld [vmem:[%s17206_s8 + $0x588] sm:$0xff] }
 0x778   : > { %10495 = vmatprep.subr.bf16.mxu1 %v17272_v43  ;;  %v10104_v11 = vpack.c.bf16 %v8312_v49, %v8310_v32  ;;  %v15107_v43 = vld [vmem:[%s17208_s10 + $0x40] sm:$0xff]  ;;  %v8327_v32 = vld [vmem:[%s17206_s8 + $0x548] sm:$0xff]  ;;  %v8329_v49 = vld [vmem:[%s17206_s8 + $0x558] sm:$0xff] }
 0x779   : > { %10089 = vmatpush1.bf16.msra.mxu0 %v10088_v31  ;;  %v8315_v31 = vld [vmem:[%s17206_s8 + $0x4e8] sm:$0xff]  ;;  %v8322_v35 = vld [vmem:[%s17206_s8 + $0x520] sm:$0xff] }
 0x77a   : > { %8612 = vmatmul.mubr.msk.f32.gmra.mrb[94].mxu1 %vm6263_vm13, %v15024_v48  ;;  %10091 = vmatprep.subr.bf16.mxu0 %v10090_v56  ;;  %v8317_v56 = vld [vmem:[%s17206_s8 + $0x4f8] sm:$0xff] }
 0x77b   : > { %6394 = vmatprep.mubr.f32.mxu1 %v17265_v5  ;;  %v10106_v7 = vpack.c.bf16 %v8317_v56, %v8315_v31  ;;  %v10118_v56 = vpack.c.bf16 %v8329_v49, %v8327_v32  ;;  %v8334_v49 = vld [vmem:[%s17206_s8 + $0x580] sm:$0xff] }
 0x77d   : > { %10093 = vmatpush1.bf16.msra.mxu0 %v10092_v2  ;;  %v8319_v2 = vld [vmem:[%s17206_s8 + $0x508] sm:$0xff] }
 0x77e   : > { %8613 = vmatmul.mubr.msk.f32.gmra.mrb[96].mxu1 %vm6263_vm13, %v15047_v13  ;;  %10095 = vmatprep.subr.bf16.mxu0 %v10094_v60  ;;  %v8321_v60 = vld [vmem:[%s17206_s8 + $0x518] sm:$0xff] }
 0x77f   : > { %6400 = vmatprep.mubr.f32.mxu1 %v17265_v5  ;;  %v10110_v42 = vpack.c.bf16 %v8321_v60, %v8319_v2  ;;  %v8333_v2 = vld [vmem:[%s17206_s8 + $0x578] sm:$0xff] }
 0x781   : > { %10097 = vmatpush1.bf16.msra.mxu0 %v10096_v39  ;;  %v15127_v39 = vld [vmem:[%s17208_s10 + $0x48] sm:$0xff] }
 0x782   : > { %8614 = vmatmul.mubr.msk.f32.gmra.mrb[98].mxu1 %vm6263_vm13, %v15067_v28  ;;  %10099 = vmatprep.subr.bf16.mxu0 %v10098_v21  ;;  %v8323_v21 = vld [vmem:[%s17206_s8 + $0x528] sm:$0xff] }
 0x783   : > { %6406 = vmatprep.mubr.f32.mxu1 %v17265_v5  ;;  %v10114_v3 = vpack.c.bf16 %v8325_v18, %v8323_v21  ;;  %v8337_v21 = vld [vmem:[%s17206_s8 + $0x598] sm:$0xff]  ;;  %v10998_v18 = vld [vmem:[%s11314_s22 + $0x28] sm:$0xff] }
 0x784   : > { %v10126_v32 = vpack.c.bf16 %v8337_v21, %v8335_v53  ;;  %v11003_v53 = vld [vmem:[%s11314_s22 + $0x1a8] sm:$0xff] }
 0x785   : > { %10101 = vmatpush1.bf16.msra.mxu0 %v10100_v9  ;;  %v8324_v9 = vld [vmem:[%s17206_s8 + $0x530] sm:$0xff]  ;;  %v6240_v21 = vmul.f32 %v11003_v53, %v14887_v14 }
 0x786   : > { %8615 = vmatmul.mubr.msk.f32.gmra.mrb[100].mxu1 %vm6263_vm13, %v15087_v23  ;;  %10103 = vmatprep.subr.bf16.mxu0 %v10102_v47  ;;  %v15147_v47 = vld [vmem:[%s17208_s10 + $0x50] sm:$0xff]  ;;  %v10116_v31 = vpack.c.bf16 %v8324_v9, %v8322_v35 }
 0x787   : > { %6412 = vmatprep.mubr.f32.mxu1 %v17265_v5  ;;  %v8348_v53 = vld [vmem:[%s17206_s8 + $0x5f0] sm:$0xff] }
 0x789   : > { %10105 = vmatpush1.bf16.msra.mxu0 %v10104_v11  ;;  %v8326_v11 = vld [vmem:[%s17206_s8 + $0x540] sm:$0xff] }
 0x78a   : > { %8616 = vmatmul.mubr.msk.f32.gmra.mrb[86].mxu1 %vm6263_vm13, %v15107_v43  ;;  %10107 = vmatprep.subr.bf16.mxu0 %v10106_v7  ;;  %v8328_v7 = vld [vmem:[%s17206_s8 + $0x550] sm:$0xff] }
 0x78b   : > { %6418 = vmatprep.mubr.f32.mxu1 %v17265_v5  ;;  %v10120_v60 = vpack.c.bf16 %v8328_v7, %v8326_v11  ;;  %v11000_v11 = vld [vmem:[%s11314_s22 + $0x20] sm:$0xff] }
 0x78c   : > { %v6191_v7 = vmul.f32 %v11000_v11, %v14847_v25  ;;  %v8345_v11 = vld [vmem:[%s17206_s8 + $0x5d8] sm:$0xff] }
 0x78d   : > { %10109 = vmatpush1.bf16.msra.mxu0 %v10108_v62  ;;  %v10122_v62 = vpack.c.bf16 %v8333_v2, %v8331_v41  ;;  %v11001_v41 = vld [vmem:[%s11314_s22 + $0xa0] sm:$0xff] }
 0x78e   : > { %8617 = vmatmul.mubr.msk.f32.gmra.mrb[88].mxu1 %vm6263_vm13, %v15127_v39  ;;  %10111 = vmatprep.subr.bf16.mxu0 %v10110_v42  ;;  %v8330_v42 = vld [vmem:[%s17206_s8 + $0x560] sm:$0xff]  ;;  %v6207_v2 = vmul.f32 %v11001_v41, %v14839_v30 }
 0x78f   : > { %6424 = vmatprep.mubr.f32.mxu1 %v17265_v5  ;;  %v10124_v9 = vpack.c.bf16 %v8332_v10, %v8330_v42  ;;  %v11002_v42 = vld [vmem:[%s11314_s22 + $0x128] sm:$0xff]  ;;  %v8342_v41 = vld [vmem:[%s17206_s8 + $0x5c0] sm:$0xff] }
 0x790   : > { %v6224_v10 = vmul.f32 %v11002_v42, %v14869_v52 }
 0x791   : > { %10113 = vmatpush1.bf16.msra.mxu0 %v10112_v59  ;;  %v6192_v59 = vmul.f32 %v10998_v18, %v14847_v25 }
 0x792   : > { %8618 = vmatmul.mubr.msk.f32.gmra.mrb[90].mxu1 %vm6263_vm13, %v15147_v47  ;;  %10115 = vmatprep.subr.bf16.mxu0 %v10114_v3  ;;  %v10999_v3 = vld [vmem:[%s11314_s22 + $0xa8] sm:$0xff] }
 0x793   : > { %6430 = vmatprep.mubr.f32.mxu1 %v17265_v5  ;;  %v6208_v35 = vmul.f32 %v10999_v3, %v14839_v30 }
 0x795   : > { %10117 = vmatpush1.bf16.msra.mxu0 %v10116_v31  ;;  %v8336_v31 = vld [vmem:[%s17206_s8 + $0x590] sm:$0xff] }
 0x796   : > { %8619 = vmatmul.mubr.msk.f32.gmra.mrb[92].mxu1 %vm6263_vm13, %v15167_v29  ;;  %10119 = vmatprep.subr.bf16.mxu0 %v10118_v56  ;;  %v17273_v56 = vpack.c.bf16 %v13691_v54, %v13688_v12  ;;  %v17274_v54 = vpack.c.bf16 %v13743_v1, %v13740_v4  ;;  %v10502_v12 = vpack.c.bf16 %v6208_v35, %v6192_v59  ;;  %v8338_v1 = vld [vmem:[%s17206_s8 + $0x5a0] sm:$0xff]  ;;  %v8340_v4 = vld [vmem:[%s17206_s8 + $0x5b0] sm:$0xff] }
 0x797   : > { %6501 = vmatprep.mubr.f32.mxu1 %v17265_v5  ;;  %v10128_v18 = vpack.c.bf16 %v8336_v31, %v8334_v49  ;;  %v17275_v59 = vpack.c.bf16 %v13737_v8, %v13734_v19  ;;  %v10504_v35 = vpack.c.bf16 %v6207_v2, %v6191_v7  ;;  %v10506_v19 = vpack.c.bf16 %v6240_v21, %v6224_v10  ;;  %v8344_v2 = vld [vmem:[%s17206_s8 + $0x5d0] sm:$0xff]  ;;  %v8346_v10 = vld [vmem:[%s17206_s8 + $0x5e0] sm:$0xff]  ;;  %v8351_v21 = vld [vmem:[%s17207_s9 + $0x208] sm:$0xff] }
 0x798   : > { %v10132_v8 = vpack.c.bf16 %v8340_v4, %v8338_v1  ;;  %v8350_v4 = vld [vmem:[%s17207_s9 + $0x200] sm:$0xff] }
 0x799   : > { %10121 = vmatpush1.bf16.msra.mxu0 %v10120_v60  ;;  %v8339_v60 = vld [vmem:[%s17206_s8 + $0x5a8] sm:$0xff] }
 0x79a   : > { %8620 = vmatmul.mubr.msk.f32.vlgmr.msra.gmra.mrb[102].mxu1 %vm6263_vm13, %v14908_v16  ;;  %10123 = vmatprep.subr.bf16.mxu0 %v10122_v62  ;;  %v8341_v62 = vld [vmem:[%s17206_s8 + $0x5b8] sm:$0xff] }
 0x79b   : > { %10497 = vmatpush1.bf16.msra.mxu1 %v17273_v56  ;;  %6507 = vmatprep.mubr.f32.mxu1 %v17265_v5  ;;  %v10130_v3 = vpack.c.bf16 %v8341_v62, %v8339_v60  ;;  %v8343_v56 = vld [vmem:[%s17206_s8 + $0x5c8] sm:$0xff] }
 0x79c   : > { %10499 = vmatprep.subr.bf16.mxu1 %v17274_v54  ;;  %v10134_v7 = vpack.c.bf16 %v8345_v11, %v8343_v56  ;;  %v8347_v62 = vld [vmem:[%s17206_s8 + $0x5e8] sm:$0xff]  ;;  %v8349_v54 = vld [vmem:[%s17206_s8 + $0x5f8] sm:$0xff]  ;;  %v8356_v56 = vld [vmem:[%s17207_s9 + $0x230] sm:$0xff] }
 0x79d   : > { %10125 = vmatpush1.bf16.msra.mxu0 %v10124_v9  ;;  %v11004_v9 = vld [vmem:[%s11314_s22 + $0x120] sm:$0xff]  ;;  %v10138_v42 = vpack.c.bf16 %v8349_v54, %v8347_v62  ;;  %v8359_v11 = vld [vmem:[%s17207_s9 + $0x248] sm:$0xff] }
 0x79e   : > { %8621 = vmatmul.mubr.msk.f32.gmra.mrb[104].mxu1 %vm6263_vm13, %v14937_v6  ;;  %10127 = vmatprep.subr.bf16.mxu0 %v10126_v32  ;;  %v6223_v49 = vmul.f32 %v11004_v9, %v14869_v52  ;;  %v11005_v32 = vld [vmem:[%s11314_s22 + $0x1a0] sm:$0xff]  ;;  %v8357_v9 = vld [vmem:[%s17207_s9 + $0x238] sm:$0xff] }
 0x79f   : > { %10501 = vmatpush1.bf16.msra.mxu1 %v17275_v59  ;;  %6513 = vmatprep.mubr.f32.mxu1 %v17265_v5  ;;  %v6239_v31 = vmul.f32 %v11005_v32, %v14887_v14  ;;  %v8352_v59 = vld [vmem:[%s17207_s9 + $0x210] sm:$0xff] }
 0x7a0   : > { %10503 = vmatprep.subr.bf16.mxu1 %v10502_v12  ;;  %v10136_v12 = vpack.c.bf16 %v8344_v2, %v8342_v41  ;;  %v8358_v41 = vld [vmem:[%s17207_s9 + $0x240] sm:$0xff]  ;;  %v8360_v2 = vld [vmem:[%s17207_s9 + $0x250] sm:$0xff] }
 0x7a1   : > { %10129 = vmatpush1.bf16.msra.mxu0 %v10128_v18  ;;  %v10508_v60 = vpack.c.bf16 %v6239_v31, %v6223_v49  ;;  %v8353_v18 = vld [vmem:[%s17207_s9 + $0x218] sm:$0xff]  ;;  %v10144_v49 = vpack.c.bf16 %v8352_v59, %v8350_v4  ;;  %v8354_v31 = vld [vmem:[%s17207_s9 + $0x220] sm:$0xff]  ;;  %v10152_v62 = vpack.c.bf16 %v8360_v2, %v8358_v41  ;;  %v8371_v4 = vld [vmem:[%s17207_s9 + $0x2a8] sm:$0xff] }
 0x7a2   : > { %8622 = vmatmul.mubr.msk.f32.gmra.mrb[106].mxu1 %vm6263_vm13, %v14978_v61  ;;  %10131 = vmatprep.subr.bf16.mxu0 %v10130_v3  ;;  %v10140_v3 = vpack.c.bf16 %v8348_v53, %v8346_v10  ;;  %v10142_v1 = vpack.c.bf16 %v8353_v18, %v8351_v21  ;;  %v8367_v10 = vld [vmem:[%s17207_s9 + $0x288] sm:$0xff]  ;;  %v8369_v53 = vld [vmem:[%s17207_s9 + $0x298] sm:$0xff] }
 0x7a3   : > { %10505 = vmatpush1.bf16.msra.mxu1 %v10504_v35  ;;  %6519 = vmatprep.mubr.f32.mxu1 %v17265_v5  ;;  %v8355_v35 = vld [vmem:[%s17207_s9 + $0x228] sm:$0xff]  ;;  %v10158_v18 = vpack.c.bf16 %v8369_v53, %v8367_v10  ;;  %v8373_v59 = vld [vmem:[%s17207_s9 + $0x2b8] sm:$0xff] }
 0x7a4   : > { %10507 = vmatprep.subr.bf16.mxu1 %v10506_v19  ;;  %v10146_v32 = vpack.c.bf16 %v8357_v9, %v8355_v35  ;;  %v8361_v19 = vld [vmem:[%s17207_s9 + $0x258] sm:$0xff]  ;;  %v10162_v9 = vpack.c.bf16 %v8373_v59, %v8371_v4  ;;  %v8379_v41 = vld [vmem:[%s17207_s9 + $0x2e8] sm:$0xff]  ;;  %v8382_v4 = vld [vmem:[%s17207_s9 + $0x300] sm:$0xff] }
 0x7a5   : > { %10133 = vmatpush1.bf16.msra.mxu0 %v10132_v8  ;;  %v10148_v8 = vpack.c.bf16 %v8356_v56, %v8354_v31  ;;  %v8375_v31 = vld [vmem:[%s17207_s9 + $0x2c8] sm:$0xff]  ;;  %v8377_v56 = vld [vmem:[%s17207_s9 + $0x2d8] sm:$0xff]  ;;  %v8384_v59 = vld [vmem:[%s17207_s9 + $0x310] sm:$0xff] }
 0x7a6   : > { %8623 = vmatmul.mubr.msk.f32.gmra.mrb[108].mxu1 %vm6263_vm13, %v15004_v38  ;;  %10135 = vmatprep.subr.bf16.mxu0 %v10134_v7  ;;  %v10150_v7 = vpack.c.bf16 %v8361_v19, %v8359_v11  ;;  %v10166_v19 = vpack.c.bf16 %v8377_v56, %v8375_v31  ;;  %v8381_v2 = vld [vmem:[%s17207_s9 + $0x2f8] sm:$0xff]  ;;  %v8387_v31 = vld [vmem:[%s17207_s9 + $0x328] sm:$0xff] }
 0x7a7   : > { %10509 = vmatpush1.bf16.msra.mxu1 %v10508_v60  ;;  %6525 = vmatprep.mubr.f32.mxu1 %v17265_v5  ;;  %v8365_v60 = vld [vmem:[%s17207_s9 + $0x278] sm:$0xff] }
 0x7a8   : > { %10590 = vmatprep.subr.bf16.mxu1 %v13793_v57  ;;  %v11006_v10 = vld [vmem:[%s11314_s22 + $0x38] sm:$0xff] }
 0x7a9   : > { %10137 = vmatpush1.bf16.msra.mxu0 %v10136_v12  ;;  %v8362_v12 = vld [vmem:[%s17207_s9 + $0x260] sm:$0xff]  ;;  %v6194_v53 = vmul.f32 %v11006_v10, %v14847_v25  ;;  %v8389_v56 = vld [vmem:[%s17207_s9 + $0x338] sm:$0xff]  ;;  %v11013_v10 = vld [vmem:[%s11314_s22 + $0x1b0] sm:$0xff] }
 0x7aa   : > { %8624 = vmatmul.mubr.msk.f32.gmra.mrb[110].mxu1 %vm6263_vm13, %v15024_v48  ;;  %10139 = vmatprep.subr.bf16.mxu0 %v10138_v42  ;;  %v8364_v42 = vld [vmem:[%s17207_s9 + $0x270] sm:$0xff] }
 0x7ab   : > { %6531 = vmatprep.mubr.f32.mxu1 %v17265_v5  ;;  %v10156_v21 = vpack.c.bf16 %v8364_v42, %v8362_v12  ;;  %v8383_v12 = vld [vmem:[%s17207_s9 + $0x308] sm:$0xff]  ;;  %v8385_v42 = vld [vmem:[%s17207_s9 + $0x318] sm:$0xff] }
 0x7ad   : > { %10141 = vmatpush1.bf16.msra.mxu0 %v10140_v3  ;;  %v8366_v3 = vld [vmem:[%s17207_s9 + $0x280] sm:$0xff] }
 0x7ae   : > { %8625 = vmatmul.mubr.msk.f32.gmra.mrb[112].mxu1 %vm6263_vm13, %v15047_v13  ;;  %10143 = vmatprep.subr.bf16.mxu0 %v10142_v1  ;;  %v8368_v1 = vld [vmem:[%s17207_s9 + $0x290] sm:$0xff] }
 0x7af   : > { %6537 = vmatprep.mubr.f32.mxu1 %v17265_v5  ;;  %v10160_v35 = vpack.c.bf16 %v8368_v1, %v8366_v3  ;;  %v10174_v1 = vpack.c.bf16 %v8385_v42, %v8383_v12  ;;  %v11012_v12 = vld [vmem:[%s11314_s22 + $0x130] sm:$0xff] }
 0x7b0   : > { %5273 = vmatmul.mubr.f32.vlgmr.msra.gmra.mrb[60].mxu0 %v14723_v51  ;;  %v8363_v51 = vld [vmem:[%s17207_s9 + $0x268] sm:$0xff]  ;;  %v6225_v42 = vmul.f32 %v11012_v12, %v14869_v52 }
 0x7b1   : > { %10145 = vmatpush1.bf16.msra.mxu0 %v10144_v49  ;;  %v10154_v54 = vpack.c.bf16 %v8365_v60, %v8363_v51  ;;  %v8370_v49 = vld [vmem:[%s17207_s9 + $0x2a0] sm:$0xff]  ;;  %v10170_v60 = vpack.c.bf16 %v8381_v2, %v8379_v41  ;;  %v10176_v2 = vpack.c.bf16 %v8384_v59, %v8382_v4 }
 0x7b2   : > { %8626 = vmatmul.mubr.msk.f32.gmra.mrb[114].mxu1 %vm6263_vm13, %v15067_v28  ;;  %10147 = vmatprep.subr.bf16.mxu0 %v10146_v32  ;;  %v8372_v32 = vld [vmem:[%s17207_s9 + $0x2b0] sm:$0xff]  ;;  %v8390_v59 = vld [vmem:[%s17207_s9 + $0x340] sm:$0xff] }
 0x7b3   : > { %6543 = vmatprep.mubr.f32.mxu1 %v17265_v5  ;;  %v10164_v11 = vpack.c.bf16 %v8372_v32, %v8370_v49  ;;  %v11009_v49 = vld [vmem:[%s11314_s22 + $0xb0] sm:$0xff] }
 0x7b4   : > { %v6209_v32 = vmul.f32 %v11009_v49, %v14839_v30  ;;  %v8395_v49 = vld [vmem:[%s17207_s9 + $0x368] sm:$0xff] }
 0x7b5   : > { %10149 = vmatpush1.bf16.msra.mxu0 %v10148_v8  ;;  %v8374_v8 = vld [vmem:[%s17207_s9 + $0x2c0] sm:$0xff] }
 0x7b6   : > { %8627 = vmatmul.mubr.msk.f32.gmra.mrb[116].mxu1 %vm6263_vm13, %v15087_v23  ;;  %10151 = vmatprep.subr.bf16.mxu0 %v10150_v7  ;;  %v8376_v7 = vld [vmem:[%s17207_s9 + $0x2d0] sm:$0xff] }
 0x7b7   : > { %6549 = vmatprep.mubr.f32.mxu1 %v17265_v5  ;;  %v10168_v51 = vpack.c.bf16 %v8376_v7, %v8374_v8  ;;  %v11011_v7 = vld [vmem:[%s11314_s22 + $0x1b8] sm:$0xff] }
 0x7b8   : > { %v6242_v41 = vmul.f32 %v11011_v7, %v14887_v14  ;;  %v8399_v7 = vld [vmem:[%s17207_s9 + $0x388] sm:$0xff] }
 0x7b9   : > { %10153 = vmatpush1.bf16.msra.mxu0 %v10152_v62  ;;  %v8378_v62 = vld [vmem:[%s17207_s9 + $0x2e0] sm:$0xff] }
 0x7ba   : > { %8628 = vmatmul.mubr.msk.f32.gmra.mrb[102].mxu1 %vm6263_vm13, %v15107_v43  ;;  %10155 = vmatprep.subr.bf16.mxu0 %v10154_v54  ;;  %v8380_v54 = vld [vmem:[%s17207_s9 + $0x2f0] sm:$0xff] }
 0x7bb   : > { %6555 = vmatprep.mubr.f32.mxu1 %v17265_v5  ;;  %v10172_v3 = vpack.c.bf16 %v8380_v54, %v8378_v62  ;;  %v8388_v62 = vld [vmem:[%s17207_s9 + $0x330] sm:$0xff] }
 0x7bd   : > { %10157 = vmatpush1.bf16.msra.mxu0 %v10156_v21  ;;  %v11007_v21 = vld [vmem:[%s11314_s22 + $0xb8] sm:$0xff] }
 0x7be   : > { %8629 = vmatmul.mubr.msk.f32.gmra.mrb[104].mxu1 %vm6263_vm13, %v15127_v39  ;;  %10159 = vmatprep.subr.bf16.mxu0 %v10158_v18  ;;  %v6210_v18 = vmul.f32 %v11007_v21, %v14839_v30  ;;  %v8391_v21 = vld [vmem:[%s17207_s9 + $0x348] sm:$0xff] }
 0x7bf   : > { %6561 = vmatprep.mubr.f32.mxu1 %v17265_v5 }
 0x7c1   : > { %10161 = vmatpush1.bf16.msra.mxu0 %v10160_v35  ;;  %v11008_v35 = vld [vmem:[%s11314_s22 + $0x30] sm:$0xff] }
 0x7c2   : > { %8630 = vmatmul.mubr.msk.f32.gmra.mrb[106].mxu1 %vm6263_vm13, %v15147_v47  ;;  %10163 = vmatprep.subr.bf16.mxu0 %v10162_v9  ;;  %v6193_v9 = vmul.f32 %v11008_v35, %v14847_v25  ;;  %v8392_v35 = vld [vmem:[%s17207_s9 + $0x350] sm:$0xff] }
 0x7c3   : > { %6567 = vmatprep.mubr.f32.mxu1 %v17265_v5 }
 0x7c4   : > { %v15438_v54 = vpack.c.bf16 %v6209_v32, %v6193_v9  ;;  %v8397_v32 = vld [vmem:[%s17207_s9 + $0x378] sm:$0xff] }
 0x7c5   : > { %10165 = vmatpush1.bf16.msra.mxu0 %v10164_v11  ;;  %v15422_v11 = vpack.c.bf16 %v6210_v18, %v6194_v53  ;;  %v6241_v53 = vmul.f32 %v11013_v10, %v14887_v14  ;;  %v8393_v18 = vld [vmem:[%s17207_s9 + $0x358] sm:$0xff]  ;;  %v11016_v10 = vld [vmem:[%s11314_s22 + $0x40] sm:$0xff] }
 0x7c6   : > { %8631 = vmatmul.mubr.msk.f32.gmra.mrb[108].mxu1 %vm6263_vm13, %v15167_v29  ;;  %10167 = vmatprep.subr.bf16.mxu0 %v10166_v19  ;;  %v11010_v19 = vld [vmem:[%s11314_s22 + $0x138] sm:$0xff]  ;;  %v10182_v4 = vpack.c.bf16 %v8393_v18, %v8391_v21  ;;  %v11017_v21 = vld [vmem:[%s11314_s22 + $0xc0] sm:$0xff] }
 0x7c7   : > { %6638 = vmatprep.mubr.f32.mxu1 %v17265_v5  ;;  %v6226_v8 = vmul.f32 %v11010_v19, %v14869_v52  ;;  %v15463_v9 = vpack.c.bf16 %v6241_v53, %v6225_v42  ;;  %v8394_v19 = vld [vmem:[%s17207_s9 + $0x360] sm:$0xff]  ;;  %v17277_v42 = vpack.c.bf16 %v13465_v44, %v13459_v50  ;;  %v6195_v53 = vmul.f32 %v11016_v10, %v14847_v25  ;;  %v11019_v50 = vld [vmem:[%s11314_s22 + $0x1c8] sm:$0xff] }
 0x7c8   : > { %v6211_v18 = vmul.f32 %v11017_v21, %v14839_v30  ;;  %v6244_v44 = vmul.f32 %v11019_v50, %v14887_v14  ;;  %v8406_v10 = vld [vmem:[%s17207_s9 + $0x3c0] sm:$0xff] }
 0x7c9   : > { %10169 = vmatpush1.bf16.msra.mxu0 %v10168_v51  ;;  %v10178_v51 = vpack.c.bf16 %v8389_v56, %v8387_v31  ;;  %v10184_v31 = vpack.c.bf16 %v8392_v35, %v8390_v59  ;;  %v10186_v56 = vpack.c.bf16 %v8397_v32, %v8395_v49  ;;  %v11018_v59 = vld [vmem:[%s11314_s22 + $0x148] sm:$0xff]  ;;  %v17279_v49 = vpack.c.bf16 %v13521_v20, %v13515_v0  ;;  %v8398_v0 = vld [vmem:[%s17207_s9 + $0x380] sm:$0xff]  ;;  %v8400_v20 = vld [vmem:[%s17207_s9 + $0x390] sm:$0xff] }
 0x7ca   : > { %8632 = vmatmul.mubr.msk.f32.vlgmr.msra.gmra.mrb[118].mxu1 %vm6263_vm13, %v14908_v16  ;;  %10171 = vmatprep.subr.bf16.mxu0 %v10170_v60  ;;  %v8386_v60 = vld [vmem:[%s17207_s9 + $0x320] sm:$0xff]  ;;  %v6228_v35 = vmul.f32 %v11018_v59, %v14869_v52  ;;  %v10536_v32 = vpack.c.bf16 %v6211_v18, %v6195_v53  ;;  %v8408_v53 = vld [vmem:[%s17207_s9 + $0x3d0] sm:$0xff] }
 0x7cb   : > { %10594 = vmatpush1.bf16.msra.mxu1 %v13783_v34  ;;  %6644 = vmatprep.mubr.f32.mxu1 %v17265_v5  ;;  %v10200_v18 = vpack.c.bf16 %v8408_v53, %v8406_v10  ;;  %v8412_v59 = vld [vmem:[%s17207_s9 + $0x3f0] sm:$0xff]  ;;  %v11028_v10 = vld [vmem:[%s11314_s22 + $0x160] sm:$0xff] }
 0x7cc   : > { %10591 = vmatprep.subr.bf16.mxu1 %v13827_v33  ;;  %v6231_v53 = vmul.f32 %v11028_v10, %v14869_v52 }
 0x7cd   : > { %10173 = vmatpush1.bf16.msra.mxu0 %v10172_v3  ;;  %v15451_v3 = vpack.c.bf16 %v6242_v41, %v6226_v8  ;;  %v8396_v8 = vld [vmem:[%s17207_s9 + $0x370] sm:$0xff]  ;;  %v8401_v41 = vld [vmem:[%s17207_s9 + $0x398] sm:$0xff] }
 0x7ce   : > { %8633 = vmatmul.mubr.msk.f32.gmra.mrb[120].mxu1 %vm6263_vm13, %v14937_v6  ;;  %10175 = vmatprep.subr.bf16.mxu0 %v10174_v1  ;;  %v10180_v1 = vpack.c.bf16 %v8388_v62, %v8386_v60  ;;  %v10190_v60 = vpack.c.bf16 %v8401_v41, %v8399_v7  ;;  %v11015_v62 = vld [vmem:[%s11314_s22 + $0xc8] sm:$0xff]  ;;  %v10192_v7 = vpack.c.bf16 %v8400_v20, %v8398_v0  ;;  %v17283_v0 = vld [vmem:[#allocation13_spill] sm:$0xff] }
 0x7cf   : > { %10595 = vmatpush1.bf16.msra.mxu1 %v13819_v63  ;;  %6650 = vmatprep.mubr.f32.mxu1 %v17265_v5  ;;  %v6212_v12 = vmul.f32 %v11015_v62, %v14839_v30  ;;  %v8403_v41 = vld [vmem:[%s17207_s9 + $0x3a8] sm:$0xff]  ;;  %v17280_v62 = vpack.c.bf16 %v13589_v24, %v13583_v17  ;;  %v8413_v24 = vld [vmem:[%s17207_s9 + $0x3f8] sm:$0xff] }
 0x7d0   : > { %10592 = vmatprep.subr.bf16.mxu1 %v15422_v11  ;;  %v8411_v17 = vld [vmem:[%s17207_s9 + $0x3e8] sm:$0xff] }
 0x7d1   : > { %10177 = vmatpush1.bf16.msra.mxu0 %v10176_v2  ;;  %v17276_v2 = vpack.c.bf16 %v13477_v45, %v13471_v22  ;;  %v11014_v22 = vld [vmem:[%s11314_s22 + $0x48] sm:$0xff] }
 0x7d2   : > { %8634 = vmatmul.mubr.msk.f32.gmra.mrb[122].mxu1 %vm6263_vm13, %v14978_v61  ;;  %10179 = vmatprep.subr.bf16.mxu0 %v10178_v51  ;;  %v10188_v51 = vpack.c.bf16 %v8396_v8, %v8394_v19  ;;  %v6196_v45 = vmul.f32 %v11014_v22, %v14847_v25  ;;  %v10538_v19 = vpack.c.bf16 %v6244_v44, %v6228_v35  ;;  %v8404_v22 = vld [vmem:[%s17207_s9 + $0x3b0] sm:$0xff]  ;;  %v11022_v35 = vld [vmem:[%s11314_s22 + $0x68] sm:$0xff] }
 0x7d3   : > { %10596 = vmatpush1.bf16.msra.mxu1 %v15438_v54  ;;  %6656 = vmatprep.mubr.f32.mxu1 %v17265_v5  ;;  %v6200_v50 = vmul.f32 %v11022_v35, %v14847_v25  ;;  %v11023_v44 = vld [vmem:[%s11314_s22 + $0xe8] sm:$0xff] }
 0x7d4   : > { %10593 = vmatprep.subr.bf16.mxu1 %v15451_v3 }
 0x7d5   : > { %10181 = vmatpush1.bf16.msra.mxu0 %v10180_v1  ;;  %v17278_v1 = vpack.c.bf16 %v13533_v40, %v13527_v15  ;;  %v11021_v40 = vld [vmem:[%s11314_s22 + $0x1c0] sm:$0xff] }
 0x7d6   : > { %8635 = vmatmul.mubr.msk.f32.gmra.mrb[124].mxu1 %vm6263_vm13, %v15004_v38  ;;  %10183 = vmatprep.subr.bf16.mxu0 %v10182_v4  ;;  %v10534_v4 = vpack.c.bf16 %v6212_v12, %v6196_v45  ;;  %v8407_v45 = vld [vmem:[%s17207_s9 + $0x3c8] sm:$0xff] }
 0x7d7   : > { %10597 = vmatpush1.bf16.msra.mxu1 %v15463_v9  ;;  %6662 = vmatprep.mubr.f32.mxu1 %v17265_v5 }
 0x7d8   : > { %10527 = vmatprep.subr.bf16.mxu1 %v17276_v2  ;;  %v8405_v2 = vld [vmem:[%s17207_s9 + $0x3b8] sm:$0xff] }
 0x7d9   : > { %10185 = vmatpush1.bf16.msra.mxu0 %v10184_v31  ;;  %v11020_v31 = vld [vmem:[%s11314_s22 + $0x140] sm:$0xff] }
 0x7da   : > { %8636 = vmatmul.mubr.msk.f32.gmra.mrb[126].mxu1 %vm6263_vm13, %v15024_v48  ;;  %10187 = vmatprep.subr.bf16.mxu0 %v10186_v56  ;;  %v6227_v15 = vmul.f32 %v11020_v31, %v14869_v52  ;;  %v6243_v56 = vmul.f32 %v11021_v40, %v14887_v14  ;;  %v17281_v31 = vpack.c.bf16 %v13577_v37, %v13571_v46  ;;  %v5296_v46 = vld [vmem:[%s17207_s9 + $0x8] sm:$0xff]  ;;  %v5298_v37 = vld [vmem:[%s17207_s9 + $0x18] sm:$0xff] }
 0x7db   : > { %6668 = vmatprep.mubr.f32.mxu1 %v17265_v5 }
 0x7dc   : > { %v10540_v8 = vpack.c.bf16 %v6243_v56, %v6227_v15  ;;  %v11024_v15 = vld [vmem:[%s11314_s22 + $0x60] sm:$0xff] }
 0x7dd   : > { %10189 = vmatpush1.bf16.msra.mxu0 %v10188_v51  ;;  %v10194_v51 = vpack.c.bf16 %v8405_v2, %v8403_v41  ;;  %v6199_v40 = vmul.f32 %v11024_v15, %v14847_v25  ;;  %v11025_v56 = vld [vmem:[%s11314_s22 + $0xe0] sm:$0xff]  ;;  %v17285_v41 = vld [vmem:[#allocation12_spill] sm:$0xff]  ;;  %v17286_v2 = vld [vmem:[#allocation11_spill] sm:$0xff] }
 0x7de   : > { %8637 = vmatmul.mubr.msk.f32.gmra.mrb[128].mxu1 %vm6263_vm13, %v15047_v13  ;;  %10191 = vmatprep.subr.bf16.mxu0 %v10190_v60  ;;  %v8402_v60 = vld [vmem:[%s17207_s9 + $0x3a0] sm:$0xff] }
 0x7df   : > { %6674 = vmatprep.mubr.f32.mxu1 %v17265_v5  ;;  %v10196_v12 = vpack.c.bf16 %v8404_v22, %v8402_v60  ;;  %v10206_v22 = vpack.c.bf16 %v5298_v37, %v5296_v46  ;;  %v5299_v15 = vld [vmem:[%s17207_s9 + $0x20] sm:$0xff] }
 0x7e1   : > { %10193 = vmatpush1.bf16.msra.mxu0 %v10192_v7 }
 0x7e2   : > { %8638 = vmatmul.mubr.msk.f32.gmra.mrb[130].mxu1 %vm6263_vm13, %v15067_v28  ;;  %10195 = vmatprep.subr.bf16.mxu0 %v10194_v51  ;;  %v17287_v51 = vpack.c.bf16 %v17285_v41, %v17286_v2 }
 0x7e3   : > { %6680 = vmatprep.mubr.f32.mxu1 %v17265_v5 }
 0x7e5   : > { %10197 = vmatpush1.bf16.msra.mxu0 %v10196_v12  ;;  %v11027_v12 = vld [vmem:[%s11314_s22 + $0x1e8] sm:$0xff] }
 0x7e6   : > { %8639 = vmatmul.mubr.msk.f32.gmra.mrb[132].mxu1 %vm6263_vm13, %v15087_v23 }
 0x7e7   : > { %6686 = vmatprep.mubr.f32.mxu1 %v17265_v5 }
 0x7ea   : > { %8640 = vmatmul.mubr.msk.f32.gmra.mrb[118].mxu1 %vm6263_vm13, %v15107_v43 }
 0x7eb   : > { %6692 = vmatprep.mubr.f32.mxu1 %v17265_v5 }
 0x7ee   : > { %8641 = vmatmul.mubr.msk.f32.gmra.mrb[120].mxu1 %vm6263_vm13, %v15127_v39 }
 0x7ef   : > { %6698 = vmatprep.mubr.f32.mxu1 %v17265_v5 }
 0x7f2   : > { %8642 = vmatmul.mubr.msk.f32.gmra.mrb[122].mxu1 %vm6263_vm13, %v15147_v47 }
 0x7f3   : > { %6704 = vmatprep.mubr.f32.mxu1 %v17265_v5 }
 0x7f6   : > { %8643 = vmatmul.mubr.msk.f32.gmra.mrb[124].mxu1 %vm6263_vm13, %v15167_v29 }
 0x7f7   : > { %6817 = vmatprep.mubr.f32.mxu1 %v17265_v5 }
 0x7fa   : > { %8651 = vmatmul.mubr.msk.f32.vlgmr.msra.gmra.mrb[134].mxu1 %vm6263_vm13, %v15087_v23 }
 0x7fb   : > { %10529 = vmatpush1.bf16.msra.mxu1 %v17277_v42  ;;  %6823 = vmatprep.mubr.f32.mxu1 %v17265_v5  ;;  %v8409_v42 = vld [vmem:[%s17207_s9 + $0x3d8] sm:$0xff] }
 0x7fc   : > { %10531 = vmatprep.subr.bf16.mxu1 %v17278_v1  ;;  %v10198_v21 = vpack.c.bf16 %v8409_v42, %v8407_v45  ;;  %v10202_v1 = vpack.c.bf16 %v8413_v24, %v8411_v17  ;;  %v11026_v45 = vld [vmem:[%s11314_s22 + $0x168] sm:$0xff]  ;;  %v6248_v42 = vmul.f32 %v11027_v12, %v14887_v14  ;;  %v5310_v12 = vld [vmem:[%s17207_s9 + $0x78] sm:$0xff] }
 0x7fe   : > { %8652 = vmatmul.mubr.msk.f32.gmra.mrb[136].mxu1 %vm6263_vm13, %v15107_v43  ;;  %10199 = vmatprep.subr.bf16.mxu0 %v10198_v21  ;;  %v11029_v21 = vld [vmem:[%s11314_s22 + $0x1e0] sm:$0xff] }
 0x7ff   : > { %10533 = vmatpush1.bf16.msra.mxu1 %v17279_v49  ;;  %6829 = vmatprep.mubr.f32.mxu1 %v17265_v5  ;;  %v6216_v49 = vmul.f32 %v11023_v44, %v14839_v30  ;;  %v6247_v17 = vmul.f32 %v11029_v21, %v14887_v14  ;;  %v5309_v21 = vld [vmem:[%s17207_s9 + $0x70] sm:$0xff] }
 0x800   : > { %10535 = vmatprep.subr.bf16.mxu1 %v10534_v4  ;;  %v8410_v4 = vld [vmem:[%s17207_s9 + $0x3e0] sm:$0xff]  ;;  %10201 = vmatpush1.bf16.msra.mxu0 %v10200_v18 }
 0x801   : > { %10203 = vmatprep.subr.bf16.mxu0 %v10202_v1  ;;  %v10566_v7 = vpack.c.bf16 %v6216_v49, %v6200_v50  ;;  %v10572_v18 = vpack.c.bf16 %v6247_v17, %v6231_v53  ;;  %v5307_v53 = vld [vmem:[%s17207_s9 + $0x60] sm:$0xff]  ;;  %v5312_v17 = vld [vmem:[%s17207_s9 + $0x88] sm:$0xff] }
 0x802   : > { %8653 = vmatmul.mubr.msk.f32.gmra.mrb[138].mxu1 %vm6263_vm13, %v15127_v39 }
 0x803   : > { %10537 = vmatpush1.bf16.msra.mxu1 %v10536_v32  ;;  %6835 = vmatprep.mubr.f32.mxu1 %v17265_v5  ;;  %v10204_v32 = vpack.c.bf16 %v8412_v59, %v8410_v4 }
 0x804   : > { %10539 = vmatprep.subr.bf16.mxu1 %v10538_v19  ;;  %v6215_v19 = vmul.f32 %v11025_v56, %v14839_v30 }
 0x805   : > { %10205 = vmatpush1.bf16.msra.mxu0 %v10204_v32 }
 0x806   : > { %8654 = vmatmul.mubr.msk.f32.gmra.mrb[140].mxu1 %vm6263_vm13, %v15147_v47  ;;  %v10568_v60 = vpack.c.bf16 %v6215_v19, %v6199_v40  ;;  %10207 = vmatprep.subr.bf16.mxu0 %v10206_v22  ;;  %v5301_v40 = vld [vmem:[%s17207_s9 + $0x30] sm:$0xff] }
 0x807   : > { %10541 = vmatpush1.bf16.msra.mxu1 %v10540_v8  ;;  %6841 = vmatprep.mubr.f32.mxu1 %v17265_v5  ;;  %v17282_v8 = vld [vmem:[#allocation14_spill] sm:$0xff]  ;;  %v10212_v2 = vpack.c.bf16 %v5301_v40, %v5299_v15  ;;  %v5305_v22 = vld [vmem:[%s17207_s9 + $0x50] sm:$0xff] }
 0x808   : > { %10559 = vmatprep.subr.bf16.mxu1 %v17280_v62  ;;  %v17284_v20 = vpack.c.bf16 %v17282_v8, %v17283_v0  ;;  %v6232_v62 = vmul.f32 %v11026_v45, %v14869_v52  ;;  %v5323_v15 = vld [vmem:[%s17207_s9 + $0xe0] sm:$0xff]  ;;  %v5325_v40 = vld [vmem:[%s17207_s9 + $0xf0] sm:$0xff] }
 0x80a   : > { %8655 = vmatmul.mubr.msk.f32.gmra.mrb[142].mxu1 %vm6263_vm13, %v15167_v29  ;;  %v10570_v24 = vpack.c.bf16 %v6248_v42, %v6232_v62  ;;  %v5308_v62 = vld [vmem:[%s17207_s9 + $0x68] sm:$0xff] }
 0x80b   : > { %6912 = vmatprep.mubr.f32.mxu1 %v17265_v5  ;;  %v10218_v10 = vpack.c.bf16 %v5310_v12, %v5308_v62  ;;  %v5333_v62 = vld [vmem:[%s17207_s9 + $0x130] sm:$0xff]  ;;  %v5336_v12 = vld [vmem:[%s17207_s9 + $0x148] sm:$0xff] }
 0x80e   : > { %8656 = vmatmul.mubr.msk.f32.vlgmr.msra.gmra.mrb[144].mxu1 %vm6263_vm13, %v14908_v16 }
 0x80f   : > { %10561 = vmatpush1.bf16.msra.mxu1 %v17281_v31  ;;  %6918 = vmatprep.mubr.f32.mxu1 %v17265_v5 }
 0x810   : > { %10563 = vmatprep.subr.bf16.mxu1 %v17284_v20  ;;  %v5304_v20 = vld [vmem:[%s17207_s9 + $0x48] sm:$0xff] }
 0x812   : > { %8657 = vmatmul.mubr.msk.f32.gmra.mrb[146].mxu1 %vm6263_vm13, %v14937_v6 }
 0x813   : > { %10565 = vmatpush1.bf16.msra.mxu1 %v17287_v51  ;;  %6924 = vmatprep.mubr.f32.mxu1 %v17265_v5 }
 0x814   : > { %10567 = vmatprep.subr.bf16.mxu1 %v10566_v7  ;;  %v5306_v7 = vld [vmem:[%s17207_s9 + $0x58] sm:$0xff] }
 0x815   : > { %v10214_v51 = vpack.c.bf16 %v5306_v7, %v5304_v20  ;;  %v5327_v7 = vld [vmem:[%s17207_s9 + $0x100] sm:$0xff] }
 0x816   : > { %8658 = vmatmul.mubr.msk.f32.gmra.mrb[148].mxu1 %vm6263_vm13, %v14978_v61 }
 0x817   : > { %10569 = vmatpush1.bf16.msra.mxu1 %v10568_v60  ;;  %6930 = vmatprep.mubr.f32.mxu1 %v17265_v5  ;;  %v5303_v60 = vld [vmem:[%s17207_s9 + $0x40] sm:$0xff] }
 0x818   : > { %10571 = vmatprep.subr.bf16.mxu1 %v10570_v24  ;;  %v10216_v42 = vpack.c.bf16 %v5305_v22, %v5303_v60  ;;  %v5314_v24 = vld [vmem:[%s17207_s9 + $0x98] sm:$0xff]  ;;  %v5331_v22 = vld [vmem:[%s17207_s9 + $0x120] sm:$0xff] }
 0x81a   : > { %8659 = vmatmul.mubr.msk.f32.gmra.mrb[150].mxu1 %vm6263_vm13, %v15004_v38 }
 0x81b   : > { %6936 = vmatprep.mubr.f32.mxu1 %v17265_v5  ;;  %10573 = vmatpush1.bf16.msra.mxu1 %v10572_v18  ;;  %v10220_v18 = vpack.c.bf16 %v5309_v21, %v5307_v53  ;;  %v5335_v21 = vld [vmem:[%s17207_s9 + $0x140] sm:$0xff] }
 0x81e   : > { %8660 = vmatmul.mubr.msk.f32.gmra.mrb[152].mxu1 %vm6263_vm13, %v15024_v48 }
 0x81f   : > { %6942 = vmatprep.mubr.f32.mxu1 %v17265_v5 }
 0x822   : > { %8661 = vmatmul.mubr.msk.f32.gmra.mrb[154].mxu1 %vm6263_vm13, %v15047_v13 }
 0x823   : > { %6948 = vmatprep.mubr.f32.mxu1 %v17265_v5 }
 0x826   : > { %8662 = vmatmul.mubr.msk.f32.gmra.mrb[156].mxu1 %vm6263_vm13, %v15067_v28 }
 0x827   : > { %6954 = vmatprep.mubr.f32.mxu1 %v17265_v5 }
 0x82a   : > { %8663 = vmatmul.mubr.msk.f32.gmra.mrb[158].mxu1 %vm6263_vm13, %v15087_v23 }
 0x82b   : > { %6960 = vmatprep.mubr.f32.mxu1 %v17265_v5 }
 0x82e   : > { %8664 = vmatmul.mubr.msk.f32.gmra.mrb[144].mxu1 %vm6263_vm13, %v15107_v43 }
 0x82f   : > { %6966 = vmatprep.mubr.f32.mxu1 %v17265_v5 }
 0x832   : > { %8665 = vmatmul.mubr.msk.f32.gmra.mrb[146].mxu1 %vm6263_vm13, %v15127_v39 }
 0x833   : > { %6972 = vmatprep.mubr.f32.mxu1 %v17265_v5 }
 0x836   : > { %8666 = vmatmul.mubr.msk.f32.gmra.mrb[148].mxu1 %vm6263_vm13, %v15147_v47 }
 0x837   : > { %6978 = vmatprep.mubr.f32.mxu1 %v17265_v5 }
 0x83a   : > { %8667 = vmatmul.mubr.msk.f32.gmra.mrb[150].mxu1 %vm6263_vm13, %v15167_v29 }
 0x83b   : > { %7186 = vmatprep.mubr.f32.mxu1 %v17265_v5 }
 0x83e   : > { %8680 = vmatmul.mubr.msk.f32.vlgmr.msra.gmra.mrb[160].mxu1 %vm6263_vm13, %v14908_v16 }
 0x83f   : > { %7192 = vmatprep.mubr.f32.mxu1 %v17265_v5 }
 0x842   : > { %8681 = vmatmul.mubr.msk.f32.gmra.mrb[162].mxu1 %vm6263_vm13, %v14937_v6 }
 0x843   : > { %7198 = vmatprep.mubr.f32.mxu1 %v17265_v5 }
 0x846   : > { %8682 = vmatmul.mubr.msk.f32.gmra.mrb[164].mxu1 %vm6263_vm13, %v14978_v61 }
 0x847   : > { %7204 = vmatprep.mubr.f32.mxu1 %v17265_v5 }
 0x84a   : > { %8683 = vmatmul.mubr.msk.f32.gmra.mrb[166].mxu1 %vm6263_vm13, %v15004_v38 }
 0x84b   : > { %7210 = vmatprep.mubr.f32.mxu1 %v17265_v5 }
 0x84e   : > { %8684 = vmatmul.mubr.msk.f32.gmra.mrb[168].mxu1 %vm6263_vm13, %v15024_v48 }
 0x84f   : > { %7216 = vmatprep.mubr.f32.mxu1 %v17265_v5 }
 0x852   : > { %8685 = vmatmul.mubr.msk.f32.gmra.mrb[170].mxu1 %vm6263_vm13, %v15047_v13 }
 0x853   : > { %7222 = vmatprep.mubr.f32.mxu1 %v17265_v5 }
 0x856   : > { %8686 = vmatmul.mubr.msk.f32.gmra.mrb[172].mxu1 %vm6263_vm13, %v15067_v28  ;;  %v5295_v28 = vld [vmem:[%s17207_s9] sm:$0xff] }
 0x857   : > { %7228 = vmatprep.mubr.f32.mxu1 %v17265_v5 }
 0x85a   : > { %8687 = vmatmul.mubr.msk.f32.gmra.mrb[174].mxu1 %vm6263_vm13, %v15087_v23  ;;  %v5297_v23 = vld [vmem:[%s17207_s9 + $0x10] sm:$0xff] }
 0x85b   : > { %7234 = vmatprep.mubr.f32.mxu1 %v17265_v5  ;;  %v10208_v49 = vpack.c.bf16 %v5297_v23, %v5295_v28  ;;  %v5318_v28 = vld [vmem:[%s17207_s9 + $0xb8] sm:$0xff] }
 0x85e   : > { %8688 = vmatmul.mubr.msk.f32.gmra.mrb[160].mxu1 %vm6263_vm13, %v15107_v43 }
 0x85f   : > { %7240 = vmatprep.mubr.f32.mxu1 %v17265_v5 }
 0x862   : > { %8689 = vmatmul.mubr.msk.f32.gmra.mrb[162].mxu1 %vm6263_vm13, %v15127_v39  ;;  %v5302_v39 = vld [vmem:[%s17207_s9 + $0x38] sm:$0xff] }
 0x863   : > { %7246 = vmatprep.mubr.f32.mxu1 %v17265_v5 }
 0x866   : > { %8690 = vmatmul.mubr.msk.f32.gmra.mrb[164].mxu1 %vm6263_vm13, %v15147_v47 }
 0x867   : > { %7252 = vmatprep.mubr.f32.mxu1 %v17265_v5 }
 0x86a   : > { %8691 = vmatmul.mubr.msk.f32.gmra.mrb[166].mxu1 %vm6263_vm13, %v15167_v29 }
 0x883   : > { %v5274_v16 = vpop.f32.mrb[60].mxu0 }
 0x884   : > { %v5283_v6 = vrot.slane %v5274_v16, 6  ;;  %v15703_v61 = vadd.f32 %v5274_v16, %v14683_v26  ;;  %v5276_v38 = vpop.f32.mrb[61].mxu0  ;;  %v5300_v26 = vld [vmem:[%s17207_s9 + $0x28] sm:$0xff]  ;;  %v10222_v16 = vpack.c.bf16 %v5314_v24, %v5312_v17  ;;  %v5337_v17 = vld [vmem:[%s17207_s9 + $0x150] sm:$0xff] }
 0x885   : > { %v5284_v48 = vrot.slane %v5276_v38, 6  ;;  %v15706_v13 = vadd.f32 %v5276_v38, %v14686_v58  ;;  %v10210_v32 = vpack.c.bf16 %v5302_v39, %v5300_v26  ;;  %v5313_v38 = vld [vmem:[%s17207_s9 + $0x90] sm:$0xff]  ;;  %v5315_v39 = vld [vmem:[%s17207_s9 + $0xa0] sm:$0xff]  ;;  %v5340_v24 = vld [vmem:[%s17207_s9 + $0x168] sm:$0xff] }
 0x886   : > { %5287 = vst [vmem:[#allocation6] sm:$0xfc] %v5283_v6  ;;  %5289 = vst [vmem:[#allocation6 + $0x10] sm:$0x3] %v5283_v6  ;;  %v5311_v6 = vld [vmem:[%s17207_s9 + $0x80] sm:$0xff] }
 0x887   : > { %5288 = vst [vmem:[#allocation6 + $0x8] sm:$0xfc] %v5284_v48  ;;  %5290 = vst [vmem:[#allocation6 + $0x18] sm:$0x3] %v5284_v48  ;;  %v5316_v48 = vld [vmem:[%s17207_s9 + $0xa8] sm:$0xff]  ;;  %v10224_v23 = vpack.c.bf16 %v5313_v38, %v5311_v6  ;;  %v5339_v38 = vld [vmem:[%s17207_s9 + $0x160] sm:$0xff] }
 0x888   : > { %v10226_v26 = vpack.c.bf16 %v5318_v28, %v5316_v48  ;;  %v5341_v48 = vld [vmem:[%s17207_s9 + $0x170] sm:$0xff]  ;;  %v5344_v28 = vld [vmem:[%s17207_s9 + $0x188] sm:$0xff] }
 0x88d   : > { %v15717_v43 = vld [vmem:[#allocation6] sm:$0xff]  ;;  %v15719_v58 = vld [vmem:[#allocation6 + $0x10] sm:$0xf] }
 0x88e   : > { %v5292_v47 = vld [vmem:[#allocation6 + $0x8] sm:$0xff]  ;;  %v5294_v29 = vld [vmem:[#allocation6 + $0x18] sm:$0xf]  ;;  %v5428_v1 = vrot.slane %v15717_v43, 1  ;;  %v5429_v4 = vrot.slane %v15719_v58, 1 }
 0x88f   : > { %v5431_v59 = vrot.slane %v5292_v47, 1  ;;  %v5432_v35 = vrot.slane %v5294_v29, 1  ;;  %v5646_v50 = vrot.slane %v5292_v47, 2  ;;  %v5647_v44 = vrot.slane %v5294_v29, 2 }
 0x890   : > { %v5792_v19 = vrot.slane %v5292_v47, 3  ;;  %v5793_v8 = vrot.slane %v5294_v29, 3  ;;  %v5430_v0 = vsel %vm4161_vm10, %v5428_v1, %v5429_v4  ;;  %v5939_v46 = vrot.slane %v5292_v47, 4  ;;  %v5322_v1 = vld [vmem:[%s17207_s9 + $0xd8] sm:$0xff] }
 0x891   : > { %v5433_v31 = vsel %vm4161_vm10, %v5431_v59, %v5432_v35  ;;  %v15734_v56 = vsel %vm4081_vm9, %v5646_v50, %v5647_v44  ;;  %v5940_v41 = vrot.slane %v5294_v29, 4  ;;  %v5320_v29 = vld [vmem:[%s17207_s9 + $0xc8] sm:$0xff]  ;;  %v5319_v35 = vld [vmem:[%s17207_s9 + $0xc0] sm:$0xff]  ;;  %v5321_v50 = vld [vmem:[%s17207_s9 + $0xd0] sm:$0xff] }
 0x892   : > { %5500 = vmatprep.mubr.f32.mxu0 %v5433_v31  ;;  %v15744_v37 = vsel %vm4306_vm11, %v5792_v19, %v5793_v8  ;;  %v10230_v59 = vpack.c.bf16 %v5322_v1, %v5320_v29  ;;  %v5324_v44 = vld [vmem:[%s17207_s9 + $0xe8] sm:$0xff]  ;;  %v5330_v8 = vld [vmem:[%s17207_s9 + $0x118] sm:$0xff]  ;;  %v5345_v29 = vld [vmem:[%s17207_s9 + $0x190] sm:$0xff] }
 0x893   : > { %5501 = vmatmul.mubr.f32.vlgmr.msra.gmra.mrb[62].mxu0 %v5430_v0  ;;  %v15753_v45 = vsel %vm5935_vm14, %v5939_v46, %v5940_v41  ;;  %v5328_v19 = vld [vmem:[%s17207_s9 + $0x108] sm:$0xff]  ;;  %v10236_v0 = vpack.c.bf16 %v5325_v40, %v5323_v15  ;;  %v5329_v46 = vld [vmem:[%s17207_s9 + $0x110] sm:$0xff]  ;;  %v5351_v40 = vld [vmem:[%s17207_s9 + $0x1c0] sm:$0xff] }
 0x894   : > { %10209 = vmatpush1.bf16.msra.mxu0 %v10208_v49  ;;  %5571 = vmatprep.mubr.f32.mxu0 %v5292_v47  ;;  %v5317_v47 = vld [vmem:[%s17207_s9 + $0xb0] sm:$0xff]  ;;  %v5326_v49 = vld [vmem:[%s17207_s9 + $0xf8] sm:$0xff]  ;;  %v10238_v20 = vpack.c.bf16 %v5330_v8, %v5328_v19  ;;  %v5332_v41 = vld [vmem:[%s17207_s9 + $0x128] sm:$0xff] }
 0x895   : > { %10211 = vmatprep.subr.bf16.mxu0 %v10210_v32  ;;  %v10228_v4 = vpack.c.bf16 %v5317_v47, %v5315_v39  ;;  %v10232_v32 = vpack.c.bf16 %v5321_v50, %v5319_v35  ;;  %v10234_v31 = vpack.c.bf16 %v5326_v49, %v5324_v44  ;;  %v5343_v47 = vld [vmem:[%s17207_s9 + $0x180] sm:$0xff]  ;;  %v5348_v1 = vld [vmem:[%s17207_s9 + $0x1a8] sm:$0xff]  ;;  %v5349_v44 = vld [vmem:[%s17207_s9 + $0x1b0] sm:$0xff] }
 0x896   : > { %v5347_v50 = vld [vmem:[%s17207_s9 + $0x1a0] sm:$0xff]  ;;  %v5352_v49 = vld [vmem:[%s17207_s9 + $0x1c8] sm:$0xff]  ;;  %v5353_v19 = vld [vmem:[%s17207_s9 + $0x1d0] sm:$0xff] }
 0x897   : > { %v5356_v8 = vld [vmem:[%s17207_s9 + $0x1e8] sm:$0xff] }
 0x898   : > { %10213 = vmatpush1.bf16.msra.mxu0 %v10212_v2  ;;  %v5334_v2 = vld [vmem:[%s17207_s9 + $0x138] sm:$0xff] }
 0x899   : > { %10215 = vmatprep.subr.bf16.mxu0 %v10214_v51  ;;  %v10240_v51 = vpack.c.bf16 %v5329_v46, %v5327_v7  ;;  %v10242_v60 = vpack.c.bf16 %v5334_v2, %v5332_v41  ;;  %v5355_v46 = vld [vmem:[%s17207_s9 + $0x1e0] sm:$0xff]  ;;  %v5357_v41 = vld [vmem:[%s17207_s9 + $0x1f0] sm:$0xff]  ;;  %v8415_v2 = vld [vmem:[%s17207_s9 + $0x408] sm:$0xff] }
 0x89c   : > { %10217 = vmatpush1.bf16.msra.mxu0 %v10216_v42  ;;  %v5338_v42 = vld [vmem:[%s17207_s9 + $0x158] sm:$0xff] }
 0x89d   : > { %10219 = vmatprep.subr.bf16.mxu0 %v10218_v10  ;;  %v10244_v10 = vpack.c.bf16 %v5333_v62, %v5331_v22  ;;  %v10246_v53 = vpack.c.bf16 %v5338_v42, %v5336_v12  ;;  %v8414_v62 = vld [vmem:[%s17207_s9 + $0x400] sm:$0xff]  ;;  %v8416_v12 = vld [vmem:[%s17207_s9 + $0x410] sm:$0xff]  ;;  %v8419_v42 = vld [vmem:[%s17207_s9 + $0x428] sm:$0xff] }
 0x8a0   : > { %10221 = vmatpush1.bf16.msra.mxu0 %v10220_v18  ;;  %v5342_v18 = vld [vmem:[%s17207_s9 + $0x178] sm:$0xff] }
 0x8a1   : > { %10223 = vmatprep.subr.bf16.mxu0 %v10222_v16  ;;  %v10248_v16 = vpack.c.bf16 %v5337_v17, %v5335_v21  ;;  %v10250_v6 = vpack.c.bf16 %v5342_v18, %v5340_v24  ;;  %v8418_v17 = vld [vmem:[%s17207_s9 + $0x420] sm:$0xff]  ;;  %v8420_v24 = vld [vmem:[%s17207_s9 + $0x430] sm:$0xff]  ;;  %v8423_v18 = vld [vmem:[%s17207_s9 + $0x448] sm:$0xff] }
 0x8a4   : > { %10225 = vmatpush1.bf16.msra.mxu0 %v10224_v23  ;;  %v5346_v23 = vld [vmem:[%s17207_s9 + $0x198] sm:$0xff] }
 0x8a5   : > { %10227 = vmatprep.subr.bf16.mxu0 %v10226_v26  ;;  %v10252_v26 = vpack.c.bf16 %v5341_v48, %v5339_v38  ;;  %v10254_v39 = vpack.c.bf16 %v5346_v23, %v5344_v28  ;;  %v8422_v48 = vld [vmem:[%s17207_s9 + $0x440] sm:$0xff]  ;;  %v8424_v28 = vld [vmem:[%s17207_s9 + $0x450] sm:$0xff]  ;;  %v8427_v23 = vld [vmem:[%s17207_s9 + $0x468] sm:$0xff] }
 0x8a8   : > { %10229 = vmatpush1.bf16.msra.mxu0 %v10228_v4  ;;  %v5350_v4 = vld [vmem:[%s17207_s9 + $0x1b8] sm:$0xff] }
 0x8a9   : > { %10231 = vmatprep.subr.bf16.mxu0 %v10230_v59  ;;  %v10256_v59 = vpack.c.bf16 %v5345_v29, %v5343_v47  ;;  %v10258_v35 = vpack.c.bf16 %v5350_v4, %v5348_v1  ;;  %v8426_v47 = vld [vmem:[%s17207_s9 + $0x460] sm:$0xff]  ;;  %v8428_v29 = vld [vmem:[%s17207_s9 + $0x470] sm:$0xff]  ;;  %v8431_v1 = vld [vmem:[%s17207_s9 + $0x488] sm:$0xff] }
 0x8aa   : > { %v8433_v4 = vld [vmem:[%s17207_s9 + $0x498] sm:$0xff] }
 0x8ac   : > { %10233 = vmatpush1.bf16.msra.mxu0 %v10232_v32  ;;  %v5354_v32 = vld [vmem:[%s17207_s9 + $0x1d8] sm:$0xff] }
 0x8ad   : > { %10235 = vmatprep.subr.bf16.mxu0 %v10234_v31  ;;  %v10260_v31 = vpack.c.bf16 %v5349_v44, %v5347_v50  ;;  %v10262_v15 = vpack.c.bf16 %v5354_v32, %v5352_v49  ;;  %v8430_v50 = vld [vmem:[%s17207_s9 + $0x480] sm:$0xff]  ;;  %v8432_v44 = vld [vmem:[%s17207_s9 + $0x490] sm:$0xff]  ;;  %v8435_v49 = vld [vmem:[%s17207_s9 + $0x4a8] sm:$0xff] }
 0x8ae   : > { %v8437_v32 = vld [vmem:[%s17207_s9 + $0x4b8] sm:$0xff] }
 0x8b0   : > { %10237 = vmatpush1.bf16.msra.mxu0 %v10236_v0  ;;  %v5358_v0 = vld [vmem:[%s17207_s9 + $0x1f8] sm:$0xff] }
 0x8b1   : > { %10239 = vmatprep.subr.bf16.mxu0 %v10238_v20  ;;  %v10264_v20 = vpack.c.bf16 %v5353_v19, %v5351_v40  ;;  %v10266_v7 = vpack.c.bf16 %v5358_v0, %v5356_v8  ;;  %v8434_v40 = vld [vmem:[%s17207_s9 + $0x4a0] sm:$0xff]  ;;  %v8436_v19 = vld [vmem:[%s17207_s9 + $0x4b0] sm:$0xff]  ;;  %v8439_v8 = vld [vmem:[%s17207_s9 + $0x4c8] sm:$0xff] }
 0x8b2   : > { %v8441_v0 = vld [vmem:[%s17207_s9 + $0x4d8] sm:$0xff] }
 0x8b4   : > { %10241 = vmatpush1.bf16.msra.mxu0 %v10240_v51  ;;  %v8417_v51 = vld [vmem:[%s17207_s9 + $0x418] sm:$0xff] }
 0x8b5   : > { %10243 = vmatprep.subr.bf16.mxu0 %v10242_v60  ;;  %v10268_v60 = vpack.c.bf16 %v5357_v41, %v5355_v46  ;;  %v10270_v22 = vpack.c.bf16 %v8417_v51, %v8415_v2  ;;  %v8438_v46 = vld [vmem:[%s17207_s9 + $0x4c0] sm:$0xff]  ;;  %v8440_v41 = vld [vmem:[%s17207_s9 + $0x4d0] sm:$0xff]  ;;  %v8443_v2 = vld [vmem:[%s17207_s9 + $0x4e8] sm:$0xff] }
 0x8b6   : > { %v8445_v51 = vld [vmem:[%s17207_s9 + $0x4f8] sm:$0xff] }
 0x8b8   : > { %10245 = vmatpush1.bf16.msra.mxu0 %v10244_v10  ;;  %v8421_v10 = vld [vmem:[%s17207_s9 + $0x438] sm:$0xff] }
 0x8b9   : > { %10247 = vmatprep.subr.bf16.mxu0 %v10246_v53  ;;  %v10272_v53 = vpack.c.bf16 %v8416_v12, %v8414_v62  ;;  %v10274_v21 = vpack.c.bf16 %v8421_v10, %v8419_v42  ;;  %v8442_v62 = vld [vmem:[%s17207_s9 + $0x4e0] sm:$0xff]  ;;  %v8444_v12 = vld [vmem:[%s17207_s9 + $0x4f0] sm:$0xff]  ;;  %v8447_v42 = vld [vmem:[%s17207_s9 + $0x508] sm:$0xff] }
 0x8ba   : > { %v8449_v10 = vld [vmem:[%s17207_s9 + $0x518] sm:$0xff] }
 0x8bc   : > { %10249 = vmatpush1.bf16.msra.mxu0 %v10248_v16  ;;  %v8425_v16 = vld [vmem:[%s17207_s9 + $0x458] sm:$0xff] }
 0x8bd   : > { %10251 = vmatprep.subr.bf16.mxu0 %v10250_v6  ;;  %v10276_v6 = vpack.c.bf16 %v8420_v24, %v8418_v17  ;;  %v10278_v38 = vpack.c.bf16 %v8425_v16, %v8423_v18  ;;  %v8446_v17 = vld [vmem:[%s17207_s9 + $0x500] sm:$0xff]  ;;  %v8448_v24 = vld [vmem:[%s17207_s9 + $0x510] sm:$0xff]  ;;  %v8451_v18 = vld [vmem:[%s17207_s9 + $0x528] sm:$0xff] }
 0x8be   : > { %v8453_v16 = vld [vmem:[%s17207_s9 + $0x538] sm:$0xff] }
 0x8c0   : > { %10253 = vmatpush1.bf16.msra.mxu0 %v10252_v26  ;;  %v8429_v26 = vld [vmem:[%s17207_s9 + $0x478] sm:$0xff] }
 0x8c1   : > { %10255 = vmatprep.subr.bf16.mxu0 %v10254_v39  ;;  %v10282_v39 = vpack.c.bf16 %v8429_v26, %v8427_v23  ;;  %v8455_v23 = vld [vmem:[%s17207_s9 + $0x548] sm:$0xff]  ;;  %v8457_v26 = vld [vmem:[%s17207_s9 + $0x558] sm:$0xff] }
 0x8c4   : > { %10257 = vmatpush1.bf16.msra.mxu0 %v10256_v59  ;;  %v10284_v59 = vpack.c.bf16 %v8428_v29, %v8426_v47  ;;  %v8454_v47 = vld [vmem:[%s17207_s9 + $0x540] sm:$0xff]  ;;  %v8456_v29 = vld [vmem:[%s17207_s9 + $0x550] sm:$0xff] }
 0x8c5   : > { %10259 = vmatprep.subr.bf16.mxu0 %v10258_v35  ;;  %v10286_v35 = vpack.c.bf16 %v8433_v4, %v8431_v1  ;;  %v8459_v1 = vld [vmem:[%s17207_s9 + $0x568] sm:$0xff]  ;;  %v8461_v4 = vld [vmem:[%s17207_s9 + $0x578] sm:$0xff] }
 0x8c8   : > { %10261 = vmatpush1.bf16.msra.mxu0 %v10260_v31  ;;  %v10288_v31 = vpack.c.bf16 %v8432_v44, %v8430_v50  ;;  %v8458_v50 = vld [vmem:[%s17207_s9 + $0x560] sm:$0xff]  ;;  %v8460_v44 = vld [vmem:[%s17207_s9 + $0x570] sm:$0xff] }
 0x8c9   : > { %10263 = vmatprep.subr.bf16.mxu0 %v10262_v15  ;;  %v10290_v15 = vpack.c.bf16 %v8437_v32, %v8435_v49  ;;  %v8463_v49 = vld [vmem:[%s17207_s9 + $0x588] sm:$0xff]  ;;  %v8465_v32 = vld [vmem:[%s17207_s9 + $0x598] sm:$0xff] }
 0x8cc   : > { %10265 = vmatpush1.bf16.msra.mxu0 %v10264_v20  ;;  %v10292_v20 = vpack.c.bf16 %v8436_v19, %v8434_v40  ;;  %v8462_v40 = vld [vmem:[%s17207_s9 + $0x580] sm:$0xff]  ;;  %v8464_v19 = vld [vmem:[%s17207_s9 + $0x590] sm:$0xff] }
 0x8cd   : > { %10267 = vmatprep.subr.bf16.mxu0 %v10266_v7  ;;  %v10294_v7 = vpack.c.bf16 %v8441_v0, %v8439_v8  ;;  %v8467_v8 = vld [vmem:[%s17207_s9 + $0x5a8] sm:$0xff]  ;;  %v8469_v0 = vld [vmem:[%s17207_s9 + $0x5b8] sm:$0xff] }
 0x8d0   : > { %10269 = vmatpush1.bf16.msra.mxu0 %v10268_v60  ;;  %v10296_v60 = vpack.c.bf16 %v8440_v41, %v8438_v46  ;;  %v8466_v46 = vld [vmem:[%s17207_s9 + $0x5a0] sm:$0xff]  ;;  %v8468_v41 = vld [vmem:[%s17207_s9 + $0x5b0] sm:$0xff] }
 0x8d1   : > { %10271 = vmatprep.subr.bf16.mxu0 %v10270_v22  ;;  %v10298_v22 = vpack.c.bf16 %v8445_v51, %v8443_v2  ;;  %v8471_v2 = vld [vmem:[%s17207_s9 + $0x5c8] sm:$0xff]  ;;  %v8473_v51 = vld [vmem:[%s17207_s9 + $0x5d8] sm:$0xff] }
 0x8d3   : > { %5572 = vmatmul.mubr.f32.vlgmr.msra.gmra.mrb[62].mxu0 %v15717_v43 }
 0x8d4   : > { %10273 = vmatpush1.bf16.msra.mxu0 %v10272_v53  ;;  %5715 = vmatprep.mubr.f32.mxu0 %v15734_v56  ;;  %v10280_v56 = vpack.c.bf16 %v8424_v28, %v8422_v48  ;;  %v10300_v53 = vpack.c.bf16 %v8444_v12, %v8442_v62  ;;  %v8450_v48 = vld [vmem:[%s17207_s9 + $0x520] sm:$0xff]  ;;  %v8452_v28 = vld [vmem:[%s17207_s9 + $0x530] sm:$0xff] }
 0x8d5   : > { %10275 = vmatprep.subr.bf16.mxu0 %v10274_v21  ;;  %v10302_v21 = vpack.c.bf16 %v8449_v10, %v8447_v42  ;;  %v8470_v62 = vld [vmem:[%s17207_s9 + $0x5c0] sm:$0xff]  ;;  %v8472_v12 = vld [vmem:[%s17207_s9 + $0x5d0] sm:$0xff]  ;;  %v8475_v42 = vld [vmem:[%s17207_s9 + $0x5e8] sm:$0xff] }
 0x8d6   : > { %v8477_v10 = vld [vmem:[%s17207_s9 + $0x5f8] sm:$0xff] }
 0x8d8   : > { %10277 = vmatpush1.bf16.msra.mxu0 %v10276_v6  ;;  %v10304_v6 = vpack.c.bf16 %v8448_v24, %v8446_v17  ;;  %v8474_v17 = vld [vmem:[%s17207_s9 + $0x5e0] sm:$0xff]  ;;  %v8476_v24 = vld [vmem:[%s17207_s9 + $0x5f0] sm:$0xff] }
 0x8d9   : > { %10279 = vmatprep.subr.bf16.mxu0 %v10278_v38  ;;  %v10306_v38 = vpack.c.bf16 %v8453_v16, %v8451_v18  ;;  %v8479_v18 = vld [vmem:[%s17207_s9 + $0x608] sm:$0xff]  ;;  %v8481_v16 = vld [vmem:[%s17207_s9 + $0x618] sm:$0xff] }
 0x8dc   : > { %10281 = vmatpush1.bf16.msra.mxu0 %v10280_v56  ;;  %v10308_v56 = vpack.c.bf16 %v8452_v28, %v8450_v48  ;;  %v8478_v48 = vld [vmem:[%s17207_s9 + $0x600] sm:$0xff]  ;;  %v8480_v28 = vld [vmem:[%s17207_s9 + $0x610] sm:$0xff] }
 0x8dd   : > { %10283 = vmatprep.subr.bf16.mxu0 %v10282_v39  ;;  %v10310_v39 = vpack.c.bf16 %v8457_v26, %v8455_v23  ;;  %v5643_v23 = vrot.slane %v15717_v43, 2  ;;  %v5644_v26 = vrot.slane %v15719_v58, 2 }
 0x8e0   : > { %10285 = vmatpush1.bf16.msra.mxu0 %v10284_v59  ;;  %v10312_v59 = vpack.c.bf16 %v8456_v29, %v8454_v47  ;;  %v10336_v47 = vpack.c.bf16 %v8480_v28, %v8478_v48 }
 0x8e1   : > { %10287 = vmatprep.subr.bf16.mxu0 %v10286_v35  ;;  %v10314_v35 = vpack.c.bf16 %v8461_v4, %v8459_v1  ;;  %v8482_v1 = vld [vmem:[%s17207_s9 + $0x620] sm:$0xff]  ;;  %v8484_v4 = vld [vmem:[%s17207_s9 + $0x630] sm:$0xff] }
 0x8e4   : > { %10289 = vmatpush1.bf16.msra.mxu0 %v10288_v31  ;;  %v10316_v31 = vpack.c.bf16 %v8460_v44, %v8458_v50  ;;  %v8489_v50 = vld [vmem:[%s17207_s9 + $0x658] sm:$0xff]  ;;  %v10340_v44 = vpack.c.bf16 %v8484_v4, %v8482_v1  ;;  %v8510_v1 = vld [vmem:[%s17207_s9 + $0x700] sm:$0xff]  ;;  %v8512_v4 = vld [vmem:[%s17207_s9 + $0x710] sm:$0xff] }
 0x8e5   : > { %10291 = vmatprep.subr.bf16.mxu0 %v10290_v15  ;;  %v10318_v15 = vpack.c.bf16 %v8465_v32, %v8463_v49  ;;  %v8486_v32 = vld [vmem:[%s17207_s9 + $0x640] sm:$0xff] }
 0x8e8   : > { %10293 = vmatpush1.bf16.msra.mxu0 %v10292_v20  ;;  %v10320_v20 = vpack.c.bf16 %v8464_v19, %v8462_v40  ;;  %v8493_v40 = vld [vmem:[%s17207_s9 + $0x678] sm:$0xff] }
 0x8e9   : > { %10295 = vmatprep.subr.bf16.mxu0 %v10294_v7  ;;  %v10322_v7 = vpack.c.bf16 %v8469_v0, %v8467_v8  ;;  %v8490_v8 = vld [vmem:[%s17207_s9 + $0x660] sm:$0xff]  ;;  %v8492_v0 = vld [vmem:[%s17207_s9 + $0x670] sm:$0xff] }
 0x8ec   : > { %10297 = vmatpush1.bf16.msra.mxu0 %v10296_v60  ;;  %v10324_v60 = vpack.c.bf16 %v8468_v41, %v8466_v46  ;;  %v10348_v46 = vpack.c.bf16 %v8492_v0, %v8490_v8  ;;  %v8520_v8 = vld [vmem:[%s17207_s9 + $0x750] sm:$0xff]  ;;  %v8523_v0 = vld [vmem:[%s17207_s9 + $0x768] sm:$0xff] }
 0x8ed   : > { %10299 = vmatprep.subr.bf16.mxu0 %v10298_v22  ;;  %v10326_v22 = vpack.c.bf16 %v8473_v51, %v8471_v2  ;;  %v8494_v2 = vld [vmem:[%s17207_s9 + $0x680] sm:$0xff]  ;;  %v8496_v51 = vld [vmem:[%s17207_s9 + $0x690] sm:$0xff] }
 0x8f0   : > { %10301 = vmatpush1.bf16.msra.mxu0 %v10300_v53  ;;  %v10328_v53 = vpack.c.bf16 %v8472_v12, %v8470_v62  ;;  %v10352_v62 = vpack.c.bf16 %v8496_v51, %v8494_v2  ;;  %v8524_v2 = vld [vmem:[%s17207_s9 + $0x770] sm:$0xff]  ;;  %v8527_v51 = vld [vmem:[%s17207_s9 + $0x788] sm:$0xff] }
 0x8f1   : > { %10303 = vmatprep.subr.bf16.mxu0 %v10302_v21  ;;  %v10330_v21 = vpack.c.bf16 %v8477_v10, %v8475_v42  ;;  %v8498_v42 = vld [vmem:[%s17207_s9 + $0x6a0] sm:$0xff]  ;;  %v8500_v10 = vld [vmem:[%s17207_s9 + $0x6b0] sm:$0xff] }
 0x8f4   : > { %10305 = vmatpush1.bf16.msra.mxu0 %v10304_v6  ;;  %v10332_v6 = vpack.c.bf16 %v8476_v24, %v8474_v17  ;;  %v10356_v17 = vpack.c.bf16 %v8500_v10, %v8498_v42  ;;  %v8528_v42 = vld [vmem:[%s17207_s9 + $0x790] sm:$0xff]  ;;  %v8531_v10 = vld [vmem:[%s17207_s9 + $0x7a8] sm:$0xff] }
 0x8f5   : > { %10307 = vmatprep.subr.bf16.mxu0 %v10306_v38  ;;  %v10334_v38 = vpack.c.bf16 %v8481_v16, %v8479_v18  ;;  %v8502_v18 = vld [vmem:[%s17207_s9 + $0x6c0] sm:$0xff]  ;;  %v8504_v16 = vld [vmem:[%s17207_s9 + $0x6d0] sm:$0xff] }
 0x8f6   : > { %v10360_v48 = vpack.c.bf16 %v8504_v16, %v8502_v18  ;;  %v8532_v18 = vld [vmem:[%s17207_s9 + $0x7b0] sm:$0xff]  ;;  %v8535_v16 = vld [vmem:[%s17207_s9 + $0x7c8] sm:$0xff] }
 0x8f8   : > { %10309 = vmatpush1.bf16.msra.mxu0 %v10308_v56  ;;  %v8483_v56 = vld [vmem:[%s17207_s9 + $0x628] sm:$0xff] }
 0x8f9   : > { %10311 = vmatprep.subr.bf16.mxu0 %v10310_v39  ;;  %v8485_v39 = vld [vmem:[%s17207_s9 + $0x638] sm:$0xff] }
 0x8fa   : > { %v10338_v29 = vpack.c.bf16 %v8485_v39, %v8483_v56  ;;  %v8511_v56 = vld [vmem:[%s17207_s9 + $0x708] sm:$0xff]  ;;  %v8513_v39 = vld [vmem:[%s17207_s9 + $0x718] sm:$0xff] }
 0x8fc   : > { %10313 = vmatpush1.bf16.msra.mxu0 %v10312_v59  ;;  %v5645_v59 = vsel %vm4081_vm9, %v5643_v23, %v5644_v26  ;;  %v8506_v23 = vld [vmem:[%s17207_s9 + $0x6e0] sm:$0xff]  ;;  %v8508_v26 = vld [vmem:[%s17207_s9 + $0x6f0] sm:$0xff] }
 0x8fd   : > { %10315 = vmatprep.subr.bf16.mxu0 %v10314_v35  ;;  %v8487_v35 = vld [vmem:[%s17207_s9 + $0x648] sm:$0xff] }
 0x8fe   : > { %v10342_v49 = vpack.c.bf16 %v8489_v50, %v8487_v35  ;;  %v8517_v35 = vld [vmem:[%s17207_s9 + $0x738] sm:$0xff]  ;;  %v10368_v50 = vpack.c.bf16 %v8512_v4, %v8510_v1  ;;  %v8540_v1 = vld [vmem:[%s17207_s9 + $0x7f0] sm:$0xff]  ;;  %v8543_v4 = vld [vmem:[%s17207_s9 + $0x808] sm:$0xff] }
 0x900   : > { %10317 = vmatpush1.bf16.msra.mxu0 %v10316_v31  ;;  %v8488_v31 = vld [vmem:[%s17207_s9 + $0x650] sm:$0xff] }
 0x901   : > { %10319 = vmatprep.subr.bf16.mxu0 %v10318_v15  ;;  %v8491_v15 = vld [vmem:[%s17207_s9 + $0x668] sm:$0xff] }
 0x902   : > { %v10346_v19 = vpack.c.bf16 %v8493_v40, %v8491_v15  ;;  %v8521_v15 = vld [vmem:[%s17207_s9 + $0x758] sm:$0xff] }
 0x904   : > { %10321 = vmatpush1.bf16.msra.mxu0 %v10320_v20  ;;  %v8495_v20 = vld [vmem:[%s17207_s9 + $0x688] sm:$0xff] }
 0x905   : > { %10323 = vmatprep.subr.bf16.mxu0 %v10322_v7  ;;  %v8497_v7 = vld [vmem:[%s17207_s9 + $0x698] sm:$0xff] }
 0x906   : > { %v10350_v41 = vpack.c.bf16 %v8497_v7, %v8495_v20  ;;  %v8525_v20 = vld [vmem:[%s17207_s9 + $0x778] sm:$0xff] }
 0x908   : > { %10325 = vmatpush1.bf16.msra.mxu0 %v10324_v60  ;;  %v8499_v60 = vld [vmem:[%s17207_s9 + $0x6a8] sm:$0xff] }
 0x909   : > { %10327 = vmatprep.subr.bf16.mxu0 %v10326_v22  ;;  %v8501_v22 = vld [vmem:[%s17207_s9 + $0x6b8] sm:$0xff] }
 0x90a   : > { %v10354_v12 = vpack.c.bf16 %v8501_v22, %v8499_v60  ;;  %v8529_v60 = vld [vmem:[%s17207_s9 + $0x798] sm:$0xff] }
 0x90c   : > { %10329 = vmatpush1.bf16.msra.mxu0 %v10328_v53  ;;  %v8503_v53 = vld [vmem:[%s17207_s9 + $0x6c8] sm:$0xff] }
 0x90d   : > { %10331 = vmatprep.subr.bf16.mxu0 %v10330_v21  ;;  %v8505_v21 = vld [vmem:[%s17207_s9 + $0x6d8] sm:$0xff] }
 0x90e   : > { %v10358_v24 = vpack.c.bf16 %v8505_v21, %v8503_v53  ;;  %v8533_v53 = vld [vmem:[%s17207_s9 + $0x7b8] sm:$0xff] }
 0x910   : > { %10333 = vmatpush1.bf16.msra.mxu0 %v10332_v6  ;;  %v8507_v6 = vld [vmem:[%s17207_s9 + $0x6e8] sm:$0xff] }
 0x911   : > { %10335 = vmatprep.subr.bf16.mxu0 %v10334_v38  ;;  %v8509_v38 = vld [vmem:[%s17207_s9 + $0x6f8] sm:$0xff] }
 0x912   : > { %v10362_v28 = vpack.c.bf16 %v8509_v38, %v8507_v6  ;;  %v8537_v6 = vld [vmem:[%s17207_s9 + $0x7d8] sm:$0xff] }
 0x913   : > { %5716 = vmatmul.mubr.f32.vlgmr.msra.gmra.mrb[62].mxu0 %v5645_v59  ;;  %v8515_v59 = vld [vmem:[%s17207_s9 + $0x728] sm:$0xff] }
 0x914   : > { %10337 = vmatpush1.bf16.msra.mxu0 %v10336_v47  ;;  %5861 = vmatprep.mubr.f32.mxu0 %v15744_v37  ;;  %v10344_v37 = vpack.c.bf16 %v8488_v31, %v8486_v32  ;;  %v10364_v47 = vpack.c.bf16 %v8508_v26, %v8506_v23  ;;  %v8516_v32 = vld [vmem:[%s17207_s9 + $0x730] sm:$0xff]  ;;  %v8519_v31 = vld [vmem:[%s17207_s9 + $0x748] sm:$0xff] }
 0x915   : > { %10339 = vmatprep.subr.bf16.mxu0 %v10338_v29  ;;  %v10366_v29 = vpack.c.bf16 %v8513_v39, %v8511_v56  ;;  %v8536_v23 = vld [vmem:[%s17207_s9 + $0x7d0] sm:$0xff]  ;;  %v8539_v26 = vld [vmem:[%s17207_s9 + $0x7e8] sm:$0xff]  ;;  %v8541_v56 = vld [vmem:[%s17207_s9 + $0x7f8] sm:$0xff] }
 0x918   : > { %10341 = vmatpush1.bf16.msra.mxu0 %v10340_v44  ;;  %v10370_v44 = vpack.c.bf16 %v8517_v35, %v8515_v59  ;;  %v8545_v59 = vld [vmem:[%s17207_s9 + $0x818] sm:$0xff] }
 0x919   : > { %10343 = vmatprep.subr.bf16.mxu0 %v10342_v49  ;;  %v8514_v49 = vld [vmem:[%s17207_s9 + $0x720] sm:$0xff] }
 0x91a   : > { %v10372_v40 = vpack.c.bf16 %v8516_v32, %v8514_v49  ;;  %v8544_v49 = vld [vmem:[%s17207_s9 + $0x810] sm:$0xff]  ;;  %v5789_v32 = vrot.slane %v15717_v43, 3 }
 0x91b   : > { %v8548_v43 = vld [vmem:[%s17207_s9 + $0x830] sm:$0xff] }
 0x91c   : > { %10345 = vmatpush1.bf16.msra.mxu0 %v10344_v37  ;;  %v10374_v37 = vpack.c.bf16 %v8521_v15, %v8519_v31  ;;  %v5790_v31 = vrot.slane %v15719_v58, 3  ;;  %v8547_v15 = vld [vmem:[%s17207_s9 + $0x828] sm:$0xff] }
 0x91d   : > { %10347 = vmatprep.subr.bf16.mxu0 %v10346_v19  ;;  %v8518_v19 = vld [vmem:[%s17207_s9 + $0x740] sm:$0xff] }
 0x91e   : > { %v10376_v7 = vpack.c.bf16 %v8520_v8, %v8518_v19  ;;  %v8546_v8 = vld [vmem:[%s17207_s9 + $0x820] sm:$0xff]  ;;  %v5791_v58 = vsel %vm4306_vm11, %v5789_v32, %v5790_v31  ;;  %v8572_v32 = vld [vmem:[%s17207_s9 + $0x8f0] sm:$0xff]  ;;  %v8575_v31 = vld [vmem:[%s17207_s9 + $0x908] sm:$0xff] }
 0x920   : > { %10349 = vmatpush1.bf16.msra.mxu0 %v10348_v46  ;;  %v10378_v46 = vpack.c.bf16 %v8525_v20, %v8523_v0  ;;  %v8551_v0 = vld [vmem:[%s17207_s9 + $0x848] sm:$0xff]  ;;  %v8553_v20 = vld [vmem:[%s17207_s9 + $0x858] sm:$0xff] }
 0x921   : > { %10351 = vmatprep.subr.bf16.mxu0 %v10350_v41  ;;  %v8522_v41 = vld [vmem:[%s17207_s9 + $0x760] sm:$0xff] }
 0x922   : > { %v10380_v22 = vpack.c.bf16 %v8524_v2, %v8522_v41  ;;  %v8550_v41 = vld [vmem:[%s17207_s9 + $0x840] sm:$0xff]  ;;  %v8552_v2 = vld [vmem:[%s17207_s9 + $0x850] sm:$0xff] }
 0x924   : > { %10353 = vmatpush1.bf16.msra.mxu0 %v10352_v62  ;;  %v10382_v62 = vpack.c.bf16 %v8529_v60, %v8527_v51  ;;  %v8555_v51 = vld [vmem:[%s17207_s9 + $0x868] sm:$0xff]  ;;  %v8557_v60 = vld [vmem:[%s17207_s9 + $0x878] sm:$0xff] }
 0x925   : > { %10355 = vmatprep.subr.bf16.mxu0 %v10354_v12  ;;  %v8526_v12 = vld [vmem:[%s17207_s9 + $0x780] sm:$0xff] }
 0x926   : > { %v10384_v21 = vpack.c.bf16 %v8528_v42, %v8526_v12  ;;  %v8556_v12 = vld [vmem:[%s17207_s9 + $0x870] sm:$0xff]  ;;  %v8559_v42 = vld [vmem:[%s17207_s9 + $0x888] sm:$0xff] }
 0x928   : > { %10357 = vmatpush1.bf16.msra.mxu0 %v10356_v17  ;;  %v10386_v17 = vpack.c.bf16 %v8533_v53, %v8531_v10  ;;  %v8561_v10 = vld [vmem:[%s17207_s9 + $0x898] sm:$0xff] }
 0x929   : > { %10359 = vmatprep.subr.bf16.mxu0 %v10358_v24  ;;  %v8530_v24 = vld [vmem:[%s17207_s9 + $0x7a0] sm:$0xff] }
 0x92a   : > { %v10388_v38 = vpack.c.bf16 %v8532_v18, %v8530_v24  ;;  %v8560_v24 = vld [vmem:[%s17207_s9 + $0x890] sm:$0xff]  ;;  %v8563_v18 = vld [vmem:[%s17207_s9 + $0x8a8] sm:$0xff] }
 0x92c   : > { %10361 = vmatpush1.bf16.msra.mxu0 %v10360_v48  ;;  %v10390_v48 = vpack.c.bf16 %v8537_v6, %v8535_v16  ;;  %v8565_v16 = vld [vmem:[%s17207_s9 + $0x8b8] sm:$0xff] }
 0x92d   : > { %10363 = vmatprep.subr.bf16.mxu0 %v10362_v28  ;;  %v8534_v28 = vld [vmem:[%s17207_s9 + $0x7c0] sm:$0xff] }
 0x92e   : > { %v10392_v39 = vpack.c.bf16 %v8536_v23, %v8534_v28  ;;  %v8564_v28 = vld [vmem:[%s17207_s9 + $0x8b0] sm:$0xff]  ;;  %v8567_v23 = vld [vmem:[%s17207_s9 + $0x8c8] sm:$0xff] }
 0x930   : > { %10365 = vmatpush1.bf16.msra.mxu0 %v10364_v47  ;;  %v10394_v47 = vpack.c.bf16 %v8541_v56, %v8539_v26  ;;  %v8569_v26 = vld [vmem:[%s17207_s9 + $0x8d8] sm:$0xff] }
 0x931   : > { %10367 = vmatprep.subr.bf16.mxu0 %v10366_v29  ;;  %v8538_v29 = vld [vmem:[%s17207_s9 + $0x7e0] sm:$0xff] }
 0x932   : > { %v10396_v35 = vpack.c.bf16 %v8540_v1, %v8538_v29  ;;  %v8568_v29 = vld [vmem:[%s17207_s9 + $0x8d0] sm:$0xff]  ;;  %v8571_v1 = vld [vmem:[%s17207_s9 + $0x8e8] sm:$0xff] }
 0x934   : > { %10369 = vmatpush1.bf16.msra.mxu0 %v10368_v50  ;;  %v10398_v50 = vpack.c.bf16 %v8545_v59, %v8543_v4  ;;  %v8573_v4 = vld [vmem:[%s17207_s9 + $0x8f8] sm:$0xff]  ;;  %v16395_v59 = vpop.f32.mrb[94].mxu1 }
 0x935   : > { %10371 = vmatprep.subr.bf16.mxu0 %v10370_v44  ;;  %v8542_v44 = vld [vmem:[%s17207_s9 + $0x800] sm:$0xff] }
 0x938   : > { %10373 = vmatpush1.bf16.msra.mxu0 %v10372_v40  ;;  %v8549_v40 = vld [vmem:[%s17207_s9 + $0x838] sm:$0xff] }
 0x939   : > { %10375 = vmatprep.subr.bf16.mxu0 %v10374_v37  ;;  %v10400_v37 = vpack.c.bf16 %v8544_v49, %v8542_v44  ;;  %v10402_v19 = vpack.c.bf16 %v8549_v40, %v8547_v15  ;;  %v10426_v44 = vpack.c.bf16 %v8573_v4, %v8571_v1  ;;  %v8570_v49 = vld [vmem:[%s17207_s9 + $0x8e0] sm:$0xff]  ;;  %v8577_v15 = vld [vmem:[%s17207_s9 + $0x918] sm:$0xff] }
 0x93c   : > { %10377 = vmatpush1.bf16.msra.mxu0 %v10376_v7  ;;  %v10404_v7 = vpack.c.bf16 %v8548_v43, %v8546_v8  ;;  %v10430_v8 = vpack.c.bf16 %v8577_v15, %v8575_v31  ;;  %v8574_v43 = vld [vmem:[%s17207_s9 + $0x900] sm:$0xff]  ;;  %v8595_v31 = vld [vmem:[%s17207_s9 + $0x9a8] sm:$0xff]  ;;  %v8597_v15 = vld [vmem:[%s17207_s9 + $0x9b8] sm:$0xff] }
 0x93d   : > { %10379 = vmatprep.subr.bf16.mxu0 %v10378_v46  ;;  %v10406_v46 = vpack.c.bf16 %v8553_v20, %v8551_v0  ;;  %v8579_v20 = vld [vmem:[%s17207_s9 + $0x928] sm:$0xff] }
 0x940   : > { %10381 = vmatpush1.bf16.msra.mxu0 %v10380_v22  ;;  %v10410_v22 = vpack.c.bf16 %v8557_v60, %v8555_v51 }
 0x941   : > { %10383 = vmatprep.subr.bf16.mxu0 %v10382_v62  ;;  %v8554_v62 = vld [vmem:[%s17207_s9 + $0x860] sm:$0xff] }
 0x942   : > { %v10412_v53 = vpack.c.bf16 %v8556_v12, %v8554_v62  ;;  %v8583_v12 = vld [vmem:[%s17207_s9 + $0x948] sm:$0xff] }
 0x944   : > { %10385 = vmatpush1.bf16.msra.mxu0 %v10384_v21  ;;  %v10414_v21 = vpack.c.bf16 %v8561_v10, %v8559_v42  ;;  %v8585_v42 = vld [vmem:[%s17207_s9 + $0x958] sm:$0xff] }
 0x945   : > { %10387 = vmatprep.subr.bf16.mxu0 %v10386_v17  ;;  %v8558_v17 = vld [vmem:[%s17207_s9 + $0x880] sm:$0xff] }
 0x946   : > { %v10416_v6 = vpack.c.bf16 %v8560_v24, %v8558_v17  ;;  %v10438_v24 = vpack.c.bf16 %v8585_v42, %v8583_v12  ;;  %v8603_v12 = vld [vmem:[%s17207_s9 + $0x9e8] sm:$0xff]  ;;  %v8605_v42 = vld [vmem:[%s17207_s9 + $0x9f8] sm:$0xff] }
 0x948   : > { %10389 = vmatpush1.bf16.msra.mxu0 %v10388_v38  ;;  %v10418_v38 = vpack.c.bf16 %v8565_v16, %v8563_v18  ;;  %v8582_v18 = vld [vmem:[%s17207_s9 + $0x940] sm:$0xff]  ;;  %v8584_v16 = vld [vmem:[%s17207_s9 + $0x950] sm:$0xff] }
 0x949   : > { %10391 = vmatprep.subr.bf16.mxu0 %v10390_v48  ;;  %v8562_v48 = vld [vmem:[%s17207_s9 + $0x8a0] sm:$0xff] }
 0x94a   : > { %v10420_v56 = vpack.c.bf16 %v8564_v28, %v8562_v48  ;;  %v10440_v28 = vpack.c.bf16 %v8584_v16, %v8582_v18  ;;  %v8602_v18 = vld [vmem:[%s17207_s9 + $0x9e0] sm:$0xff]  ;;  %v8604_v16 = vld [vmem:[%s17207_s9 + $0x9f0] sm:$0xff] }
 0x94c   : > { %10393 = vmatpush1.bf16.msra.mxu0 %v10392_v39  ;;  %v10422_v39 = vpack.c.bf16 %v8569_v26, %v8567_v23 }
 0x94d   : > { %10395 = vmatprep.subr.bf16.mxu0 %v10394_v47  ;;  %v8566_v47 = vld [vmem:[%s17207_s9 + $0x8c0] sm:$0xff] }
 0x950   : > { %10397 = vmatpush1.bf16.msra.mxu0 %v10396_v35  ;;  %v10424_v35 = vpack.c.bf16 %v8568_v29, %v8566_v47  ;;  %v8591_v47 = vld [vmem:[%s17207_s9 + $0x988] sm:$0xff]  ;;  %v8593_v29 = vld [vmem:[%s17207_s9 + $0x998] sm:$0xff] }
 0x951   : > { %10399 = vmatprep.subr.bf16.mxu0 %v10398_v50  ;;  %v16397_v50 = vpop.f32.mrb[95].mxu1 }
 0x952   : > { %v16411_v40 = vpop.f32.mrb[96].mxu1 }
 0x953   : > { %5862 = vmatmul.mubr.f32.vlgmr.msra.gmra.mrb[62].mxu0 %v5791_v58  ;;  %v8576_v58 = vld [vmem:[%s17207_s9 + $0x910] sm:$0xff] }
 0x954   : > { %10401 = vmatpush1.bf16.msra.mxu0 %v10400_v37  ;;  %6008 = vmatprep.mubr.f32.mxu0 %v15753_v45  ;;  %v10408_v45 = vpack.c.bf16 %v8552_v2, %v8550_v41  ;;  %v10428_v37 = vpack.c.bf16 %v8572_v32, %v8570_v49  ;;  %v10432_v2 = vpack.c.bf16 %v8576_v58, %v8574_v43  ;;  %v8590_v49 = vld [vmem:[%s17207_s9 + $0x980] sm:$0xff]  ;;  %v8592_v32 = vld [vmem:[%s17207_s9 + $0x990] sm:$0xff] }
 0x955   : > { %10403 = vmatprep.subr.bf16.mxu0 %v10402_v19  ;;  %v16413_v19 = vpop.f32.mrb[97].mxu1  ;;  %v8594_v43 = vld [vmem:[%s17207_s9 + $0x9a0] sm:$0xff]  ;;  %v8596_v58 = vld [vmem:[%s17207_s9 + $0x9b0] sm:$0xff] }
 0x956   : > { %v16421_v0 = vpop.f32.mrb[98].mxu1 }
 0x958   : > { %10405 = vmatpush1.bf16.msra.mxu0 %v10404_v7  ;;  %v8581_v7 = vld [vmem:[%s17207_s9 + $0x938] sm:$0xff] }
 0x959   : > { %10407 = vmatprep.subr.bf16.mxu0 %v10406_v46  ;;  %v16429_v46 = vpop.f32.mrb[99].mxu1  ;;  %v10434_v60 = vpack.c.bf16 %v8581_v7, %v8579_v20  ;;  %v8599_v20 = vld [vmem:[%s17207_s9 + $0x9c8] sm:$0xff]  ;;  %v8601_v7 = vld [vmem:[%s17207_s9 + $0x9d8] sm:$0xff] }
 0x95a   : > { %v16431_v41 = vpop.f32.mrb[100].mxu1 }
 0x95b   : > { %v16433_v51 = vpop.f32.mrb[101].mxu1 }
 0x95c   : > { %10409 = vmatpush1.bf16.msra.mxu0 %v10408_v45  ;;  %v8578_v45 = vld [vmem:[%s17207_s9 + $0x920] sm:$0xff]  ;;  %v16441_v62 = vpop.f32.mrb[86].mxu1 }
 0x95d   : > { %10411 = vmatprep.subr.bf16.mxu0 %v10410_v22  ;;  %v8580_v22 = vld [vmem:[%s17207_s9 + $0x930] sm:$0xff]  ;;  %v16449_v10 = vpop.f32.mrb[87].mxu1 }
 0x960   : > { %10413 = vmatpush1.bf16.msra.mxu0 %v10412_v53  ;;  %v16451_v53 = vpop.f32.mrb[88].mxu1 }
 0x961   : > { %10415 = vmatprep.subr.bf16.mxu0 %v10414_v21  ;;  %v10436_v21 = vpack.c.bf16 %v8580_v22, %v8578_v45  ;;  %v16453_v17 = vpop.f32.mrb[89].mxu1  ;;  %v8598_v45 = vld [vmem:[%s17207_s9 + $0x9c0] sm:$0xff]  ;;  %v8600_v22 = vld [vmem:[%s17207_s9 + $0x9d0] sm:$0xff] }
 0x962   : > { %v16467_v48 = vpop.f32.mrb[90].mxu1 }
 0x963   : > { %v16469_v23 = vpop.f32.mrb[91].mxu1 }
 0x964   : > { %10417 = vmatpush1.bf16.msra.mxu0 %v10416_v6  ;;  %v8587_v6 = vld [vmem:[%s17207_s9 + $0x968] sm:$0xff]  ;;  %v16483_v1 = vpop.f32.mrb[92].mxu1 }
 0x965   : > { %10419 = vmatprep.subr.bf16.mxu0 %v10418_v38  ;;  %v8589_v38 = vld [vmem:[%s17207_s9 + $0x978] sm:$0xff] }
 0x966   : > { %v10442_v26 = vpack.c.bf16 %v8589_v38, %v8587_v6  ;;  %v10460_v6 = vpack.c.bf16 %v8604_v16, %v8602_v18  ;;  %v11030_v38 = vld [vmem:[#allocation6] sm:$0xff]  ;;  %v16595_v18 = vld [vmem:[%s17208_s10 + $0x8] sm:$0xff] }
 0x968   : > { %10421 = vmatpush1.bf16.msra.mxu0 %v10420_v56  ;;  %v8586_v56 = vld [vmem:[%s17207_s9 + $0x960] sm:$0xff] }
 0x969   : > { %10423 = vmatprep.subr.bf16.mxu0 %v10422_v39  ;;  %v8588_v39 = vld [vmem:[%s17207_s9 + $0x970] sm:$0xff] }
 0x96a   : > { %v10444_v4 = vpack.c.bf16 %v8588_v39, %v8586_v56 }
 0x96c   : > { %10425 = vmatpush1.bf16.msra.mxu0 %v10424_v35  ;;  %v16485_v35 = vpop.f32.mrb[93].mxu1 }
 0x96d   : > { %10427 = vmatprep.subr.bf16.mxu0 %v10426_v44  ;;  %v10446_v44 = vpack.c.bf16 %v8593_v29, %v8591_v47  ;;  %v16534_v47 = vpop.f32.mrb[110].mxu1 }
 0x96e   : > { %17288 = vst [vmem:[#allocation14_spill] sm:$0xff] %v16534_v47  ;;  %v16537_v29 = vpop.f32.mrb[111].mxu1 }
 0x96f   : > { %17289 = vst [vmem:[#allocation13_spill] sm:$0xff] %v16537_v29 }
 0x970   : > { %10429 = vmatpush1.bf16.msra.mxu0 %v10428_v37  ;;  %v10448_v37 = vpack.c.bf16 %v8592_v32, %v8590_v49 }
 0x971   : > { %10431 = vmatprep.subr.bf16.mxu0 %v10430_v8  ;;  %v10450_v8 = vpack.c.bf16 %v8597_v15, %v8595_v31  ;;  %v11034_v15 = vld [vmem:[%s11314_s22 + $0xd8] sm:$0xff] }
 0x974   : > { %10433 = vmatpush1.bf16.msra.mxu0 %v10432_v2  ;;  %v10452_v2 = vpack.c.bf16 %v8596_v58, %v8594_v43  ;;  %v17302_v43 = vld [vmem:[#allocation15_spill] sm:$0xff] }
 0x975   : > { %10435 = vmatprep.subr.bf16.mxu0 %v10434_v60  ;;  %v10454_v60 = vpack.c.bf16 %v8601_v7, %v8599_v20  ;;  %v17305_v7 = vld [vmem:[#allocation21_spill] sm:$0xff] }
 0x978   : > { %10437 = vmatpush1.bf16.msra.mxu0 %v10436_v21  ;;  %v10456_v21 = vpack.c.bf16 %v8600_v22, %v8598_v45  ;;  %v11035_v22 = vld [vmem:[%s11314_s22 + $0x50] sm:$0xff] }
 0x979   : > { %10439 = vmatprep.subr.bf16.mxu0 %v10438_v24  ;;  %v10458_v24 = vpack.c.bf16 %v8605_v42, %v8603_v12  ;;  %v6197_v12 = vmul.f32 %v11035_v22, %v14847_v25  ;;  %v11036_v42 = vld [vmem:[%s11314_s22 + $0xd0] sm:$0xff] }
 0x97c   : > { %10441 = vmatpush1.bf16.msra.mxu0 %v10440_v28  ;;  %v5936_v28 = vrot.slane %v11030_v38, 4 }
 0x97d   : > { %10443 = vmatprep.subr.bf16.mxu0 %v10442_v26  ;;  %v11031_v26 = vld [vmem:[#allocation6 + $0x10] sm:$0xf] }
 0x97e   : > { %v5937_v56 = vrot.slane %v11031_v26, 4 }
 0x980   : > { %10445 = vmatpush1.bf16.msra.mxu0 %v10444_v4  ;;  %v5938_v39 = vsel %vm5935_vm14, %v5936_v28, %v5937_v56  ;;  %v16540_v4 = vpop.f32.mrb[112].mxu1  ;;  %v11039_v28 = vld [vmem:[%s11314_s22 + $0x1d8] sm:$0xff] }
 0x981   : > { %10447 = vmatprep.subr.bf16.mxu0 %v10446_v44  ;;  %17290 = vst [vmem:[#allocation12_spill] sm:$0xff] %v16540_v4  ;;  %v6246_v26 = vmul.f32 %v11039_v28, %v14887_v14 }
 0x984   : > { %10449 = vmatpush1.bf16.msra.mxu0 %v10448_v37 }
 0x985   : > { %10451 = vmatprep.subr.bf16.mxu0 %v10450_v8  ;;  %v17301_v8 = vld [vmem:[#allocation16_spill] sm:$0xff] }
 0x986   : > { %v17303_v58 = vpack.c.bf16 %v17301_v8, %v17302_v43  ;;  %v11041_v43 = vld [vmem:[%s11314_s22 + $0x1d0] sm:$0xff] }
 0x988   : > { %10453 = vmatpush1.bf16.msra.mxu0 %v10452_v2  ;;  %v17306_v2 = vld [vmem:[#allocation20_spill] sm:$0xff] }
 0x989   : > { %10455 = vmatprep.subr.bf16.mxu0 %v10454_v60  ;;  %v17307_v60 = vpack.c.bf16 %v17305_v7, %v17306_v2  ;;  %v16622_v2 = vld [vmem:[%s17208_s10 + $0x10] sm:$0xff] }
 0x98c   : > { %10457 = vmatpush1.bf16.msra.mxu0 %v10456_v21  ;;  %v6213_v21 = vmul.f32 %v11036_v42, %v14839_v30 }
 0x98d   : > { %10459 = vmatprep.subr.bf16.mxu0 %v10458_v24 }
 0x990   : > { %10461 = vmatpush1.bf16.msra.mxu0 %v10460_v6  ;;  %v11038_v6 = vld [vmem:[%s11314_s22 + $0x158] sm:$0xff] }
 0x991   : > { %10511 = vmatprep.subr.bf16.mxu0 %v13793_v57  ;;  %v16543_v57 = vpop.f32.mrb[113].mxu1  ;;  %v6230_v38 = vmul.f32 %v11038_v6, %v14869_v52  ;;  %v16638_v6 = vld [vmem:[%s17208_s10 + $0x18] sm:$0xff] }
 0x992   : > { %17291 = vst [vmem:[#allocation11_spill] sm:$0xff] %v16543_v57  ;;  %v11050_v57 = vld [vmem:[%s11314_s22 + $0xf0] sm:$0xff] }
 0x993   : > { %6009 = vmatmul.mubr.f32.vlgmr.msra.gmra.mrb[62].mxu0 %v5938_v39  ;;  %v17311_v39 = vld [vmem:[#allocation19_spill] sm:$0xff] }
 0x994   : > { %10513 = vmatpush1.bf16.msra.mxu0 %v13783_v34  ;;  %6775 = vmatprep.mubr.f32.mxu0 %v17265_v5  ;;  %v16546_v34 = vpop.f32.mrb[114].mxu1 }
 0x995   : > { %10515 = vmatprep.subr.bf16.mxu0 %v13827_v33  ;;  %17292 = vst [vmem:[#allocation28_spill] sm:$0xff] %v16546_v34  ;;  %v16548_v33 = vpop.f32.mrb[115].mxu1 }
 0x996   : > { %17293 = vst [vmem:[#allocation29_spill] sm:$0xff] %v16548_v33  ;;  %v16550_v44 = vpop.f32.mrb[116].mxu1 }
 0x997   : > { %17294 = vst [vmem:[#allocation30_spill] sm:$0xff] %v16550_v44 }
 0x998   : > { %10517 = vmatpush1.bf16.msra.mxu0 %v13819_v63  ;;  %v16553_v63 = vpop.f32.mrb[117].mxu1 }
 0x999   : > { %10519 = vmatprep.subr.bf16.mxu0 %v15422_v11  ;;  %17295 = vst [vmem:[#allocation31_spill] sm:$0xff] %v16553_v63  ;;  %v17296_v11 = vld [vmem:[#allocation17_spill] sm:$0xff]  ;;  %v17330_v63 = vld [vmem:[#allocation23_spill] sm:$0xff] }
 0x99a   : > { %v17297_v49 = vpack.c.bf16 %v13857_v36, %v17296_v11  ;;  %v6214_v36 = vmul.f32 %v11034_v15, %v14839_v30  ;;  %v17312_v11 = vld [vmem:[#allocation18_spill] sm:$0xff] }
 0x99c   : > { %10521 = vmatpush1.bf16.msra.mxu0 %v15438_v54  ;;  %v16558_v54 = vpop.f32.mrb[102].mxu1 }
 0x99d   : > { %10523 = vmatprep.subr.bf16.mxu0 %v15451_v3  ;;  %17298 = vst [vmem:[#allocation17_spill] sm:$0xff] %v16558_v54  ;;  %v16560_v32 = vpop.f32.mrb[103].mxu1  ;;  %v16565_v3 = vld [vmem:[%s17208_s10] sm:$0xff] }
 0x99e   : > { %17299 = vst [vmem:[#allocation32_spill] sm:$0xff] %v16560_v32  ;;  %v16573_v37 = vpop.f32.mrb[104].mxu1 }
 0x99f   : > { %17300 = vst [vmem:[#allocation33_spill] sm:$0xff] %v16573_v37  ;;  %v16579_v20 = vpop.f32.mrb[105].mxu1  ;;  %v11049_v37 = vld [vmem:[%s11314_s22 + $0x70] sm:$0xff] }
 0x9a0   : > { %10525 = vmatpush1.bf16.msra.mxu0 %v15463_v9  ;;  %v11033_v9 = vld [vmem:[%s11314_s22 + $0x58] sm:$0xff]  ;;  %17304 = vst [vmem:[#allocation16_spill] sm:$0xff] %v16579_v20  ;;  %v16584_v45 = vpop.f32.mrb[106].mxu1  ;;  %v6201_v54 = vmul.f32 %v11049_v37, %v14847_v25  ;;  %v11053_v37 = vld [vmem:[%s11314_s22 + $0x170] sm:$0xff] }
 0x9a1   : > { %10543 = vmatprep.subr.bf16.mxu0 %v17297_v49  ;;  %v6198_v31 = vmul.f32 %v11033_v9, %v14847_v25  ;;  %17308 = vst [vmem:[#allocation15_spill] sm:$0xff] %v16584_v45  ;;  %v16590_v24 = vpop.f32.mrb[107].mxu1  ;;  %v17313_v49 = vpack.c.bf16 %v17311_v39, %v17312_v11  ;;  %v17320_v39 = vld [vmem:[#allocation24_spill] sm:$0xff]  ;;  %v11048_v20 = vld [vmem:[%s11314_s22 + $0xf8] sm:$0xff]  ;;  %v17333_v45 = vpack.c.bf16 %v13977_v27, %v13974_v55  ;;  %v17334_v55 = vld [vmem:[#allocation27_spill] sm:$0xff] }
 0x9a2   : > { %17309 = vst [vmem:[#allocation21_spill] sm:$0xff] %v16590_v24  ;;  %v16603_v56 = vpop.f32.mrb[108].mxu1  ;;  %v6218_v32 = vmul.f32 %v11048_v20, %v14839_v30  ;;  %v17335_v27 = vld [vmem:[#allocation26_spill] sm:$0xff] }
 0x9a3   : > { %8644 = vmatmul.mubr.msk.f32.vlgmr.msra.gmra.mrb[64].mxu0 %vm6263_vm13, %v16565_v3  ;;  %v10550_v16 = vpack.c.bf16 %v6214_v36, %v6198_v31  ;;  %17310 = vst [vmem:[#allocation20_spill] sm:$0xff] %v16603_v56  ;;  %v16609_v9 = vpop.f32.mrb[109].mxu1  ;;  %v10552_v31 = vpack.c.bf16 %v6213_v21, %v6197_v12  ;;  %v11040_v36 = vld [vmem:[%s11314_s22 + $0x150] sm:$0xff]  ;;  %v17331_v56 = vld [vmem:[#allocation22_spill] sm:$0xff] }
 0x9a4   : > { %10545 = vmatpush1.bf16.msra.mxu0 %v17303_v58  ;;  %6781 = vmatprep.mubr.f32.mxu0 %v17265_v5  ;;  %17314 = vst [vmem:[#allocation19_spill] sm:$0xff] %v16609_v9  ;;  %v16611_v15 = vpop.f32.mrb[126].mxu1  ;;  %v6229_v8 = vmul.f32 %v11040_v36, %v14869_v52  ;;  %v6245_v58 = vmul.f32 %v11041_v43, %v14887_v14  ;;  %v16657_v36 = vld [vmem:[%s17208_s10 + $0x20] sm:$0xff]  ;;  %v11047_v9 = vld [vmem:[%s11314_s22 + $0x78] sm:$0xff] }
 0x9a5   : > { %10547 = vmatprep.subr.bf16.mxu0 %v17307_v60  ;;  %v16617_v7 = vpop.f32.mrb[127].mxu1  ;;  %v10554_v60 = vpack.c.bf16 %v6246_v26, %v6230_v38  ;;  %v17319_v26 = vld [vmem:[#allocation25_spill] sm:$0xff]  ;;  %v6202_v24 = vmul.f32 %v11047_v9, %v14847_v25  ;;  %v17332_v33 = vpack.c.bf16 %v17330_v63, %v17331_v56  ;;  %v6217_v9 = vmul.f32 %v11050_v57, %v14839_v30  ;;  %v11054_v57 = vld [vmem:[%s11314_s22 + $0x1f0] sm:$0xff] }
 0x9a6   : > { %17315 = vst [vmem:[#allocation18_spill] sm:$0xff] %v16617_v7  ;;  %v16626_v22 = vpop.f32.mrb[128].mxu1  ;;  %v10556_v21 = vpack.c.bf16 %v6245_v58, %v6229_v8  ;;  %v17321_v11 = vpack.c.bf16 %v17319_v26, %v17320_v39  ;;  %v11051_v63 = vld [vmem:[%s11314_s22 + $0x178] sm:$0xff]  ;;  %v6233_v30 = vmul.f32 %v11053_v37, %v14869_v52 }
 0x9a7   : > { %8645 = vmatmul.mubr.msk.f32.gmra.mrb[66].mxu0 %vm6263_vm13, %v16595_v18  ;;  %v16629_v12 = vpop.f32.mrb[129].mxu1  ;;  %v10582_v20 = vpack.c.bf16 %v6218_v32, %v6202_v24  ;;  %v11052_v56 = vld [vmem:[%s11314_s22 + $0x1f8] sm:$0xff]  ;;  %v10584_v25 = vpack.c.bf16 %v6217_v9, %v6201_v54  ;;  %v6249_v32 = vmul.f32 %v11054_v57, %v14887_v14  ;;  %v11058_v54 = vld [vmem:[%s17208_s10 + $0x50] sm:$0xff] }
 0x9a8   : > { %10549 = vmatpush1.bf16.msra.mxu0 %v17313_v49  ;;  %6787 = vmatprep.mubr.f32.mxu0 %v17265_v5  ;;  %17316 = vst [vmem:[#allocation34_spill] sm:$0xff] %v16629_v12  ;;  %v16631_v42 = vpop.f32.mrb[130].mxu1  ;;  %v6250_v29 = vmul.f32 %v11052_v56, %v14887_v14  ;;  %v11056_v14 = vld [vmem:[%s17208_s10 + $0x40] sm:$0xff]  ;;  %v11059_v9 = vld [vmem:[%s17208_s10 + $0x58] sm:$0xff] }
 0x9a9   : > { %10551 = vmatprep.subr.bf16.mxu0 %v10550_v16  ;;  %v16633_v16 = vpop.f32.mrb[131].mxu1 }
 0x9aa   : > { %17317 = vst [vmem:[#allocation35_spill] sm:$0xff] %v16633_v16  ;;  %v16642_v38 = vpop.f32.mrb[132].mxu1 }
 0x9ab   : > { %8646 = vmatmul.mubr.msk.f32.gmra.mrb[68].mxu0 %vm6263_vm13, %v16622_v2  ;;  %v16645_v28 = vpop.f32.mrb[133].mxu1 }
 0x9ac   : > { %10553 = vmatpush1.bf16.msra.mxu0 %v10552_v31  ;;  %6793 = vmatprep.mubr.f32.mxu0 %v17265_v5  ;;  %17318 = vst [vmem:[#allocation36_spill] sm:$0xff] %v16645_v28  ;;  %v16650_v49 = vpop.f32.mrb[118].mxu1 }
 0x9ad   : > { %10555 = vmatprep.subr.bf16.mxu0 %v10554_v60  ;;  %17322 = vst [vmem:[#allocation25_spill] sm:$0xff] %v16650_v49  ;;  %v16652_v31 = vpop.f32.mrb[119].mxu1 }
 0x9ae   : > { %17323 = vst [vmem:[#allocation24_spill] sm:$0xff] %v16652_v31  ;;  %v16661_v8 = vpop.f32.mrb[120].mxu1 }
 0x9af   : > { %8647 = vmatmul.mubr.msk.f32.gmra.mrb[70].mxu0 %vm6263_vm13, %v16638_v6  ;;  %17324 = vst [vmem:[#allocation37_spill] sm:$0xff] %v16661_v8  ;;  %v16664_v43 = vpop.f32.mrb[121].mxu1 }
 0x9b0   : > { %10557 = vmatpush1.bf16.msra.mxu0 %v10556_v21  ;;  %6799 = vmatprep.mubr.f32.mxu0 %v17265_v5  ;;  %17325 = vst [vmem:[#allocation38_spill] sm:$0xff] %v16664_v43  ;;  %v16666_v58 = vpop.f32.mrb[122].mxu1  ;;  %v16673_v21 = vld [vmem:[%s17208_s10 + $0x28] sm:$0xff] }
 0x9b1   : > { %10575 = vmatprep.subr.bf16.mxu0 %v17321_v11  ;;  %17326 = vst [vmem:[#allocation39_spill] sm:$0xff] %v16666_v58  ;;  %v16668_v60 = vpop.f32.mrb[123].mxu1  ;;  %v16685_v11 = vld [vmem:[%s17208_s10 + $0x30] sm:$0xff]  ;;  %v17352_v58 = vld [vmem:[#allocation9_spill] sm:$0xff] }
 0x9b2   : > { %17327 = vst [vmem:[#allocation40_spill] sm:$0xff] %v16668_v60  ;;  %v16677_v26 = vpop.f32.mrb[124].mxu1 }
 0x9b3   : > { %8648 = vmatmul.mubr.msk.f32.gmra.mrb[72].mxu0 %vm6263_vm13, %v16657_v36  ;;  %17328 = vst [vmem:[#allocation41_spill] sm:$0xff] %v16677_v26  ;;  %v16680_v39 = vpop.f32.mrb[125].mxu1 }
 0x9b4   : > { %6805 = vmatprep.mubr.f32.mxu0 %v17265_v5  ;;  %17329 = vst [vmem:[#allocation42_spill] sm:$0xff] %v16680_v39 }
 0x9b7   : > { %8649 = vmatmul.mubr.msk.f32.gmra.mrb[74].mxu0 %vm6263_vm13, %v16673_v21 }
 0x9b8   : > { %6811 = vmatprep.mubr.f32.mxu0 %v17265_v5 }
 0x9bb   : > { %8650 = vmatmul.mubr.msk.f32.gmra.mrb[76].mxu0 %vm6263_vm13, %v16685_v11 }
 0x9bc   : > { %7049 = vmatprep.mubr.f32.mxu0 %v17265_v5 }
 0x9bf   : > { %8668 = vmatmul.mubr.msk.f32.vlgmr.msra.gmra.mrb[78].mxu0 %vm6263_vm13, %v16565_v3 }
 0x9c0   : > { %10577 = vmatpush1.bf16.msra.mxu0 %v17332_v33  ;;  %7055 = vmatprep.mubr.f32.mxu0 %v17265_v5  ;;  %v6234_v33 = vmul.f32 %v11051_v63, %v14869_v52  ;;  %v10588_v63 = vpack.c.bf16 %v6249_v32, %v6233_v30  ;;  %v11055_v52 = vld [vmem:[%s17208_s10 + $0x38] sm:$0xff] }
 0x9c1   : > { %10579 = vmatprep.subr.bf16.mxu0 %v17333_v45  ;;  %v17336_v45 = vpack.c.bf16 %v17334_v55, %v17335_v27 }
 0x9c2   : > { %v10586_v24 = vpack.c.bf16 %v6250_v29, %v6234_v33  ;;  %v11057_v29 = vld [vmem:[%s17208_s10 + $0x48] sm:$0xff] }
 0x9c3   : > { %8669 = vmatmul.mubr.msk.f32.gmra.mrb[80].mxu0 %vm6263_vm13, %v16595_v18 }
 0x9c4   : > { %10581 = vmatpush1.bf16.msra.mxu0 %v17336_v45  ;;  %7061 = vmatprep.mubr.f32.mxu0 %v17265_v5 }
 0x9c5   : > { %10583 = vmatprep.subr.bf16.mxu0 %v10582_v20  ;;  %v16767_v20 = vpop.f32.mrb[134].mxu1 }
 0x9c6   : > { %v16769_v33 = vpop.f32.mrb[135].mxu1 }
 0x9c7   : > { %8670 = vmatmul.mubr.msk.f32.gmra.mrb[82].mxu0 %vm6263_vm13, %v16622_v2  ;;  %v16773_v56 = vpop.f32.mrb[136].mxu1 }
 0x9c8   : > { %10585 = vmatpush1.bf16.msra.mxu0 %v10584_v25  ;;  %7067 = vmatprep.mubr.f32.mxu0 %v17265_v5  ;;  %v16776_v55 = vpop.f32.mrb[137].mxu1 }
 0x9c9   : > { %10587 = vmatprep.subr.bf16.mxu0 %v10586_v24 }
 0x9cb   : > { %8671 = vmatmul.mubr.msk.f32.gmra.mrb[84].mxu0 %vm6263_vm13, %v16638_v6 }
 0x9cc   : > { %10589 = vmatpush1.bf16.msra.mxu0 %v10588_v63  ;;  %7073 = vmatprep.mubr.f32.mxu0 %v17265_v5 }
 0x9cf   : > { %8672 = vmatmul.mubr.msk.f32.gmra.mrb[86].mxu0 %vm6263_vm13, %v16657_v36 }
 0x9d0   : > { %7079 = vmatprep.mubr.f32.mxu0 %v17265_v5 }
 0x9d3   : > { %8673 = vmatmul.mubr.msk.f32.gmra.mrb[88].mxu0 %vm6263_vm13, %v16673_v21 }
 0x9d4   : > { %7085 = vmatprep.mubr.f32.mxu0 %v17265_v5 }
 0x9d7   : > { %8674 = vmatmul.mubr.msk.f32.gmra.mrb[90].mxu0 %vm6263_vm13, %v16685_v11 }
 0x9d8   : > { %7091 = vmatprep.mubr.f32.mxu0 %v17265_v5 }
 0x9db   : > { %8675 = vmatmul.mubr.msk.f32.gmra.mrb[92].mxu0 %vm6263_vm13, %v11055_v52 }
 0x9dc   : > { %7097 = vmatprep.mubr.f32.mxu0 %v17265_v5 }
 0x9df   : > { %8676 = vmatmul.mubr.msk.f32.gmra.mrb[78].mxu0 %vm6263_vm13, %v11056_v14 }
 0x9e0   : > { %7103 = vmatprep.mubr.f32.mxu0 %v17265_v5 }
 0x9e3   : > { %8677 = vmatmul.mubr.msk.f32.gmra.mrb[80].mxu0 %vm6263_vm13, %v11057_v29 }
 0x9e4   : > { %7109 = vmatprep.mubr.f32.mxu0 %v17265_v5 }
 0x9e7   : > { %8678 = vmatmul.mubr.msk.f32.gmra.mrb[82].mxu0 %vm6263_vm13, %v11058_v54 }
 0x9e8   : > { %7115 = vmatprep.mubr.f32.mxu0 %v17265_v5 }
 0x9eb   : > { %8679 = vmatmul.mubr.msk.f32.gmra.mrb[84].mxu0 %vm6263_vm13, %v11059_v9 }
 0x9ec   : > { %7323 = vmatprep.mubr.f32.mxu0 %v17265_v5 }
 0x9ef   : > { %8692 = vmatmul.mubr.msk.f32.vlgmr.msra.gmra.mrb[94].mxu0 %vm6263_vm13, %v16565_v3  ;;  %v16778_v3 = vpop.f32.mrb[138].mxu1 }
 0x9f0   : > { %7329 = vmatprep.mubr.f32.mxu0 %v17265_v5  ;;  %v16780_v27 = vpop.f32.mrb[139].mxu1 }
 0x9f3   : > { %8693 = vmatmul.mubr.msk.f32.gmra.mrb[96].mxu0 %vm6263_vm13, %v16595_v18  ;;  %v16784_v18 = vpop.f32.mrb[140].mxu1 }
 0x9f4   : > { %7335 = vmatprep.mubr.f32.mxu0 %v17265_v5  ;;  %v16787_v45 = vpop.f32.mrb[141].mxu1 }
 0x9f7   : > { %8694 = vmatmul.mubr.msk.f32.gmra.mrb[98].mxu0 %vm6263_vm13, %v16622_v2  ;;  %v16789_v2 = vpop.f32.mrb[142].mxu1 }
 0x9f8   : > { %7341 = vmatprep.mubr.f32.mxu0 %v17265_v5  ;;  %v16791_v25 = vpop.f32.mrb[143].mxu1 }
 0x9f9   : > { %v16795_v37 = vpop.f32.mrb[152].mxu1 }
 0x9fa   : > { %v16798_v30 = vpop.f32.mrb[153].mxu1 }
 0x9fb   : > { %8695 = vmatmul.mubr.msk.f32.gmra.mrb[100].mxu0 %vm6263_vm13, %v16638_v6  ;;  %v16800_v6 = vpop.f32.mrb[154].mxu1 }
 0x9fc   : > { %7347 = vmatprep.mubr.f32.mxu0 %v17265_v5  ;;  %v16802_v57 = vpop.f32.mrb[155].mxu1 }
 0x9fd   : > { %v16806_v32 = vpop.f32.mrb[156].mxu1 }
 0x9fe   : > { %v16809_v24 = vpop.f32.mrb[157].mxu1 }
 0x9ff   : > { %8696 = vmatmul.mubr.msk.f32.gmra.mrb[102].mxu0 %vm6263_vm13, %v16657_v36  ;;  %v16811_v36 = vpop.f32.mrb[158].mxu1 }
 0xa00   : > { %7353 = vmatprep.mubr.f32.mxu0 %v17265_v5  ;;  %v16815_v63 = vpop.f32.mrb[159].mxu1 }
 0xa01   : > { %v16818_v44 = vpop.f32.mrb[144].mxu1 }
 0xa02   : > { %v16820_v34 = vpop.f32.mrb[145].mxu1 }
 0xa03   : > { %8697 = vmatmul.mubr.msk.f32.gmra.mrb[104].mxu0 %vm6263_vm13, %v16673_v21  ;;  %v16822_v21 = vpop.f32.mrb[146].mxu1 }
 0xa04   : > { %7359 = vmatprep.mubr.f32.mxu0 %v17265_v5  ;;  %v16825_v4 = vpop.f32.mrb[147].mxu1 }
 0xa05   : > { %v16828_v47 = vpop.f32.mrb[148].mxu1 }
 0xa06   : > { %v16830_v39 = vpop.f32.mrb[149].mxu1 }
 0xa07   : > { %8698 = vmatmul.mubr.msk.f32.gmra.mrb[106].mxu0 %vm6263_vm13, %v16685_v11  ;;  %v16832_v11 = vpop.f32.mrb[150].mxu1 }
 0xa08   : > { %7365 = vmatprep.mubr.f32.mxu0 %v17265_v5  ;;  %v16835_v60 = vpop.f32.mrb[151].mxu1 }
 0xa09   : > { %v16839_v43 = vpop.f32.mrb[168].mxu1 }
 0xa0b   : > { %8699 = vmatmul.mubr.msk.f32.gmra.mrb[108].mxu0 %vm6263_vm13, %v11055_v52  ;;  %v16842_v52 = vpop.f32.mrb[169].mxu1 }
 0xa0c   : > { %7371 = vmatprep.mubr.f32.mxu0 %v17265_v5  ;;  %17337 = vst [vmem:[#allocation23_spill] sm:$0xff] %v16842_v52  ;;  %v16846_v31 = vpop.f32.mrb[170].mxu1 }
 0xa0d   : > { %17338 = vst [vmem:[#allocation22_spill] sm:$0xff] %v16846_v31 }
 0xa0f   : > { %8700 = vmatmul.mubr.msk.f32.gmra.mrb[94].mxu0 %vm6263_vm13, %v11056_v14  ;;  %v16849_v14 = vpop.f32.mrb[171].mxu1 }
 0xa10   : > { %7377 = vmatprep.mubr.f32.mxu0 %v17265_v5  ;;  %17339 = vst [vmem:[#allocation27_spill] sm:$0xff] %v16849_v14  ;;  %v16851_v28 = vpop.f32.mrb[172].mxu1 }
 0xa11   : > { %17340 = vst [vmem:[#allocation26_spill] sm:$0xff] %v16851_v28  ;;  %v16853_v16 = vpop.f32.mrb[173].mxu1 }
 0xa12   : > { %17341 = vst [vmem:[#allocation43_spill] sm:$0xff] %v16853_v16 }
 0xa13   : > { %8701 = vmatmul.mubr.msk.f32.gmra.mrb[96].mxu0 %vm6263_vm13, %v11057_v29  ;;  %v16855_v29 = vpop.f32.mrb[174].mxu1 }
 0xa14   : > { %7383 = vmatprep.mubr.f32.mxu0 %v17265_v5  ;;  %17342 = vst [vmem:[#allocation44_spill] sm:$0xff] %v16855_v29  ;;  %v16857_v12 = vpop.f32.mrb[175].mxu1 }
 0xa15   : > { %17343 = vst [vmem:[#allocation45_spill] sm:$0xff] %v16857_v12  ;;  %v16859_v7 = vpop.f32.mrb[160].mxu1 }
 0xa16   : > { %17344 = vst [vmem:[#allocation46_spill] sm:$0xff] %v16859_v7  ;;  %v16861_v52 = vpop.f32.mrb[161].mxu1 }
 0xa17   : > { %8702 = vmatmul.mubr.msk.f32.gmra.mrb[98].mxu0 %vm6263_vm13, %v11058_v54  ;;  %17345 = vst [vmem:[#allocation47_spill] sm:$0xff] %v16861_v52  ;;  %v16863_v54 = vpop.f32.mrb[162].mxu1 }
 0xa18   : > { %7389 = vmatprep.mubr.f32.mxu0 %v17265_v5  ;;  %17346 = vst [vmem:[#allocation48_spill] sm:$0xff] %v16863_v54  ;;  %v16865_v5 = vpop.f32.mrb[163].mxu1 }
 0xa19   : > { %17347 = vst [vmem:[#allocation49_spill] sm:$0xff] %v16865_v5  ;;  %v16867_v31 = vpop.f32.mrb[164].mxu1 }
 0xa1a   : > { %17348 = vst [vmem:[#allocation50_spill] sm:$0xff] %v16867_v31 }
 0xa1b   : > { %8703 = vmatmul.mubr.msk.f32.gmra.mrb[100].mxu0 %vm6263_vm13, %v11059_v9  ;;  %v16869_v9 = vpop.f32.mrb[165].mxu1 }
 0xa1c   : > { %17349 = vst [vmem:[#allocation51_spill] sm:$0xff] %v16869_v9  ;;  %v16871_v14 = vpop.f32.mrb[166].mxu1 }
 0xa1d   : > { %17350 = vst [vmem:[#allocation52_spill] sm:$0xff] %v16871_v14  ;;  %v16873_v28 = vpop.f32.mrb[167].mxu1 }
 0xa1e   : > { %17351 = vst [vmem:[#allocation53_spill] sm:$0xff] %v16873_v28 }
 0xa66   : > { %v6010_v16 = vpop.f32.mrb[62].mxu0 }
 0xa67   : > { %v6019_v29 = vadd.f32 %v15703_v61, %v6010_v16  ;;  %v6012_v12 = vpop.f32.mrb[63].mxu0 }
 0xa68   : > { %v6020_v7 = vadd.f32 %v15706_v13, %v6012_v12 }
 0xa6a   : > { %v6023_v26 = vcombine.low %v6019_v29, %v6020_v7  ;;  %v6056_v52 = vcombine.high %v6019_v29, %v6020_v7 }
 0xa6c   : > { %v6030_v54 = vrot.slane %v6023_v26, %v17352_v58  ;;  %v6063_v5 = vrot.slane %v6056_v52, %v17352_v58 }
 0xa6e   : > { %v6037_v31 = vrot.slane %v6030_v54, %v17352_v58  ;;  %v6040_v8 = vcombine.high %v6030_v54, %v6030_v54  ;;  %v6070_v9 = vrot.slane %v6063_v5, %v17352_v58  ;;  %v6073_v14 = vcombine.high %v6063_v5, %v6063_v5 }
 0xa70   : > { %6039 = vst.msk [vmem:[#allocation7] sm:$0x3] %vm11845_vm0, %v6037_v31  ;;  %v6047_v61 = vrot.slane %v6040_v8, %v17352_v58  ;;  %v6050_v16 = vcombine.high %v6037_v31, %v6037_v31  ;;  %6072 = vst.msk [vmem:[#allocation7 + $0x8] sm:$0x3] %vm11845_vm0, %v6070_v9  ;;  %v6080_v13 = vrot.slane %v6073_v14, %v17352_v58 }
 0xa71   : > { %v6083_v7 = vcombine.high %v6070_v9, %v6070_v9 }
 0xa72   : > { %6049 = vst.msk [vmem:[#allocation7 + $0x2] sm:$0x3] %vm11845_vm0, %v6047_v61  ;;  %6052 = vst.msk [vmem:[#allocation7 + $0x4] sm:$0x3] %vm11845_vm0, %v6050_v16  ;;  %v6053_v12 = vcombine.high %v6047_v61, %v6047_v61  ;;  %v6086_v31 = vcombine.high %v6080_v13, %v6080_v13 }
 0xa73   : > { %6082 = vst.msk [vmem:[#allocation7 + $0xa] sm:$0x3] %vm11845_vm0, %v6080_v13  ;;  %6085 = vst.msk [vmem:[#allocation7 + $0xc] sm:$0x3] %vm11845_vm0, %v6083_v7 }
 0xa74   : > { %6055 = vst.msk [vmem:[#allocation7 + $0x6] sm:$0x3] %vm11845_vm0, %v6053_v12  ;;  %6088 = vst.msk [vmem:[#allocation7 + $0xe] sm:$0x3] %vm11845_vm0, %v6086_v31 }
 0xa76   : > { %v6777_v8 = vpop.f32.mrb[64].mxu0 }
 0xa77   : > { %v16900_v58 = vadd.f32 %v16773_v56, %v6777_v8  ;;  %v6779_v26 = vpop.f32.mrb[65].mxu0 }
 0xa78   : > { %v16903_v52 = vadd.f32 %v16776_v55, %v6779_v26 }
 0xa7a   : > { %17354 = vst [vmem:[#allocation9_spill] sm:$0xff] %v16903_v52  ;;  %v6783_v14 = vpop.f32.mrb[66].mxu0 }
 0xa7b   : > { %v6089_v29 = vld [vmem:[#allocation7] sm:$0xff]  ;;  %v6090_v54 = vld [vmem:[#allocation7 + $0x8] sm:$0xff]  ;;  %v16906_v5 = vadd.f32 %v16778_v3, %v6783_v14  ;;  %v6785_v9 = vpop.f32.mrb[67].mxu0 }
 0xa7c   : > { %v8606_v61 = vmul.f32 -1.442695, %v6089_v29  ;;  %v8607_v16 = vmul.f32 -1.442695, %v6090_v54  ;;  %v16909_v49 = vadd.f32 %v16780_v27, %v6785_v9 }
 0xa7d   : > { %17355 = vst [vmem:[#allocation10_spill] sm:$0xff] %v16906_v5 }
 0xa7e   : > { %17356 = vst [vmem:[#allocation54_spill] sm:$0xff] %v16909_v49  ;;  %10864 = vpow2.f32 %v8606_v61  ;;  %v6789_v13 = vpop.f32.mrb[68].mxu0 }
 0xa7f   : > { %10866 = vpow2.f32 %v8607_v16  ;;  %v16912_v56 = vadd.f32 %v16784_v18, %v6789_v13  ;;  %v6791_v55 = vpop.f32.mrb[69].mxu0 }
 0xa80   : > { %v16915_v7 = vadd.f32 %v16787_v45, %v6791_v55 }
 0xa81   : > { %17357 = vst [vmem:[#allocation55_spill] sm:$0xff] %v16912_v56 }
 0xa82   : > { %17358 = vst [vmem:[#allocation56_spill] sm:$0xff] %v16915_v7  ;;  %v6795_v12 = vpop.f32.mrb[70].mxu0 }
 0xa83   : > { %v16918_v3 = vadd.f32 %v16789_v2, %v6795_v12  ;;  %v6797_v31 = vpop.f32.mrb[71].mxu0 }
 0xa84   : > { %v16921_v8 = vadd.f32 %v16791_v25, %v6797_v31  ;;  %v17363_v25 = vld [vmem:[#allocation8_spill] sm:$0xff] }
 0xa85   : > { %v17236_v16 = vsub.s32 6, %v17363_v25  ;;  %v7400_v55 = vsub.s32 0, %v17363_v25  ;;  %v7404_v12 = vsub.s32 1, %v17363_v25  ;;  %v7416_v31 = vsub.s32 4, %v17363_v25 }
 0xa86   : > { %v16923_v27 = vpop.f32.mrb[72].mxu0  ;;  %v17364_v7 = vsub.s32 7, %v17363_v25 }
 0xa87   : > { %v16925_v26 = vpop.f32.mrb[73].mxu0 }
 0xa88   : > { %v10865_v14 = vpop.eup %10864 }
 0xa89   : > { %v10867_v29 = vpop.eup %10866  ;;  %v6097_v18 = vadd.f32 1.0, %v10865_v14 }
 0xa8a   : > { %v6098_v54 = vadd.f32 1.0, %v10867_v29  ;;  %v16927_v9 = vpop.f32.mrb[74].mxu0 }
 0xa8b   : > { %17359 = vst [vmem:[#allocation57_spill] sm:$0xff] %v16927_v9  ;;  %10868 = vrcp.f32 %v6097_v18  ;;  %v16929_v45 = vpop.f32.mrb[75].mxu0 }
 0xa8c   : > { %17360 = vst [vmem:[#allocation58_spill] sm:$0xff] %v16929_v45  ;;  %10870 = vrcp.f32 %v6098_v54 }
 0xa8e   : > { %v16931_v2 = vpop.f32.mrb[76].mxu0 }
 0xa8f   : > { %17361 = vst [vmem:[#allocation59_spill] sm:$0xff] %v16931_v2  ;;  %v16933_v61 = vpop.f32.mrb[77].mxu0 }
 0xa90   : > { %17362 = vst [vmem:[#allocation60_spill] sm:$0xff] %v16933_v61 }
 0xa95   : > { %v16940_v14 = vpop.eup %10868 }
 0xa96   : > { %v16945_v28 = vpop.eup %10870  ;;  %v16950_v13 = vrot.slane %v16940_v14, %v17236_v16  ;;  %v16955_v56 = vrot.slane %v16940_v14, %v17364_v7  ;;  %v7401_v49 = vrot.slane %v16940_v14, %v7400_v55  ;;  %v7405_v29 = vrot.slane %v16940_v14, %v7404_v12 }
 0xa97   : > { %v7433_v18 = vrot.slane %v16945_v28, %v7400_v55  ;;  %v7437_v54 = vrot.slane %v16945_v28, %v7404_v12  ;;  %v7417_v61 = vrot.slane %v16940_v14, %v7416_v31  ;;  %v16963_v2 = vrot.slane %v16945_v28, %v7416_v31 }
 0xa98   : > { %v7532_v16 = vmul.f32 %v16950_v13, %v16767_v20  ;;  %v7533_v7 = vmul.f32 %v16955_v56, %v16769_v33  ;;  %v7478_v45 = vmul.f32 %v7401_v49, %v16395_v59  ;;  %v7494_v5 = vmul.f32 %v7401_v49, %v16411_v40 }
 0xa99   : > { %v7486_v55 = vmul.f32 %v7433_v18, %v16795_v37  ;;  %v7510_v12 = vmul.f32 %v7401_v49, %v16421_v0  ;;  %v7526_v20 = vmul.f32 %v7401_v49, %v16431_v41  ;;  %v7479_v33 = vmul.f32 %v7405_v29, %v16397_v50 }
 0xa9a   : > { %v10598_v59 = vadd.f32 %v7478_v45, %v16441_v62  ;;  %v10600_v40 = vadd.f32 %v7494_v5, %v16451_v53  ;;  %v7487_v31 = vmul.f32 %v7437_v54, %v16798_v30  ;;  %v7495_v9 = vmul.f32 %v7405_v29, %v16413_v19  ;;  %v17366_v5 = vld [vmem:[#allocation25_spill] sm:$0xff] }
 0xa9b   : > { %v10602_v52 = vadd.f32 %v7510_v12, %v16467_v48  ;;  %v10604_v37 = vadd.f32 %v7526_v20, %v16483_v1  ;;  %v7511_v0 = vmul.f32 %v7405_v29, %v16429_v46  ;;  %v7527_v41 = vmul.f32 %v7405_v29, %v16433_v51  ;;  %v17370_v45 = vld [vmem:[#allocation41_spill] sm:$0xff]  ;;  %v17375_v20 = vld [vmem:[#allocation35_spill] sm:$0xff] }
 0xa9c   : > { %7670 = vst [vmem:[%s16976_s27] sm:$0xff] %v10598_v59  ;;  %7686 = vst [vmem:[%s16976_s27 + $0x80] sm:$0xff] %v10600_v40  ;;  %v10599_v50 = vadd.f32 %v7479_v33, %v16449_v10  ;;  %v10601_v62 = vadd.f32 %v7495_v9, %v16453_v17  ;;  %v7502_v19 = vmul.f32 %v7433_v18, %v16800_v6  ;;  %v17376_v59 = vld [vmem:[#allocation36_spill] sm:$0xff] }
 0xa9d   : > { %v7503_v53 = vmul.f32 %v7437_v54, %v16802_v57  ;;  %7702 = vst [vmem:[%s16976_s27 + $0x100] sm:$0xff] %v10602_v52  ;;  %7718 = vst [vmem:[%s16976_s27 + $0x180] sm:$0xff] %v10604_v37  ;;  %v10603_v48 = vadd.f32 %v7511_v0, %v16469_v23  ;;  %v10605_v46 = vadd.f32 %v7527_v41, %v16485_v35  ;;  %v17378_v0 = vld [vmem:[#allocation22_spill] sm:$0xff] }
 0xa9e   : > { %v7518_v51 = vmul.f32 %v7433_v18, %v16806_v32  ;;  %v7519_v10 = vmul.f32 %v7437_v54, %v16809_v24  ;;  %7671 = vst [vmem:[%s16976_s27 + $0x8] sm:$0xff] %v10599_v50  ;;  %7687 = vst [vmem:[%s16976_s27 + $0x88] sm:$0xff] %v10601_v62  ;;  %v7534_v17 = vmul.f32 %v7433_v18, %v16811_v36  ;;  %v17379_v50 = vld [vmem:[#allocation27_spill] sm:$0xff] }
 0xa9f   : > { %v7535_v1 = vmul.f32 %v7437_v54, %v16815_v63  ;;  %v10638_v30 = vadd.f32 %v7486_v55, %v16818_v44  ;;  %v10639_v23 = vadd.f32 %v7487_v31, %v16820_v34  ;;  %7703 = vst [vmem:[%s16976_s27 + $0x108] sm:$0xff] %v10603_v48  ;;  %7719 = vst [vmem:[%s16976_s27 + $0x188] sm:$0xff] %v10605_v46  ;;  %v17373_v54 = vld [vmem:[#allocation23_spill] sm:$0xff]  ;;  %v17374_v55 = vld [vmem:[#allocation34_spill] sm:$0xff] }
 0xaa0   : > { %v10640_v35 = vadd.f32 %v7502_v19, %v16822_v21  ;;  %v10641_v6 = vadd.f32 %v7503_v53, %v16825_v4  ;;  %v10635_v57 = vadd.f32 %v16918_v3, %v7532_v16  ;;  %v10642_v32 = vadd.f32 %v7518_v51, %v16828_v47  ;;  %v17367_v3 = vld [vmem:[#allocation37_spill] sm:$0xff]  ;;  %v17377_v31 = vld [vmem:[#allocation24_spill] sm:$0xff]  ;;  %v17381_v46 = vld [vmem:[#allocation38_spill] sm:$0xff] }
 0xaa1   : > { %7678 = vst [vmem:[%s16976_s27 + $0x40] sm:$0xff] %v10638_v30  ;;  %7679 = vst [vmem:[%s16976_s27 + $0x48] sm:$0xff] %v10639_v23  ;;  %v10637_v44 = vadd.f32 %v16921_v8, %v7533_v7  ;;  %v10643_v34 = vadd.f32 %v7519_v10, %v16830_v39  ;;  %v10644_v24 = vadd.f32 %v7534_v17, %v16832_v11  ;;  %v17371_v16 = vld [vmem:[#allocation9_spill] sm:$0xff]  ;;  %v17382_v10 = vld [vmem:[#allocation40_spill] sm:$0xff] }
 0xaa2   : > { %v10645_v36 = vadd.f32 %v7535_v1, %v16835_v60  ;;  %7694 = vst [vmem:[%s16976_s27 + $0xc0] sm:$0xff] %v10640_v35  ;;  %7695 = vst [vmem:[%s16976_s27 + $0xc8] sm:$0xff] %v10641_v6  ;;  %v7484_v47 = vmul.f32 %v16950_v13, %v16923_v27  ;;  %v7482_v4 = vmul.f32 %v7417_v61, %v16611_v15  ;;  %v17365_v15 = vsub.s32 5, %v17363_v25  ;;  %v17041_v52 = vpop.f32.mrb[86].mxu0  ;;  %v17380_v19 = vld [vmem:[#allocation57_spill] sm:$0xff]  ;;  %v17383_v1 = vld [vmem:[#allocation42_spill] sm:$0xff] }
 0xaa3   : > { %7724 = vst [vmem:[%s16976_s27 + $0x1b0] sm:$0xff] %v10635_v57  ;;  %7710 = vst [vmem:[%s16976_s27 + $0x140] sm:$0xff] %v10642_v32  ;;  %v7490_v63 = vmul.f32 %v16963_v2, %v16839_v43  ;;  %v7498_v21 = vmul.f32 %v7417_v61, %v16626_v22  ;;  %v7514_v60 = vmul.f32 %v7417_v61, %v16631_v42  ;;  %v17049_v27 = vpop.f32.mrb[87].mxu0  ;;  %v17384_v23 = vld [vmem:[#allocation26_spill] sm:$0xff] }
 0xaa4   : > { %7725 = vst [vmem:[%s16976_s27 + $0x1b8] sm:$0xff] %v10637_v44  ;;  %7711 = vst [vmem:[%s16976_s27 + $0x148] sm:$0xff] %v10643_v34  ;;  %v7530_v39 = vmul.f32 %v7417_v61, %v16642_v38  ;;  %v7485_v11 = vmul.f32 %v16955_v56, %v16925_v26  ;;  %v7421_v43 = vrot.slane %v16940_v14, %v17365_v15  ;;  %v17368_v8 = vmov %v17365_v15  ;;  %v17369_v26 = vld [vmem:[#allocation39_spill] sm:$0xff]  ;;  %v17385_v57 = vld [vmem:[#allocation10_spill] sm:$0xff] }
 0xaa5   : > { %7726 = vst [vmem:[%s16976_s27 + $0x1c0] sm:$0xff] %v10644_v24  ;;  %7727 = vst [vmem:[%s16976_s27 + $0x1c8] sm:$0xff] %v10645_v36  ;;  %v10623_v22 = vadd.f32 %v16900_v58, %v7484_v47  ;;  %v10614_v49 = vadd.f32 %v7482_v4, %v17366_v5  ;;  %v10616_v42 = vadd.f32 %v7498_v21, %v17367_v3  ;;  %v17372_v58 = vld [vmem:[#allocation18_spill] sm:$0xff]  ;;  %v17387_v24 = vld [vmem:[#allocation43_spill] sm:$0xff] }
 0xaa6   : > { %v7453_v38 = vrot.slane %v16945_v28, %v17368_v8  ;;  %v10618_v9 = vadd.f32 %v7514_v60, %v17369_v26  ;;  %v10620_v61 = vadd.f32 %v7530_v39, %v17370_v45  ;;  %v10625_v29 = vadd.f32 %v17371_v16, %v7485_v11  ;;  %v17071_v48 = vpop.f32.mrb[88].mxu0  ;;  %v17386_v44 = vld [vmem:[#allocation58_spill] sm:$0xff]  ;;  %v17388_v47 = vld [vmem:[#allocation44_spill] sm:$0xff]  ;;  %v17389_v21 = vld [vmem:[#allocation45_spill] sm:$0xff] }
 0xaa7   : > { %v7483_v18 = vmul.f32 %v7421_v43, %v17372_v58  ;;  %7676 = vst [vmem:[%s16976_s27 + $0x30] sm:$0xff] %v10623_v22  ;;  %7674 = vst [vmem:[%s16976_s27 + $0x20] sm:$0xff] %v10614_v49  ;;  %v7499_v12 = vmul.f32 %v7421_v43, %v17374_v55  ;;  %v7515_v33 = vmul.f32 %v7421_v43, %v17375_v20  ;;  %v17078_v6 = vpop.f32.mrb[89].mxu0  ;;  %v17390_v39 = vld [vmem:[#allocation59_spill] sm:$0xff]  ;;  %v17391_v15 = vld [vmem:[#allocation46_spill] sm:$0xff] }
 0xaa8   : > { %7690 = vst [vmem:[%s16976_s27 + $0xa0] sm:$0xff] %v10616_v42  ;;  %v7491_v7 = vmul.f32 %v7453_v38, %v17373_v54  ;;  %v7531_v40 = vmul.f32 %v7421_v43, %v17376_v59  ;;  %7706 = vst [vmem:[%s16976_s27 + $0x120] sm:$0xff] %v10618_v9  ;;  %v7506_v41 = vmul.f32 %v16963_v2, %v17378_v0  ;;  %v17392_v22 = vld [vmem:[#allocation60_spill] sm:$0xff]  ;;  %v17393_v49 = vld [vmem:[#allocation54_spill] sm:$0xff] }
 0xaa9   : > { %7722 = vst [vmem:[%s16976_s27 + $0x1a0] sm:$0xff] %v10620_v61  ;;  %7677 = vst [vmem:[%s16976_s27 + $0x38] sm:$0xff] %v10625_v29  ;;  %v10615_v37 = vadd.f32 %v7483_v18, %v17377_v31  ;;  %v7507_v62 = vmul.f32 %v7453_v38, %v17379_v50  ;;  %v7500_v53 = vmul.f32 %v16950_v13, %v17380_v19  ;;  %v17394_v3 = vld [vmem:[#allocation47_spill] sm:$0xff]  ;;  %v17395_v8 = vld [vmem:[#allocation48_spill] sm:$0xff] }
 0xaaa   : > { %v10617_v51 = vadd.f32 %v7499_v12, %v17381_v46  ;;  %v10619_v17 = vadd.f32 %v7515_v33, %v17382_v10  ;;  %v10621_v30 = vadd.f32 %v7531_v40, %v17383_v1  ;;  %v7522_v35 = vmul.f32 %v16963_v2, %v17384_v23  ;;  %v17397_v45 = vld [vmem:[#allocation55_spill] sm:$0xff]  ;;  %v17399_v16 = vld [vmem:[#allocation50_spill] sm:$0xff]  ;;  %v17402_v12 = vld [vmem:[#allocation53_spill] sm:$0xff] }
 0xaab   : > { %7675 = vst [vmem:[%s16976_s27 + $0x28] sm:$0xff] %v10615_v37  ;;  %v10627_v32 = vadd.f32 %v17385_v57, %v7500_v53  ;;  %v7501_v34 = vmul.f32 %v16955_v56, %v17386_v44  ;;  %v7523_v36 = vmul.f32 %v7453_v38, %v17387_v24  ;;  %v7538_v4 = vmul.f32 %v16963_v2, %v17388_v47  ;;  %v17400_v58 = vld [vmem:[#allocation51_spill] sm:$0xff]  ;;  %v17408_v53 = vld [vmem:[#allocation14_spill] sm:$0xff]  ;;  %v17410_v10 = vld [vmem:[#allocation28_spill] sm:$0xff] }
 0xaac   : > { %7691 = vst [vmem:[%s16976_s27 + $0xa8] sm:$0xff] %v10617_v51  ;;  %7707 = vst [vmem:[%s16976_s27 + $0x128] sm:$0xff] %v10619_v17  ;;  %v7539_v60 = vmul.f32 %v7453_v38, %v17389_v21  ;;  %v7516_v11 = vmul.f32 %v16950_v13, %v17390_v39  ;;  %v10654_v43 = vadd.f32 %v7490_v63, %v17391_v15  ;;  %v17396_v38 = vld [vmem:[#allocation49_spill] sm:$0xff]  ;;  %v17101_v13 = vpop.f32.mrb[90].mxu0  ;;  %v17403_v33 = vsub.s32 2, %v17363_v25  ;;  %v17409_v51 = vld [vmem:[#allocation12_spill] sm:$0xff] }
 0xaad   : > { %7723 = vst [vmem:[%s16976_s27 + $0x1a8] sm:$0xff] %v10621_v30  ;;  %v7517_v5 = vmul.f32 %v16955_v56, %v17392_v22  ;;  %7692 = vst [vmem:[%s16976_s27 + $0xb0] sm:$0xff] %v10627_v32  ;;  %v10629_v2 = vadd.f32 %v17393_v49, %v7501_v34  ;;  %v10655_v42 = vadd.f32 %v7491_v7, %v17394_v3  ;;  %v17398_v56 = vld [vmem:[#allocation56_spill] sm:$0xff]  ;;  %v7089_v54 = vpop.f32.mrb[91].mxu0  ;;  %v17404_v40 = vsub.s32 3, %v17363_v25  ;;  %v17411_v30 = vld [vmem:[#allocation30_spill] sm:$0xff] }
 0xaae   : > { %v10656_v26 = vadd.f32 %v7506_v41, %v17395_v8  ;;  %v10657_v9 = vadd.f32 %v7507_v62, %v17396_v38  ;;  %v10631_v63 = vadd.f32 %v17397_v45, %v7516_v11  ;;  %7682 = vst [vmem:[%s16976_s27 + $0x60] sm:$0xff] %v10654_v43  ;;  %v10658_v29 = vadd.f32 %v7522_v35, %v17399_v16  ;;  %v17401_v7 = vld [vmem:[#allocation52_spill] sm:$0xff]  ;;  %v7093_v1 = vpop.f32.mrb[92].mxu0  ;;  %v17413_v32 = vld [vmem:[#allocation13_spill] sm:$0xff]  ;;  %v17414_v34 = vld [vmem:[#allocation11_spill] sm:$0xff] }
 0xaaf   : > { %v10633_v61 = vadd.f32 %v17398_v56, %v7517_v5  ;;  %v10659_v18 = vadd.f32 %v7523_v36, %v17400_v58  ;;  %7693 = vst [vmem:[%s16976_s27 + $0xb8] sm:$0xff] %v10629_v2  ;;  %7683 = vst [vmem:[%s16976_s27 + $0x68] sm:$0xff] %v10655_v42  ;;  %v10660_v55 = vadd.f32 %v7538_v4, %v17401_v7  ;;  %v17405_v37 = vsub.s32 6, %v17363_v25  ;;  %v7095_v36 = vpop.f32.mrb[93].mxu0  ;;  %v17415_v47 = vld [vmem:[#allocation17_spill] sm:$0xff]  ;;  %v17417_v39 = vld [vmem:[#allocation15_spill] sm:$0xff] }
 0xab0   : > { %7698 = vst [vmem:[%s16976_s27 + $0xe0] sm:$0xff] %v10656_v26  ;;  %7699 = vst [vmem:[%s16976_s27 + $0xe8] sm:$0xff] %v10657_v9  ;;  %v10661_v20 = vadd.f32 %v7539_v60, %v17402_v12  ;;  %v7409_v59 = vrot.slane %v16940_v14, %v17403_v33  ;;  %v7413_v31 = vrot.slane %v16940_v14, %v17404_v40  ;;  %v17406_v41 = vsub.s32 7, %v17363_v25  ;;  %v17416_v21 = vld [vmem:[#allocation33_spill] sm:$0xff]  ;;  %v17419_v25 = vld [vmem:[#allocation20_spill] sm:$0xff] }
 0xab1   : > { %7708 = vst [vmem:[%s16976_s27 + $0x130] sm:$0xff] %v10631_v63  ;;  %7709 = vst [vmem:[%s16976_s27 + $0x138] sm:$0xff] %v10633_v61  ;;  %v17127_v0 = vrot.slane %v16945_v28, %v17405_v37  ;;  %v17407_v62 = vmov %v17403_v33  ;;  %v17412_v35 = vmov %v17404_v40  ;;  %v17418_v15 = vld [vmem:[#allocation29_spill] sm:$0xff]  ;;  %v17420_v5 = vld [vmem:[#allocation31_spill] sm:$0xff] }
 0xab2   : > { %7714 = vst [vmem:[%s16976_s27 + $0x160] sm:$0xff] %v10658_v29  ;;  %7715 = vst [vmem:[%s16976_s27 + $0x168] sm:$0xff] %v10659_v18  ;;  %v17132_v50 = vrot.slane %v16945_v28, %v17406_v41  ;;  %v7441_v19 = vrot.slane %v16945_v28, %v17407_v62  ;;  %v7480_v46 = vmul.f32 %v7409_v59, %v17408_v53  ;;  %v17421_v49 = vld [vmem:[#allocation32_spill] sm:$0xff]  ;;  %v17423_v38 = vld [vmem:[#allocation21_spill] sm:$0xff]  ;;  %v7099_v45 = vpop.f32.mrb[78].mxu0 }
 0xab3   : > { %7730 = vst [vmem:[%s16976_s27 + $0x1e0] sm:$0xff] %v10660_v55  ;;  %7731 = vst [vmem:[%s16976_s27 + $0x1e8] sm:$0xff] %v10661_v20  ;;  %v7496_v14 = vmul.f32 %v7409_v59, %v17409_v51  ;;  %v7512_v17 = vmul.f32 %v7409_v59, %v17410_v10  ;;  %v7528_v23 = vmul.f32 %v7409_v59, %v17411_v30  ;;  %v17422_v3 = vld [vmem:[#allocation16_spill] sm:$0xff]  ;;  %v17424_v63 = vld [vmem:[#allocation19_spill] sm:$0xff]  ;;  %v7101_v61 = vpop.f32.mrb[79].mxu0 }
 0xab4   : > { %v7445_v57 = vrot.slane %v16945_v28, %v17412_v35  ;;  %v7481_v44 = vmul.f32 %v7413_v31, %v17413_v32  ;;  %v7497_v24 = vmul.f32 %v7413_v31, %v17414_v34  ;;  %v10606_v4 = vadd.f32 %v7480_v46, %v17415_v47 }
 0xab5   : > { %v10608_v60 = vadd.f32 %v7496_v14, %v17416_v21  ;;  %v10610_v11 = vadd.f32 %v7512_v17, %v17417_v39  ;;  %v7513_v43 = vmul.f32 %v7413_v31, %v17418_v15  ;;  %v10612_v22 = vadd.f32 %v7528_v23, %v17419_v25 }
 0xab6   : > { %v7529_v28 = vmul.f32 %v7413_v31, %v17420_v5  ;;  %v10607_v2 = vadd.f32 %v7481_v44, %v17421_v49  ;;  %v10609_v42 = vadd.f32 %v7497_v24, %v17422_v3  ;;  %v7488_v8 = vmul.f32 %v7441_v19, %v17041_v52  ;;  %7672 = vst [vmem:[%s16976_s27 + $0x10] sm:$0xff] %v10606_v4 }
 0xab7   : > { %7688 = vst [vmem:[%s16976_s27 + $0x90] sm:$0xff] %v10608_v60  ;;  %7704 = vst [vmem:[%s16976_s27 + $0x110] sm:$0xff] %v10610_v11  ;;  %v7489_v26 = vmul.f32 %v7445_v57, %v17049_v27  ;;  %v10611_v9 = vadd.f32 %v7513_v43, %v17423_v38  ;;  %v7504_v29 = vmul.f32 %v7441_v19, %v17071_v48  ;;  %v7105_v27 = vpop.f32.mrb[80].mxu0 }
 0xab8   : > { %7720 = vst [vmem:[%s16976_s27 + $0x190] sm:$0xff] %v10612_v22  ;;  %v10613_v56 = vadd.f32 %v7529_v28, %v17424_v63  ;;  %7673 = vst [vmem:[%s16976_s27 + $0x18] sm:$0xff] %v10607_v2  ;;  %v10646_v52 = vadd.f32 %v7488_v8, %v7099_v45  ;;  %v7505_v58 = vmul.f32 %v7445_v57, %v17078_v6  ;;  %v7107_v7 = vpop.f32.mrb[81].mxu0 }
 0xab9   : > { %7689 = vst [vmem:[%s16976_s27 + $0x98] sm:$0xff] %v10609_v42  ;;  %7705 = vst [vmem:[%s16976_s27 + $0x118] sm:$0xff] %v10611_v9  ;;  %v10647_v16 = vadd.f32 %v7489_v26, %v7101_v61  ;;  %v10648_v18 = vadd.f32 %v7504_v29, %v7105_v27  ;;  %v7520_v12 = vmul.f32 %v7441_v19, %v17101_v13 }
 0xaba   : > { %7721 = vst [vmem:[%s16976_s27 + $0x198] sm:$0xff] %v10613_v56  ;;  %7680 = vst [vmem:[%s16976_s27 + $0x50] sm:$0xff] %v10646_v52  ;;  %v10649_v55 = vadd.f32 %v7505_v58, %v7107_v7  ;;  %v7521_v20 = vmul.f32 %v7445_v57, %v7089_v54  ;;  %v7111_v33 = vpop.f32.mrb[82].mxu0  ;;  %v7536_v6 = vmul.f32 %v7441_v19, %v7093_v1 }
 0xabb   : > { %7681 = vst [vmem:[%s16976_s27 + $0x58] sm:$0xff] %v10647_v16  ;;  %7696 = vst [vmem:[%s16976_s27 + $0xd0] sm:$0xff] %v10648_v18  ;;  %v10650_v59 = vadd.f32 %v7520_v12, %v7111_v33  ;;  %v7113_v48 = vpop.f32.mrb[83].mxu0  ;;  %v7537_v31 = vmul.f32 %v7445_v57, %v7095_v36 }
 0xabc   : > { %7697 = vst [vmem:[%s16976_s27 + $0xd8] sm:$0xff] %v10649_v55  ;;  %v10651_v40 = vadd.f32 %v7521_v20, %v7113_v48 }
 0xabd   : > { %7712 = vst [vmem:[%s16976_s27 + $0x150] sm:$0xff] %v10650_v59 }
 0xabe   : > { %7713 = vst [vmem:[%s16976_s27 + $0x158] sm:$0xff] %v10651_v40  ;;  %v7117_v37 = vpop.f32.mrb[84].mxu0 }
 0xabf   : > { %v10652_v41 = vadd.f32 %v7536_v6, %v7117_v37  ;;  %v7119_v62 = vpop.f32.mrb[85].mxu0 }
 0xac0   : > { %v10653_v53 = vadd.f32 %v7537_v31, %v7119_v62 }
 0xac1   : > { %7728 = vst [vmem:[%s16976_s27 + $0x1d0] sm:$0xff] %v10652_v41 }
 0xac2   : > { %7729 = vst [vmem:[%s16976_s27 + $0x1d8] sm:$0xff] %v10653_v53 }
 0xad2   : > { %v7349_v13 = vpop.f32.mrb[102].mxu0 }
 0xad3   : > { %v7492_v46 = vmul.f32 %v17127_v0, %v7349_v13  ;;  %v7351_v51 = vpop.f32.mrb[103].mxu0 }
 0xad4   : > { %v7493_v54 = vmul.f32 %v17132_v50, %v7351_v51 }
 0xad6   : > { %v7355_v14 = vpop.f32.mrb[104].mxu0 }
 0xad7   : > { %v7508_v10 = vmul.f32 %v17127_v0, %v7355_v14  ;;  %v7357_v19 = vpop.f32.mrb[105].mxu0 }
 0xad8   : > { %v7509_v17 = vmul.f32 %v17132_v50, %v7357_v19 }
 0xada   : > { %v7361_v1 = vpop.f32.mrb[106].mxu0 }
 0xadb   : > { %v7524_v30 = vmul.f32 %v17127_v0, %v7361_v1  ;;  %v7363_v23 = vpop.f32.mrb[107].mxu0 }
 0xadc   : > { %v7525_v35 = vmul.f32 %v17132_v50, %v7363_v23 }
 0xade   : > { %v7367_v57 = vpop.f32.mrb[108].mxu0 }
 0xadf   : > { %v7540_v32 = vmul.f32 %v17127_v0, %v7367_v57  ;;  %v7369_v44 = vpop.f32.mrb[109].mxu0 }
 0xae0   : > { %v7541_v34 = vmul.f32 %v17132_v50, %v7369_v44 }
 0xae2   : > { %v7373_v24 = vpop.f32.mrb[94].mxu0 }
 0xae3   : > { %v10662_v36 = vadd.f32 %v7492_v46, %v7373_v24  ;;  %v7375_v47 = vpop.f32.mrb[95].mxu0 }
 0xae4   : > { %v10663_v4 = vadd.f32 %v7493_v54, %v7375_v47 }
 0xae5   : > { %7684 = vst [vmem:[%s16976_s27 + $0x70] sm:$0xff] %v10662_v36 }
 0xae6   : > { %7685 = vst [vmem:[%s16976_s27 + $0x78] sm:$0xff] %v10663_v4  ;;  %v7379_v21 = vpop.f32.mrb[96].mxu0 }
 0xae7   : > { %v10664_v60 = vadd.f32 %v7508_v10, %v7379_v21  ;;  %v7381_v39 = vpop.f32.mrb[97].mxu0 }
 0xae8   : > { %v10665_v11 = vadd.f32 %v7509_v17, %v7381_v39 }
 0xae9   : > { %7700 = vst [vmem:[%s16976_s27 + $0xf0] sm:$0xff] %v10664_v60 }
 0xaea   : > { %7701 = vst [vmem:[%s16976_s27 + $0xf8] sm:$0xff] %v10665_v11  ;;  %v7385_v0 = vpop.f32.mrb[98].mxu0 }
 0xaeb   : > { %v10666_v15 = vadd.f32 %v7524_v30, %v7385_v0  ;;  %v7387_v43 = vpop.f32.mrb[99].mxu0 }
 0xaec   : > { %v10667_v50 = vadd.f32 %v7525_v35, %v7387_v43 }
 0xaed   : > { %7716 = vst [vmem:[%s16976_s27 + $0x170] sm:$0xff] %v10666_v15 }
 0xaee   : > { %7717 = vst [vmem:[%s16976_s27 + $0x178] sm:$0xff] %v10667_v50  ;;  %v7391_v25 = vpop.f32.mrb[100].mxu0 }
 0xaef   : > { %v10668_v22 = vadd.f32 %v7540_v32, %v7391_v25  ;;  %v7393_v5 = vpop.f32.mrb[101].mxu0 }
 0xaf0   : > { %v10669_v28 = vadd.f32 %v7541_v34, %v7393_v5 }
 0xaf1   : > { %7732 = vst [vmem:[%s16976_s27 + $0x1f0] sm:$0xff] %v10668_v22 }
 0xaf2   : > { %7733 = vst [vmem:[%s16976_s27 + $0x1f8] sm:$0xff] %v10669_v28 }
 0xaf3 PF: > { %s21_s17 = sadd.s32 1, %s11066_s17  }
 0xaf4   : > { %p18_p4 = scmp.ge.s32.totalorder %s21_s17, 4  }
 0xaf6   :  { %20 = sbr.rel (!%p18_p4) target bundleno = 1 (0x1), region = 125 }

</bundles_post_ra>
